<compile_context>
chip_gen: v7x
topology: tpu7x:2x2x1
jax: 0.10.0
libtpu: 0.0.40
codegen_flags: <defaults>
</compile_context>

<pallas_src>
import functools

import jax
import jax.numpy as jnp
from jax import lax
from jax.experimental import pallas as pl
from jax.experimental.pallas import tpu as pltpu


def _residual_block_kernel(x_ref, w1_ref, w2_ref, out_ref, pad_ref, *,
                           H, W, K, pad, dil, compute_dtype):
    BT = x_ref.shape[0]
    C = x_ref.shape[-1]
    Hp, Wp = H + 2 * pad, W + 2 * pad
    R = BT * H * W

    x = x_ref[...]              # (BT, H, W, C) unpadded input (also the residual)
    w1 = w1_ref[...]            # (K*K*C, C) im2col weight slab, compute dtype
    w2 = w2_ref[...]

    # Zero only the halo ring of the padded scratch; the interior is fully
    # overwritten below (once with x, once with relu(conv1(x))), and the halo
    # stays zero between the two convs so we pay for it once per step.
    if pad > 0:
        zeros_h = jnp.zeros((BT, pad, Wp, C), compute_dtype)
        zeros_w = jnp.zeros((BT, Hp, pad, C), compute_dtype)
        pad_ref[:, 0:pad, :, :] = zeros_h
        pad_ref[:, pad + H:Hp, :, :] = zeros_h
        pad_ref[:, :, 0:pad, :] = zeros_w
        pad_ref[:, :, pad + W:Wp, :] = zeros_w

    def im2col():
        # Build one (R, K*K*C) slab: taps concatenated along the contraction
        # axis so each conv is a single MXU matmul instead of K*K tiny ones.
        # pad_ref is already in the compute dtype -> no per-tap casts.
        taps = []
        for kh in range(K):
            for kw in range(K):
                t = pad_ref[:, kh * dil:kh * dil + H, kw * dil:kw * dil + W, :]
                taps.append(t.reshape(R, C))
        return jnp.concatenate(taps, axis=-1)

    # ---- conv1 + ReLU ----
    pad_ref[:, pad:pad + H, pad:pad + W, :] = x.astype(compute_dtype)
    h1 = jnp.maximum(
        jnp.dot(im2col(), w1, preferred_element_type=jnp.float32), 0.0)

    # ---- conv2 (reuse the same padded scratch; the halo ring stays zero) ----
    pad_ref[:, pad:pad + H, pad:pad + W, :] = (
        h1.reshape(BT, H, W, C).astype(compute_dtype))
    y = jnp.dot(im2col(), w2, preferred_element_type=jnp.float32)

    # ---- residual add (residual taken from the unpadded input block, f32) ----
    out_ref[...] = (x.astype(jnp.float32)
                    + y.reshape(BT, H, W, C)).astype(out_ref.dtype)


def _pick_batch_tile(B, H, W, C, K, pad, budget_bytes=8 * 1024 * 1024):
    """Largest divisor of B whose per-step VMEM footprint fits the budget."""
    Hp, Wp = H + 2 * pad, W + 2 * pad
    per_img = 4 * (2 * H * W * C          # x block (double-buffered)
                   + 2 * H * W * C        # out block (double-buffered)
                   + Hp * Wp * C          # padded scratch (f32 worst case)
                   + H * W * K * K * C    # im2col slab (f32 worst case)
                   + 2 * H * W * C)       # f32 accumulator / temps
    bt = 1
    for d in range(1, B + 1):
        if B % d == 0 and d * per_img <= budget_bytes:
            bt = d
    return bt


def residual_block(x_nchw, w1_oihw, w2_oihw, *, pad=1, dil=1,
                   compute_dtype=jnp.bfloat16, batch_tile=None):
    """x_nchw: (B, C, H, W); weights: (C, C, K, K) OIHW. Returns (B, C, H, W)."""
    B, C, H, W = x_nchw.shape
    Cout, Cin, Kh, Kw = w1_oihw.shape
    K = Kh
    if not (Cout == Cin == C and Kh == Kw and w2_oihw.shape == w1_oihw.shape):
        raise ValueError("weights must be (C, C, K, K) matching input channels")
    if 2 * pad != (K - 1) * dil:
        raise ValueError(
            "kernel supports shape-preserving convs only: need 2*pad == (K-1)*dil")

    bt = batch_tile if batch_tile is not None else _pick_batch_tile(
        B, H, W, C, K, pad)
    if B % bt != 0:
        raise ValueError("batch_tile must divide the batch size")
    Hp, Wp = H + 2 * pad, W + 2 * pad

    # NCHW -> NHWC once (no padded HBM copy, no separate residual input).
    x_nhwc = jnp.transpose(x_nchw, (0, 2, 3, 1))
    # OIHW -> HWIO -> (K*K*Cin, Cout) im2col weight slab, pre-cast to bf16.
    w1 = jnp.transpose(w1_oihw, (2, 3, 1, 0)).reshape(K * K * C, C).astype(compute_dtype)
    w2 = jnp.transpose(w2_oihw, (2, 3, 1, 0)).reshape(K * K * C, C).astype(compute_dtype)

    kernel = functools.partial(_residual_block_kernel, H=H, W=W, K=K,
                               pad=pad, dil=dil, compute_dtype=compute_dtype)

    out_nhwc = pl.pallas_call(
        kernel,
        out_shape=jax.ShapeDtypeStruct((B, H, W, C), x_nchw.dtype),
        grid_spec=pltpu.PrefetchScalarGridSpec(
            num_scalar_prefetch=0,
            grid=(B // bt,),
            in_specs=[
                pl.BlockSpec((bt, H, W, C), lambda b: (b, 0, 0, 0)),
                pl.BlockSpec((K * K * C, C), lambda b: (0, 0)),
                pl.BlockSpec((K * K * C, C), lambda b: (0, 0)),
            ],
            out_specs=pl.BlockSpec((bt, H, W, C), lambda b: (b, 0, 0, 0)),
            scratch_shapes=[pltpu.VMEM((bt, Hp, Wp, C), compute_dtype)],
        ),
        compiler_params=pltpu.CompilerParams(
            dimension_semantics=("parallel",),     # batch tiles are independent
            vmem_limit_bytes=32 * 1024 * 1024),
    )(x_nhwc, w1, w2)

    return jnp.transpose(out_nhwc, (0, 3, 1, 2))   # back to NCHW


def residual_block_ref(x_nchw, w1_oihw, w2_oihw, *, pad=1, dil=1):
    """Pure-JAX fp32 reference (NCHW, matches PyTorch semantics)."""
    dn = lax.conv_dimension_numbers(x_nchw.shape, w1_oihw.shape,
                                    ("NCHW", "OIHW", "NCHW"))
    conv = lambda x, w: lax.conv_general_dilated(
        x, w, window_strides=(1, 1), padding=[(pad, pad), (pad, pad)],
        rhs_dilation=(dil, dil), dimension_numbers=dn)
    h1 = jnp.maximum(conv(x_nchw, w1_oihw), 0.0)
    return x_nchw + conv(h1, w2_oihw)


if __name__ == "__main__":
    B, C, H, W = 2, 4, 16, 16
    key = jax.random.PRNGKey(0)
    kx, k1, k2 = jax.random.split(key, 3)

    x = jax.random.normal(kx, (B, C, H, W), dtype=jnp.float32)
    # deterministic "kaiming-ish" init for the two 3x3 conv weights (no bias)
    w1 = jax.random.normal(k1, (C, C, 3, 3), dtype=jnp.float32) * 0.1
    w2 = jax.random.normal(k2, (C, C, 3, 3), dtype=jnp.float32) * 0.1

    ref = residual_block_ref(x, w1, w2)

    # fp32-compute path: must match the fp32 reference tightly.
    out_f32 = residual_block(x, w1, w2, compute_dtype=jnp.float32)
    jax.block_until_ready(out_f32)
    assert out_f32.shape == (B, C, H, W)
    assert jnp.allclose(out_f32, ref, atol=1e-4, rtol=1e-4)

    # default bf16-MXU path: validated with conv-level tolerance.
    out_bf16 = residual_block(x, w1, w2)
    jax.block_until_ready(out_bf16)
    assert out_bf16.shape == (B, C, H, W)
    assert jnp.allclose(out_bf16, ref, atol=5e-2, rtol=5e-2)

    print("KERNEL_OK")
</pallas_src>

<mosaic_0001>
module attributes {stable_mosaic.version = 11 : i64} {
  func.func @_residual_block_kernel(%arg0: i32, %arg1: memref<2x16x16x4xf32, #tpu.memory_space<vmem>>, %arg2: memref<36x4xf32, #tpu.memory_space<vmem>>, %arg3: memref<36x4xf32, #tpu.memory_space<vmem>>, %arg4: memref<2x16x16x4xf32, #tpu.memory_space<vmem>>, %arg5: memref<2x18x18x4xf32, #tpu.memory_space<vmem>>) attributes {dimension_semantics = [#tpu.dimension_semantics<parallel>], iteration_bounds = array<i64: 1>, scalar_prefetch = 0 : i64, scratch_operands = 1 : i64, tpu.core_type = #tpu.core_type<tc>, window_params = [{transform_indices = @transform_0, window_bounds = array<i64: 2, 16, 16, 4>}, {pipeline_mode = #tpu.pipeline_mode<synchronous>, transform_indices = @transform_1, window_bounds = array<i64: 36, 4>}, {pipeline_mode = #tpu.pipeline_mode<synchronous>, transform_indices = @transform_2, window_bounds = array<i64: 36, 4>}, {transform_indices = @transform_3, window_bounds = array<i64: 2, 16, 16, 4>}]} {
    %c0 = arith.constant 0 : index
    %c0_0 = arith.constant 0 : index
    %c0_1 = arith.constant 0 : index
    %c0_2 = arith.constant 0 : index
    %0 = vector.load %arg1[%c0, %c0_0, %c0_1, %c0_2] : memref<2x16x16x4xf32, #tpu.memory_space<vmem>>, vector<2x16x16x4xf32>
    %c0_3 = arith.constant 0 : index
    %c0_4 = arith.constant 0 : index
    %1 = vector.load %arg2[%c0_3, %c0_4] : memref<36x4xf32, #tpu.memory_space<vmem>>, vector<36x4xf32>
    %c0_5 = arith.constant 0 : index
    %c0_6 = arith.constant 0 : index
    %2 = vector.load %arg3[%c0_5, %c0_6] : memref<36x4xf32, #tpu.memory_space<vmem>>, vector<36x4xf32>
    %cst = arith.constant 0.000000e+00 : f32
    %3 = vector.broadcast %cst : f32 to vector<2x1x18x4xf32>
    %cst_7 = arith.constant 0.000000e+00 : f32
    %4 = vector.broadcast %cst_7 : f32 to vector<2x18x1x4xf32>
    %c0_8 = arith.constant 0 : index
    %c0_9 = arith.constant 0 : index
    %c0_10 = arith.constant 0 : index
    %c0_11 = arith.constant 0 : index
    %5 = vector.load %arg5[%c0_8, %c0_9, %c0_10, %c0_11] : memref<2x18x18x4xf32, #tpu.memory_space<vmem>>, vector<2x1x18x4xf32>
    tpu.vector_store %arg5[%c0_8, %c0_9, %c0_10, %c0_11], %3 {strides = array<i32>} : memref<2x18x18x4xf32, #tpu.memory_space<vmem>>, vector<2x1x18x4xf32>,
    %c0_12 = arith.constant 0 : index
    %c17 = arith.constant 17 : index
    %c0_13 = arith.constant 0 : index
    %c0_14 = arith.constant 0 : index
    %6 = vector.load %arg5[%c0_12, %c17, %c0_13, %c0_14] : memref<2x18x18x4xf32, #tpu.memory_space<vmem>>, vector<2x1x18x4xf32>
    tpu.vector_store %arg5[%c0_12, %c17, %c0_13, %c0_14], %3 {strides = array<i32>} : memref<2x18x18x4xf32, #tpu.memory_space<vmem>>, vector<2x1x18x4xf32>,
    %c0_15 = arith.constant 0 : index
    %c0_16 = arith.constant 0 : index
    %c0_17 = arith.constant 0 : index
    %c0_18 = arith.constant 0 : index
    %7 = vector.load %arg5[%c0_15, %c0_16, %c0_17, %c0_18] : memref<2x18x18x4xf32, #tpu.memory_space<vmem>>, vector<2x18x1x4xf32>
    tpu.vector_store %arg5[%c0_15, %c0_16, %c0_17, %c0_18], %4 {strides = array<i32>} : memref<2x18x18x4xf32, #tpu.memory_space<vmem>>, vector<2x18x1x4xf32>,
    %c0_19 = arith.constant 0 : index
    %c0_20 = arith.constant 0 : index
    %c17_21 = arith.constant 17 : index
    %c0_22 = arith.constant 0 : index
    %8 = vector.load %arg5[%c0_19, %c0_20, %c17_21, %c0_22] : memref<2x18x18x4xf32, #tpu.memory_space<vmem>>, vector<2x18x1x4xf32>
    tpu.vector_store %arg5[%c0_19, %c0_20, %c17_21, %c0_22], %4 {strides = array<i32>} : memref<2x18x18x4xf32, #tpu.memory_space<vmem>>, vector<2x18x1x4xf32>,
    %c0_23 = arith.constant 0 : index
    %c1 = arith.constant 1 : index
    %c1_24 = arith.constant 1 : index
    %c0_25 = arith.constant 0 : index
    %9 = vector.load %arg5[%c0_23, %c1, %c1_24, %c0_25] : memref<2x18x18x4xf32, #tpu.memory_space<vmem>>, vector<2x16x16x4xf32>
    tpu.vector_store %arg5[%c0_23, %c1, %c1_24, %c0_25], %0 {strides = array<i32>} : memref<2x18x18x4xf32, #tpu.memory_space<vmem>>, vector<2x16x16x4xf32>,
    %c0_26 = arith.constant 0 : index
    %c0_27 = arith.constant 0 : index
    %c0_28 = arith.constant 0 : index
    %c0_29 = arith.constant 0 : index
    %10 = vector.load %arg5[%c0_26, %c0_27, %c0_28, %c0_29] : memref<2x18x18x4xf32, #tpu.memory_space<vmem>>, vector<2x16x16x4xf32>
    %11 = vector.shape_cast %10 : vector<2x16x16x4xf32> to vector<512x4xf32>
    %c0_30 = arith.constant 0 : index
    %c0_31 = arith.constant 0 : index
    %c1_32 = arith.constant 1 : index
    %c0_33 = arith.constant 0 : index
    %12 = vector.load %arg5[%c0_30, %c0_31, %c1_32, %c0_33] : memref<2x18x18x4xf32, #tpu.memory_space<vmem>>, vector<2x16x16x4xf32>
    %13 = vector.shape_cast %12 : vector<2x16x16x4xf32> to vector<512x4xf32>
    %c0_34 = arith.constant 0 : index
    %c0_35 = arith.constant 0 : index
    %c2 = arith.constant 2 : index
    %c0_36 = arith.constant 0 : index
    %14 = vector.load %arg5[%c0_34, %c0_35, %c2, %c0_36] : memref<2x18x18x4xf32, #tpu.memory_space<vmem>>, vector<2x16x16x4xf32>
    %15 = vector.shape_cast %14 : vector<2x16x16x4xf32> to vector<512x4xf32>
    %c0_37 = arith.constant 0 : index
    %c1_38 = arith.constant 1 : index
    %c0_39 = arith.constant 0 : index
    %c0_40 = arith.constant 0 : index
    %16 = vector.load %arg5[%c0_37, %c1_38, %c0_39, %c0_40] : memref<2x18x18x4xf32, #tpu.memory_space<vmem>>, vector<2x16x16x4xf32>
    %17 = vector.shape_cast %16 : vector<2x16x16x4xf32> to vector<512x4xf32>
    %c0_41 = arith.constant 0 : index
    %c1_42 = arith.constant 1 : index
    %c1_43 = arith.constant 1 : index
    %c0_44 = arith.constant 0 : index
    %18 = vector.load %arg5[%c0_41, %c1_42, %c1_43, %c0_44] : memref<2x18x18x4xf32, #tpu.memory_space<vmem>>, vector<2x16x16x4xf32>
    %19 = vector.shape_cast %18 : vector<2x16x16x4xf32> to vector<512x4xf32>
    %c0_45 = arith.constant 0 : index
    %c1_46 = arith.constant 1 : index
    %c2_47 = arith.constant 2 : index
    %c0_48 = arith.constant 0 : index
    %20 = vector.load %arg5[%c0_45, %c1_46, %c2_47, %c0_48] : memref<2x18x18x4xf32, #tpu.memory_space<vmem>>, vector<2x16x16x4xf32>
    %21 = vector.shape_cast %20 : vector<2x16x16x4xf32> to vector<512x4xf32>
    %c0_49 = arith.constant 0 : index
    %c2_50 = arith.constant 2 : index
    %c0_51 = arith.constant 0 : index
    %c0_52 = arith.constant 0 : index
    %22 = vector.load %arg5[%c0_49, %c2_50, %c0_51, %c0_52] : memref<2x18x18x4xf32, #tpu.memory_space<vmem>>, vector<2x16x16x4xf32>
    %23 = vector.shape_cast %22 : vector<2x16x16x4xf32> to vector<512x4xf32>
    %c0_53 = arith.constant 0 : index
    %c2_54 = arith.constant 2 : index
    %c1_55 = arith.constant 1 : index
    %c0_56 = arith.constant 0 : index
    %24 = vector.load %arg5[%c0_53, %c2_54, %c1_55, %c0_56] : memref<2x18x18x4xf32, #tpu.memory_space<vmem>>, vector<2x16x16x4xf32>
    %25 = vector.shape_cast %24 : vector<2x16x16x4xf32> to vector<512x4xf32>
    %c0_57 = arith.constant 0 : index
    %c2_58 = arith.constant 2 : index
    %c2_59 = arith.constant 2 : index
    %c0_60 = arith.constant 0 : index
    %26 = vector.load %arg5[%c0_57, %c2_58, %c2_59, %c0_60] : memref<2x18x18x4xf32, #tpu.memory_space<vmem>>, vector<2x16x16x4xf32>
    %27 = vector.shape_cast %26 : vector<2x16x16x4xf32> to vector<512x4xf32>
    %28 = tpu.concatenate %11, %13, %15, %17, %19, %21, %23, %25, %27 in 1 : vector<512x4xf32>, vector<512x4xf32>, vector<512x4xf32>, vector<512x4xf32>, vector<512x4xf32>, vector<512x4xf32>, vector<512x4xf32>, vector<512x4xf32>, vector<512x4xf32> -> vector<512x36xf32>
    %cst_61 = arith.constant dense<0.000000e+00> : vector<512x4xf32>
    %29 = tpu.matmul %28, %1, %cst_61 {dimension_numbers = #tpu.dot_dimension_numbers<[1], [0], [0], [1], [0, 0, 1, 1], [], []>} : vector<512x36xf32>, vector<36x4xf32>, vector<512x4xf32> -> vector<512x4xf32>
    %cst_62 = arith.constant 0.000000e+00 : f32
    %30 = vector.broadcast %cst_62 : f32 to vector<512x4xf32>
    %31 = arith.maximumf %29, %30 : vector<512x4xf32>
    %32 = vector.shape_cast %31 : vector<512x4xf32> to vector<2x16x16x4xf32>
    %c0_63 = arith.constant 0 : index
    %c1_64 = arith.constant 1 : index
    %c1_65 = arith.constant 1 : index
    %c0_66 = arith.constant 0 : index
    %33 = vector.load %arg5[%c0_63, %c1_64, %c1_65, %c0_66] : memref<2x18x18x4xf32, #tpu.memory_space<vmem>>, vector<2x16x16x4xf32>
    tpu.vector_store %arg5[%c0_63, %c1_64, %c1_65, %c0_66], %32 {strides = array<i32>} : memref<2x18x18x4xf32, #tpu.memory_space<vmem>>, vector<2x16x16x4xf32>,
    %c0_67 = arith.constant 0 : index
    %c0_68 = arith.constant 0 : index
    %c0_69 = arith.constant 0 : index
    %c0_70 = arith.constant 0 : index
    %34 = vector.load %arg5[%c0_67, %c0_68, %c0_69, %c0_70] : memref<2x18x18x4xf32, #tpu.memory_space<vmem>>, vector<2x16x16x4xf32>
    %35 = vector.shape_cast %34 : vector<2x16x16x4xf32> to vector<512x4xf32>
    %c0_71 = arith.constant 0 : index
    %c0_72 = arith.constant 0 : index
    %c1_73 = arith.constant 1 : index
    %c0_74 = arith.constant 0 : index
    %36 = vector.load %arg5[%c0_71, %c0_72, %c1_73, %c0_74] : memref<2x18x18x4xf32, #tpu.memory_space<vmem>>, vector<2x16x16x4xf32>
    %37 = vector.shape_cast %36 : vector<2x16x16x4xf32> to vector<512x4xf32>
    %c0_75 = arith.constant 0 : index
    %c0_76 = arith.constant 0 : index
    %c2_77 = arith.constant 2 : index
    %c0_78 = arith.constant 0 : index
    %38 = vector.load %arg5[%c0_75, %c0_76, %c2_77, %c0_78] : memref<2x18x18x4xf32, #tpu.memory_space<vmem>>, vector<2x16x16x4xf32>
    %39 = vector.shape_cast %38 : vector<2x16x16x4xf32> to vector<512x4xf32>
    %c0_79 = arith.constant 0 : index
    %c1_80 = arith.constant 1 : index
    %c0_81 = arith.constant 0 : index
    %c0_82 = arith.constant 0 : index
    %40 = vector.load %arg5[%c0_79, %c1_80, %c0_81, %c0_82] : memref<2x18x18x4xf32, #tpu.memory_space<vmem>>, vector<2x16x16x4xf32>
    %41 = vector.shape_cast %40 : vector<2x16x16x4xf32> to vector<512x4xf32>
    %c0_83 = arith.constant 0 : index
    %c1_84 = arith.constant 1 : index
    %c1_85 = arith.constant 1 : index
    %c0_86 = arith.constant 0 : index
    %42 = vector.load %arg5[%c0_83, %c1_84, %c1_85, %c0_86] : memref<2x18x18x4xf32, #tpu.memory_space<vmem>>, vector<2x16x16x4xf32>
    %43 = vector.shape_cast %42 : vector<2x16x16x4xf32> to vector<512x4xf32>
    %c0_87 = arith.constant 0 : index
    %c1_88 = arith.constant 1 : index
    %c2_89 = arith.constant 2 : index
    %c0_90 = arith.constant 0 : index
    %44 = vector.load %arg5[%c0_87, %c1_88, %c2_89, %c0_90] : memref<2x18x18x4xf32, #tpu.memory_space<vmem>>, vector<2x16x16x4xf32>
    %45 = vector.shape_cast %44 : vector<2x16x16x4xf32> to vector<512x4xf32>
    %c0_91 = arith.constant 0 : index
    %c2_92 = arith.constant 2 : index
    %c0_93 = arith.constant 0 : index
    %c0_94 = arith.constant 0 : index
    %46 = vector.load %arg5[%c0_91, %c2_92, %c0_93, %c0_94] : memref<2x18x18x4xf32, #tpu.memory_space<vmem>>, vector<2x16x16x4xf32>
    %47 = vector.shape_cast %46 : vector<2x16x16x4xf32> to vector<512x4xf32>
    %c0_95 = arith.constant 0 : index
    %c2_96 = arith.constant 2 : index
    %c1_97 = arith.constant 1 : index
    %c0_98 = arith.constant 0 : index
    %48 = vector.load %arg5[%c0_95, %c2_96, %c1_97, %c0_98] : memref<2x18x18x4xf32, #tpu.memory_space<vmem>>, vector<2x16x16x4xf32>
    %49 = vector.shape_cast %48 : vector<2x16x16x4xf32> to vector<512x4xf32>
    %c0_99 = arith.constant 0 : index
    %c2_100 = arith.constant 2 : index
    %c2_101 = arith.constant 2 : index
    %c0_102 = arith.constant 0 : index
    %50 = vector.load %arg5[%c0_99, %c2_100, %c2_101, %c0_102] : memref<2x18x18x4xf32, #tpu.memory_space<vmem>>, vector<2x16x16x4xf32>
    %51 = vector.shape_cast %50 : vector<2x16x16x4xf32> to vector<512x4xf32>
    %52 = tpu.concatenate %35, %37, %39, %41, %43, %45, %47, %49, %51 in 1 : vector<512x4xf32>, vector<512x4xf32>, vector<512x4xf32>, vector<512x4xf32>, vector<512x4xf32>, vector<512x4xf32>, vector<512x4xf32>, vector<512x4xf32>, vector<512x4xf32> -> vector<512x36xf32>
    %cst_103 = arith.constant dense<0.000000e+00> : vector<512x4xf32>
    %53 = tpu.matmul %52, %2, %cst_103 {dimension_numbers = #tpu.dot_dimension_numbers<[1], [0], [0], [1], [0, 0, 1, 1], [], []>} : vector<512x36xf32>, vector<36x4xf32>, vector<512x4xf32> -> vector<512x4xf32>
    %54 = vector.shape_cast %53 : vector<512x4xf32> to vector<2x16x16x4xf32>
    %55 = arith.addf %0, %54 : vector<2x16x16x4xf32>
    %c0_104 = arith.constant 0 : index
    %c0_105 = arith.constant 0 : index
    %c0_106 = arith.constant 0 : index
    %c0_107 = arith.constant 0 : index
    %56 = vector.load %arg4[%c0_104, %c0_105, %c0_106, %c0_107] : memref<2x16x16x4xf32, #tpu.memory_space<vmem>>, vector<2x16x16x4xf32>
    tpu.vector_store %arg4[%c0_104, %c0_105, %c0_106, %c0_107], %55 {strides = array<i32>} : memref<2x16x16x4xf32, #tpu.memory_space<vmem>>, vector<2x16x16x4xf32>,
    return
  }
  func.func @transform_0(%arg0: i32) -> (i32, i32, i32, i32) {
    %c0_i32 = arith.constant 0 : i32
    %c0_i32_0 = arith.constant 0 : i32
    %c0_i32_1 = arith.constant 0 : i32
    %c0_i32_2 = arith.constant 0 : i32
    return %arg0, %c0_i32, %c0_i32_0, %c0_i32_1 : i32, i32, i32, i32
  }
  func.func @transform_1(%arg0: i32) -> (i32, i32) {
    %c0_i32 = arith.constant 0 : i32
    %c0_i32_0 = arith.constant 0 : i32
    %c0_i32_1 = arith.constant 0 : i32
    return %c0_i32, %c0_i32_0 : i32, i32
  }
  func.func @transform_2(%arg0: i32) -> (i32, i32) {
    %c0_i32 = arith.constant 0 : i32
    %c0_i32_0 = arith.constant 0 : i32
    %c0_i32_1 = arith.constant 0 : i32
    return %c0_i32, %c0_i32_0 : i32, i32
  }
  func.func @transform_3(%arg0: i32) -> (i32, i32, i32, i32) {
    %c0_i32 = arith.constant 0 : i32
    %c0_i32_0 = arith.constant 0 : i32
    %c0_i32_1 = arith.constant 0 : i32
    %c0_i32_2 = arith.constant 0 : i32
    return %arg0, %c0_i32, %c0_i32_0, %c0_i32_1 : i32, i32, i32, i32
  }
}

</mosaic_0001>

<bundles_post_ra>
// kernel: tpu_custom_call.1
= control target key start
LH: loop header
LB: loop body
LE: loop exit
PB: predicated region body
PF: predicated region fallthrough
CT: control target
= control target key end

     0   :  { %vm88_vm0 = vcmask 31744   ;;  %vm91_vm1 = vcmask 25600   ;;  %vm103_vm2 = vcmask 24576   ;;  %v8568_v0 = vmov 0.0   ;;  %s8569_s29 = smov 4   ;;  %s8570_s27 = smov 8   ;;  %s14242_s0 = inlined_call_operand.vmem [shape: f32[2,16,16,4], index: 0, kind: input, shape index: {}]   ;;  %s14243_s1 = inlined_call_operand.vmem [shape: f32[36,4], index: 1, kind: input, shape index: {}]   ;;  %s14244_s2 = inlined_call_operand.vmem [shape: f32[36,4], index: 2, kind: input, shape index: {}]   ;;  %s14245_s3 = inlined_call_operand.vmem [shape: f32[2,16,16,4], index: 3, kind: output, shape index: {}]  }
   0x1   :  { %89 = vst.msk [vmem:[#allocation2] sm:$0xff] %vm88_vm0, %v8568_v0  ;;  %90 = vst.msk [vmem:[#allocation2 + $0x8] sm:$0xff] %vm88_vm0, %v8568_v0  ;;  %v8616_v1 = vld [vmem:[%s14242_s0] sm:$0xff]  ;;  %v8625_v2 = vld [vmem:[%s14242_s0 + $0x8] sm:$0xff]  ;;  %s8572_s10 = smov 16   ;;  %s8573_s11 = smov 20  }
   0x2   :  { %93 = vst.msk [vmem:[#allocation2 + $0x1b0] sm:$0xff] %vm88_vm0, %v8568_v0  ;;  %94 = vst.msk [vmem:[#allocation2 + $0x1b8] sm:$0xff] %vm88_vm0, %v8568_v0  ;;  %v8630_v3 = vld [vmem:[%s14242_s0 + $0x10] sm:$0xff]  ;;  %v8769_v4 = vld [vmem:[%s14242_s0 + $0x18] sm:$0xff]  ;;  %s8574_s12 = smov 24   ;;  %s8575_s13 = smov 28  }
   0x3   :  { %97 = vst.msk [vmem:[#allocation2 + $0x198] sm:$0xff] %vm88_vm0, %v8568_v0  ;;  %98 = vst.msk [vmem:[#allocation2 + $0x1a0] sm:$0xff] %vm88_vm0, %v8568_v0  ;;  %v8774_v5 = vld [vmem:[%s14242_s0 + $0x20] sm:$0xff]  ;;  %v8779_v6 = vld [vmem:[%s14242_s0 + $0x28] sm:$0xff]  ;;  %vm3578_vm3 = vcmask 1043456   ;;  %vm2930_vm4 = vcmask 64512  }
   0x4   :  { %100 = vst.msk [vmem:[#allocation2 + $0x348] sm:$0xff] %vm88_vm0, %v8568_v0  ;;  %101 = vst.msk [vmem:[#allocation2 + $0x350] sm:$0xff] %vm88_vm0, %v8568_v0  ;;  %v8806_v7 = vld [vmem:[%s14242_s0 + $0x30] sm:$0xff]  ;;  %v8811_v8 = vld [vmem:[%s14242_s0 + $0x38] sm:$0xff]  ;;  %vm2995_vm5 = vcmask 97280   ;;  %vm3060_vm6 = vcmask 130048  }
   0x5   :  { %14316 = vst [vmem:[#allocation3_spill] sm:$0xff] %v8616_v1  ;;  %92 = vst.msk [vmem:[#allocation2 + $0x10] sm:$0x3] %vm91_vm1, %v8568_v0  ;;  %v8816_v9 = vld [vmem:[%s14242_s0 + $0x40] sm:$0xff]  ;;  %v8827_v10 = vld [vmem:[%s14242_s0 + $0x48] sm:$0xff]  ;;  %vm3125_vm7 = vcmask 162816  }
   0x6   :  { %95 = vst.msk [vmem:[#allocation2 + $0x1c0] sm:$0x3] %vm91_vm1, %v8568_v0  ;;  %99 = vst.msk [vmem:[#allocation2 + $0x1a8] sm:$0x3] %vm91_vm1, %v8568_v0  ;;  %v8832_v11 = vld [vmem:[%s14242_s0 + $0x50] sm:$0xff]  ;;  %v8837_v12 = vld [vmem:[%s14242_s0 + $0x58] sm:$0xff] }
   0x7   :  { %102 = vst.msk [vmem:[#allocation2 + $0x358] sm:$0x3] %vm91_vm1, %v8568_v0  ;;  %14317 = vst [vmem:[#allocation4_spill] sm:$0xff] %v8625_v2  ;;  %v8848_v13 = vld [vmem:[%s14242_s0 + $0x60] sm:$0xff]  ;;  %v8853_v14 = vld [vmem:[%s14242_s0 + $0x68] sm:$0xff]  ;;  %vm3190_vm8 = vcmask 195584  }
   0x8   :  { %14318 = vst [vmem:[#allocation5_spill] sm:$0xff] %v8630_v3  ;;  %105 = vst.msk [vmem:[#allocation2 + $0x18] sm:$0x1] %vm103_vm2, %v8568_v0  ;;  %v8858_v15 = vld [vmem:[%s14242_s0 + $0x70] sm:$0xff]  ;;  %v8869_v16 = vld [vmem:[%s14242_s0 + $0x78] sm:$0xff]  ;;  %vm3255_vm9 = vcmask 228352  }
   0x9   :  { %106 = vst.msk [vmem:[#allocation2 + $0x30] sm:$0x1] %vm103_vm2, %v8568_v0  ;;  %107 = vst.msk [vmem:[#allocation2 + $0x48] sm:$0x1] %vm103_vm2, %v8568_v0  ;;  %v8874_v17 = vld [vmem:[%s14242_s0 + $0x80] sm:$0xff]  ;;  %v8879_v18 = vld [vmem:[%s14242_s0 + $0x88] sm:$0xff] }
   0xa   :  { %108 = vst.msk [vmem:[#allocation2 + $0x60] sm:$0x1] %vm103_vm2, %v8568_v0  ;;  %109 = vst.msk [vmem:[#allocation2 + $0x78] sm:$0x1] %vm103_vm2, %v8568_v0  ;;  %v8890_v19 = vld [vmem:[%s14242_s0 + $0x90] sm:$0xff]  ;;  %v8895_v20 = vld [vmem:[%s14242_s0 + $0x98] sm:$0xff] }
   0xb   :  { %110 = vst.msk [vmem:[#allocation2 + $0x90] sm:$0x1] %vm103_vm2, %v8568_v0  ;;  %111 = vst.msk [vmem:[#allocation2 + $0xa8] sm:$0x1] %vm103_vm2, %v8568_v0  ;;  %v8900_v21 = vld [vmem:[%s14242_s0 + $0xa0] sm:$0xff]  ;;  %v8911_v23 = vld [vmem:[%s14242_s0 + $0xa8] sm:$0xff] }
   0xc   :  { %112 = vst.msk [vmem:[#allocation2 + $0xc0] sm:$0x1] %vm103_vm2, %v8568_v0  ;;  %113 = vst.msk [vmem:[#allocation2 + $0xd8] sm:$0x1] %vm103_vm2, %v8568_v0  ;;  %v305_v22 = vld [vmem:[#allocation2 + $0x1] sm:$0xff]  ;;  %v306_v25 = vld [vmem:[#allocation2 + $0x9] sm:$0xff] }
   0xd   :  { %114 = vst.msk [vmem:[#allocation2 + $0xf0] sm:$0x1] %vm103_vm2, %v8568_v0  ;;  %115 = vst.msk [vmem:[#allocation2 + $0x108] sm:$0x1] %vm103_vm2, %v8568_v0  ;;  %882 = vrot.lane.b32.xlu0 %v305_v22, %s8569_s29  ;;  %v8922_v30 = vld [vmem:[%s14242_s0 + $0xb0] sm:$0xff]  ;;  %v8927_v31 = vld [vmem:[%s14242_s0 + $0xb8] sm:$0xff] }
   0xe   :  { %116 = vst.msk [vmem:[#allocation2 + $0x120] sm:$0x1] %vm103_vm2, %v8568_v0  ;;  %117 = vst.msk [vmem:[#allocation2 + $0x138] sm:$0x1] %vm103_vm2, %v8568_v0  ;;  %v8937_v32 = vld [vmem:[%s14242_s0 + $0xc0] sm:$0xff]  ;;  %v8942_v33 = vld [vmem:[%s14242_s0 + $0xc8] sm:$0xff] }
   0xf   :  { %118 = vst.msk [vmem:[#allocation2 + $0x150] sm:$0x1] %vm103_vm2, %v8568_v0  ;;  %119 = vst.msk [vmem:[#allocation2 + $0x168] sm:$0x1] %vm103_vm2, %v8568_v0  ;;  %v8947_v34 = vld [vmem:[%s14242_s0 + $0xd0] sm:$0xff]  ;;  %v8959_v35 = vld [vmem:[%s14242_s0 + $0xd8] sm:$0xff] }
  0x10   :  { %120 = vst.msk [vmem:[#allocation2 + $0x180] sm:$0x1] %vm103_vm2, %v8568_v0  ;;  %123 = vst.msk [vmem:[#allocation2 + $0x1c8] sm:$0x1] %vm103_vm2, %v8568_v0  ;;  %v8964_v36 = vld [vmem:[%s14242_s0 + $0xe0] sm:$0xff]  ;;  %v8969_v37 = vld [vmem:[%s14242_s0 + $0xe8] sm:$0xff] }
  0x11   :  { %124 = vst.msk [vmem:[#allocation2 + $0x1e0] sm:$0x1] %vm103_vm2, %v8568_v0  ;;  %125 = vst.msk [vmem:[#allocation2 + $0x1f8] sm:$0x1] %vm103_vm2, %v8568_v0  ;;  %884 = vrot.lane.b32.xlu0 %v306_v25, %s8569_s29  ;;  %v8980_v39 = vld [vmem:[%s14242_s0 + $0x100] sm:$0xff]  ;;  %v8987_v41 = vld [vmem:[%s14242_s0 + $0x108] sm:$0xff] }
  0x12   :  { %126 = vst.msk [vmem:[#allocation2 + $0x210] sm:$0x1] %vm103_vm2, %v8568_v0  ;;  %127 = vst.msk [vmem:[#allocation2 + $0x228] sm:$0x1] %vm103_vm2, %v8568_v0  ;;  %v8992_v42 = vld [vmem:[%s14242_s0 + $0x110] sm:$0xff]  ;;  %v8997_v43 = vld [vmem:[%s14242_s0 + $0x118] sm:$0xff] }
  0x13   :  { %128 = vst.msk [vmem:[#allocation2 + $0x240] sm:$0x1] %vm103_vm2, %v8568_v0  ;;  %129 = vst.msk [vmem:[#allocation2 + $0x258] sm:$0x1] %vm103_vm2, %v8568_v0  ;;  %v9009_v45 = vld [vmem:[%s14242_s0 + $0x120] sm:$0xff]  ;;  %v9014_v46 = vld [vmem:[%s14242_s0 + $0x128] sm:$0xff] }
  0x14   :  { %130 = vst.msk [vmem:[#allocation2 + $0x270] sm:$0x1] %vm103_vm2, %v8568_v0  ;;  %131 = vst.msk [vmem:[#allocation2 + $0x288] sm:$0x1] %vm103_vm2, %v8568_v0  ;;  %v9019_v47 = vld [vmem:[%s14242_s0 + $0x130] sm:$0xff]  ;;  %v9031_v48 = vld [vmem:[%s14242_s0 + $0x138] sm:$0xff] }
  0x15   :  { %132 = vst.msk [vmem:[#allocation2 + $0x2a0] sm:$0x1] %vm103_vm2, %v8568_v0  ;;  %133 = vst.msk [vmem:[#allocation2 + $0x2b8] sm:$0x1] %vm103_vm2, %v8568_v0  ;;  %v9036_v49 = vld [vmem:[%s14242_s0 + $0x140] sm:$0xff]  ;;  %v9041_v50 = vld [vmem:[%s14242_s0 + $0x148] sm:$0xff] }
  0x16   :  { %134 = vst.msk [vmem:[#allocation2 + $0x2d0] sm:$0x1] %vm103_vm2, %v8568_v0  ;;  %135 = vst.msk [vmem:[#allocation2 + $0x2e8] sm:$0x1] %vm103_vm2, %v8568_v0  ;;  %v9052_v51 = vld [vmem:[%s14242_s0 + $0x150] sm:$0xff]  ;;  %v9057_v52 = vld [vmem:[%s14242_s0 + $0x158] sm:$0xff] }
  0x17   :  { %136 = vst.msk [vmem:[#allocation2 + $0x300] sm:$0x1] %vm103_vm2, %v8568_v0  ;;  %137 = vst.msk [vmem:[#allocation2 + $0x318] sm:$0x1] %vm103_vm2, %v8568_v0  ;;  %v9062_v53 = vld [vmem:[%s14242_s0 + $0x160] sm:$0xff]  ;;  %v9073_v54 = vld [vmem:[%s14242_s0 + $0x168] sm:$0xff] }
  0x18   :  { %138 = vst.msk [vmem:[#allocation2 + $0x330] sm:$0x1] %vm103_vm2, %v8568_v0  ;;  %141 = vst.msk [vmem:[#allocation2 + $0x29] sm:$0x1] %vm103_vm2, %v8568_v0  ;;  %v9082_v57 = vld [vmem:[%s14242_s0 + $0x170] sm:$0xff]  ;;  %v9087_v58 = vld [vmem:[%s14242_s0 + $0x178] sm:$0xff] }
  0x19   :  { %142 = vst.msk [vmem:[#allocation2 + $0x41] sm:$0x1] %vm103_vm2, %v8568_v0  ;;  %143 = vst.msk [vmem:[#allocation2 + $0x59] sm:$0x1] %vm103_vm2, %v8568_v0  ;;  %v9098_v62 = vld [vmem:[%s14242_s0 + $0x180] sm:$0xff]  ;;  %v9103_v63 = vld [vmem:[%s14242_s0 + $0x188] sm:$0xff] }
  0x1a   :  { %144 = vst.msk [vmem:[#allocation2 + $0x71] sm:$0x1] %vm103_vm2, %v8568_v0  ;;  %145 = vst.msk [vmem:[#allocation2 + $0x89] sm:$0x1] %vm103_vm2, %v8568_v0  ;;  %v9118_v22 = vld [vmem:[%s14242_s0 + $0x198] sm:$0xff]  ;;  %v9135_v25 = vld [vmem:[%s14242_s0 + $0x1a8] sm:$0xff] }
  0x1b   :  { %146 = vst.msk [vmem:[#allocation2 + $0xa1] sm:$0x1] %vm103_vm2, %v8568_v0  ;;  %147 = vst.msk [vmem:[#allocation2 + $0xb9] sm:$0x1] %vm103_vm2, %v8568_v0  ;;  %vm3320_vm10 = vcmask 261120   ;;  %vm3385_vm11 = vcmask 293888  }
  0x1c   :  { %148 = vst.msk [vmem:[#allocation2 + $0xd1] sm:$0x1] %vm103_vm2, %v8568_v0  ;;  %149 = vst.msk [vmem:[#allocation2 + $0xe9] sm:$0x1] %vm103_vm2, %v8568_v0 }
  0x1d   :  { %150 = vst.msk [vmem:[#allocation2 + $0x101] sm:$0x1] %vm103_vm2, %v8568_v0  ;;  %151 = vst.msk [vmem:[#allocation2 + $0x119] sm:$0x1] %vm103_vm2, %v8568_v0 }
  0x1e   :  { %152 = vst.msk [vmem:[#allocation2 + $0x131] sm:$0x1] %vm103_vm2, %v8568_v0  ;;  %153 = vst.msk [vmem:[#allocation2 + $0x149] sm:$0x1] %vm103_vm2, %v8568_v0 }
  0x1f   :  { %154 = vst.msk [vmem:[#allocation2 + $0x161] sm:$0x1] %vm103_vm2, %v8568_v0  ;;  %155 = vst.msk [vmem:[#allocation2 + $0x179] sm:$0x1] %vm103_vm2, %v8568_v0 }
  0x20   :  { %156 = vst.msk [vmem:[#allocation2 + $0x191] sm:$0x1] %vm103_vm2, %v8568_v0  ;;  %159 = vst.msk [vmem:[#allocation2 + $0x1d9] sm:$0x1] %vm103_vm2, %v8568_v0 }
  0x21   :  { %160 = vst.msk [vmem:[#allocation2 + $0x1f1] sm:$0x1] %vm103_vm2, %v8568_v0  ;;  %161 = vst.msk [vmem:[#allocation2 + $0x209] sm:$0x1] %vm103_vm2, %v8568_v0 }
  0x22   :  { %162 = vst.msk [vmem:[#allocation2 + $0x221] sm:$0x1] %vm103_vm2, %v8568_v0  ;;  %163 = vst.msk [vmem:[#allocation2 + $0x239] sm:$0x1] %vm103_vm2, %v8568_v0 }
  0x23   :  { %164 = vst.msk [vmem:[#allocation2 + $0x251] sm:$0x1] %vm103_vm2, %v8568_v0  ;;  %165 = vst.msk [vmem:[#allocation2 + $0x269] sm:$0x1] %vm103_vm2, %v8568_v0 }
  0x24   :  { %166 = vst.msk [vmem:[#allocation2 + $0x281] sm:$0x1] %vm103_vm2, %v8568_v0  ;;  %167 = vst.msk [vmem:[#allocation2 + $0x299] sm:$0x1] %vm103_vm2, %v8568_v0 }
  0x25   :  { %168 = vst.msk [vmem:[#allocation2 + $0x2b1] sm:$0x1] %vm103_vm2, %v8568_v0  ;;  %169 = vst.msk [vmem:[#allocation2 + $0x2c9] sm:$0x1] %vm103_vm2, %v8568_v0 }
  0x26   :  { %170 = vst.msk [vmem:[#allocation2 + $0x2e1] sm:$0x1] %vm103_vm2, %v8568_v0  ;;  %171 = vst.msk [vmem:[#allocation2 + $0x2f9] sm:$0x1] %vm103_vm2, %v8568_v0 }
  0x27   :  { %172 = vst.msk [vmem:[#allocation2 + $0x311] sm:$0x1] %vm103_vm2, %v8568_v0  ;;  %173 = vst.msk [vmem:[#allocation2 + $0x329] sm:$0x1] %vm103_vm2, %v8568_v0 }
  0x28   :  { %174 = vst.msk [vmem:[#allocation2 + $0x341] sm:$0x1] %vm103_vm2, %v8568_v0  ;;  %14319 = vst [vmem:[#allocation6_spill] sm:$0xff] %v8769_v4 }
  0x29   :  { %177 = vst.msk [vmem:[#allocation2 + $0x19] sm:$0xff] %vm88_vm0, %v8616_v1  ;;  %178 = vst.msk [vmem:[#allocation2 + $0x21] sm:$0xff] %vm88_vm0, %v8625_v2 }
  0x2a   :  { %179 = vst.msk [vmem:[#allocation2 + $0x31] sm:$0xff] %vm88_vm0, %v8630_v3  ;;  %14320 = vst [vmem:[#allocation7_spill] sm:$0xff] %v8774_v5 }
  0x2b   :  { %14321 = vst [vmem:[#allocation8_spill] sm:$0xff] %v8779_v6  ;;  %104 = vst.msk [vmem:[#allocation2] sm:$0x1] %vm103_vm2, %v8568_v0 }
  0x2c   :  { %121 = vst.msk [vmem:[#allocation2 + $0x198] sm:$0x1] %vm103_vm2, %v8568_v0  ;;  %122 = vst.msk [vmem:[#allocation2 + $0x1b0] sm:$0x1] %vm103_vm2, %v8568_v0 }
  0x2d   :  { %139 = vst.msk [vmem:[#allocation2 + $0x348] sm:$0x1] %vm103_vm2, %v8568_v0  ;;  %140 = vst.msk [vmem:[#allocation2 + $0x11] sm:$0x1] %vm103_vm2, %v8568_v0 }
  0x2e   :  { %157 = vst.msk [vmem:[#allocation2 + $0x1a9] sm:$0x1] %vm103_vm2, %v8568_v0  ;;  %158 = vst.msk [vmem:[#allocation2 + $0x1c1] sm:$0x1] %vm103_vm2, %v8568_v0 }
  0x2f   :  { %175 = vst.msk [vmem:[#allocation2 + $0x359] sm:$0x1] %vm103_vm2, %v8568_v0  ;;  %14322 = vst [vmem:[#allocation9_spill] sm:$0xff] %v8806_v7  ;;  %v9113_v0 = vld [vmem:[%s14242_s0 + $0x190] sm:$0xff] }
  0x30   :  { %180 = vst.msk [vmem:[#allocation2 + $0x39] sm:$0xff] %vm88_vm0, %v8769_v4  ;;  %181 = vst.msk [vmem:[#allocation2 + $0x49] sm:$0xff] %vm88_vm0, %v8774_v5  ;;  %v307_v24 = vld [vmem:[#allocation2 + $0x19] sm:$0xff]  ;;  %v308_v26 = vld [vmem:[#allocation2 + $0x21] sm:$0xff] }
  0x31   :  { %182 = vst.msk [vmem:[#allocation2 + $0x51] sm:$0xff] %vm88_vm0, %v8779_v6  ;;  %14323 = vst [vmem:[#allocation10_spill] sm:$0xff] %v8811_v8  ;;  %886 = vrot.lane.b32.xlu1 %v307_v24, %s8569_s29  ;;  %v309_v27 = vld [vmem:[#allocation2 + $0x31] sm:$0xff]  ;;  %v9123_v24 = vld [vmem:[%s14242_s0 + $0x1a0] sm:$0xff] }
  0x32   :  { %14324 = vst [vmem:[#allocation11_spill] sm:$0xff] %v8816_v9  ;;  %183 = vst.msk [vmem:[#allocation2 + $0x61] sm:$0xff] %vm88_vm0, %v8806_v7  ;;  %890 = vrot.lane.b32.xlu0 %v309_v27, %s8569_s29  ;;  %v9145_v27 = vld [vmem:[%s14242_s0 + $0x1b8] sm:$0xff] }
  0x33   :  { %184 = vst.msk [vmem:[#allocation2 + $0x69] sm:$0xff] %vm88_vm0, %v8811_v8  ;;  %185 = vst.msk [vmem:[#allocation2 + $0x79] sm:$0xff] %vm88_vm0, %v8816_v9 }
  0x34   :  { %14325 = vst [vmem:[#allocation12_spill] sm:$0xff] %v8827_v10  ;;  %14326 = vst [vmem:[#allocation13_spill] sm:$0xff] %v8832_v11 }
  0x35   :  { %14327 = vst [vmem:[#allocation14_spill] sm:$0xff] %v8837_v12  ;;  %186 = vst.msk [vmem:[#allocation2 + $0x81] sm:$0xff] %vm88_vm0, %v8827_v10  ;;  %888 = vrot.lane.b32.xlu1 %v308_v26, %s8569_s29  ;;  %v9140_v26 = vld [vmem:[%s14242_s0 + $0x1b0] sm:$0xff] }
  0x36   :  { %187 = vst.msk [vmem:[#allocation2 + $0x91] sm:$0xff] %vm88_vm0, %v8832_v11  ;;  %188 = vst.msk [vmem:[#allocation2 + $0x99] sm:$0xff] %vm88_vm0, %v8837_v12 }
  0x37   :  { %14328 = vst [vmem:[#allocation15_spill] sm:$0xff] %v8848_v13  ;;  %14329 = vst [vmem:[#allocation16_spill] sm:$0xff] %v8853_v14  ;;  %v310_v28 = vld [vmem:[#allocation2 + $0x39] sm:$0xff]  ;;  %v311_v29 = vld [vmem:[#allocation2 + $0x49] sm:$0xff] }
  0x38   :  { %14330 = vst [vmem:[#allocation17_spill] sm:$0xff] %v8858_v15  ;;  %189 = vst.msk [vmem:[#allocation2 + $0xa9] sm:$0xff] %vm88_vm0, %v8848_v13  ;;  %v312_v38 = vld [vmem:[#allocation2 + $0x51] sm:$0xff]  ;;  %894 = vrot.lane.b32.xlu0 %v311_v29, %s8569_s29  ;;  %v9156_v29 = vld [vmem:[%s14242_s0 + $0x1c0] sm:$0xff] }
  0x39   :  { %190 = vst.msk [vmem:[#allocation2 + $0xb1] sm:$0xff] %vm88_vm0, %v8853_v14  ;;  %191 = vst.msk [vmem:[#allocation2 + $0xc1] sm:$0xff] %vm88_vm0, %v8858_v15  ;;  %892 = vrot.lane.b32.xlu1 %v310_v28, %s8569_s29  ;;  %v313_v40 = vld [vmem:[#allocation2 + $0x61] sm:$0xff] }
  0x3a   :  { %14331 = vst [vmem:[#allocation18_spill] sm:$0xff] %v8869_v16  ;;  %14332 = vst [vmem:[#allocation19_spill] sm:$0xff] %v8874_v17  ;;  %v314_v44 = vld [vmem:[#allocation2 + $0x69] sm:$0xff]  ;;  %v315_v55 = vld [vmem:[#allocation2 + $0x79] sm:$0xff] }
  0x3b   :  { %14333 = vst [vmem:[#allocation20_spill] sm:$0xff] %v8879_v18  ;;  %192 = vst.msk [vmem:[#allocation2 + $0xc9] sm:$0xff] %vm88_vm0, %v8869_v16 }
  0x3c   :  { %193 = vst.msk [vmem:[#allocation2 + $0xd9] sm:$0xff] %vm88_vm0, %v8874_v17  ;;  %194 = vst.msk [vmem:[#allocation2 + $0xe1] sm:$0xff] %vm88_vm0, %v8879_v18  ;;  %898 = vrot.lane.b32.xlu0 %v313_v40, %s8569_s29  ;;  %v316_v56 = vld [vmem:[#allocation2 + $0x81] sm:$0xff]  ;;  %v9171_v40 = vld [vmem:[%s14242_s0 + $0x1d0] sm:$0xff] }
  0x3d   :  { %14334 = vst [vmem:[#allocation21_spill] sm:$0xff] %v8890_v19  ;;  %14335 = vst [vmem:[#allocation22_spill] sm:$0xff] %v8895_v20  ;;  %896 = vrot.lane.b32.xlu1 %v312_v38, %s8569_s29  ;;  %v317_v59 = vld [vmem:[#allocation2 + $0x91] sm:$0xff]  ;;  %v318_v60 = vld [vmem:[#allocation2 + $0x99] sm:$0xff] }
  0x3e   :  { %14336 = vst [vmem:[#allocation23_spill] sm:$0xff] %v8900_v21  ;;  %195 = vst.msk [vmem:[#allocation2 + $0xf1] sm:$0xff] %vm88_vm0, %v8890_v19  ;;  %v9161_v38 = vld [vmem:[%s14242_s0 + $0x1c8] sm:$0xff]  ;;  %v402_v19 = vld [vmem:[#allocation2 + $0x1ba] sm:$0xff] }
  0x3f   :  { %196 = vst.msk [vmem:[#allocation2 + $0xf9] sm:$0xff] %vm88_vm0, %v8895_v20  ;;  %197 = vst.msk [vmem:[#allocation2 + $0x109] sm:$0xff] %vm88_vm0, %v8900_v21  ;;  %v319_v61 = vld [vmem:[#allocation2 + $0xa9] sm:$0xff] }
  0x40   :  { %14337 = vst [vmem:[#allocation24_spill] sm:$0xff] %v8911_v23  ;;  %198 = vst.msk [vmem:[#allocation2 + $0x111] sm:$0xff] %vm88_vm0, %v8911_v23  ;;  %902 = vrot.lane.b32.xlu0 %v315_v55, %s8569_s29  ;;  %v320_v28 = vld [vmem:[#allocation2 + $0xb1] sm:$0xff] }
  0x41   :  { %14338 = vst [vmem:[#allocation25_spill] sm:$0xff] %v8922_v30  ;;  %14339 = vst [vmem:[#allocation26_spill] sm:$0xff] %v8927_v31  ;;  %900 = vrot.lane.b32.xlu1 %v314_v44, %s8569_s29  ;;  %v321_v44 = vld [vmem:[#allocation2 + $0xc1] sm:$0xff]  ;;  %v9179_v55 = vld [vmem:[%s14242_s0 + $0x1d8] sm:$0xff] }
  0x42   :  { %199 = vst.msk [vmem:[#allocation2 + $0x121] sm:$0xff] %vm88_vm0, %v8922_v30  ;;  %200 = vst.msk [vmem:[#allocation2 + $0x129] sm:$0xff] %vm88_vm0, %v8927_v31 }
  0x43   :  { %14340 = vst [vmem:[#allocation27_spill] sm:$0xff] %v8937_v32  ;;  %14341 = vst [vmem:[#allocation28_spill] sm:$0xff] %v8942_v33 }
  0x44   :  { %14342 = vst [vmem:[#allocation29_spill] sm:$0xff] %v8947_v34  ;;  %201 = vst.msk [vmem:[#allocation2 + $0x139] sm:$0xff] %vm88_vm0, %v8937_v32  ;;  %906 = vrot.lane.b32.xlu0 %v317_v59, %s8569_s29  ;;  %v9186_v59 = vld [vmem:[%s14242_s0 + $0x1e0] sm:$0xff] }
  0x45   :  { %202 = vst.msk [vmem:[#allocation2 + $0x141] sm:$0xff] %vm88_vm0, %v8942_v33  ;;  %203 = vst.msk [vmem:[#allocation2 + $0x151] sm:$0xff] %vm88_vm0, %v8947_v34  ;;  %904 = vrot.lane.b32.xlu1 %v316_v56, %s8569_s29  ;;  %v322_v56 = vld [vmem:[#allocation2 + $0xc9] sm:$0xff] }
  0x46   :  { %14343 = vst [vmem:[#allocation30_spill] sm:$0xff] %v8959_v35  ;;  %14344 = vst [vmem:[#allocation31_spill] sm:$0xff] %v8964_v36 }
  0x47   :  { %14345 = vst [vmem:[#allocation32_spill] sm:$0xff] %v8969_v37  ;;  %204 = vst.msk [vmem:[#allocation2 + $0x159] sm:$0xff] %vm88_vm0, %v8959_v35 }
  0x48   :  { %205 = vst.msk [vmem:[#allocation2 + $0x169] sm:$0xff] %vm88_vm0, %v8964_v36  ;;  %206 = vst.msk [vmem:[#allocation2 + $0x171] sm:$0xff] %vm88_vm0, %v8969_v37  ;;  %910 = vrot.lane.b32.xlu0 %v319_v61, %s8569_s29  ;;  %v323_v61 = vld [vmem:[#allocation2 + $0xd9] sm:$0xff] }
  0x49   :  { %14346 = vst [vmem:[#allocation33_spill] sm:$0xff] %v8980_v39  ;;  %209 = vst.msk [vmem:[#allocation2 + $0x1c9] sm:$0xff] %vm88_vm0, %v8980_v39  ;;  %908 = vrot.lane.b32.xlu1 %v318_v60, %s8569_s29  ;;  %v9191_v60 = vld [vmem:[%s14242_s0 + $0x1e8] sm:$0xff]  ;;  %v390_v39 = vld [vmem:[#allocation2 + $0xfa] sm:$0xff] }
  0x4a   :  { %14347 = vst [vmem:[#allocation34_spill] sm:$0xff] %v8987_v41  ;;  %14348 = vst [vmem:[#allocation35_spill] sm:$0xff] %v8992_v42  ;;  %v392_v36 = vld [vmem:[#allocation2 + $0x112] sm:$0xff]  ;;  %v394_v34 = vld [vmem:[#allocation2 + $0x12a] sm:$0xff] }
  0x4b   :  { %14349 = vst [vmem:[#allocation36_spill] sm:$0xff] %v8997_v43  ;;  %210 = vst.msk [vmem:[#allocation2 + $0x1d1] sm:$0xff] %vm88_vm0, %v8987_v41 }
  0x4c   :  { %211 = vst.msk [vmem:[#allocation2 + $0x1e1] sm:$0xff] %vm88_vm0, %v8992_v42  ;;  %212 = vst.msk [vmem:[#allocation2 + $0x1e9] sm:$0xff] %vm88_vm0, %v8997_v43  ;;  %914 = vrot.lane.b32.xlu0 %v321_v44, %s8569_s29  ;;  %v329_v44 = vld [vmem:[#allocation2 + $0x121] sm:$0xff] }
  0x4d   :  { %14350 = vst [vmem:[#allocation37_spill] sm:$0xff] %v9009_v45  ;;  %14351 = vst [vmem:[#allocation38_spill] sm:$0xff] %v9014_v46  ;;  %912 = vrot.lane.b32.xlu1 %v320_v28, %s8569_s29  ;;  %v324_v28 = vld [vmem:[#allocation2 + $0xe1] sm:$0xff] }
  0x4e   :  { %14352 = vst [vmem:[#allocation39_spill] sm:$0xff] %v9019_v47  ;;  %213 = vst.msk [vmem:[#allocation2 + $0x1f9] sm:$0xff] %vm88_vm0, %v9009_v45  ;;  %v386_v45 = vld [vmem:[#allocation2 + $0xca] sm:$0xff]  ;;  %v388_v42 = vld [vmem:[#allocation2 + $0xe2] sm:$0xff] }
  0x4f   :  { %214 = vst.msk [vmem:[#allocation2 + $0x201] sm:$0xff] %vm88_vm0, %v9014_v46  ;;  %215 = vst.msk [vmem:[#allocation2 + $0x211] sm:$0xff] %vm88_vm0, %v9019_v47  ;;  %v384_v47 = vld [vmem:[#allocation2 + $0xb2] sm:$0xff]  ;;  %v396_v32 = vld [vmem:[#allocation2 + $0x142] sm:$0xff] }
  0x50   :  { %14353 = vst [vmem:[#allocation40_spill] sm:$0xff] %v9031_v48  ;;  %14354 = vst [vmem:[#allocation41_spill] sm:$0xff] %v9036_v49  ;;  %918 = vrot.lane.b32.xlu0 %v323_v61, %s8569_s29  ;;  %v331_v61 = vld [vmem:[#allocation2 + $0x139] sm:$0xff] }
  0x51   :  { %14355 = vst [vmem:[#allocation42_spill] sm:$0xff] %v9041_v50  ;;  %216 = vst.msk [vmem:[#allocation2 + $0x219] sm:$0xff] %vm88_vm0, %v9031_v48  ;;  %916 = vrot.lane.b32.xlu1 %v322_v56, %s8569_s29  ;;  %v330_v56 = vld [vmem:[#allocation2 + $0x129] sm:$0xff]  ;;  %v398_v30 = vld [vmem:[#allocation2 + $0x15a] sm:$0xff] }
  0x52   :  { %217 = vst.msk [vmem:[#allocation2 + $0x229] sm:$0xff] %vm88_vm0, %v9036_v49  ;;  %218 = vst.msk [vmem:[#allocation2 + $0x231] sm:$0xff] %vm88_vm0, %v9041_v50  ;;  %v382_v49 = vld [vmem:[#allocation2 + $0x9a] sm:$0xff]  ;;  %v400_v21 = vld [vmem:[#allocation2 + $0x172] sm:$0xff] }
  0x53   :  { %14356 = vst [vmem:[#allocation43_spill] sm:$0xff] %v9052_v51  ;;  %14357 = vst [vmem:[#allocation44_spill] sm:$0xff] %v9057_v52  ;;  %v404_v17 = vld [vmem:[#allocation2 + $0x1d2] sm:$0xff]  ;;  %v406_v15 = vld [vmem:[#allocation2 + $0x1ea] sm:$0xff] }
  0x54   :  { %14358 = vst [vmem:[#allocation45_spill] sm:$0xff] %v9062_v53  ;;  %219 = vst.msk [vmem:[#allocation2 + $0x241] sm:$0xff] %vm88_vm0, %v9052_v51  ;;  %v380_v51 = vld [vmem:[#allocation2 + $0x82] sm:$0xff] }
  0x55   :  { %220 = vst.msk [vmem:[#allocation2 + $0x249] sm:$0xff] %vm88_vm0, %v9057_v52  ;;  %221 = vst.msk [vmem:[#allocation2 + $0x259] sm:$0xff] %vm88_vm0, %v9062_v53  ;;  %920 = vrot.lane.b32.xlu1 %v324_v28, %s8569_s29  ;;  %v332_v28 = vld [vmem:[#allocation2 + $0x141] sm:$0xff]  ;;  %v378_v53 = vld [vmem:[#allocation2 + $0x6a] sm:$0xff] }
  0x56   :  { %14359 = vst [vmem:[#allocation46_spill] sm:$0xff] %v9073_v54  ;;  %222 = vst.msk [vmem:[#allocation2 + $0x261] sm:$0xff] %vm88_vm0, %v9073_v54  ;;  %v408_v13 = vld [vmem:[#allocation2 + $0x202] sm:$0xff] }
  0x57   :  { %14360 = vst [vmem:[#allocation47_spill] sm:$0xff] %v9082_v57  ;;  %14361 = vst [vmem:[#allocation48_spill] sm:$0xff] %v9087_v58 }
  0x58   :  { %223 = vst.msk [vmem:[#allocation2 + $0x271] sm:$0xff] %vm88_vm0, %v9082_v57  ;;  %224 = vst.msk [vmem:[#allocation2 + $0x279] sm:$0xff] %vm88_vm0, %v9087_v58  ;;  %v376_v57 = vld [vmem:[#allocation2 + $0x52] sm:$0xff]  ;;  %v410_v11 = vld [vmem:[#allocation2 + $0x21a] sm:$0xff] }
  0x59   :  { %14362 = vst [vmem:[#allocation49_spill] sm:$0xff] %v9098_v62  ;;  %14363 = vst [vmem:[#allocation50_spill] sm:$0xff] %v9103_v63  ;;  %v412_v9 = vld [vmem:[#allocation2 + $0x232] sm:$0xff] }
  0x5a   :  { %225 = vst.msk [vmem:[#allocation2 + $0x289] sm:$0xff] %vm88_vm0, %v9098_v62  ;;  %226 = vst.msk [vmem:[#allocation2 + $0x291] sm:$0xff] %vm88_vm0, %v9103_v63  ;;  %v374_v62 = vld [vmem:[#allocation2 + $0x3a] sm:$0xff] }
  0x5b   :  { %14364 = vst [vmem:[#allocation51_spill] sm:$0xff] %v9113_v0  ;;  %14365 = vst [vmem:[#allocation52_spill] sm:$0xff] %v9118_v22 }
  0x5c   :  { %14366 = vst [vmem:[#allocation53_spill] sm:$0xff] %v9123_v24  ;;  %227 = vst.msk [vmem:[#allocation2 + $0x2a1] sm:$0xff] %vm88_vm0, %v9113_v0  ;;  %v372_v0 = vld [vmem:[#allocation2 + $0x22] sm:$0xff]  ;;  %v414_v7 = vld [vmem:[#allocation2 + $0x24a] sm:$0xff] }
  0x5d   :  { %228 = vst.msk [vmem:[#allocation2 + $0x2a9] sm:$0xff] %vm88_vm0, %v9118_v22  ;;  %229 = vst.msk [vmem:[#allocation2 + $0x2b9] sm:$0xff] %vm88_vm0, %v9123_v24  ;;  %v370_v24 = vld [vmem:[#allocation2 + $0xa] sm:$0xff]  ;;  %v416_v5 = vld [vmem:[#allocation2 + $0x262] sm:$0xff] }
  0x5e   :  { %14367 = vst [vmem:[#allocation54_spill] sm:$0xff] %v9135_v25  ;;  %14368 = vst [vmem:[#allocation55_spill] sm:$0xff] %v9140_v26 }
  0x5f   :  { %14369 = vst [vmem:[#allocation56_spill] sm:$0xff] %v9145_v27  ;;  %230 = vst.msk [vmem:[#allocation2 + $0x2c1] sm:$0xff] %vm88_vm0, %v9135_v25  ;;  %v418_v3 = vld [vmem:[#allocation2 + $0x27a] sm:$0xff] }
  0x60   :  { %231 = vst.msk [vmem:[#allocation2 + $0x2d1] sm:$0xff] %vm88_vm0, %v9140_v26  ;;  %232 = vst.msk [vmem:[#allocation2 + $0x2d9] sm:$0xff] %vm88_vm0, %v9145_v27 }
  0x61   :  { %14370 = vst [vmem:[#allocation57_spill] sm:$0xff] %v9156_v29  ;;  %14371 = vst [vmem:[#allocation58_spill] sm:$0xff] %v9161_v38  ;;  %v420_v1 = vld [vmem:[#allocation2 + $0x292] sm:$0xff] }
  0x62   :  { %233 = vst.msk [vmem:[#allocation2 + $0x2e9] sm:$0xff] %vm88_vm0, %v9156_v29  ;;  %234 = vst.msk [vmem:[#allocation2 + $0x2f1] sm:$0xff] %vm88_vm0, %v9161_v38  ;;  %v328_v29 = vld [vmem:[#allocation2 + $0x111] sm:$0xff] }
  0x63   :  { %14372 = vst [vmem:[#allocation59_spill] sm:$0xff] %v9171_v40  ;;  %235 = vst.msk [vmem:[#allocation2 + $0x301] sm:$0xff] %vm88_vm0, %v9171_v40  ;;  %v325_v40 = vld [vmem:[#allocation2 + $0xf1] sm:$0xff] }
  0x64   :  { %14373 = vst [vmem:[#allocation60_spill] sm:$0xff] %v9179_v55  ;;  %236 = vst.msk [vmem:[#allocation2 + $0x309] sm:$0xff] %vm88_vm0, %v9179_v55  ;;  %v326_v55 = vld [vmem:[#allocation2 + $0xf9] sm:$0xff]  ;;  %922 = vrot.lane.b32.xlu0 %v325_v40, %s8569_s29  ;;  %v333_v40 = vld [vmem:[#allocation2 + $0x151] sm:$0xff] }
  0x65   :  { %14374 = vst [vmem:[#allocation61_spill] sm:$0xff] %v9186_v59  ;;  %14375 = vst [vmem:[#allocation62_spill] sm:$0xff] %v9191_v60  ;;  %924 = vrot.lane.b32.xlu1 %v326_v55, %s8569_s29  ;;  %v334_v55 = vld [vmem:[#allocation2 + $0x159] sm:$0xff] }
  0x66   :  { %237 = vst.msk [vmem:[#allocation2 + $0x319] sm:$0xff] %vm88_vm0, %v9186_v59  ;;  %238 = vst.msk [vmem:[#allocation2 + $0x321] sm:$0xff] %vm88_vm0, %v9191_v60  ;;  %v327_v59 = vld [vmem:[#allocation2 + $0x109] sm:$0xff] }
  0x68   :  { %926 = vrot.lane.b32.xlu0 %v327_v59, %s8569_s29  ;;  %v335_v59 = vld [vmem:[#allocation2 + $0x169] sm:$0xff] }
  0x69   :  { %928 = vrot.lane.b32.xlu1 %v328_v29, %s8569_s29  ;;  %v336_v29 = vld [vmem:[#allocation2 + $0x171] sm:$0xff] }
  0x6a   :  { %v364_v60 = vld [vmem:[#allocation2 + $0x2f1] sm:$0xff] }
  0x6c   :  { %930 = vrot.lane.b32.xlu0 %v329_v44, %s8569_s29  ;;  %v337_v44 = vld [vmem:[#allocation2 + $0x1b1] sm:$0xff] }
  0x6d   :  { %932 = vrot.lane.b32.xlu1 %v330_v56, %s8569_s29  ;;  %v338_v56 = vld [vmem:[#allocation2 + $0x1b9] sm:$0xff]  ;;  %v368_v26 = vld [vmem:[#allocation2 + $0x321] sm:$0xff] }
  0x70   :  { %934 = vrot.lane.b32.xlu0 %v331_v61, %s8569_s29  ;;  %v339_v61 = vld [vmem:[#allocation2 + $0x1c9] sm:$0xff] }
  0x71   :  { %936 = vrot.lane.b32.xlu1 %v332_v28, %s8569_s29  ;;  %v340_v28 = vld [vmem:[#allocation2 + $0x1d1] sm:$0xff] }
  0x74   :  { %938 = vrot.lane.b32.xlu0 %v333_v40, %s8569_s29  ;;  %v341_v40 = vld [vmem:[#allocation2 + $0x1e1] sm:$0xff] }
  0x75   :  { %940 = vrot.lane.b32.xlu1 %v334_v55, %s8569_s29  ;;  %v342_v55 = vld [vmem:[#allocation2 + $0x1e9] sm:$0xff] }
  0x78   :  { %942 = vrot.lane.b32.xlu0 %v335_v59, %s8569_s29  ;;  %v343_v59 = vld [vmem:[#allocation2 + $0x1f9] sm:$0xff] }
  0x79   :  { %944 = vrot.lane.b32.xlu1 %v336_v29, %s8569_s29  ;;  %v344_v29 = vld [vmem:[#allocation2 + $0x201] sm:$0xff] }
  0x7c   :  { %946 = vrot.lane.b32.xlu0 %v337_v44, %s8569_s29  ;;  %v345_v44 = vld [vmem:[#allocation2 + $0x211] sm:$0xff] }
  0x7d   :  { %948 = vrot.lane.b32.xlu1 %v338_v56, %s8569_s29  ;;  %v346_v56 = vld [vmem:[#allocation2 + $0x219] sm:$0xff] }
  0x80   :  { %950 = vrot.lane.b32.xlu0 %v339_v61, %s8569_s29  ;;  %v347_v61 = vld [vmem:[#allocation2 + $0x229] sm:$0xff] }
  0x81   :  { %952 = vrot.lane.b32.xlu1 %v340_v28, %s8569_s29  ;;  %v348_v28 = vld [vmem:[#allocation2 + $0x231] sm:$0xff] }
  0x84   :  { %954 = vrot.lane.b32.xlu0 %v341_v40, %s8569_s29  ;;  %v349_v40 = vld [vmem:[#allocation2 + $0x241] sm:$0xff] }
  0x85   :  { %956 = vrot.lane.b32.xlu1 %v342_v55, %s8569_s29  ;;  %v350_v55 = vld [vmem:[#allocation2 + $0x249] sm:$0xff] }
  0x88   :  { %958 = vrot.lane.b32.xlu0 %v343_v59, %s8569_s29  ;;  %v351_v59 = vld [vmem:[#allocation2 + $0x259] sm:$0xff] }
  0x89   :  { %960 = vrot.lane.b32.xlu1 %v344_v29, %s8569_s29  ;;  %v352_v29 = vld [vmem:[#allocation2 + $0x261] sm:$0xff] }
  0x8c   :  { %962 = vrot.lane.b32.xlu0 %v345_v44, %s8569_s29  ;;  %v353_v44 = vld [vmem:[#allocation2 + $0x271] sm:$0xff] }
  0x8d   :  { %964 = vrot.lane.b32.xlu1 %v346_v56, %s8569_s29  ;;  %v354_v56 = vld [vmem:[#allocation2 + $0x279] sm:$0xff] }
  0x90   :  { %966 = vrot.lane.b32.xlu0 %v347_v61, %s8569_s29  ;;  %v355_v61 = vld [vmem:[#allocation2 + $0x289] sm:$0xff] }
  0x91   :  { %968 = vrot.lane.b32.xlu1 %v348_v28, %s8569_s29  ;;  %v356_v28 = vld [vmem:[#allocation2 + $0x291] sm:$0xff] }
  0x94   :  { %970 = vrot.lane.b32.xlu0 %v349_v40, %s8569_s29  ;;  %v357_v40 = vld [vmem:[#allocation2 + $0x2a1] sm:$0xff] }
  0x95   :  { %972 = vrot.lane.b32.xlu1 %v350_v55, %s8569_s29  ;;  %v358_v55 = vld [vmem:[#allocation2 + $0x2a9] sm:$0xff] }
  0x98   :  { %974 = vrot.lane.b32.xlu0 %v351_v59, %s8569_s29  ;;  %v359_v59 = vld [vmem:[#allocation2 + $0x2b9] sm:$0xff] }
  0x99   :  { %976 = vrot.lane.b32.xlu1 %v352_v29, %s8569_s29  ;;  %v360_v29 = vld [vmem:[#allocation2 + $0x2c1] sm:$0xff] }
  0x9c   :  { %978 = vrot.lane.b32.xlu0 %v353_v44, %s8569_s29  ;;  %v361_v44 = vld [vmem:[#allocation2 + $0x2d1] sm:$0xff] }
  0x9d   :  { %980 = vrot.lane.b32.xlu1 %v354_v56, %s8569_s29  ;;  %v362_v56 = vld [vmem:[#allocation2 + $0x2d9] sm:$0xff] }
  0xa0   :  { %982 = vrot.lane.b32.xlu0 %v355_v61, %s8569_s29  ;;  %v363_v61 = vld [vmem:[#allocation2 + $0x2e9] sm:$0xff] }
  0xa1   :  { %984 = vrot.lane.b32.xlu1 %v356_v28, %s8569_s29  ;;  %v9239_v28 = vpop.permute.xlu0 %882 }
  0xa3   :  { %v9241_v38 = vpop.permute.xlu1 %886 }
  0xa4   :  { %986 = vrot.lane.b32.xlu0 %v357_v40, %s8569_s29  ;;  %v365_v40 = vld [vmem:[#allocation2 + $0x301] sm:$0xff] }
  0xa5   :  { %988 = vrot.lane.b32.xlu1 %v358_v55, %s8569_s29  ;;  %v9245_v55 = vpop.permute.xlu0 %884 }
  0xa8   :  { %990 = vrot.lane.b32.xlu0 %v359_v59, %s8569_s29  ;;  %v366_v59 = vld [vmem:[#allocation2 + $0x309] sm:$0xff] }
  0xa9   :  { %992 = vrot.lane.b32.xlu1 %v360_v29, %s8569_s29  ;;  %v9247_v29 = vpop.permute.xlu1 %888 }
  0xac   :  { %994 = vrot.lane.b32.xlu0 %v361_v44, %s8569_s29  ;;  %v367_v44 = vld [vmem:[#allocation2 + $0x319] sm:$0xff] }
  0xad   :  { %996 = vrot.lane.b32.xlu1 %v362_v56, %s8569_s29  ;;  %v9251_v56 = vpop.permute.xlu0 %890  ;;  %v9253_v27 = vpop.permute.xlu1 %892 }
  0xb0   :  { %998 = vrot.lane.b32.xlu0 %v363_v61, %s8569_s29 }
  0xb1   :  { %1000 = vrot.lane.b32.xlu1 %v364_v60, %s8569_s29  ;;  %v369_v60 = vld [vmem:[#allocation2 + $0x2] sm:$0xff]  ;;  %v9257_v61 = vpop.permute.xlu0 %894  ;;  %v9259_v25 = vpop.permute.xlu1 %896 }
  0xb4   :  { %1002 = vrot.lane.b32.xlu0 %v365_v40, %s8569_s29  ;;  %v371_v40 = vld [vmem:[#allocation2 + $0x1a] sm:$0xff] }
  0xb5   :  { %1004 = vrot.lane.b32.xlu1 %v366_v59, %s8569_s29  ;;  %v9263_v59 = vpop.permute.xlu0 %898  ;;  %v9265_v22 = vpop.permute.xlu1 %900 }
  0xb8   :  { %1006 = vrot.lane.b32.xlu0 %v367_v44, %s8569_s29 }
  0xb9   :  { %1008 = vrot.lane.b32.xlu1 %v368_v26, %s8569_s29  ;;  %v373_v26 = vld [vmem:[#allocation2 + $0x32] sm:$0xff]  ;;  %v9269_v44 = vpop.permute.xlu0 %902  ;;  %v9271_v63 = vpop.permute.xlu1 %904 }
  0xba   :  { %14376 = vst [vmem:[#allocation63_spill] sm:$0xff] %v9271_v63 }
  0xbc   :  { %1138 = vrot.lane.b32.xlu0 %v369_v60, %s8570_s27 }
  0xbd   :  { %1140 = vrot.lane.b32.xlu1 %v370_v24, %s8570_s27  ;;  %v375_v24 = vld [vmem:[#allocation2 + $0x4a] sm:$0xff]  ;;  %v9275_v60 = vpop.permute.xlu0 %906  ;;  %v9277_v58 = vpop.permute.xlu1 %908 }
  0xbe   :  { %14377 = vst [vmem:[#allocation64_spill] sm:$0xff] %v9275_v60  ;;  %14378 = vst [vmem:[#allocation65_spill] sm:$0xff] %v9277_v58  ;;  %v691_v60 = vld [vmem:[#allocation2 + $0x39] sm:$0xff] }
  0xc0   :  { %1142 = vrot.lane.b32.xlu0 %v371_v40, %s8570_s27 }
  0xc1   :  { %1144 = vrot.lane.b32.xlu1 %v372_v0, %s8570_s27  ;;  %v377_v0 = vld [vmem:[#allocation2 + $0x62] sm:$0xff]  ;;  %v9281_v40 = vpop.permute.xlu0 %910  ;;  %v9283_v54 = vpop.permute.xlu1 %912 }
  0xc2   :  { %14379 = vst [vmem:[#allocation66_spill] sm:$0xff] %v9281_v40  ;;  %14380 = vst [vmem:[#allocation67_spill] sm:$0xff] %v9283_v54  ;;  %v570_v54 = vld [vmem:[#allocation2 + $0x82] sm:$0xff] }
  0xc4   :  { %1146 = vrot.lane.b32.xlu0 %v373_v26, %s8570_s27 }
  0xc5   :  { %1148 = vrot.lane.b32.xlu1 %v374_v62, %s8570_s27  ;;  %v379_v62 = vld [vmem:[#allocation2 + $0x7a] sm:$0xff]  ;;  %v9287_v26 = vpop.permute.xlu0 %914  ;;  %v9289_v52 = vpop.permute.xlu1 %916 }
  0xc6   :  { %14381 = vst [vmem:[#allocation68_spill] sm:$0xff] %v9287_v26  ;;  %14382 = vst [vmem:[#allocation69_spill] sm:$0xff] %v9289_v52  ;;  %v564_v52 = vld [vmem:[#allocation2 + $0x3a] sm:$0xff] }
  0xc8   :  { %1150 = vrot.lane.b32.xlu0 %v375_v24, %s8570_s27 }
  0xc9   :  { %1152 = vrot.lane.b32.xlu1 %v376_v57, %s8570_s27  ;;  %v381_v57 = vld [vmem:[#allocation2 + $0x92] sm:$0xff]  ;;  %v9293_v24 = vpop.permute.xlu0 %918  ;;  %v9295_v50 = vpop.permute.xlu1 %920 }
  0xca   :  { %14383 = vst [vmem:[#allocation70_spill] sm:$0xff] %v9293_v24  ;;  %14384 = vst [vmem:[#allocation71_spill] sm:$0xff] %v9295_v50  ;;  %v512_v50 = vld [vmem:[#allocation2 + $0xc9] sm:$0xff] }
  0xcc   :  { %1154 = vrot.lane.b32.xlu0 %v377_v0, %s8570_s27 }
  0xcd   :  { %1156 = vrot.lane.b32.xlu1 %v378_v53, %s8570_s27  ;;  %v383_v53 = vld [vmem:[#allocation2 + $0xaa] sm:$0xff] }
  0xd0   :  { %1158 = vrot.lane.b32.xlu0 %v379_v62, %s8570_s27 }
  0xd1   :  { %1160 = vrot.lane.b32.xlu1 %v380_v51, %s8570_s27  ;;  %v385_v51 = vld [vmem:[#allocation2 + $0xc2] sm:$0xff] }
  0xd4   :  { %1162 = vrot.lane.b32.xlu0 %v381_v57, %s8570_s27 }
  0xd5   :  { %1164 = vrot.lane.b32.xlu1 %v382_v49, %s8570_s27  ;;  %v387_v49 = vld [vmem:[#allocation2 + $0xda] sm:$0xff] }
  0xd6   :  { %v9299_v0 = vpop.permute.xlu0 %922 }
  0xd7   :  { %14385 = vst [vmem:[#allocation72_spill] sm:$0xff] %v9299_v0  ;;  %v9301_v48 = vpop.permute.xlu1 %924 }
  0xd8   :  { %14386 = vst [vmem:[#allocation73_spill] sm:$0xff] %v9301_v48  ;;  %1166 = vrot.lane.b32.xlu0 %v383_v53, %s8570_s27  ;;  %v508_v48 = vld [vmem:[#allocation2 + $0x99] sm:$0xff] }
  0xd9   :  { %1168 = vrot.lane.b32.xlu1 %v384_v47, %s8570_s27  ;;  %v389_v47 = vld [vmem:[#allocation2 + $0xf2] sm:$0xff] }
  0xda   :  { %v9305_v62 = vpop.permute.xlu0 %926 }
  0xdb   :  { %14387 = vst [vmem:[#allocation74_spill] sm:$0xff] %v9305_v62  ;;  %v9307_v46 = vpop.permute.xlu1 %928 }
  0xdc   :  { %14388 = vst [vmem:[#allocation75_spill] sm:$0xff] %v9307_v46  ;;  %1170 = vrot.lane.b32.xlu0 %v385_v51, %s8570_s27  ;;  %v504_v46 = vld [vmem:[#allocation2 + $0x69] sm:$0xff] }
  0xdd   :  { %1172 = vrot.lane.b32.xlu1 %v386_v45, %s8570_s27  ;;  %v391_v45 = vld [vmem:[#allocation2 + $0x10a] sm:$0xff] }
  0xde   :  { %v9311_v57 = vpop.permute.xlu0 %930 }
  0xdf   :  { %14389 = vst [vmem:[#allocation76_spill] sm:$0xff] %v9311_v57  ;;  %v9313_v43 = vpop.permute.xlu1 %932 }
  0xe0   :  { %14390 = vst [vmem:[#allocation77_spill] sm:$0xff] %v9313_v43  ;;  %1174 = vrot.lane.b32.xlu0 %v387_v49, %s8570_s27  ;;  %v500_v43 = vld [vmem:[#allocation2 + $0x39] sm:$0xff] }
  0xe1   :  { %1176 = vrot.lane.b32.xlu1 %v388_v42, %s8570_s27  ;;  %v393_v42 = vld [vmem:[#allocation2 + $0x122] sm:$0xff] }
  0xe2   :  { %v9317_v53 = vpop.permute.xlu0 %934 }
  0xe3   :  { %14391 = vst [vmem:[#allocation78_spill] sm:$0xff] %v9317_v53  ;;  %v9319_v41 = vpop.permute.xlu1 %936 }
  0xe4   :  { %14392 = vst [vmem:[#allocation79_spill] sm:$0xff] %v9319_v41  ;;  %1178 = vrot.lane.b32.xlu0 %v389_v47, %s8570_s27 }
  0xe5   :  { %1180 = vrot.lane.b32.xlu1 %v390_v39, %s8570_s27  ;;  %v395_v39 = vld [vmem:[#allocation2 + $0x13a] sm:$0xff] }
  0xe6   :  { %v9323_v51 = vpop.permute.xlu0 %938 }
  0xe7   :  { %14393 = vst [vmem:[#allocation80_spill] sm:$0xff] %v9323_v51  ;;  %v9325_v37 = vpop.permute.xlu1 %940  ;;  %v266_v51 = vld [vmem:[#allocation2 + $0x128] sm:$0xff] }
  0xe8   :  { %14394 = vst [vmem:[#allocation81_spill] sm:$0xff] %v9325_v37  ;;  %1182 = vrot.lane.b32.xlu0 %v391_v45, %s8570_s27  ;;  %v397_v45 = vld [vmem:[#allocation2 + $0x152] sm:$0xff] }
  0xe9   :  { %1184 = vrot.lane.b32.xlu1 %v392_v36, %s8570_s27  ;;  %v9342_v36 = vld [vmem:[%s14242_s0 + $0xf0] sm:$0xff] }
  0xea   :  { %v9329_v49 = vpop.permute.xlu0 %942  ;;  %14399 = vst [vmem:[#allocation86_spill] sm:$0xff] %v9342_v36  ;;  %207 = vst.msk [vmem:[#allocation2 + $0x181] sm:$0xff] %vm88_vm0, %v9342_v36 }
  0xeb   :  { %14395 = vst [vmem:[#allocation82_spill] sm:$0xff] %v9329_v49  ;;  %v9331_v35 = vpop.permute.xlu1 %944  ;;  %v264_v49 = vld [vmem:[#allocation2 + $0x110] sm:$0xff] }
  0xec   :  { %14396 = vst [vmem:[#allocation83_spill] sm:$0xff] %v9331_v35  ;;  %1186 = vrot.lane.b32.xlu0 %v393_v42, %s8570_s27 }
  0xed   :  { %1188 = vrot.lane.b32.xlu1 %v394_v34, %s8570_s27  ;;  %v9350_v34 = vld [vmem:[%s14242_s0 + $0xf8] sm:$0xff] }
  0xee   :  { %v9335_v47 = vpop.permute.xlu0 %946  ;;  %14400 = vst [vmem:[#allocation87_spill] sm:$0xff] %v9350_v34  ;;  %208 = vst.msk [vmem:[#allocation2 + $0x189] sm:$0xff] %vm88_vm0, %v9350_v34 }
  0xef   :  { %14397 = vst [vmem:[#allocation84_spill] sm:$0xff] %v9335_v47  ;;  %v9337_v33 = vpop.permute.xlu1 %948  ;;  %v262_v47 = vld [vmem:[#allocation2 + $0xf8] sm:$0xff] }
  0xf0   :  { %14398 = vst [vmem:[#allocation85_spill] sm:$0xff] %v9337_v33  ;;  %1190 = vrot.lane.b32.xlu0 %v395_v39, %s8570_s27  ;;  %v399_v39 = vld [vmem:[#allocation2 + $0x16a] sm:$0xff] }
  0xf1   :  { %1192 = vrot.lane.b32.xlu1 %v396_v32, %s8570_s27  ;;  %v401_v32 = vld [vmem:[#allocation2 + $0x1b2] sm:$0xff] }
  0xf2   :  { %v9355_v42 = vpop.permute.xlu0 %950 }
  0xf3   :  { %14401 = vst [vmem:[#allocation88_spill] sm:$0xff] %v9355_v42  ;;  %v9357_v31 = vpop.permute.xlu1 %952  ;;  %v260_v42 = vld [vmem:[#allocation2 + $0xe0] sm:$0xff] }
  0xf4   :  { %14402 = vst [vmem:[#allocation89_spill] sm:$0xff] %v9357_v31  ;;  %1194 = vrot.lane.b32.xlu0 %v397_v45, %s8570_s27 }
  0xf5   :  { %1196 = vrot.lane.b32.xlu1 %v398_v30, %s8570_s27  ;;  %v403_v30 = vld [vmem:[#allocation2 + $0x1ca] sm:$0xff] }
  0xf6   :  { %v9361_v36 = vpop.permute.xlu0 %954 }
  0xf7   :  { %14403 = vst [vmem:[#allocation90_spill] sm:$0xff] %v9361_v36  ;;  %v9363_v23 = vpop.permute.xlu1 %956  ;;  %v258_v36 = vld [vmem:[#allocation2 + $0xc8] sm:$0xff] }
  0xf8   :  { %14404 = vst [vmem:[#allocation91_spill] sm:$0xff] %v9363_v23  ;;  %1198 = vrot.lane.b32.xlu0 %v399_v39, %s8570_s27 }
  0xf9   :  { %1200 = vrot.lane.b32.xlu1 %v400_v21, %s8570_s27  ;;  %v405_v21 = vld [vmem:[#allocation2 + $0x1e2] sm:$0xff] }
  0xfa   :  { %v9367_v34 = vpop.permute.xlu0 %958 }
  0xfb   :  { %14405 = vst [vmem:[#allocation92_spill] sm:$0xff] %v9367_v34  ;;  %v9369_v20 = vpop.permute.xlu1 %960  ;;  %v256_v34 = vld [vmem:[#allocation2 + $0xb0] sm:$0xff] }
  0xfc   :  { %14406 = vst [vmem:[#allocation93_spill] sm:$0xff] %v9369_v20  ;;  %1202 = vrot.lane.b32.xlu0 %v401_v32, %s8570_s27 }
  0xfd   :  { %1204 = vrot.lane.b32.xlu1 %v402_v19, %s8570_s27  ;;  %v407_v19 = vld [vmem:[#allocation2 + $0x1fa] sm:$0xff] }
  0xfe   :  { %v9373_v45 = vpop.permute.xlu0 %962 }
  0xff   :  { %14407 = vst [vmem:[#allocation94_spill] sm:$0xff] %v9373_v45  ;;  %v9375_v18 = vpop.permute.xlu1 %964  ;;  %v254_v45 = vld [vmem:[#allocation2 + $0x98] sm:$0xff] }
 0x100   :  { %14408 = vst [vmem:[#allocation95_spill] sm:$0xff] %v9375_v18  ;;  %1206 = vrot.lane.b32.xlu0 %v403_v30, %s8570_s27 }
 0x101   :  { %1208 = vrot.lane.b32.xlu1 %v404_v17, %s8570_s27  ;;  %v409_v17 = vld [vmem:[#allocation2 + $0x212] sm:$0xff] }
 0x102   :  { %v9379_v39 = vpop.permute.xlu0 %966 }
 0x103   :  { %14409 = vst [vmem:[#allocation96_spill] sm:$0xff] %v9379_v39  ;;  %v9381_v16 = vpop.permute.xlu1 %968  ;;  %v252_v39 = vld [vmem:[#allocation2 + $0x80] sm:$0xff] }
 0x104   :  { %14410 = vst [vmem:[#allocation97_spill] sm:$0xff] %v9381_v16  ;;  %1210 = vrot.lane.b32.xlu0 %v405_v21, %s8570_s27 }
 0x105   :  { %1212 = vrot.lane.b32.xlu1 %v406_v15, %s8570_s27  ;;  %v411_v15 = vld [vmem:[#allocation2 + $0x22a] sm:$0xff] }
 0x106   :  { %v9385_v32 = vpop.permute.xlu0 %970 }
 0x107   :  { %14411 = vst [vmem:[#allocation98_spill] sm:$0xff] %v9385_v32  ;;  %v9387_v14 = vpop.permute.xlu1 %972  ;;  %v250_v32 = vld [vmem:[#allocation2 + $0x68] sm:$0xff] }
 0x108   :  { %14412 = vst [vmem:[#allocation99_spill] sm:$0xff] %v9387_v14  ;;  %1214 = vrot.lane.b32.xlu0 %v407_v19, %s8570_s27 }
 0x109   :  { %1216 = vrot.lane.b32.xlu1 %v408_v13, %s8570_s27  ;;  %v413_v13 = vld [vmem:[#allocation2 + $0x242] sm:$0xff] }
 0x10a   :  { %v9391_v30 = vpop.permute.xlu0 %974 }
 0x10b   :  { %14413 = vst [vmem:[#allocation100_spill] sm:$0xff] %v9391_v30  ;;  %v9393_v12 = vpop.permute.xlu1 %976  ;;  %v248_v30 = vld [vmem:[#allocation2 + $0x50] sm:$0xff] }
 0x10c   :  { %14414 = vst [vmem:[#allocation101_spill] sm:$0xff] %v9393_v12  ;;  %1218 = vrot.lane.b32.xlu0 %v409_v17, %s8570_s27 }
 0x10d   :  { %1220 = vrot.lane.b32.xlu1 %v410_v11, %s8570_s27  ;;  %v415_v11 = vld [vmem:[#allocation2 + $0x25a] sm:$0xff] }
 0x10e   :  { %v9397_v21 = vpop.permute.xlu0 %978 }
 0x10f   :  { %14415 = vst [vmem:[#allocation102_spill] sm:$0xff] %v9397_v21  ;;  %v9399_v10 = vpop.permute.xlu1 %980  ;;  %v246_v21 = vld [vmem:[#allocation2 + $0x38] sm:$0xff] }
 0x110   :  { %14416 = vst [vmem:[#allocation103_spill] sm:$0xff] %v9399_v10  ;;  %1222 = vrot.lane.b32.xlu0 %v411_v15, %s8570_s27 }
 0x111   :  { %1224 = vrot.lane.b32.xlu1 %v412_v9, %s8570_s27  ;;  %v417_v9 = vld [vmem:[#allocation2 + $0x272] sm:$0xff] }
 0x112   :  { %v9403_v19 = vpop.permute.xlu0 %982 }
 0x113   :  { %14417 = vst [vmem:[#allocation104_spill] sm:$0xff] %v9403_v19  ;;  %v9405_v8 = vpop.permute.xlu1 %984  ;;  %v244_v19 = vld [vmem:[#allocation2 + $0x20] sm:$0xff] }
 0x114   :  { %14418 = vst [vmem:[#allocation105_spill] sm:$0xff] %v9405_v8  ;;  %1226 = vrot.lane.b32.xlu0 %v413_v13, %s8570_s27 }
 0x115   :  { %1228 = vrot.lane.b32.xlu1 %v414_v7, %s8570_s27  ;;  %v419_v7 = vld [vmem:[#allocation2 + $0x28a] sm:$0xff] }
 0x116   :  { %v9409_v17 = vpop.permute.xlu0 %986 }
 0x117   :  { %14419 = vst [vmem:[#allocation106_spill] sm:$0xff] %v9409_v17  ;;  %v9411_v6 = vpop.permute.xlu1 %988 }
 0x118   :  { %14420 = vst [vmem:[#allocation107_spill] sm:$0xff] %v9411_v6  ;;  %1230 = vrot.lane.b32.xlu0 %v415_v11, %s8570_s27 }
 0x119   :  { %1232 = vrot.lane.b32.xlu1 %v416_v5, %s8570_s27  ;;  %v421_v5 = vld [vmem:[#allocation2 + $0x2a2] sm:$0xff] }
 0x11a   :  { %v9415_v15 = vpop.permute.xlu0 %990 }
 0x11b   :  { %14421 = vst [vmem:[#allocation108_spill] sm:$0xff] %v9415_v15  ;;  %v9417_v4 = vpop.permute.xlu1 %992  ;;  %v422_v15 = vld [vmem:[#allocation2 + $0x2aa] sm:$0xff] }
 0x11c   :  { %14422 = vst [vmem:[#allocation109_spill] sm:$0xff] %v9417_v4  ;;  %1234 = vrot.lane.b32.xlu0 %v417_v9, %s8570_s27 }
 0x11d   :  { %1236 = vrot.lane.b32.xlu1 %v418_v3, %s8570_s27  ;;  %v423_v3 = vld [vmem:[#allocation2 + $0x2ba] sm:$0xff] }
 0x11e   :  { %v9421_v13 = vpop.permute.xlu0 %994 }
 0x11f   :  { %14423 = vst [vmem:[#allocation110_spill] sm:$0xff] %v9421_v13  ;;  %v9423_v2 = vpop.permute.xlu1 %996  ;;  %v424_v13 = vld [vmem:[#allocation2 + $0x2c2] sm:$0xff] }
 0x120   :  { %14424 = vst [vmem:[#allocation111_spill] sm:$0xff] %v9423_v2  ;;  %1238 = vrot.lane.b32.xlu0 %v419_v7, %s8570_s27 }
 0x121   :  { %1240 = vrot.lane.b32.xlu1 %v420_v1, %s8570_s27  ;;  %v425_v1 = vld [vmem:[#allocation2 + $0x2d2] sm:$0xff] }
 0x122   :  { %v9427_v11 = vpop.permute.xlu0 %998 }
 0x123   :  { %14425 = vst [vmem:[#allocation112_spill] sm:$0xff] %v9427_v11  ;;  %v9429_v6 = vpop.permute.xlu1 %1000  ;;  %v426_v11 = vld [vmem:[#allocation2 + $0x2da] sm:$0xff] }
 0x124   :  { %14426 = vst [vmem:[#allocation113_spill] sm:$0xff] %v9429_v6  ;;  %1242 = vrot.lane.b32.xlu0 %v421_v5, %s8570_s27 }
 0x125   :  { %1244 = vrot.lane.b32.xlu1 %v422_v15, %s8570_s27  ;;  %v427_v15 = vld [vmem:[#allocation2 + $0x2ea] sm:$0xff] }
 0x126   :  { %v9433_v9 = vpop.permute.xlu0 %1002 }
 0x127   :  { %14427 = vst [vmem:[#allocation114_spill] sm:$0xff] %v9433_v9  ;;  %v9435_v4 = vpop.permute.xlu1 %1004  ;;  %v428_v9 = vld [vmem:[#allocation2 + $0x2f2] sm:$0xff] }
 0x128   :  { %14428 = vst [vmem:[#allocation115_spill] sm:$0xff] %v9435_v4  ;;  %1246 = vrot.lane.b32.xlu0 %v423_v3, %s8570_s27  ;;  %v429_v3 = vld [vmem:[#allocation2 + $0x302] sm:$0xff] }
 0x129   :  { %1248 = vrot.lane.b32.xlu1 %v424_v13, %s8570_s27  ;;  %v9452_v13 = vld [vmem:[%s14242_s0 + $0x1f0] sm:$0xff]  ;;  %v432_v4 = vld [vmem:[#allocation2 + $0x322] sm:$0xff] }
 0x12a   :  { %v9439_v7 = vpop.permute.xlu0 %1006  ;;  %14431 = vst [vmem:[#allocation118_spill] sm:$0xff] %v9452_v13  ;;  %239 = vst.msk [vmem:[#allocation2 + $0x331] sm:$0xff] %vm88_vm0, %v9452_v13 }
 0x12b   :  { %14429 = vst [vmem:[#allocation116_spill] sm:$0xff] %v9439_v7  ;;  %v9441_v2 = vpop.permute.xlu1 %1008 }
 0x12c   :  { %14430 = vst [vmem:[#allocation117_spill] sm:$0xff] %v9441_v2  ;;  %1250 = vrot.lane.b32.xlu0 %v425_v1, %s8570_s27  ;;  %v430_v2 = vld [vmem:[#allocation2 + $0x30a] sm:$0xff] }
 0x12d   :  { %1252 = vrot.lane.b32.xlu1 %v426_v11, %s8570_s27  ;;  %v9460_v11 = vld [vmem:[%s14242_s0 + $0x1f8] sm:$0xff]  ;;  %s8571_s0 = smov 12  }
 0x12e   :  { %v9445_v5 = vpop.permute.xlu0 %1138  ;;  %14432 = vst [vmem:[#allocation119_spill] sm:$0xff] %v9460_v11  ;;  %240 = vst.msk [vmem:[#allocation2 + $0x339] sm:$0xff] %vm88_vm0, %v9460_v11  ;;  %v243_v11 = vld [vmem:[#allocation2 + $0x18] sm:$0xff] }
 0x12f   :  { %v9447_v6 = vpop.permute.xlu1 %1140 }
 0x130   :  { %1254 = vrot.lane.b32.xlu0 %v427_v15, %s8570_s27  ;;  %v431_v15 = vld [vmem:[#allocation2 + $0x31a] sm:$0xff] }
 0x131   :  { %1256 = vrot.lane.b32.xlu1 %v428_v9, %s8570_s27 }
 0x132   :  { %v9465_v1 = vpop.permute.xlu0 %1142 }
 0x133   :  { %v9467_v7 = vpop.permute.xlu1 %1144 }
 0x134   :  { %1258 = vrot.lane.b32.xlu0 %v429_v3, %s8570_s27  ;;  %v245_v3 = vld [vmem:[#allocation2 + $0x30] sm:$0xff] }
 0x135   :  { %1260 = vrot.lane.b32.xlu1 %v430_v2, %s8570_s27  ;;  %v496_v41 = vld [vmem:[#allocation2 + $0x338] sm:$0xff] }
 0x136   :  { %v9471_v13 = vpop.permute.xlu0 %1146 }
 0x137   :  { %v9473_v17 = vpop.permute.xlu1 %1148 }
 0x138   :  { %1262 = vrot.lane.b32.xlu0 %v431_v15, %s8570_s27  ;;  %v247_v15 = vld [vmem:[#allocation2 + $0x48] sm:$0xff] }
 0x139   :  { %1264 = vrot.lane.b32.xlu1 %v432_v4, %s8570_s27 }
 0x13a   :  { %v9477_v9 = vpop.permute.xlu0 %1150 }
 0x13b   :  { %v9479_v8 = vpop.permute.xlu1 %1152 }
 0x13c   :  { %1394 = vrot.lane.b32.xlu0 %v243_v11, %s8571_s0  ;;  %v249_v11 = vld [vmem:[#allocation2 + $0x60] sm:$0xff] }
 0x13d   :  { %1396 = vrot.lane.b32.xlu1 %v244_v19, %s8571_s0 }
 0x13e   :  { %v9483_v2 = vpop.permute.xlu0 %1154 }
 0x13f   :  { %14433 = vst [vmem:[#allocation120_spill] sm:$0xff] %v9483_v2  ;;  %v9485_v10 = vpop.permute.xlu1 %1156 }
 0x140   :  { %14434 = vst [vmem:[#allocation121_spill] sm:$0xff] %v9485_v10  ;;  %1398 = vrot.lane.b32.xlu0 %v245_v3, %s8571_s0  ;;  %v251_v3 = vld [vmem:[#allocation2 + $0x78] sm:$0xff] }
 0x141   :  { %1400 = vrot.lane.b32.xlu1 %v246_v21, %s8571_s0 }
 0x142   :  { %v9489_v4 = vpop.permute.xlu0 %1158 }
 0x143   :  { %14435 = vst [vmem:[#allocation122_spill] sm:$0xff] %v9489_v4  ;;  %v9491_v12 = vpop.permute.xlu1 %1160 }
 0x144   :  { %14436 = vst [vmem:[#allocation123_spill] sm:$0xff] %v9491_v12  ;;  %1402 = vrot.lane.b32.xlu0 %v247_v15, %s8571_s0  ;;  %v253_v15 = vld [vmem:[#allocation2 + $0x90] sm:$0xff] }
 0x145   :  { %1404 = vrot.lane.b32.xlu1 %v248_v30, %s8571_s0 }
 0x146   :  { %v9495_v19 = vpop.permute.xlu0 %1162 }
 0x147   :  { %14437 = vst [vmem:[#allocation124_spill] sm:$0xff] %v9495_v19  ;;  %v9497_v14 = vpop.permute.xlu1 %1164  ;;  %v627_v19 = vld [vmem:[#allocation2 + $0x38] sm:$0xff] }
 0x148   :  { %14438 = vst [vmem:[#allocation125_spill] sm:$0xff] %v9497_v14  ;;  %1406 = vrot.lane.b32.xlu0 %v249_v11, %s8571_s0  ;;  %v255_v11 = vld [vmem:[#allocation2 + $0xa8] sm:$0xff] }
 0x149   :  { %1408 = vrot.lane.b32.xlu1 %v250_v32, %s8571_s0 }
 0x14a   :  { %v9501_v21 = vpop.permute.xlu0 %1166 }
 0x14b   :  { %14439 = vst [vmem:[#allocation126_spill] sm:$0xff] %v9501_v21  ;;  %v9503_v16 = vpop.permute.xlu1 %1168  ;;  %v568_v21 = vld [vmem:[#allocation2 + $0x6a] sm:$0xff] }
 0x14c   :  { %14440 = vst [vmem:[#allocation127_spill] sm:$0xff] %v9503_v16  ;;  %1410 = vrot.lane.b32.xlu0 %v251_v3, %s8571_s0  ;;  %v257_v3 = vld [vmem:[#allocation2 + $0xc0] sm:$0xff] }
 0x14d   :  { %1412 = vrot.lane.b32.xlu1 %v252_v39, %s8571_s0 }
 0x14e   :  { %v9507_v30 = vpop.permute.xlu0 %1170 }
 0x14f   :  { %14441 = vst [vmem:[#allocation128_spill] sm:$0xff] %v9507_v30  ;;  %v9509_v18 = vpop.permute.xlu1 %1172  ;;  %v562_v30 = vld [vmem:[#allocation2 + $0x22] sm:$0xff] }
 0x150   :  { %14442 = vst [vmem:[#allocation129_spill] sm:$0xff] %v9509_v18  ;;  %1414 = vrot.lane.b32.xlu0 %v253_v15, %s8571_s0  ;;  %v259_v15 = vld [vmem:[#allocation2 + $0xd8] sm:$0xff] }
 0x151   :  { %1416 = vrot.lane.b32.xlu1 %v254_v45, %s8571_s0 }
 0x152   :  { %v9513_v32 = vpop.permute.xlu0 %1174 }
 0x153   :  { %14443 = vst [vmem:[#allocation130_spill] sm:$0xff] %v9513_v32  ;;  %v9515_v20 = vpop.permute.xlu1 %1176  ;;  %v510_v32 = vld [vmem:[#allocation2 + $0xb1] sm:$0xff] }
 0x154   :  { %14444 = vst [vmem:[#allocation131_spill] sm:$0xff] %v9515_v20  ;;  %1418 = vrot.lane.b32.xlu0 %v255_v11, %s8571_s0  ;;  %v261_v11 = vld [vmem:[#allocation2 + $0xf0] sm:$0xff] }
 0x155   :  { %1420 = vrot.lane.b32.xlu1 %v256_v34, %s8571_s0 }
 0x156   :  { %v9519_v39 = vpop.permute.xlu0 %1178 }
 0x157   :  { %14445 = vst [vmem:[#allocation132_spill] sm:$0xff] %v9519_v39  ;;  %v9521_v23 = vpop.permute.xlu1 %1180  ;;  %v506_v39 = vld [vmem:[#allocation2 + $0x81] sm:$0xff] }
 0x158   :  { %14446 = vst [vmem:[#allocation133_spill] sm:$0xff] %v9521_v23  ;;  %1422 = vrot.lane.b32.xlu0 %v257_v3, %s8571_s0  ;;  %v263_v3 = vld [vmem:[#allocation2 + $0x108] sm:$0xff] }
 0x159   :  { %1424 = vrot.lane.b32.xlu1 %v258_v36, %s8571_s0 }
 0x15a   :  { %v9525_v45 = vpop.permute.xlu0 %1182 }
 0x15b   :  { %14447 = vst [vmem:[#allocation134_spill] sm:$0xff] %v9525_v45  ;;  %v9527_v31 = vpop.permute.xlu1 %1184  ;;  %v502_v45 = vld [vmem:[#allocation2 + $0x51] sm:$0xff] }
 0x15c   :  { %14448 = vst [vmem:[#allocation135_spill] sm:$0xff] %v9527_v31  ;;  %1426 = vrot.lane.b32.xlu0 %v259_v15, %s8571_s0  ;;  %v265_v15 = vld [vmem:[#allocation2 + $0x120] sm:$0xff] }
 0x15d   :  { %1428 = vrot.lane.b32.xlu1 %v260_v42, %s8571_s0 }
 0x15e   :  { %v9531_v34 = vpop.permute.xlu0 %1186 }
 0x15f   :  { %14449 = vst [vmem:[#allocation136_spill] sm:$0xff] %v9531_v34  ;;  %v9533_v33 = vpop.permute.xlu1 %1188  ;;  %v498_v34 = vld [vmem:[#allocation2 + $0x21] sm:$0xff] }
 0x160   :  { %14450 = vst [vmem:[#allocation137_spill] sm:$0xff] %v9533_v33  ;;  %1430 = vrot.lane.b32.xlu0 %v261_v11, %s8571_s0  ;;  %v267_v11 = vld [vmem:[#allocation2 + $0x138] sm:$0xff] }
 0x161   :  { %1432 = vrot.lane.b32.xlu1 %v262_v47, %s8571_s0 }
 0x162   :  { %v9537_v36 = vpop.permute.xlu0 %1190 }
 0x163   :  { %14451 = vst [vmem:[#allocation138_spill] sm:$0xff] %v9537_v36  ;;  %v9539_v35 = vpop.permute.xlu1 %1192 }
 0x164   :  { %14452 = vst [vmem:[#allocation139_spill] sm:$0xff] %v9539_v35  ;;  %1434 = vrot.lane.b32.xlu0 %v263_v3, %s8571_s0  ;;  %v268_v35 = vld [vmem:[#allocation2 + $0x140] sm:$0xff]  ;;  %v269_v3 = vld [vmem:[#allocation2 + $0x150] sm:$0xff] }
 0x165   :  { %1436 = vrot.lane.b32.xlu1 %v264_v49, %s8571_s0 }
 0x166   :  { %v9543_v42 = vpop.permute.xlu0 %1194 }
 0x167   :  { %14453 = vst [vmem:[#allocation140_spill] sm:$0xff] %v9543_v42  ;;  %v9545_v37 = vpop.permute.xlu1 %1196 }
 0x168   :  { %14454 = vst [vmem:[#allocation141_spill] sm:$0xff] %v9545_v37  ;;  %1438 = vrot.lane.b32.xlu0 %v265_v15, %s8571_s0  ;;  %v270_v37 = vld [vmem:[#allocation2 + $0x158] sm:$0xff]  ;;  %v271_v15 = vld [vmem:[#allocation2 + $0x168] sm:$0xff] }
 0x169   :  { %1440 = vrot.lane.b32.xlu1 %v266_v51, %s8571_s0 }
 0x16a   :  { %v9549_v47 = vpop.permute.xlu0 %1198 }
 0x16b   :  { %14455 = vst [vmem:[#allocation142_spill] sm:$0xff] %v9549_v47  ;;  %v9551_v36 = vpop.permute.xlu1 %1200 }
 0x16c   :  { %14456 = vst [vmem:[#allocation143_spill] sm:$0xff] %v9551_v36  ;;  %1442 = vrot.lane.b32.xlu0 %v267_v11, %s8571_s0  ;;  %v272_v36 = vld [vmem:[#allocation2 + $0x170] sm:$0xff] }
 0x16d   :  { %1444 = vrot.lane.b32.xlu1 %v268_v35, %s8571_s0  ;;  %v463_v35 = vld [vmem:[#allocation2 + $0x180] sm:$0xff] }
 0x16e   :  { %v9555_v49 = vpop.permute.xlu0 %1202 }
 0x16f   :  { %14457 = vst [vmem:[#allocation144_spill] sm:$0xff] %v9555_v49  ;;  %v9557_v42 = vpop.permute.xlu1 %1204  ;;  %v464_v49 = vld [vmem:[#allocation2 + $0x188] sm:$0xff] }
 0x170   :  { %14458 = vst [vmem:[#allocation145_spill] sm:$0xff] %v9557_v42  ;;  %1446 = vrot.lane.b32.xlu0 %v269_v3, %s8571_s0  ;;  %v275_v3 = vld [vmem:[#allocation2 + $0x1c8] sm:$0xff] }
 0x171   :  { %1448 = vrot.lane.b32.xlu1 %v270_v37, %s8571_s0 }
 0x172   :  { %v9561_v51 = vpop.permute.xlu0 %1206 }
 0x173   :  { %14459 = vst [vmem:[#allocation146_spill] sm:$0xff] %v9561_v51  ;;  %v9563_v47 = vpop.permute.xlu1 %1208 }
 0x174   :  { %14460 = vst [vmem:[#allocation147_spill] sm:$0xff] %v9563_v47  ;;  %1450 = vrot.lane.b32.xlu0 %v271_v15, %s8571_s0  ;;  %v276_v47 = vld [vmem:[#allocation2 + $0x1d0] sm:$0xff]  ;;  %v277_v15 = vld [vmem:[#allocation2 + $0x1e0] sm:$0xff] }
 0x175   :  { %1452 = vrot.lane.b32.xlu1 %v272_v36, %s8571_s0 }
 0x176   :  { %v9567_v11 = vpop.permute.xlu0 %1210 }
 0x177   :  { %14461 = vst [vmem:[#allocation148_spill] sm:$0xff] %v9567_v11  ;;  %v9569_v42 = vpop.permute.xlu1 %1212 }
 0x178   :  { %14462 = vst [vmem:[#allocation149_spill] sm:$0xff] %v9569_v42  ;;  %1454 = vrot.lane.b32.xlu0 %v463_v35, %s8571_s0  ;;  %v278_v42 = vld [vmem:[#allocation2 + $0x1e8] sm:$0xff]  ;;  %v279_v35 = vld [vmem:[#allocation2 + $0x1f8] sm:$0xff] }
 0x179   :  { %1456 = vrot.lane.b32.xlu1 %v464_v49, %s8571_s0 }
 0x17a   :  { %v9573_v37 = vpop.permute.xlu0 %1214 }
 0x17b   :  { %14463 = vst [vmem:[#allocation150_spill] sm:$0xff] %v9573_v37  ;;  %v9575_v51 = vpop.permute.xlu1 %1216 }
 0x17c   :  { %14464 = vst [vmem:[#allocation151_spill] sm:$0xff] %v9575_v51  ;;  %1458 = vrot.lane.b32.xlu0 %v275_v3, %s8571_s0  ;;  %v280_v51 = vld [vmem:[#allocation2 + $0x200] sm:$0xff]  ;;  %v281_v3 = vld [vmem:[#allocation2 + $0x210] sm:$0xff] }
 0x17d   :  { %1460 = vrot.lane.b32.xlu1 %v276_v47, %s8571_s0 }
 0x17e   :  { %v9579_v36 = vpop.permute.xlu0 %1218 }
 0x17f   :  { %14465 = vst [vmem:[#allocation152_spill] sm:$0xff] %v9579_v36  ;;  %v9581_v11 = vpop.permute.xlu1 %1220 }
 0x180   :  { %14466 = vst [vmem:[#allocation153_spill] sm:$0xff] %v9581_v11  ;;  %1462 = vrot.lane.b32.xlu0 %v277_v15, %s8571_s0  ;;  %v282_v11 = vld [vmem:[#allocation2 + $0x218] sm:$0xff]  ;;  %v283_v15 = vld [vmem:[#allocation2 + $0x228] sm:$0xff] }
 0x181   :  { %1464 = vrot.lane.b32.xlu1 %v278_v42, %s8571_s0 }
 0x182   :  { %v9585_v49 = vpop.permute.xlu0 %1222 }
 0x183   :  { %14467 = vst [vmem:[#allocation154_spill] sm:$0xff] %v9585_v49  ;;  %v9587_v37 = vpop.permute.xlu1 %1224 }
 0x184   :  { %14468 = vst [vmem:[#allocation155_spill] sm:$0xff] %v9587_v37  ;;  %1466 = vrot.lane.b32.xlu0 %v279_v35, %s8571_s0  ;;  %v284_v37 = vld [vmem:[#allocation2 + $0x230] sm:$0xff]  ;;  %v285_v35 = vld [vmem:[#allocation2 + $0x240] sm:$0xff] }
 0x185   :  { %1468 = vrot.lane.b32.xlu1 %v280_v51, %s8571_s0 }
 0x186   :  { %v9591_v47 = vpop.permute.xlu0 %1226 }
 0x187   :  { %14469 = vst [vmem:[#allocation156_spill] sm:$0xff] %v9591_v47  ;;  %v9593_v36 = vpop.permute.xlu1 %1228 }
 0x188   :  { %14470 = vst [vmem:[#allocation157_spill] sm:$0xff] %v9593_v36  ;;  %1470 = vrot.lane.b32.xlu0 %v281_v3, %s8571_s0  ;;  %v286_v36 = vld [vmem:[#allocation2 + $0x248] sm:$0xff]  ;;  %v287_v3 = vld [vmem:[#allocation2 + $0x258] sm:$0xff] }
 0x189   :  { %1472 = vrot.lane.b32.xlu1 %v282_v11, %s8571_s0 }
 0x18a   :  { %v9597_v42 = vpop.permute.xlu0 %1230 }
 0x18b   :  { %14471 = vst [vmem:[#allocation158_spill] sm:$0xff] %v9597_v42  ;;  %v9599_v49 = vpop.permute.xlu1 %1232 }
 0x18c   :  { %14472 = vst [vmem:[#allocation159_spill] sm:$0xff] %v9599_v49  ;;  %1474 = vrot.lane.b32.xlu0 %v283_v15, %s8571_s0  ;;  %v288_v49 = vld [vmem:[#allocation2 + $0x260] sm:$0xff]  ;;  %v289_v15 = vld [vmem:[#allocation2 + $0x270] sm:$0xff] }
 0x18d   :  { %1476 = vrot.lane.b32.xlu1 %v284_v37, %s8571_s0 }
 0x18e   :  { %v9603_v51 = vpop.permute.xlu0 %1234 }
 0x18f   :  { %14473 = vst [vmem:[#allocation160_spill] sm:$0xff] %v9603_v51  ;;  %v9605_v47 = vpop.permute.xlu1 %1236 }
 0x190   :  { %14474 = vst [vmem:[#allocation161_spill] sm:$0xff] %v9605_v47  ;;  %1478 = vrot.lane.b32.xlu0 %v285_v35, %s8571_s0  ;;  %v290_v47 = vld [vmem:[#allocation2 + $0x278] sm:$0xff]  ;;  %v291_v35 = vld [vmem:[#allocation2 + $0x288] sm:$0xff] }
 0x191   :  { %1480 = vrot.lane.b32.xlu1 %v286_v36, %s8571_s0 }
 0x192   :  { %v9609_v11 = vpop.permute.xlu0 %1238 }
 0x193   :  { %14475 = vst [vmem:[#allocation162_spill] sm:$0xff] %v9609_v11  ;;  %v9611_v42 = vpop.permute.xlu1 %1240 }
 0x194   :  { %14476 = vst [vmem:[#allocation163_spill] sm:$0xff] %v9611_v42  ;;  %1482 = vrot.lane.b32.xlu0 %v287_v3, %s8571_s0  ;;  %v292_v42 = vld [vmem:[#allocation2 + $0x290] sm:$0xff]  ;;  %v293_v3 = vld [vmem:[#allocation2 + $0x2a0] sm:$0xff] }
 0x195   :  { %1484 = vrot.lane.b32.xlu1 %v288_v49, %s8571_s0 }
 0x196   :  { %v9615_v37 = vpop.permute.xlu0 %1242 }
 0x197   :  { %14477 = vst [vmem:[#allocation164_spill] sm:$0xff] %v9615_v37  ;;  %v9617_v51 = vpop.permute.xlu1 %1244 }
 0x198   :  { %14478 = vst [vmem:[#allocation165_spill] sm:$0xff] %v9617_v51  ;;  %1486 = vrot.lane.b32.xlu0 %v289_v15, %s8571_s0  ;;  %v294_v51 = vld [vmem:[#allocation2 + $0x2a8] sm:$0xff]  ;;  %v295_v15 = vld [vmem:[#allocation2 + $0x2b8] sm:$0xff] }
 0x199   :  { %1488 = vrot.lane.b32.xlu1 %v290_v47, %s8571_s0 }
 0x19a   :  { %v9621_v36 = vpop.permute.xlu0 %1246 }
 0x19b   :  { %14479 = vst [vmem:[#allocation166_spill] sm:$0xff] %v9621_v36  ;;  %v9623_v11 = vpop.permute.xlu1 %1248 }
 0x19c   :  { %14480 = vst [vmem:[#allocation167_spill] sm:$0xff] %v9623_v11  ;;  %1490 = vrot.lane.b32.xlu0 %v291_v35, %s8571_s0  ;;  %v296_v11 = vld [vmem:[#allocation2 + $0x2c0] sm:$0xff]  ;;  %v297_v35 = vld [vmem:[#allocation2 + $0x2d0] sm:$0xff] }
 0x19d   :  { %1492 = vrot.lane.b32.xlu1 %v292_v42, %s8571_s0 }
 0x19e   :  { %v9627_v49 = vpop.permute.xlu0 %1250 }
 0x19f   :  { %14481 = vst [vmem:[#allocation168_spill] sm:$0xff] %v9627_v49  ;;  %v9629_v37 = vpop.permute.xlu1 %1252 }
 0x1a0   :  { %14482 = vst [vmem:[#allocation169_spill] sm:$0xff] %v9629_v37  ;;  %1494 = vrot.lane.b32.xlu0 %v293_v3, %s8571_s0  ;;  %v298_v37 = vld [vmem:[#allocation2 + $0x2d8] sm:$0xff]  ;;  %v299_v3 = vld [vmem:[#allocation2 + $0x2e8] sm:$0xff] }
 0x1a1   :  { %1496 = vrot.lane.b32.xlu1 %v294_v51, %s8571_s0 }
 0x1a2   :  { %v9633_v47 = vpop.permute.xlu0 %1254 }
 0x1a3   :  { %14483 = vst [vmem:[#allocation170_spill] sm:$0xff] %v9633_v47  ;;  %v9635_v36 = vpop.permute.xlu1 %1256 }
 0x1a4   :  { %14484 = vst [vmem:[#allocation171_spill] sm:$0xff] %v9635_v36  ;;  %1498 = vrot.lane.b32.xlu0 %v295_v15, %s8571_s0  ;;  %v300_v36 = vld [vmem:[#allocation2 + $0x2f0] sm:$0xff]  ;;  %v301_v15 = vld [vmem:[#allocation2 + $0x300] sm:$0xff] }
 0x1a5   :  { %1500 = vrot.lane.b32.xlu1 %v296_v11, %s8571_s0 }
 0x1a6   :  { %v9639_v42 = vpop.permute.xlu0 %1258 }
 0x1a7   :  { %14485 = vst [vmem:[#allocation172_spill] sm:$0xff] %v9639_v42  ;;  %v9641_v49 = vpop.permute.xlu1 %1260 }
 0x1a8   :  { %14486 = vst [vmem:[#allocation173_spill] sm:$0xff] %v9641_v49  ;;  %1502 = vrot.lane.b32.xlu0 %v297_v35, %s8571_s0  ;;  %v302_v49 = vld [vmem:[#allocation2 + $0x308] sm:$0xff]  ;;  %v303_v35 = vld [vmem:[#allocation2 + $0x318] sm:$0xff] }
 0x1a9   :  { %1504 = vrot.lane.b32.xlu1 %v298_v37, %s8571_s0 }
 0x1aa   :  { %v9645_v51 = vpop.permute.xlu0 %1262 }
 0x1ab   :  { %14487 = vst [vmem:[#allocation174_spill] sm:$0xff] %v9645_v51  ;;  %v9647_v47 = vpop.permute.xlu1 %1264 }
 0x1ac   :  { %14488 = vst [vmem:[#allocation175_spill] sm:$0xff] %v9647_v47  ;;  %1506 = vrot.lane.b32.xlu0 %v299_v3, %s8571_s0  ;;  %v304_v47 = vld [vmem:[#allocation2 + $0x320] sm:$0xff] }
 0x1ad   :  { %1508 = vrot.lane.b32.xlu1 %v300_v36, %s8571_s0  ;;  %v495_v36 = vld [vmem:[#allocation2 + $0x330] sm:$0xff] }
 0x1ae   :  { %v9651_v11 = vpop.permute.xlu0 %1394 }
 0x1af   :  { %v9653_v42 = vpop.permute.xlu1 %1396 }
 0x1b0   :  { %1510 = vrot.lane.b32.xlu0 %v301_v15, %s8571_s0 }
 0x1b1   :  { %1512 = vrot.lane.b32.xlu1 %v302_v49, %s8571_s0  ;;  %v497_v49 = vld [vmem:[#allocation2 + $0x19] sm:$0xff] }
 0x1b2   :  { %v9657_v37 = vpop.permute.xlu0 %1398 }
 0x1b3   :  { %v9659_v51 = vpop.permute.xlu1 %1400 }
 0x1b4   :  { %1514 = vrot.lane.b32.xlu0 %v303_v35, %s8571_s0 }
 0x1b5   :  { %1516 = vrot.lane.b32.xlu1 %v304_v47, %s8571_s0  ;;  %v499_v47 = vld [vmem:[#allocation2 + $0x31] sm:$0xff] }
 0x1b6   :  { %v9663_v3 = vpop.permute.xlu0 %1402 }
 0x1b7   :  { %v9665_v33 = vpop.permute.xlu1 %1404 }
 0x1b8   :  { %1518 = vrot.lane.b32.xlu0 %v495_v36, %s8571_s0 }
 0x1b9   :  { %1520 = vrot.lane.b32.xlu1 %v496_v41, %s8571_s0  ;;  %v501_v41 = vld [vmem:[#allocation2 + $0x49] sm:$0xff] }
 0x1ba   :  { %v9669_v15 = vpop.permute.xlu0 %1406 }
 0x1bb   :  { %v9671_v53 = vpop.permute.xlu1 %1408 }
 0x1bc   :  { %1650 = vrot.lane.b32.xlu0 %v497_v49, %s8572_s10 }
 0x1bd   :  { %1652 = vrot.lane.b32.xlu1 %v498_v34, %s8572_s10  ;;  %v503_v34 = vld [vmem:[#allocation2 + $0x61] sm:$0xff] }
 0x1be   :  { %v9675_v35 = vpop.permute.xlu0 %1410 }
 0x1bf   :  { %14489 = vst [vmem:[#allocation176_spill] sm:$0xff] %v9675_v35  ;;  %v9677_v31 = vpop.permute.xlu1 %1412  ;;  %v753_v35 = vld [vmem:[#allocation2 + $0x351] sm:$0xff] }
 0x1c0   :  { %14490 = vst [vmem:[#allocation177_spill] sm:$0xff] %v9677_v31  ;;  %1654 = vrot.lane.b32.xlu0 %v499_v47, %s8572_s10 }
 0x1c1   :  { %1656 = vrot.lane.b32.xlu1 %v500_v43, %s8572_s10  ;;  %v505_v43 = vld [vmem:[#allocation2 + $0x79] sm:$0xff] }
 0x1c2   :  { %v9681_v36 = vpop.permute.xlu0 %1414 }
 0x1c3   :  { %14491 = vst [vmem:[#allocation178_spill] sm:$0xff] %v9681_v36  ;;  %v9683_v57 = vpop.permute.xlu1 %1416  ;;  %v633_v36 = vld [vmem:[#allocation2 + $0x80] sm:$0xff] }
 0x1c4   :  { %14492 = vst [vmem:[#allocation179_spill] sm:$0xff] %v9683_v57  ;;  %1658 = vrot.lane.b32.xlu0 %v501_v41, %s8572_s10 }
 0x1c5   :  { %1660 = vrot.lane.b32.xlu1 %v502_v45, %s8572_s10  ;;  %v507_v45 = vld [vmem:[#allocation2 + $0x91] sm:$0xff] }
 0x1c6   :  { %v9687_v49 = vpop.permute.xlu0 %1418 }
 0x1c7   :  { %14493 = vst [vmem:[#allocation180_spill] sm:$0xff] %v9687_v49  ;;  %v9689_v23 = vpop.permute.xlu1 %1420 }
 0x1c8   :  { %14494 = vst [vmem:[#allocation181_spill] sm:$0xff] %v9689_v23  ;;  %1662 = vrot.lane.b32.xlu0 %v503_v34, %s8572_s10 }
 0x1c9   :  { %1664 = vrot.lane.b32.xlu1 %v504_v46, %s8572_s10  ;;  %v509_v46 = vld [vmem:[#allocation2 + $0xa9] sm:$0xff] }
 0x1ca   :  { %v9693_v47 = vpop.permute.xlu0 %1422 }
 0x1cb   :  { %14495 = vst [vmem:[#allocation182_spill] sm:$0xff] %v9693_v47  ;;  %v9695_v62 = vpop.permute.xlu1 %1424  ;;  %v566_v47 = vld [vmem:[#allocation2 + $0x52] sm:$0xff] }
 0x1cc   :  { %14496 = vst [vmem:[#allocation183_spill] sm:$0xff] %v9695_v62  ;;  %1666 = vrot.lane.b32.xlu0 %v505_v43, %s8572_s10 }
 0x1cd   :  { %1668 = vrot.lane.b32.xlu1 %v506_v39, %s8572_s10  ;;  %v511_v39 = vld [vmem:[#allocation2 + $0xc1] sm:$0xff] }
 0x1ce   :  { %v9699_v41 = vpop.permute.xlu0 %1426 }
 0x1cf   :  { %14497 = vst [vmem:[#allocation184_spill] sm:$0xff] %v9699_v41  ;;  %v9701_v20 = vpop.permute.xlu1 %1428 }
 0x1d0   :  { %14498 = vst [vmem:[#allocation185_spill] sm:$0xff] %v9701_v20  ;;  %1670 = vrot.lane.b32.xlu0 %v507_v45, %s8572_s10 }
 0x1d1   :  { %1672 = vrot.lane.b32.xlu1 %v508_v48, %s8572_s10  ;;  %v513_v48 = vld [vmem:[#allocation2 + $0xd9] sm:$0xff] }
 0x1d2   :  { %v9705_v34 = vpop.permute.xlu0 %1430 }
 0x1d3   :  { %14499 = vst [vmem:[#allocation186_spill] sm:$0xff] %v9705_v34  ;;  %v9707_v0 = vpop.permute.xlu1 %1432  ;;  %v514_v34 = vld [vmem:[#allocation2 + $0xe1] sm:$0xff] }
 0x1d4   :  { %14500 = vst [vmem:[#allocation187_spill] sm:$0xff] %v9707_v0  ;;  %1674 = vrot.lane.b32.xlu0 %v509_v46, %s8572_s10 }
 0x1d5   :  { %1676 = vrot.lane.b32.xlu1 %v510_v32, %s8572_s10  ;;  %v515_v32 = vld [vmem:[#allocation2 + $0xf1] sm:$0xff] }
 0x1d6   :  { %v9711_v43 = vpop.permute.xlu0 %1434 }
 0x1d7   :  { %14501 = vst [vmem:[#allocation188_spill] sm:$0xff] %v9711_v43  ;;  %v9713_v41 = vpop.permute.xlu1 %1436  ;;  %v516_v43 = vld [vmem:[#allocation2 + $0xf9] sm:$0xff] }
 0x1d8   :  { %14502 = vst [vmem:[#allocation189_spill] sm:$0xff] %v9713_v41  ;;  %1678 = vrot.lane.b32.xlu0 %v511_v39, %s8572_s10 }
 0x1d9   :  { %1680 = vrot.lane.b32.xlu1 %v512_v50, %s8572_s10  ;;  %v517_v50 = vld [vmem:[#allocation2 + $0x109] sm:$0xff] }
 0x1da   :  { %v9717_v45 = vpop.permute.xlu0 %1438 }
 0x1db   :  { %14503 = vst [vmem:[#allocation190_spill] sm:$0xff] %v9717_v45  ;;  %v9719_v20 = vpop.permute.xlu1 %1440  ;;  %v518_v45 = vld [vmem:[#allocation2 + $0x111] sm:$0xff] }
 0x1dc   :  { %14504 = vst [vmem:[#allocation191_spill] sm:$0xff] %v9719_v20  ;;  %1682 = vrot.lane.b32.xlu0 %v513_v48, %s8572_s10 }
 0x1dd   :  { %1684 = vrot.lane.b32.xlu1 %v514_v34, %s8572_s10  ;;  %v519_v34 = vld [vmem:[#allocation2 + $0x121] sm:$0xff] }
 0x1de   :  { %v9723_v46 = vpop.permute.xlu0 %1442 }
 0x1df   :  { %14505 = vst [vmem:[#allocation192_spill] sm:$0xff] %v9723_v46  ;;  %v9725_v0 = vpop.permute.xlu1 %1444  ;;  %v520_v46 = vld [vmem:[#allocation2 + $0x129] sm:$0xff] }
 0x1e0   :  { %14506 = vst [vmem:[#allocation193_spill] sm:$0xff] %v9725_v0  ;;  %1686 = vrot.lane.b32.xlu0 %v515_v32, %s8572_s10 }
 0x1e1   :  { %1688 = vrot.lane.b32.xlu1 %v516_v43, %s8572_s10  ;;  %v521_v43 = vld [vmem:[#allocation2 + $0x139] sm:$0xff] }
 0x1e2   :  { %v9729_v39 = vpop.permute.xlu0 %1446 }
 0x1e3   :  { %14507 = vst [vmem:[#allocation194_spill] sm:$0xff] %v9729_v39  ;;  %v9731_v41 = vpop.permute.xlu1 %1448  ;;  %v522_v39 = vld [vmem:[#allocation2 + $0x141] sm:$0xff] }
 0x1e4   :  { %14508 = vst [vmem:[#allocation195_spill] sm:$0xff] %v9731_v41  ;;  %1690 = vrot.lane.b32.xlu0 %v517_v50, %s8572_s10 }
 0x1e5   :  { %1692 = vrot.lane.b32.xlu1 %v518_v45, %s8572_s10  ;;  %v523_v45 = vld [vmem:[#allocation2 + $0x151] sm:$0xff] }
 0x1e6   :  { %v9735_v48 = vpop.permute.xlu0 %1450 }
 0x1e7   :  { %14509 = vst [vmem:[#allocation196_spill] sm:$0xff] %v9735_v48  ;;  %v9737_v20 = vpop.permute.xlu1 %1452  ;;  %v524_v48 = vld [vmem:[#allocation2 + $0x159] sm:$0xff] }
 0x1e8   :  { %14510 = vst [vmem:[#allocation197_spill] sm:$0xff] %v9737_v20  ;;  %1694 = vrot.lane.b32.xlu0 %v519_v34, %s8572_s10 }
 0x1e9   :  { %1696 = vrot.lane.b32.xlu1 %v520_v46, %s8572_s10  ;;  %v525_v46 = vld [vmem:[#allocation2 + $0x169] sm:$0xff] }
 0x1ea   :  { %v9741_v32 = vpop.permute.xlu0 %1454 }
 0x1eb   :  { %14511 = vst [vmem:[#allocation198_spill] sm:$0xff] %v9741_v32  ;;  %v9743_v0 = vpop.permute.xlu1 %1456  ;;  %v526_v32 = vld [vmem:[#allocation2 + $0x171] sm:$0xff] }
 0x1ec   :  { %14512 = vst [vmem:[#allocation199_spill] sm:$0xff] %v9743_v0  ;;  %1698 = vrot.lane.b32.xlu0 %v521_v43, %s8572_s10 }
 0x1ed   :  { %1700 = vrot.lane.b32.xlu1 %v522_v39, %s8572_s10  ;;  %v527_v39 = vld [vmem:[#allocation2 + $0x181] sm:$0xff] }
 0x1ee   :  { %v9747_v50 = vpop.permute.xlu0 %1458 }
 0x1ef   :  { %14513 = vst [vmem:[#allocation200_spill] sm:$0xff] %v9747_v50  ;;  %v9749_v41 = vpop.permute.xlu1 %1460  ;;  %v528_v50 = vld [vmem:[#allocation2 + $0x189] sm:$0xff] }
 0x1f0   :  { %14514 = vst [vmem:[#allocation201_spill] sm:$0xff] %v9749_v41  ;;  %1702 = vrot.lane.b32.xlu0 %v523_v45, %s8572_s10 }
 0x1f1   :  { %1704 = vrot.lane.b32.xlu1 %v524_v48, %s8572_s10  ;;  %v529_v48 = vld [vmem:[#allocation2 + $0x1c9] sm:$0xff] }
 0x1f2   :  { %v9753_v34 = vpop.permute.xlu0 %1462 }
 0x1f3   :  { %14515 = vst [vmem:[#allocation202_spill] sm:$0xff] %v9753_v34  ;;  %v9755_v20 = vpop.permute.xlu1 %1464  ;;  %v530_v34 = vld [vmem:[#allocation2 + $0x1d1] sm:$0xff] }
 0x1f4   :  { %14516 = vst [vmem:[#allocation203_spill] sm:$0xff] %v9755_v20  ;;  %1706 = vrot.lane.b32.xlu0 %v525_v46, %s8572_s10 }
 0x1f5   :  { %1708 = vrot.lane.b32.xlu1 %v526_v32, %s8572_s10  ;;  %v531_v32 = vld [vmem:[#allocation2 + $0x1e1] sm:$0xff] }
 0x1f6   :  { %v9759_v43 = vpop.permute.xlu0 %1466 }
 0x1f7   :  { %14517 = vst [vmem:[#allocation204_spill] sm:$0xff] %v9759_v43  ;;  %v9761_v0 = vpop.permute.xlu1 %1468  ;;  %v532_v43 = vld [vmem:[#allocation2 + $0x1e9] sm:$0xff] }
 0x1f8   :  { %14518 = vst [vmem:[#allocation205_spill] sm:$0xff] %v9761_v0  ;;  %1710 = vrot.lane.b32.xlu0 %v527_v39, %s8572_s10 }
 0x1f9   :  { %1712 = vrot.lane.b32.xlu1 %v528_v50, %s8572_s10  ;;  %v533_v50 = vld [vmem:[#allocation2 + $0x1f9] sm:$0xff] }
 0x1fa   :  { %v9765_v45 = vpop.permute.xlu0 %1470 }
 0x1fb   :  { %14519 = vst [vmem:[#allocation206_spill] sm:$0xff] %v9765_v45  ;;  %v9767_v41 = vpop.permute.xlu1 %1472  ;;  %v534_v45 = vld [vmem:[#allocation2 + $0x201] sm:$0xff] }
 0x1fc   :  { %14520 = vst [vmem:[#allocation207_spill] sm:$0xff] %v9767_v41  ;;  %1714 = vrot.lane.b32.xlu0 %v529_v48, %s8572_s10 }
 0x1fd   :  { %1716 = vrot.lane.b32.xlu1 %v530_v34, %s8572_s10  ;;  %v535_v34 = vld [vmem:[#allocation2 + $0x211] sm:$0xff] }
 0x1fe   :  { %v9771_v46 = vpop.permute.xlu0 %1474 }
 0x1ff   :  { %14521 = vst [vmem:[#allocation208_spill] sm:$0xff] %v9771_v46  ;;  %v9773_v20 = vpop.permute.xlu1 %1476  ;;  %v536_v46 = vld [vmem:[#allocation2 + $0x219] sm:$0xff] }
 0x200   :  { %14522 = vst [vmem:[#allocation209_spill] sm:$0xff] %v9773_v20  ;;  %1718 = vrot.lane.b32.xlu0 %v531_v32, %s8572_s10 }
 0x201   :  { %1720 = vrot.lane.b32.xlu1 %v532_v43, %s8572_s10  ;;  %v537_v43 = vld [vmem:[#allocation2 + $0x229] sm:$0xff] }
 0x202   :  { %v9777_v39 = vpop.permute.xlu0 %1478 }
 0x203   :  { %14523 = vst [vmem:[#allocation210_spill] sm:$0xff] %v9777_v39  ;;  %v9779_v0 = vpop.permute.xlu1 %1480  ;;  %v538_v39 = vld [vmem:[#allocation2 + $0x231] sm:$0xff] }
 0x204   :  { %14524 = vst [vmem:[#allocation211_spill] sm:$0xff] %v9779_v0  ;;  %1722 = vrot.lane.b32.xlu0 %v533_v50, %s8572_s10 }
 0x205   :  { %1724 = vrot.lane.b32.xlu1 %v534_v45, %s8572_s10  ;;  %v539_v45 = vld [vmem:[#allocation2 + $0x241] sm:$0xff] }
 0x206   :  { %v9783_v48 = vpop.permute.xlu0 %1482 }
 0x207   :  { %14525 = vst [vmem:[#allocation212_spill] sm:$0xff] %v9783_v48  ;;  %v9785_v41 = vpop.permute.xlu1 %1484  ;;  %v540_v48 = vld [vmem:[#allocation2 + $0x249] sm:$0xff] }
 0x208   :  { %14526 = vst [vmem:[#allocation213_spill] sm:$0xff] %v9785_v41  ;;  %1726 = vrot.lane.b32.xlu0 %v535_v34, %s8572_s10 }
 0x209   :  { %1728 = vrot.lane.b32.xlu1 %v536_v46, %s8572_s10  ;;  %v541_v46 = vld [vmem:[#allocation2 + $0x259] sm:$0xff] }
 0x20a   :  { %v9789_v32 = vpop.permute.xlu0 %1486 }
 0x20b   :  { %14527 = vst [vmem:[#allocation214_spill] sm:$0xff] %v9789_v32  ;;  %v9791_v20 = vpop.permute.xlu1 %1488  ;;  %v542_v32 = vld [vmem:[#allocation2 + $0x261] sm:$0xff] }
 0x20c   :  { %14528 = vst [vmem:[#allocation215_spill] sm:$0xff] %v9791_v20  ;;  %1730 = vrot.lane.b32.xlu0 %v537_v43, %s8572_s10 }
 0x20d   :  { %1732 = vrot.lane.b32.xlu1 %v538_v39, %s8572_s10  ;;  %v543_v39 = vld [vmem:[#allocation2 + $0x271] sm:$0xff] }
 0x20e   :  { %v9795_v50 = vpop.permute.xlu0 %1490 }
 0x20f   :  { %14529 = vst [vmem:[#allocation216_spill] sm:$0xff] %v9795_v50  ;;  %v9797_v0 = vpop.permute.xlu1 %1492  ;;  %v544_v50 = vld [vmem:[#allocation2 + $0x279] sm:$0xff] }
 0x210   :  { %14530 = vst [vmem:[#allocation217_spill] sm:$0xff] %v9797_v0  ;;  %1734 = vrot.lane.b32.xlu0 %v539_v45, %s8572_s10 }
 0x211   :  { %1736 = vrot.lane.b32.xlu1 %v540_v48, %s8572_s10  ;;  %v545_v48 = vld [vmem:[#allocation2 + $0x289] sm:$0xff] }
 0x212   :  { %v9801_v34 = vpop.permute.xlu0 %1494 }
 0x213   :  { %14531 = vst [vmem:[#allocation218_spill] sm:$0xff] %v9801_v34  ;;  %v9803_v41 = vpop.permute.xlu1 %1496  ;;  %v546_v34 = vld [vmem:[#allocation2 + $0x291] sm:$0xff] }
 0x214   :  { %14532 = vst [vmem:[#allocation219_spill] sm:$0xff] %v9803_v41  ;;  %1738 = vrot.lane.b32.xlu0 %v541_v46, %s8572_s10 }
 0x215   :  { %1740 = vrot.lane.b32.xlu1 %v542_v32, %s8572_s10  ;;  %v547_v32 = vld [vmem:[#allocation2 + $0x2a1] sm:$0xff] }
 0x216   :  { %v9807_v43 = vpop.permute.xlu0 %1498 }
 0x217   :  { %14533 = vst [vmem:[#allocation220_spill] sm:$0xff] %v9807_v43  ;;  %v9809_v20 = vpop.permute.xlu1 %1500  ;;  %v548_v43 = vld [vmem:[#allocation2 + $0x2a9] sm:$0xff] }
 0x218   :  { %14534 = vst [vmem:[#allocation221_spill] sm:$0xff] %v9809_v20  ;;  %1742 = vrot.lane.b32.xlu0 %v543_v39, %s8572_s10 }
 0x219   :  { %1744 = vrot.lane.b32.xlu1 %v544_v50, %s8572_s10  ;;  %v549_v50 = vld [vmem:[#allocation2 + $0x2b9] sm:$0xff] }
 0x21a   :  { %v9813_v45 = vpop.permute.xlu0 %1502 }
 0x21b   :  { %14535 = vst [vmem:[#allocation222_spill] sm:$0xff] %v9813_v45  ;;  %v9815_v0 = vpop.permute.xlu1 %1504  ;;  %v550_v45 = vld [vmem:[#allocation2 + $0x2c1] sm:$0xff] }
 0x21c   :  { %14536 = vst [vmem:[#allocation223_spill] sm:$0xff] %v9815_v0  ;;  %1746 = vrot.lane.b32.xlu0 %v545_v48, %s8572_s10 }
 0x21d   :  { %1748 = vrot.lane.b32.xlu1 %v546_v34, %s8572_s10  ;;  %v551_v34 = vld [vmem:[#allocation2 + $0x2d1] sm:$0xff] }
 0x21e   :  { %v9819_v46 = vpop.permute.xlu0 %1506 }
 0x21f   :  { %14537 = vst [vmem:[#allocation224_spill] sm:$0xff] %v9819_v46  ;;  %v9821_v41 = vpop.permute.xlu1 %1508  ;;  %v552_v46 = vld [vmem:[#allocation2 + $0x2d9] sm:$0xff] }
 0x220   :  { %14538 = vst [vmem:[#allocation225_spill] sm:$0xff] %v9821_v41  ;;  %1750 = vrot.lane.b32.xlu0 %v547_v32, %s8572_s10 }
 0x221   :  { %1752 = vrot.lane.b32.xlu1 %v548_v43, %s8572_s10  ;;  %v553_v43 = vld [vmem:[#allocation2 + $0x2e9] sm:$0xff] }
 0x222   :  { %v9825_v39 = vpop.permute.xlu0 %1510 }
 0x223   :  { %14539 = vst [vmem:[#allocation226_spill] sm:$0xff] %v9825_v39  ;;  %v9827_v20 = vpop.permute.xlu1 %1512  ;;  %v554_v39 = vld [vmem:[#allocation2 + $0x2f1] sm:$0xff] }
 0x224   :  { %14540 = vst [vmem:[#allocation227_spill] sm:$0xff] %v9827_v20  ;;  %1754 = vrot.lane.b32.xlu0 %v549_v50, %s8572_s10 }
 0x225   :  { %1756 = vrot.lane.b32.xlu1 %v550_v45, %s8572_s10  ;;  %v555_v45 = vld [vmem:[#allocation2 + $0x301] sm:$0xff] }
 0x226   :  { %v9831_v48 = vpop.permute.xlu0 %1514 }
 0x227   :  { %14541 = vst [vmem:[#allocation228_spill] sm:$0xff] %v9831_v48  ;;  %v9833_v0 = vpop.permute.xlu1 %1516  ;;  %v556_v48 = vld [vmem:[#allocation2 + $0x309] sm:$0xff] }
 0x228   :  { %14542 = vst [vmem:[#allocation229_spill] sm:$0xff] %v9833_v0  ;;  %1758 = vrot.lane.b32.xlu0 %v551_v34, %s8572_s10 }
 0x229   :  { %1760 = vrot.lane.b32.xlu1 %v552_v46, %s8572_s10  ;;  %v557_v46 = vld [vmem:[#allocation2 + $0x319] sm:$0xff] }
 0x22a   :  { %v9837_v32 = vpop.permute.xlu0 %1518 }
 0x22b   :  { %14543 = vst [vmem:[#allocation230_spill] sm:$0xff] %v9837_v32  ;;  %v9839_v41 = vpop.permute.xlu1 %1520  ;;  %v558_v32 = vld [vmem:[#allocation2 + $0x321] sm:$0xff] }
 0x22c   :  { %14544 = vst [vmem:[#allocation231_spill] sm:$0xff] %v9839_v41  ;;  %1762 = vrot.lane.b32.xlu0 %v553_v43, %s8572_s10  ;;  %v560_v41 = vld [vmem:[#allocation2 + $0x339] sm:$0xff] }
 0x22d   :  { %1764 = vrot.lane.b32.xlu1 %v554_v39, %s8572_s10  ;;  %v559_v39 = vld [vmem:[#allocation2 + $0x331] sm:$0xff] }
 0x22e   :  { %v9843_v50 = vpop.permute.xlu0 %1650 }
 0x22f   :  { %v9845_v20 = vpop.permute.xlu1 %1652 }
 0x230   :  { %1766 = vrot.lane.b32.xlu0 %v555_v45, %s8572_s10 }
 0x231   :  { %1768 = vrot.lane.b32.xlu1 %v556_v48, %s8572_s10  ;;  %v561_v48 = vld [vmem:[#allocation2 + $0x1a] sm:$0xff] }
 0x232   :  { %v9849_v34 = vpop.permute.xlu0 %1654 }
 0x233   :  { %v9851_v0 = vpop.permute.xlu1 %1656 }
 0x234   :  { %1770 = vrot.lane.b32.xlu0 %v557_v46, %s8572_s10 }
 0x235   :  { %1772 = vrot.lane.b32.xlu1 %v558_v32, %s8572_s10  ;;  %v563_v32 = vld [vmem:[#allocation2 + $0x32] sm:$0xff] }
 0x236   :  { %v9855_v43 = vpop.permute.xlu0 %1658 }
 0x237   :  { %v9857_v18 = vpop.permute.xlu1 %1660 }
 0x238   :  { %1774 = vrot.lane.b32.xlu0 %v559_v39, %s8572_s10 }
 0x239   :  { %1776 = vrot.lane.b32.xlu1 %v560_v41, %s8572_s10  ;;  %v565_v41 = vld [vmem:[#allocation2 + $0x4a] sm:$0xff] }
 0x23a   :  { %v9861_v45 = vpop.permute.xlu0 %1662 }
 0x23b   :  { %14545 = vst [vmem:[#allocation232_spill] sm:$0xff] %v9861_v45  ;;  %v9863_v24 = vpop.permute.xlu1 %1664  ;;  %v8451_v45 = vld [vmem:[#allocation2 + $0x38] sm:$0xff] }
 0x23c   :  { %14546 = vst [vmem:[#allocation233_spill] sm:$0xff] %v9863_v24  ;;  %1906 = vrot.lane.b32.xlu0 %v561_v48, %s8573_s11 }
 0x23d   :  { %1908 = vrot.lane.b32.xlu1 %v562_v30, %s8573_s11  ;;  %v567_v30 = vld [vmem:[#allocation2 + $0x62] sm:$0xff] }
 0x23e   :  { %v9867_v46 = vpop.permute.xlu0 %1666 }
 0x23f   :  { %14547 = vst [vmem:[#allocation234_spill] sm:$0xff] %v9867_v46  ;;  %v9869_v62 = vpop.permute.xlu1 %1668  ;;  %v695_v46 = vld [vmem:[#allocation2 + $0x69] sm:$0xff] }
 0x240   :  { %14548 = vst [vmem:[#allocation235_spill] sm:$0xff] %v9869_v62  ;;  %1910 = vrot.lane.b32.xlu0 %v563_v32, %s8573_s11  ;;  %v693_v62 = vld [vmem:[#allocation2 + $0x51] sm:$0xff] }
 0x241   :  { %1912 = vrot.lane.b32.xlu1 %v564_v52, %s8573_s11  ;;  %v569_v52 = vld [vmem:[#allocation2 + $0x7a] sm:$0xff] }
 0x242   :  { %v9873_v39 = vpop.permute.xlu0 %1670 }
 0x243   :  { %14549 = vst [vmem:[#allocation236_spill] sm:$0xff] %v9873_v39  ;;  %v9875_v16 = vpop.permute.xlu1 %1672  ;;  %v631_v39 = vld [vmem:[#allocation2 + $0x68] sm:$0xff] }
 0x244   :  { %14550 = vst [vmem:[#allocation237_spill] sm:$0xff] %v9875_v16  ;;  %1914 = vrot.lane.b32.xlu0 %v565_v41, %s8573_s11  ;;  %v629_v16 = vld [vmem:[#allocation2 + $0x50] sm:$0xff] }
 0x245   :  { %1916 = vrot.lane.b32.xlu1 %v566_v47, %s8573_s11  ;;  %v571_v47 = vld [vmem:[#allocation2 + $0x92] sm:$0xff] }
 0x246   :  { %v9879_v48 = vpop.permute.xlu0 %1674 }
 0x247   :  { %14551 = vst [vmem:[#allocation238_spill] sm:$0xff] %v9879_v48  ;;  %v9881_v26 = vpop.permute.xlu1 %1676  ;;  %v572_v48 = vld [vmem:[#allocation2 + $0x9a] sm:$0xff] }
 0x248   :  { %14552 = vst [vmem:[#allocation239_spill] sm:$0xff] %v9881_v26  ;;  %1918 = vrot.lane.b32.xlu0 %v567_v30, %s8573_s11 }
 0x249   :  { %1920 = vrot.lane.b32.xlu1 %v568_v21, %s8573_s11  ;;  %v573_v21 = vld [vmem:[#allocation2 + $0xaa] sm:$0xff] }
 0x24a   :  { %v9885_v32 = vpop.permute.xlu0 %1678 }
 0x24b   :  { %14553 = vst [vmem:[#allocation240_spill] sm:$0xff] %v9885_v32  ;;  %v9887_v23 = vpop.permute.xlu1 %1680  ;;  %v574_v32 = vld [vmem:[#allocation2 + $0xb2] sm:$0xff] }
 0x24c   :  { %14554 = vst [vmem:[#allocation241_spill] sm:$0xff] %v9887_v23  ;;  %1922 = vrot.lane.b32.xlu0 %v569_v52, %s8573_s11 }
 0x24d   :  { %1924 = vrot.lane.b32.xlu1 %v570_v54, %s8573_s11  ;;  %v575_v54 = vld [vmem:[#allocation2 + $0xc2] sm:$0xff] }
 0x24e   :  { %v9891_v41 = vpop.permute.xlu0 %1682 }
 0x24f   :  { %14555 = vst [vmem:[#allocation242_spill] sm:$0xff] %v9891_v41  ;;  %v9893_v49 = vpop.permute.xlu1 %1684  ;;  %v576_v41 = vld [vmem:[#allocation2 + $0xca] sm:$0xff] }
 0x250   :  { %14556 = vst [vmem:[#allocation243_spill] sm:$0xff] %v9893_v49  ;;  %1926 = vrot.lane.b32.xlu0 %v571_v47, %s8573_s11 }
 0x251   :  { %1928 = vrot.lane.b32.xlu1 %v572_v48, %s8573_s11  ;;  %v577_v48 = vld [vmem:[#allocation2 + $0xda] sm:$0xff] }
 0x252   :  { %v9897_v30 = vpop.permute.xlu0 %1686 }
 0x253   :  { %14557 = vst [vmem:[#allocation244_spill] sm:$0xff] %v9897_v30  ;;  %v9899_v26 = vpop.permute.xlu1 %1688  ;;  %v578_v30 = vld [vmem:[#allocation2 + $0xe2] sm:$0xff] }
 0x254   :  { %14558 = vst [vmem:[#allocation245_spill] sm:$0xff] %v9899_v26  ;;  %1930 = vrot.lane.b32.xlu0 %v573_v21, %s8573_s11 }
 0x255   :  { %1932 = vrot.lane.b32.xlu1 %v574_v32, %s8573_s11  ;;  %v579_v32 = vld [vmem:[#allocation2 + $0xf2] sm:$0xff] }
 0x256   :  { %v9903_v52 = vpop.permute.xlu0 %1690 }
 0x257   :  { %14559 = vst [vmem:[#allocation246_spill] sm:$0xff] %v9903_v52  ;;  %v9905_v23 = vpop.permute.xlu1 %1692  ;;  %v580_v52 = vld [vmem:[#allocation2 + $0xfa] sm:$0xff] }
 0x258   :  { %14560 = vst [vmem:[#allocation247_spill] sm:$0xff] %v9905_v23  ;;  %1934 = vrot.lane.b32.xlu0 %v575_v54, %s8573_s11 }
 0x259   :  { %1936 = vrot.lane.b32.xlu1 %v576_v41, %s8573_s11  ;;  %v581_v41 = vld [vmem:[#allocation2 + $0x10a] sm:$0xff] }
 0x25a   :  { %v9909_v47 = vpop.permute.xlu0 %1694 }
 0x25b   :  { %14561 = vst [vmem:[#allocation248_spill] sm:$0xff] %v9909_v47  ;;  %v9911_v49 = vpop.permute.xlu1 %1696  ;;  %v582_v47 = vld [vmem:[#allocation2 + $0x112] sm:$0xff] }
 0x25c   :  { %14562 = vst [vmem:[#allocation249_spill] sm:$0xff] %v9911_v49  ;;  %1938 = vrot.lane.b32.xlu0 %v577_v48, %s8573_s11 }
 0x25d   :  { %1940 = vrot.lane.b32.xlu1 %v578_v30, %s8573_s11  ;;  %v583_v30 = vld [vmem:[#allocation2 + $0x122] sm:$0xff] }
 0x25e   :  { %v9915_v21 = vpop.permute.xlu0 %1698 }
 0x25f   :  { %14563 = vst [vmem:[#allocation250_spill] sm:$0xff] %v9915_v21  ;;  %v9917_v26 = vpop.permute.xlu1 %1700  ;;  %v584_v21 = vld [vmem:[#allocation2 + $0x12a] sm:$0xff] }
 0x260   :  { %14564 = vst [vmem:[#allocation251_spill] sm:$0xff] %v9917_v26  ;;  %1942 = vrot.lane.b32.xlu0 %v579_v32, %s8573_s11 }
 0x261   :  { %1944 = vrot.lane.b32.xlu1 %v580_v52, %s8573_s11  ;;  %v585_v52 = vld [vmem:[#allocation2 + $0x13a] sm:$0xff] }
 0x262   :  { %v9921_v54 = vpop.permute.xlu0 %1702 }
 0x263   :  { %14565 = vst [vmem:[#allocation252_spill] sm:$0xff] %v9921_v54  ;;  %v9923_v23 = vpop.permute.xlu1 %1704  ;;  %v586_v54 = vld [vmem:[#allocation2 + $0x142] sm:$0xff] }
 0x264   :  { %14566 = vst [vmem:[#allocation253_spill] sm:$0xff] %v9923_v23  ;;  %1946 = vrot.lane.b32.xlu0 %v581_v41, %s8573_s11 }
 0x265   :  { %1948 = vrot.lane.b32.xlu1 %v582_v47, %s8573_s11  ;;  %v587_v47 = vld [vmem:[#allocation2 + $0x152] sm:$0xff] }
 0x266   :  { %v9927_v48 = vpop.permute.xlu0 %1706 }
 0x267   :  { %14567 = vst [vmem:[#allocation254_spill] sm:$0xff] %v9927_v48  ;;  %v9929_v49 = vpop.permute.xlu1 %1708  ;;  %v588_v48 = vld [vmem:[#allocation2 + $0x15a] sm:$0xff] }
 0x268   :  { %14568 = vst [vmem:[#allocation255_spill] sm:$0xff] %v9929_v49  ;;  %1950 = vrot.lane.b32.xlu0 %v583_v30, %s8573_s11 }
 0x269   :  { %1952 = vrot.lane.b32.xlu1 %v584_v21, %s8573_s11  ;;  %v589_v21 = vld [vmem:[#allocation2 + $0x16a] sm:$0xff] }
 0x26a   :  { %v9933_v32 = vpop.permute.xlu0 %1710 }
 0x26b   :  { %14569 = vst [vmem:[#allocation256_spill] sm:$0xff] %v9933_v32  ;;  %v9935_v26 = vpop.permute.xlu1 %1712  ;;  %v590_v32 = vld [vmem:[#allocation2 + $0x172] sm:$0xff] }
 0x26c   :  { %14570 = vst [vmem:[#allocation257_spill] sm:$0xff] %v9935_v26  ;;  %1954 = vrot.lane.b32.xlu0 %v585_v52, %s8573_s11 }
 0x26d   :  { %1956 = vrot.lane.b32.xlu1 %v586_v54, %s8573_s11  ;;  %v591_v54 = vld [vmem:[#allocation2 + $0x182] sm:$0xff] }
 0x26e   :  { %v9939_v41 = vpop.permute.xlu0 %1714 }
 0x26f   :  { %14571 = vst [vmem:[#allocation258_spill] sm:$0xff] %v9939_v41  ;;  %v9941_v23 = vpop.permute.xlu1 %1716  ;;  %v592_v41 = vld [vmem:[#allocation2 + $0x18a] sm:$0xff] }
 0x270   :  { %14572 = vst [vmem:[#allocation259_spill] sm:$0xff] %v9941_v23  ;;  %1958 = vrot.lane.b32.xlu0 %v587_v47, %s8573_s11 }
 0x271   :  { %1960 = vrot.lane.b32.xlu1 %v588_v48, %s8573_s11  ;;  %v593_v48 = vld [vmem:[#allocation2 + $0x1ca] sm:$0xff] }
 0x272   :  { %v9945_v30 = vpop.permute.xlu0 %1718 }
 0x273   :  { %14573 = vst [vmem:[#allocation260_spill] sm:$0xff] %v9945_v30  ;;  %v9947_v49 = vpop.permute.xlu1 %1720  ;;  %v594_v30 = vld [vmem:[#allocation2 + $0x1d2] sm:$0xff] }
 0x274   :  { %14574 = vst [vmem:[#allocation261_spill] sm:$0xff] %v9947_v49  ;;  %1962 = vrot.lane.b32.xlu0 %v589_v21, %s8573_s11 }
 0x275   :  { %1964 = vrot.lane.b32.xlu1 %v590_v32, %s8573_s11  ;;  %v595_v32 = vld [vmem:[#allocation2 + $0x1e2] sm:$0xff] }
 0x276   :  { %v9951_v52 = vpop.permute.xlu0 %1722 }
 0x277   :  { %14575 = vst [vmem:[#allocation262_spill] sm:$0xff] %v9951_v52  ;;  %v9953_v26 = vpop.permute.xlu1 %1724  ;;  %v596_v52 = vld [vmem:[#allocation2 + $0x1ea] sm:$0xff] }
 0x278   :  { %14576 = vst [vmem:[#allocation263_spill] sm:$0xff] %v9953_v26  ;;  %1966 = vrot.lane.b32.xlu0 %v591_v54, %s8573_s11 }
 0x279   :  { %1968 = vrot.lane.b32.xlu1 %v592_v41, %s8573_s11  ;;  %v597_v41 = vld [vmem:[#allocation2 + $0x1fa] sm:$0xff] }
 0x27a   :  { %v9957_v47 = vpop.permute.xlu0 %1726 }
 0x27b   :  { %14577 = vst [vmem:[#allocation264_spill] sm:$0xff] %v9957_v47  ;;  %v9959_v23 = vpop.permute.xlu1 %1728  ;;  %v598_v47 = vld [vmem:[#allocation2 + $0x202] sm:$0xff] }
 0x27c   :  { %14578 = vst [vmem:[#allocation265_spill] sm:$0xff] %v9959_v23  ;;  %1970 = vrot.lane.b32.xlu0 %v593_v48, %s8573_s11 }
 0x27d   :  { %1972 = vrot.lane.b32.xlu1 %v594_v30, %s8573_s11  ;;  %v599_v30 = vld [vmem:[#allocation2 + $0x212] sm:$0xff] }
 0x27e   :  { %v9963_v21 = vpop.permute.xlu0 %1730 }
 0x27f   :  { %14579 = vst [vmem:[#allocation266_spill] sm:$0xff] %v9963_v21  ;;  %v9965_v49 = vpop.permute.xlu1 %1732  ;;  %v600_v21 = vld [vmem:[#allocation2 + $0x21a] sm:$0xff] }
 0x280   :  { %14580 = vst [vmem:[#allocation267_spill] sm:$0xff] %v9965_v49  ;;  %1974 = vrot.lane.b32.xlu0 %v595_v32, %s8573_s11 }
 0x281   :  { %1976 = vrot.lane.b32.xlu1 %v596_v52, %s8573_s11  ;;  %v601_v52 = vld [vmem:[#allocation2 + $0x22a] sm:$0xff] }
 0x282   :  { %v9969_v54 = vpop.permute.xlu0 %1734 }
 0x283   :  { %14581 = vst [vmem:[#allocation268_spill] sm:$0xff] %v9969_v54  ;;  %v9971_v26 = vpop.permute.xlu1 %1736  ;;  %v602_v54 = vld [vmem:[#allocation2 + $0x232] sm:$0xff] }
 0x284   :  { %14582 = vst [vmem:[#allocation269_spill] sm:$0xff] %v9971_v26  ;;  %1978 = vrot.lane.b32.xlu0 %v597_v41, %s8573_s11 }
 0x285   :  { %1980 = vrot.lane.b32.xlu1 %v598_v47, %s8573_s11  ;;  %v603_v47 = vld [vmem:[#allocation2 + $0x242] sm:$0xff] }
 0x286   :  { %v9975_v48 = vpop.permute.xlu0 %1738 }
 0x287   :  { %14583 = vst [vmem:[#allocation270_spill] sm:$0xff] %v9975_v48  ;;  %v9977_v23 = vpop.permute.xlu1 %1740  ;;  %v604_v48 = vld [vmem:[#allocation2 + $0x24a] sm:$0xff] }
 0x288   :  { %14584 = vst [vmem:[#allocation271_spill] sm:$0xff] %v9977_v23  ;;  %1982 = vrot.lane.b32.xlu0 %v599_v30, %s8573_s11 }
 0x289   :  { %1984 = vrot.lane.b32.xlu1 %v600_v21, %s8573_s11  ;;  %v605_v21 = vld [vmem:[#allocation2 + $0x25a] sm:$0xff] }
 0x28a   :  { %v9981_v32 = vpop.permute.xlu0 %1742 }
 0x28b   :  { %14585 = vst [vmem:[#allocation272_spill] sm:$0xff] %v9981_v32  ;;  %v9983_v49 = vpop.permute.xlu1 %1744  ;;  %v606_v32 = vld [vmem:[#allocation2 + $0x262] sm:$0xff] }
 0x28c   :  { %14586 = vst [vmem:[#allocation273_spill] sm:$0xff] %v9983_v49  ;;  %1986 = vrot.lane.b32.xlu0 %v601_v52, %s8573_s11 }
 0x28d   :  { %1988 = vrot.lane.b32.xlu1 %v602_v54, %s8573_s11  ;;  %v607_v54 = vld [vmem:[#allocation2 + $0x272] sm:$0xff] }
 0x28e   :  { %v9987_v41 = vpop.permute.xlu0 %1746 }
 0x28f   :  { %14587 = vst [vmem:[#allocation274_spill] sm:$0xff] %v9987_v41  ;;  %v9989_v26 = vpop.permute.xlu1 %1748  ;;  %v608_v41 = vld [vmem:[#allocation2 + $0x27a] sm:$0xff] }
 0x290   :  { %14588 = vst [vmem:[#allocation275_spill] sm:$0xff] %v9989_v26  ;;  %1990 = vrot.lane.b32.xlu0 %v603_v47, %s8573_s11 }
 0x291   :  { %1992 = vrot.lane.b32.xlu1 %v604_v48, %s8573_s11  ;;  %v609_v48 = vld [vmem:[#allocation2 + $0x28a] sm:$0xff] }
 0x292   :  { %v9993_v30 = vpop.permute.xlu0 %1750 }
 0x293   :  { %14589 = vst [vmem:[#allocation276_spill] sm:$0xff] %v9993_v30  ;;  %v9995_v23 = vpop.permute.xlu1 %1752  ;;  %v610_v30 = vld [vmem:[#allocation2 + $0x292] sm:$0xff] }
 0x294   :  { %14590 = vst [vmem:[#allocation277_spill] sm:$0xff] %v9995_v23  ;;  %1994 = vrot.lane.b32.xlu0 %v605_v21, %s8573_s11 }
 0x295   :  { %1996 = vrot.lane.b32.xlu1 %v606_v32, %s8573_s11  ;;  %v611_v32 = vld [vmem:[#allocation2 + $0x2a2] sm:$0xff] }
 0x296   :  { %v9999_v52 = vpop.permute.xlu0 %1754 }
 0x297   :  { %14591 = vst [vmem:[#allocation278_spill] sm:$0xff] %v9999_v52  ;;  %v10001_v49 = vpop.permute.xlu1 %1756  ;;  %v612_v52 = vld [vmem:[#allocation2 + $0x2aa] sm:$0xff] }
 0x298   :  { %14592 = vst [vmem:[#allocation279_spill] sm:$0xff] %v10001_v49  ;;  %1998 = vrot.lane.b32.xlu0 %v607_v54, %s8573_s11 }
 0x299   :  { %2000 = vrot.lane.b32.xlu1 %v608_v41, %s8573_s11  ;;  %v613_v41 = vld [vmem:[#allocation2 + $0x2ba] sm:$0xff] }
 0x29a   :  { %v10005_v47 = vpop.permute.xlu0 %1758 }
 0x29b   :  { %14593 = vst [vmem:[#allocation280_spill] sm:$0xff] %v10005_v47  ;;  %v10007_v26 = vpop.permute.xlu1 %1760  ;;  %v614_v47 = vld [vmem:[#allocation2 + $0x2c2] sm:$0xff] }
 0x29c   :  { %14594 = vst [vmem:[#allocation281_spill] sm:$0xff] %v10007_v26  ;;  %2002 = vrot.lane.b32.xlu0 %v609_v48, %s8573_s11 }
 0x29d   :  { %2004 = vrot.lane.b32.xlu1 %v610_v30, %s8573_s11  ;;  %v615_v30 = vld [vmem:[#allocation2 + $0x2d2] sm:$0xff] }
 0x29e   :  { %v10011_v21 = vpop.permute.xlu0 %1762 }
 0x29f   :  { %14595 = vst [vmem:[#allocation282_spill] sm:$0xff] %v10011_v21  ;;  %v10013_v23 = vpop.permute.xlu1 %1764  ;;  %v616_v21 = vld [vmem:[#allocation2 + $0x2da] sm:$0xff] }
 0x2a0   :  { %14596 = vst [vmem:[#allocation283_spill] sm:$0xff] %v10013_v23  ;;  %2006 = vrot.lane.b32.xlu0 %v611_v32, %s8573_s11 }
 0x2a1   :  { %2008 = vrot.lane.b32.xlu1 %v612_v52, %s8573_s11  ;;  %v617_v52 = vld [vmem:[#allocation2 + $0x2ea] sm:$0xff] }
 0x2a2   :  { %v10017_v54 = vpop.permute.xlu0 %1766 }
 0x2a3   :  { %14597 = vst [vmem:[#allocation284_spill] sm:$0xff] %v10017_v54  ;;  %v10019_v49 = vpop.permute.xlu1 %1768  ;;  %v618_v54 = vld [vmem:[#allocation2 + $0x2f2] sm:$0xff] }
 0x2a4   :  { %14598 = vst [vmem:[#allocation285_spill] sm:$0xff] %v10019_v49  ;;  %2010 = vrot.lane.b32.xlu0 %v613_v41, %s8573_s11 }
 0x2a5   :  { %2012 = vrot.lane.b32.xlu1 %v614_v47, %s8573_s11  ;;  %v619_v47 = vld [vmem:[#allocation2 + $0x302] sm:$0xff] }
 0x2a6   :  { %v10023_v48 = vpop.permute.xlu0 %1770 }
 0x2a7   :  { %14599 = vst [vmem:[#allocation286_spill] sm:$0xff] %v10023_v48  ;;  %v10025_v26 = vpop.permute.xlu1 %1772  ;;  %v620_v48 = vld [vmem:[#allocation2 + $0x30a] sm:$0xff] }
 0x2a8   :  { %14600 = vst [vmem:[#allocation287_spill] sm:$0xff] %v10025_v26  ;;  %2014 = vrot.lane.b32.xlu0 %v615_v30, %s8573_s11 }
 0x2a9   :  { %2016 = vrot.lane.b32.xlu1 %v616_v21, %s8573_s11  ;;  %v621_v21 = vld [vmem:[#allocation2 + $0x31a] sm:$0xff] }
 0x2aa   :  { %v10029_v32 = vpop.permute.xlu0 %1774 }
 0x2ab   :  { %14601 = vst [vmem:[#allocation288_spill] sm:$0xff] %v10029_v32  ;;  %v10031_v23 = vpop.permute.xlu1 %1776  ;;  %v622_v32 = vld [vmem:[#allocation2 + $0x322] sm:$0xff] }
 0x2ac   :  { %14602 = vst [vmem:[#allocation289_spill] sm:$0xff] %v10031_v23  ;;  %2018 = vrot.lane.b32.xlu0 %v617_v52, %s8573_s11  ;;  %v624_v23 = vld [vmem:[#allocation2 + $0x33a] sm:$0xff] }
 0x2ad   :  { %2020 = vrot.lane.b32.xlu1 %v618_v54, %s8573_s11  ;;  %v623_v54 = vld [vmem:[#allocation2 + $0x332] sm:$0xff] }
 0x2ae   :  { %v10035_v41 = vpop.permute.xlu0 %1906 }
 0x2af   :  { %v10037_v49 = vpop.permute.xlu1 %1908 }
 0x2b0   :  { %2022 = vrot.lane.b32.xlu0 %v619_v47, %s8573_s11 }
 0x2b1   :  { %2024 = vrot.lane.b32.xlu1 %v620_v48, %s8573_s11  ;;  %v626_v48 = vld [vmem:[#allocation2 + $0x30] sm:$0xff] }
 0x2b2   :  { %v10041_v30 = vpop.permute.xlu0 %1910 }
 0x2b3   :  { %v10043_v26 = vpop.permute.xlu1 %1912 }
 0x2b4   :  { %2026 = vrot.lane.b32.xlu0 %v621_v21, %s8573_s11 }
 0x2b5   :  { %2028 = vrot.lane.b32.xlu1 %v622_v32, %s8573_s11  ;;  %v628_v32 = vld [vmem:[#allocation2 + $0x48] sm:$0xff] }
 0x2b6   :  { %v10047_v52 = vpop.permute.xlu0 %1914 }
 0x2b7   :  { %v10049_v14 = vpop.permute.xlu1 %1916 }
 0x2b8   :  { %2030 = vrot.lane.b32.xlu0 %v623_v54, %s8573_s11 }
 0x2b9   :  { %2032 = vrot.lane.b32.xlu1 %v624_v23, %s8573_s11  ;;  %v630_v23 = vld [vmem:[#allocation2 + $0x60] sm:$0xff] }
 0x2ba   :  { %v10053_v47 = vpop.permute.xlu0 %1918 }
 0x2bb   :  { %14603 = vst [vmem:[#allocation290_spill] sm:$0xff] %v10053_v47  ;;  %v10055_v40 = vpop.permute.xlu1 %1920 }
 0x2bc   :  { %14604 = vst [vmem:[#allocation291_spill] sm:$0xff] %v10055_v40  ;;  %2162 = vrot.lane.b32.xlu0 %v626_v48, %s8574_s12  ;;  %v757_v40 = vld [vmem:[#allocation2 + $0x52] sm:$0xff] }
 0x2bd   :  { %2164 = vrot.lane.b32.xlu1 %v627_v19, %s8574_s12  ;;  %v632_v19 = vld [vmem:[#allocation2 + $0x78] sm:$0xff] }
 0x2be   :  { %v10059_v21 = vpop.permute.xlu0 %1922 }
 0x2bf   :  { %14605 = vst [vmem:[#allocation292_spill] sm:$0xff] %v10059_v21  ;;  %v10061_v58 = vpop.permute.xlu1 %1924 }
 0x2c0   :  { %14606 = vst [vmem:[#allocation293_spill] sm:$0xff] %v10061_v58  ;;  %2166 = vrot.lane.b32.xlu0 %v628_v32, %s8574_s12 }
 0x2c1   :  { %2168 = vrot.lane.b32.xlu1 %v629_v16, %s8574_s12  ;;  %v634_v16 = vld [vmem:[#allocation2 + $0x90] sm:$0xff] }
 0x2c2   :  { %v10065_v54 = vpop.permute.xlu0 %1926 }
 0x2c3   :  { %14607 = vst [vmem:[#allocation294_spill] sm:$0xff] %v10065_v54  ;;  %v10067_v57 = vpop.permute.xlu1 %1928  ;;  %v635_v54 = vld [vmem:[#allocation2 + $0x98] sm:$0xff] }
 0x2c4   :  { %14608 = vst [vmem:[#allocation295_spill] sm:$0xff] %v10067_v57  ;;  %2170 = vrot.lane.b32.xlu0 %v630_v23, %s8574_s12 }
 0x2c5   :  { %2172 = vrot.lane.b32.xlu1 %v631_v39, %s8574_s12  ;;  %v636_v39 = vld [vmem:[#allocation2 + $0xa8] sm:$0xff] }
 0x2c6   :  { %v10071_v48 = vpop.permute.xlu0 %1930 }
 0x2c7   :  { %14609 = vst [vmem:[#allocation296_spill] sm:$0xff] %v10071_v48  ;;  %v10073_v12 = vpop.permute.xlu1 %1932  ;;  %v637_v48 = vld [vmem:[#allocation2 + $0xb0] sm:$0xff] }
 0x2c8   :  { %14610 = vst [vmem:[#allocation297_spill] sm:$0xff] %v10073_v12  ;;  %2174 = vrot.lane.b32.xlu0 %v632_v19, %s8574_s12 }
 0x2c9   :  { %2176 = vrot.lane.b32.xlu1 %v633_v36, %s8574_s12  ;;  %v638_v36 = vld [vmem:[#allocation2 + $0xc0] sm:$0xff] }
 0x2ca   :  { %v10077_v32 = vpop.permute.xlu0 %1934 }
 0x2cb   :  { %14611 = vst [vmem:[#allocation298_spill] sm:$0xff] %v10077_v32  ;;  %v10079_v58 = vpop.permute.xlu1 %1936  ;;  %v639_v32 = vld [vmem:[#allocation2 + $0xc8] sm:$0xff] }
 0x2cc   :  { %14612 = vst [vmem:[#allocation299_spill] sm:$0xff] %v10079_v58  ;;  %2178 = vrot.lane.b32.xlu0 %v634_v16, %s8574_s12 }
 0x2cd   :  { %2180 = vrot.lane.b32.xlu1 %v635_v54, %s8574_s12  ;;  %v640_v54 = vld [vmem:[#allocation2 + $0xd8] sm:$0xff] }
 0x2ce   :  { %v10083_v23 = vpop.permute.xlu0 %1938 }
 0x2cf   :  { %14613 = vst [vmem:[#allocation300_spill] sm:$0xff] %v10083_v23  ;;  %v10085_v57 = vpop.permute.xlu1 %1940  ;;  %v641_v23 = vld [vmem:[#allocation2 + $0xe0] sm:$0xff] }
 0x2d0   :  { %14614 = vst [vmem:[#allocation301_spill] sm:$0xff] %v10085_v57  ;;  %2182 = vrot.lane.b32.xlu0 %v636_v39, %s8574_s12 }
 0x2d1   :  { %2184 = vrot.lane.b32.xlu1 %v637_v48, %s8574_s12  ;;  %v642_v48 = vld [vmem:[#allocation2 + $0xf0] sm:$0xff] }
 0x2d2   :  { %v10089_v19 = vpop.permute.xlu0 %1942 }
 0x2d3   :  { %14615 = vst [vmem:[#allocation302_spill] sm:$0xff] %v10089_v19  ;;  %v10091_v12 = vpop.permute.xlu1 %1944  ;;  %v643_v19 = vld [vmem:[#allocation2 + $0xf8] sm:$0xff] }
 0x2d4   :  { %14616 = vst [vmem:[#allocation303_spill] sm:$0xff] %v10091_v12  ;;  %2186 = vrot.lane.b32.xlu0 %v638_v36, %s8574_s12 }
 0x2d5   :  { %2188 = vrot.lane.b32.xlu1 %v639_v32, %s8574_s12  ;;  %v644_v32 = vld [vmem:[#allocation2 + $0x108] sm:$0xff] }
 0x2d6   :  { %v10095_v16 = vpop.permute.xlu0 %1946 }
 0x2d7   :  { %14617 = vst [vmem:[#allocation304_spill] sm:$0xff] %v10095_v16  ;;  %v10097_v58 = vpop.permute.xlu1 %1948  ;;  %v645_v16 = vld [vmem:[#allocation2 + $0x110] sm:$0xff] }
 0x2d8   :  { %14618 = vst [vmem:[#allocation305_spill] sm:$0xff] %v10097_v58  ;;  %2190 = vrot.lane.b32.xlu0 %v640_v54, %s8574_s12 }
 0x2d9   :  { %2192 = vrot.lane.b32.xlu1 %v641_v23, %s8574_s12  ;;  %v646_v23 = vld [vmem:[#allocation2 + $0x120] sm:$0xff] }
 0x2da   :  { %v10101_v39 = vpop.permute.xlu0 %1950 }
 0x2db   :  { %14619 = vst [vmem:[#allocation306_spill] sm:$0xff] %v10101_v39  ;;  %v10103_v57 = vpop.permute.xlu1 %1952  ;;  %v647_v39 = vld [vmem:[#allocation2 + $0x128] sm:$0xff] }
 0x2dc   :  { %14620 = vst [vmem:[#allocation307_spill] sm:$0xff] %v10103_v57  ;;  %2194 = vrot.lane.b32.xlu0 %v642_v48, %s8574_s12 }
 0x2dd   :  { %2196 = vrot.lane.b32.xlu1 %v643_v19, %s8574_s12  ;;  %v648_v19 = vld [vmem:[#allocation2 + $0x138] sm:$0xff] }
 0x2de   :  { %v10107_v36 = vpop.permute.xlu0 %1954 }
 0x2df   :  { %14621 = vst [vmem:[#allocation308_spill] sm:$0xff] %v10107_v36  ;;  %v10109_v12 = vpop.permute.xlu1 %1956  ;;  %v649_v36 = vld [vmem:[#allocation2 + $0x140] sm:$0xff] }
 0x2e0   :  { %14622 = vst [vmem:[#allocation309_spill] sm:$0xff] %v10109_v12  ;;  %2198 = vrot.lane.b32.xlu0 %v644_v32, %s8574_s12 }
 0x2e1   :  { %2200 = vrot.lane.b32.xlu1 %v645_v16, %s8574_s12  ;;  %v650_v16 = vld [vmem:[#allocation2 + $0x150] sm:$0xff] }
 0x2e2   :  { %v10113_v54 = vpop.permute.xlu0 %1958 }
 0x2e3   :  { %14623 = vst [vmem:[#allocation310_spill] sm:$0xff] %v10113_v54  ;;  %v10115_v58 = vpop.permute.xlu1 %1960  ;;  %v651_v54 = vld [vmem:[#allocation2 + $0x158] sm:$0xff] }
 0x2e4   :  { %14624 = vst [vmem:[#allocation311_spill] sm:$0xff] %v10115_v58  ;;  %2202 = vrot.lane.b32.xlu0 %v646_v23, %s8574_s12 }
 0x2e5   :  { %2204 = vrot.lane.b32.xlu1 %v647_v39, %s8574_s12  ;;  %v652_v39 = vld [vmem:[#allocation2 + $0x168] sm:$0xff] }
 0x2e6   :  { %v10119_v48 = vpop.permute.xlu0 %1962 }
 0x2e7   :  { %14625 = vst [vmem:[#allocation312_spill] sm:$0xff] %v10119_v48  ;;  %v10121_v57 = vpop.permute.xlu1 %1964  ;;  %v653_v48 = vld [vmem:[#allocation2 + $0x170] sm:$0xff] }
 0x2e8   :  { %14626 = vst [vmem:[#allocation313_spill] sm:$0xff] %v10121_v57  ;;  %2206 = vrot.lane.b32.xlu0 %v648_v19, %s8574_s12 }
 0x2e9   :  { %2208 = vrot.lane.b32.xlu1 %v649_v36, %s8574_s12  ;;  %v654_v36 = vld [vmem:[#allocation2 + $0x180] sm:$0xff] }
 0x2ea   :  { %v10125_v32 = vpop.permute.xlu0 %1966 }
 0x2eb   :  { %14627 = vst [vmem:[#allocation314_spill] sm:$0xff] %v10125_v32  ;;  %v10127_v12 = vpop.permute.xlu1 %1968  ;;  %v655_v32 = vld [vmem:[#allocation2 + $0x188] sm:$0xff] }
 0x2ec   :  { %14628 = vst [vmem:[#allocation315_spill] sm:$0xff] %v10127_v12  ;;  %2210 = vrot.lane.b32.xlu0 %v650_v16, %s8574_s12 }
 0x2ed   :  { %2212 = vrot.lane.b32.xlu1 %v651_v54, %s8574_s12  ;;  %v656_v54 = vld [vmem:[#allocation2 + $0x198] sm:$0xff] }
 0x2ee   :  { %v10131_v23 = vpop.permute.xlu0 %1970 }
 0x2ef   :  { %14629 = vst [vmem:[#allocation316_spill] sm:$0xff] %v10131_v23  ;;  %v10133_v58 = vpop.permute.xlu1 %1972  ;;  %v657_v23 = vld [vmem:[#allocation2 + $0x1a0] sm:$0xff] }
 0x2f0   :  { %14630 = vst [vmem:[#allocation317_spill] sm:$0xff] %v10133_v58  ;;  %2214 = vrot.lane.b32.xlu0 %v652_v39, %s8574_s12 }
 0x2f1   :  { %2216 = vrot.lane.b32.xlu1 %v653_v48, %s8574_s12  ;;  %v658_v48 = vld [vmem:[#allocation2 + $0x1e0] sm:$0xff] }
 0x2f2   :  { %v10137_v19 = vpop.permute.xlu0 %1974 }
 0x2f3   :  { %14631 = vst [vmem:[#allocation318_spill] sm:$0xff] %v10137_v19  ;;  %v10139_v57 = vpop.permute.xlu1 %1976  ;;  %v659_v19 = vld [vmem:[#allocation2 + $0x1e8] sm:$0xff] }
 0x2f4   :  { %14632 = vst [vmem:[#allocation319_spill] sm:$0xff] %v10139_v57  ;;  %2218 = vrot.lane.b32.xlu0 %v654_v36, %s8574_s12 }
 0x2f5   :  { %2220 = vrot.lane.b32.xlu1 %v655_v32, %s8574_s12  ;;  %v660_v32 = vld [vmem:[#allocation2 + $0x1f8] sm:$0xff] }
 0x2f6   :  { %v10143_v16 = vpop.permute.xlu0 %1978 }
 0x2f7   :  { %14633 = vst [vmem:[#allocation320_spill] sm:$0xff] %v10143_v16  ;;  %v10145_v12 = vpop.permute.xlu1 %1980  ;;  %v661_v16 = vld [vmem:[#allocation2 + $0x200] sm:$0xff] }
 0x2f8   :  { %14634 = vst [vmem:[#allocation321_spill] sm:$0xff] %v10145_v12  ;;  %2222 = vrot.lane.b32.xlu0 %v656_v54, %s8574_s12 }
 0x2f9   :  { %2224 = vrot.lane.b32.xlu1 %v657_v23, %s8574_s12  ;;  %v662_v23 = vld [vmem:[#allocation2 + $0x210] sm:$0xff] }
 0x2fa   :  { %v10149_v39 = vpop.permute.xlu0 %1982 }
 0x2fb   :  { %14635 = vst [vmem:[#allocation322_spill] sm:$0xff] %v10149_v39  ;;  %v10151_v58 = vpop.permute.xlu1 %1984  ;;  %v663_v39 = vld [vmem:[#allocation2 + $0x218] sm:$0xff] }
 0x2fc   :  { %14636 = vst [vmem:[#allocation323_spill] sm:$0xff] %v10151_v58  ;;  %2226 = vrot.lane.b32.xlu0 %v658_v48, %s8574_s12 }
 0x2fd   :  { %2228 = vrot.lane.b32.xlu1 %v659_v19, %s8574_s12  ;;  %v664_v19 = vld [vmem:[#allocation2 + $0x228] sm:$0xff] }
 0x2fe   :  { %v10155_v36 = vpop.permute.xlu0 %1986 }
 0x2ff   :  { %14637 = vst [vmem:[#allocation324_spill] sm:$0xff] %v10155_v36  ;;  %v10157_v57 = vpop.permute.xlu1 %1988  ;;  %v665_v36 = vld [vmem:[#allocation2 + $0x230] sm:$0xff] }
 0x300   :  { %14638 = vst [vmem:[#allocation325_spill] sm:$0xff] %v10157_v57  ;;  %2230 = vrot.lane.b32.xlu0 %v660_v32, %s8574_s12 }
 0x301   :  { %2232 = vrot.lane.b32.xlu1 %v661_v16, %s8574_s12  ;;  %v666_v16 = vld [vmem:[#allocation2 + $0x240] sm:$0xff] }
 0x302   :  { %v10161_v54 = vpop.permute.xlu0 %1990 }
 0x303   :  { %14639 = vst [vmem:[#allocation326_spill] sm:$0xff] %v10161_v54  ;;  %v10163_v12 = vpop.permute.xlu1 %1992  ;;  %v667_v54 = vld [vmem:[#allocation2 + $0x248] sm:$0xff] }
 0x304   :  { %14640 = vst [vmem:[#allocation327_spill] sm:$0xff] %v10163_v12  ;;  %2234 = vrot.lane.b32.xlu0 %v662_v23, %s8574_s12 }
 0x305   :  { %2236 = vrot.lane.b32.xlu1 %v663_v39, %s8574_s12  ;;  %v668_v39 = vld [vmem:[#allocation2 + $0x258] sm:$0xff] }
 0x306   :  { %v10167_v48 = vpop.permute.xlu0 %1994 }
 0x307   :  { %14641 = vst [vmem:[#allocation328_spill] sm:$0xff] %v10167_v48  ;;  %v10169_v58 = vpop.permute.xlu1 %1996  ;;  %v669_v48 = vld [vmem:[#allocation2 + $0x260] sm:$0xff] }
 0x308   :  { %14642 = vst [vmem:[#allocation329_spill] sm:$0xff] %v10169_v58  ;;  %2238 = vrot.lane.b32.xlu0 %v664_v19, %s8574_s12 }
 0x309   :  { %2240 = vrot.lane.b32.xlu1 %v665_v36, %s8574_s12  ;;  %v670_v36 = vld [vmem:[#allocation2 + $0x270] sm:$0xff] }
 0x30a   :  { %v10173_v32 = vpop.permute.xlu0 %1998 }
 0x30b   :  { %14643 = vst [vmem:[#allocation330_spill] sm:$0xff] %v10173_v32  ;;  %v10175_v57 = vpop.permute.xlu1 %2000  ;;  %v671_v32 = vld [vmem:[#allocation2 + $0x278] sm:$0xff] }
 0x30c   :  { %14644 = vst [vmem:[#allocation331_spill] sm:$0xff] %v10175_v57  ;;  %2242 = vrot.lane.b32.xlu0 %v666_v16, %s8574_s12 }
 0x30d   :  { %2244 = vrot.lane.b32.xlu1 %v667_v54, %s8574_s12  ;;  %v672_v54 = vld [vmem:[#allocation2 + $0x288] sm:$0xff] }
 0x30e   :  { %v10179_v23 = vpop.permute.xlu0 %2002 }
 0x30f   :  { %14645 = vst [vmem:[#allocation332_spill] sm:$0xff] %v10179_v23  ;;  %v10181_v12 = vpop.permute.xlu1 %2004  ;;  %v673_v23 = vld [vmem:[#allocation2 + $0x290] sm:$0xff] }
 0x310   :  { %14646 = vst [vmem:[#allocation333_spill] sm:$0xff] %v10181_v12  ;;  %2246 = vrot.lane.b32.xlu0 %v668_v39, %s8574_s12 }
 0x311   :  { %2248 = vrot.lane.b32.xlu1 %v669_v48, %s8574_s12  ;;  %v674_v48 = vld [vmem:[#allocation2 + $0x2a0] sm:$0xff] }
 0x312   :  { %v10185_v19 = vpop.permute.xlu0 %2006 }
 0x313   :  { %14647 = vst [vmem:[#allocation334_spill] sm:$0xff] %v10185_v19  ;;  %v10187_v58 = vpop.permute.xlu1 %2008  ;;  %v675_v19 = vld [vmem:[#allocation2 + $0x2a8] sm:$0xff] }
 0x314   :  { %14648 = vst [vmem:[#allocation335_spill] sm:$0xff] %v10187_v58  ;;  %2250 = vrot.lane.b32.xlu0 %v670_v36, %s8574_s12 }
 0x315   :  { %2252 = vrot.lane.b32.xlu1 %v671_v32, %s8574_s12  ;;  %v676_v32 = vld [vmem:[#allocation2 + $0x2b8] sm:$0xff] }
 0x316   :  { %v10191_v16 = vpop.permute.xlu0 %2010 }
 0x317   :  { %14649 = vst [vmem:[#allocation336_spill] sm:$0xff] %v10191_v16  ;;  %v10193_v57 = vpop.permute.xlu1 %2012  ;;  %v677_v16 = vld [vmem:[#allocation2 + $0x2c0] sm:$0xff] }
 0x318   :  { %14650 = vst [vmem:[#allocation337_spill] sm:$0xff] %v10193_v57  ;;  %2254 = vrot.lane.b32.xlu0 %v672_v54, %s8574_s12 }
 0x319   :  { %2256 = vrot.lane.b32.xlu1 %v673_v23, %s8574_s12  ;;  %v678_v23 = vld [vmem:[#allocation2 + $0x2d0] sm:$0xff] }
 0x31a   :  { %v10197_v39 = vpop.permute.xlu0 %2014 }
 0x31b   :  { %14651 = vst [vmem:[#allocation338_spill] sm:$0xff] %v10197_v39  ;;  %v10199_v12 = vpop.permute.xlu1 %2016  ;;  %v679_v39 = vld [vmem:[#allocation2 + $0x2d8] sm:$0xff] }
 0x31c   :  { %14652 = vst [vmem:[#allocation339_spill] sm:$0xff] %v10199_v12  ;;  %2258 = vrot.lane.b32.xlu0 %v674_v48, %s8574_s12 }
 0x31d   :  { %2260 = vrot.lane.b32.xlu1 %v675_v19, %s8574_s12  ;;  %v680_v19 = vld [vmem:[#allocation2 + $0x2e8] sm:$0xff] }
 0x31e   :  { %v10203_v36 = vpop.permute.xlu0 %2018 }
 0x31f   :  { %14653 = vst [vmem:[#allocation340_spill] sm:$0xff] %v10203_v36  ;;  %v10205_v58 = vpop.permute.xlu1 %2020  ;;  %v681_v36 = vld [vmem:[#allocation2 + $0x2f0] sm:$0xff] }
 0x320   :  { %14654 = vst [vmem:[#allocation341_spill] sm:$0xff] %v10205_v58  ;;  %2262 = vrot.lane.b32.xlu0 %v676_v32, %s8574_s12 }
 0x321   :  { %2264 = vrot.lane.b32.xlu1 %v677_v16, %s8574_s12  ;;  %v682_v16 = vld [vmem:[#allocation2 + $0x300] sm:$0xff] }
 0x322   :  { %v10209_v54 = vpop.permute.xlu0 %2022 }
 0x323   :  { %14655 = vst [vmem:[#allocation342_spill] sm:$0xff] %v10209_v54  ;;  %v10211_v57 = vpop.permute.xlu1 %2024  ;;  %v683_v54 = vld [vmem:[#allocation2 + $0x308] sm:$0xff] }
 0x324   :  { %14656 = vst [vmem:[#allocation343_spill] sm:$0xff] %v10211_v57  ;;  %2266 = vrot.lane.b32.xlu0 %v678_v23, %s8574_s12 }
 0x325   :  { %2268 = vrot.lane.b32.xlu1 %v679_v39, %s8574_s12  ;;  %v684_v39 = vld [vmem:[#allocation2 + $0x318] sm:$0xff] }
 0x326   :  { %v10215_v48 = vpop.permute.xlu0 %2026 }
 0x327   :  { %14657 = vst [vmem:[#allocation344_spill] sm:$0xff] %v10215_v48  ;;  %v10217_v12 = vpop.permute.xlu1 %2028  ;;  %v685_v48 = vld [vmem:[#allocation2 + $0x320] sm:$0xff] }
 0x328   :  { %14658 = vst [vmem:[#allocation345_spill] sm:$0xff] %v10217_v12  ;;  %2270 = vrot.lane.b32.xlu0 %v680_v19, %s8574_s12 }
 0x329   :  { %2272 = vrot.lane.b32.xlu1 %v681_v36, %s8574_s12  ;;  %v686_v36 = vld [vmem:[#allocation2 + $0x330] sm:$0xff] }
 0x32a   :  { %v10221_v32 = vpop.permute.xlu0 %2030 }
 0x32b   :  { %14659 = vst [vmem:[#allocation346_spill] sm:$0xff] %v10221_v32  ;;  %v10223_v58 = vpop.permute.xlu1 %2032  ;;  %v687_v32 = vld [vmem:[#allocation2 + $0x338] sm:$0xff] }
 0x32c   :  { %14660 = vst [vmem:[#allocation347_spill] sm:$0xff] %v10223_v58  ;;  %2274 = vrot.lane.b32.xlu0 %v682_v16, %s8574_s12  ;;  %v689_v58 = vld [vmem:[#allocation2 + $0x350] sm:$0xff] }
 0x32d   :  { %2276 = vrot.lane.b32.xlu1 %v683_v54, %s8574_s12  ;;  %v688_v54 = vld [vmem:[#allocation2 + $0x348] sm:$0xff] }
 0x32e   :  { %v10227_v23 = vpop.permute.xlu0 %2162 }
 0x32f   :  { %v10229_v57 = vpop.permute.xlu1 %2164 }
 0x330   :  { %2278 = vrot.lane.b32.xlu0 %v684_v39, %s8574_s12 }
 0x331   :  { %2280 = vrot.lane.b32.xlu1 %v685_v48, %s8574_s12  ;;  %v690_v48 = vld [vmem:[#allocation2 + $0x31] sm:$0xff] }
 0x332   :  { %v10233_v19 = vpop.permute.xlu0 %2166 }
 0x333   :  { %v10235_v12 = vpop.permute.xlu1 %2168 }
 0x334   :  { %2282 = vrot.lane.b32.xlu0 %v686_v36, %s8574_s12 }
 0x335   :  { %2284 = vrot.lane.b32.xlu1 %v687_v32, %s8574_s12  ;;  %v692_v32 = vld [vmem:[#allocation2 + $0x49] sm:$0xff] }
 0x336   :  { %v10239_v16 = vpop.permute.xlu0 %2170 }
 0x337   :  { %v10241_v4 = vpop.permute.xlu1 %2172 }
 0x338   :  { %2286 = vrot.lane.b32.xlu0 %v688_v54, %s8574_s12 }
 0x339   :  { %2288 = vrot.lane.b32.xlu1 %v689_v58, %s8574_s12  ;;  %v694_v58 = vld [vmem:[#allocation2 + $0x61] sm:$0xff] }
 0x33a   :  { %v10245_v39 = vpop.permute.xlu0 %2174 }
 0x33b   :  { %14661 = vst [vmem:[#allocation348_spill] sm:$0xff] %v10245_v39  ;;  %v10247_v21 = vpop.permute.xlu1 %2176 }
 0x33c   :  { %14662 = vst [vmem:[#allocation349_spill] sm:$0xff] %v10247_v21  ;;  %2418 = vrot.lane.b32.xlu0 %v690_v48, %s8575_s13 }
 0x33d   :  { %2420 = vrot.lane.b32.xlu1 %v691_v60, %s8575_s13  ;;  %v696_v60 = vld [vmem:[#allocation2 + $0x79] sm:$0xff] }
 0x33e   :  { %v10251_v36 = vpop.permute.xlu0 %2178 }
 0x33f   :  { %14663 = vst [vmem:[#allocation350_spill] sm:$0xff] %v10251_v36  ;;  %v10253_v63 = vpop.permute.xlu1 %2180  ;;  %v697_v36 = vld [vmem:[#allocation2 + $0x81] sm:$0xff] }
 0x340   :  { %14664 = vst [vmem:[#allocation351_spill] sm:$0xff] %v10253_v63  ;;  %2422 = vrot.lane.b32.xlu0 %v692_v32, %s8575_s13 }
 0x341   :  { %2424 = vrot.lane.b32.xlu1 %v693_v62, %s8575_s13  ;;  %v698_v62 = vld [vmem:[#allocation2 + $0x91] sm:$0xff] }
 0x342   :  { %v10257_v54 = vpop.permute.xlu0 %2182 }
 0x343   :  { %14665 = vst [vmem:[#allocation352_spill] sm:$0xff] %v10257_v54  ;;  %v10259_v31 = vpop.permute.xlu1 %2184  ;;  %v699_v54 = vld [vmem:[#allocation2 + $0x99] sm:$0xff] }
 0x344   :  { %14666 = vst [vmem:[#allocation353_spill] sm:$0xff] %v10259_v31  ;;  %2426 = vrot.lane.b32.xlu0 %v694_v58, %s8575_s13 }
 0x345   :  { %2428 = vrot.lane.b32.xlu1 %v695_v46, %s8575_s13  ;;  %v700_v46 = vld [vmem:[#allocation2 + $0xa9] sm:$0xff] }
 0x346   :  { %v10263_v48 = vpop.permute.xlu0 %2186 }
 0x347   :  { %14667 = vst [vmem:[#allocation354_spill] sm:$0xff] %v10263_v48  ;;  %v10265_v21 = vpop.permute.xlu1 %2188  ;;  %v701_v48 = vld [vmem:[#allocation2 + $0xb1] sm:$0xff] }
 0x348   :  { %14668 = vst [vmem:[#allocation355_spill] sm:$0xff] %v10265_v21  ;;  %2430 = vrot.lane.b32.xlu0 %v696_v60, %s8575_s13 }
 0x349   :  { %2432 = vrot.lane.b32.xlu1 %v697_v36, %s8575_s13  ;;  %v702_v36 = vld [vmem:[#allocation2 + $0xc1] sm:$0xff] }
 0x34a   :  { %v10269_v32 = vpop.permute.xlu0 %2190 }
 0x34b   :  { %14669 = vst [vmem:[#allocation356_spill] sm:$0xff] %v10269_v32  ;;  %v10271_v63 = vpop.permute.xlu1 %2192  ;;  %v703_v32 = vld [vmem:[#allocation2 + $0xc9] sm:$0xff] }
 0x34c   :  { %14670 = vst [vmem:[#allocation357_spill] sm:$0xff] %v10271_v63  ;;  %2434 = vrot.lane.b32.xlu0 %v698_v62, %s8575_s13 }
 0x34d   :  { %2436 = vrot.lane.b32.xlu1 %v699_v54, %s8575_s13  ;;  %v704_v54 = vld [vmem:[#allocation2 + $0xd9] sm:$0xff] }
 0x34e   :  { %v10275_v58 = vpop.permute.xlu0 %2194 }
 0x34f   :  { %14671 = vst [vmem:[#allocation358_spill] sm:$0xff] %v10275_v58  ;;  %v10277_v31 = vpop.permute.xlu1 %2196  ;;  %v705_v58 = vld [vmem:[#allocation2 + $0xe1] sm:$0xff] }
 0x350   :  { %14672 = vst [vmem:[#allocation359_spill] sm:$0xff] %v10277_v31  ;;  %2438 = vrot.lane.b32.xlu0 %v700_v46, %s8575_s13 }
 0x351   :  { %2440 = vrot.lane.b32.xlu1 %v701_v48, %s8575_s13  ;;  %v706_v48 = vld [vmem:[#allocation2 + $0xf1] sm:$0xff] }
 0x352   :  { %v10281_v60 = vpop.permute.xlu0 %2198 }
 0x353   :  { %14673 = vst [vmem:[#allocation360_spill] sm:$0xff] %v10281_v60  ;;  %v10283_v21 = vpop.permute.xlu1 %2200  ;;  %v707_v60 = vld [vmem:[#allocation2 + $0xf9] sm:$0xff] }
 0x354   :  { %14674 = vst [vmem:[#allocation361_spill] sm:$0xff] %v10283_v21  ;;  %2442 = vrot.lane.b32.xlu0 %v702_v36, %s8575_s13 }
 0x355   :  { %2444 = vrot.lane.b32.xlu1 %v703_v32, %s8575_s13  ;;  %v708_v32 = vld [vmem:[#allocation2 + $0x109] sm:$0xff] }
 0x356   :  { %v10287_v62 = vpop.permute.xlu0 %2202 }
 0x357   :  { %14675 = vst [vmem:[#allocation362_spill] sm:$0xff] %v10287_v62  ;;  %v10289_v63 = vpop.permute.xlu1 %2204  ;;  %v709_v62 = vld [vmem:[#allocation2 + $0x111] sm:$0xff] }
 0x358   :  { %14676 = vst [vmem:[#allocation363_spill] sm:$0xff] %v10289_v63  ;;  %2446 = vrot.lane.b32.xlu0 %v704_v54, %s8575_s13 }
 0x359   :  { %2448 = vrot.lane.b32.xlu1 %v705_v58, %s8575_s13  ;;  %v710_v58 = vld [vmem:[#allocation2 + $0x121] sm:$0xff] }
 0x35a   :  { %v10293_v46 = vpop.permute.xlu0 %2206 }
 0x35b   :  { %14677 = vst [vmem:[#allocation364_spill] sm:$0xff] %v10293_v46  ;;  %v10295_v31 = vpop.permute.xlu1 %2208  ;;  %v711_v46 = vld [vmem:[#allocation2 + $0x129] sm:$0xff] }
 0x35c   :  { %14678 = vst [vmem:[#allocation365_spill] sm:$0xff] %v10295_v31  ;;  %2450 = vrot.lane.b32.xlu0 %v706_v48, %s8575_s13 }
 0x35d   :  { %2452 = vrot.lane.b32.xlu1 %v707_v60, %s8575_s13  ;;  %v712_v60 = vld [vmem:[#allocation2 + $0x139] sm:$0xff] }
 0x35e   :  { %v10299_v36 = vpop.permute.xlu0 %2210 }
 0x35f   :  { %14679 = vst [vmem:[#allocation366_spill] sm:$0xff] %v10299_v36  ;;  %v10301_v21 = vpop.permute.xlu1 %2212  ;;  %v713_v36 = vld [vmem:[#allocation2 + $0x141] sm:$0xff] }
 0x360   :  { %14680 = vst [vmem:[#allocation367_spill] sm:$0xff] %v10301_v21  ;;  %2454 = vrot.lane.b32.xlu0 %v708_v32, %s8575_s13 }
 0x361   :  { %2456 = vrot.lane.b32.xlu1 %v709_v62, %s8575_s13  ;;  %v714_v62 = vld [vmem:[#allocation2 + $0x151] sm:$0xff] }
 0x362   :  { %v10305_v54 = vpop.permute.xlu0 %2214 }
 0x363   :  { %14681 = vst [vmem:[#allocation368_spill] sm:$0xff] %v10305_v54  ;;  %v10307_v63 = vpop.permute.xlu1 %2216  ;;  %v715_v54 = vld [vmem:[#allocation2 + $0x159] sm:$0xff] }
 0x364   :  { %14682 = vst [vmem:[#allocation369_spill] sm:$0xff] %v10307_v63  ;;  %2458 = vrot.lane.b32.xlu0 %v710_v58, %s8575_s13 }
 0x365   :  { %2460 = vrot.lane.b32.xlu1 %v711_v46, %s8575_s13  ;;  %v716_v46 = vld [vmem:[#allocation2 + $0x169] sm:$0xff] }
 0x366   :  { %v10311_v48 = vpop.permute.xlu0 %2218 }
 0x367   :  { %14683 = vst [vmem:[#allocation370_spill] sm:$0xff] %v10311_v48  ;;  %v10313_v31 = vpop.permute.xlu1 %2220  ;;  %v717_v48 = vld [vmem:[#allocation2 + $0x171] sm:$0xff] }
 0x368   :  { %14684 = vst [vmem:[#allocation371_spill] sm:$0xff] %v10313_v31  ;;  %2462 = vrot.lane.b32.xlu0 %v712_v60, %s8575_s13 }
 0x369   :  { %2464 = vrot.lane.b32.xlu1 %v713_v36, %s8575_s13  ;;  %v718_v36 = vld [vmem:[#allocation2 + $0x181] sm:$0xff] }
 0x36a   :  { %v10317_v32 = vpop.permute.xlu0 %2222 }
 0x36b   :  { %14685 = vst [vmem:[#allocation372_spill] sm:$0xff] %v10317_v32  ;;  %v10319_v21 = vpop.permute.xlu1 %2224  ;;  %v719_v32 = vld [vmem:[#allocation2 + $0x189] sm:$0xff] }
 0x36c   :  { %14686 = vst [vmem:[#allocation373_spill] sm:$0xff] %v10319_v21  ;;  %2466 = vrot.lane.b32.xlu0 %v714_v62, %s8575_s13 }
 0x36d   :  { %2468 = vrot.lane.b32.xlu1 %v715_v54, %s8575_s13  ;;  %v720_v54 = vld [vmem:[#allocation2 + $0x199] sm:$0xff] }
 0x36e   :  { %v10323_v58 = vpop.permute.xlu0 %2226 }
 0x36f   :  { %14687 = vst [vmem:[#allocation374_spill] sm:$0xff] %v10323_v58  ;;  %v10325_v63 = vpop.permute.xlu1 %2228  ;;  %v721_v58 = vld [vmem:[#allocation2 + $0x1a1] sm:$0xff] }
 0x370   :  { %14688 = vst [vmem:[#allocation375_spill] sm:$0xff] %v10325_v63  ;;  %2470 = vrot.lane.b32.xlu0 %v716_v46, %s8575_s13 }
 0x371   :  { %2472 = vrot.lane.b32.xlu1 %v717_v48, %s8575_s13  ;;  %v722_v48 = vld [vmem:[#allocation2 + $0x1e1] sm:$0xff] }
 0x372   :  { %v10329_v60 = vpop.permute.xlu0 %2230 }
 0x373   :  { %14689 = vst [vmem:[#allocation376_spill] sm:$0xff] %v10329_v60  ;;  %v10331_v31 = vpop.permute.xlu1 %2232  ;;  %v723_v60 = vld [vmem:[#allocation2 + $0x1e9] sm:$0xff] }
 0x374   :  { %14690 = vst [vmem:[#allocation377_spill] sm:$0xff] %v10331_v31  ;;  %2474 = vrot.lane.b32.xlu0 %v718_v36, %s8575_s13 }
 0x375   :  { %2476 = vrot.lane.b32.xlu1 %v719_v32, %s8575_s13  ;;  %v724_v32 = vld [vmem:[#allocation2 + $0x1f9] sm:$0xff] }
 0x376   :  { %v10335_v62 = vpop.permute.xlu0 %2234 }
 0x377   :  { %14691 = vst [vmem:[#allocation378_spill] sm:$0xff] %v10335_v62  ;;  %v10337_v21 = vpop.permute.xlu1 %2236  ;;  %v725_v62 = vld [vmem:[#allocation2 + $0x201] sm:$0xff] }
 0x378   :  { %14692 = vst [vmem:[#allocation379_spill] sm:$0xff] %v10337_v21  ;;  %2478 = vrot.lane.b32.xlu0 %v720_v54, %s8575_s13 }
 0x379   :  { %2480 = vrot.lane.b32.xlu1 %v721_v58, %s8575_s13  ;;  %v726_v58 = vld [vmem:[#allocation2 + $0x211] sm:$0xff] }
 0x37a   :  { %v10341_v46 = vpop.permute.xlu0 %2238 }
 0x37b   :  { %14693 = vst [vmem:[#allocation380_spill] sm:$0xff] %v10341_v46  ;;  %v10343_v63 = vpop.permute.xlu1 %2240  ;;  %v727_v46 = vld [vmem:[#allocation2 + $0x219] sm:$0xff] }
 0x37c   :  { %14694 = vst [vmem:[#allocation381_spill] sm:$0xff] %v10343_v63  ;;  %2482 = vrot.lane.b32.xlu0 %v722_v48, %s8575_s13 }
 0x37d   :  { %2484 = vrot.lane.b32.xlu1 %v723_v60, %s8575_s13  ;;  %v728_v60 = vld [vmem:[#allocation2 + $0x229] sm:$0xff] }
 0x37e   :  { %v10347_v36 = vpop.permute.xlu0 %2242 }
 0x37f   :  { %14695 = vst [vmem:[#allocation382_spill] sm:$0xff] %v10347_v36  ;;  %v10349_v31 = vpop.permute.xlu1 %2244  ;;  %v729_v36 = vld [vmem:[#allocation2 + $0x231] sm:$0xff] }
 0x380   :  { %14696 = vst [vmem:[#allocation383_spill] sm:$0xff] %v10349_v31  ;;  %2486 = vrot.lane.b32.xlu0 %v724_v32, %s8575_s13 }
 0x381   :  { %2488 = vrot.lane.b32.xlu1 %v725_v62, %s8575_s13  ;;  %v730_v62 = vld [vmem:[#allocation2 + $0x241] sm:$0xff] }
 0x382   :  { %v10353_v54 = vpop.permute.xlu0 %2246 }
 0x383   :  { %14697 = vst [vmem:[#allocation384_spill] sm:$0xff] %v10353_v54  ;;  %v10355_v21 = vpop.permute.xlu1 %2248  ;;  %v731_v54 = vld [vmem:[#allocation2 + $0x249] sm:$0xff] }
 0x384   :  { %14698 = vst [vmem:[#allocation385_spill] sm:$0xff] %v10355_v21  ;;  %2490 = vrot.lane.b32.xlu0 %v726_v58, %s8575_s13 }
 0x385   :  { %2492 = vrot.lane.b32.xlu1 %v727_v46, %s8575_s13  ;;  %v732_v46 = vld [vmem:[#allocation2 + $0x259] sm:$0xff] }
 0x386   :  { %v10359_v48 = vpop.permute.xlu0 %2250 }
 0x387   :  { %14699 = vst [vmem:[#allocation386_spill] sm:$0xff] %v10359_v48  ;;  %v10361_v63 = vpop.permute.xlu1 %2252  ;;  %v733_v48 = vld [vmem:[#allocation2 + $0x261] sm:$0xff] }
 0x388   :  { %14700 = vst [vmem:[#allocation387_spill] sm:$0xff] %v10361_v63  ;;  %2494 = vrot.lane.b32.xlu0 %v728_v60, %s8575_s13 }
 0x389   :  { %2496 = vrot.lane.b32.xlu1 %v729_v36, %s8575_s13  ;;  %v734_v36 = vld [vmem:[#allocation2 + $0x271] sm:$0xff] }
 0x38a   :  { %v10365_v32 = vpop.permute.xlu0 %2254 }
 0x38b   :  { %14701 = vst [vmem:[#allocation388_spill] sm:$0xff] %v10365_v32  ;;  %v10367_v31 = vpop.permute.xlu1 %2256  ;;  %v735_v32 = vld [vmem:[#allocation2 + $0x279] sm:$0xff] }
 0x38c   :  { %14702 = vst [vmem:[#allocation389_spill] sm:$0xff] %v10367_v31  ;;  %2498 = vrot.lane.b32.xlu0 %v730_v62, %s8575_s13 }
 0x38d   :  { %2500 = vrot.lane.b32.xlu1 %v731_v54, %s8575_s13  ;;  %v736_v54 = vld [vmem:[#allocation2 + $0x289] sm:$0xff] }
 0x38e   :  { %v10371_v58 = vpop.permute.xlu0 %2258 }
 0x38f   :  { %14703 = vst [vmem:[#allocation390_spill] sm:$0xff] %v10371_v58  ;;  %v10373_v21 = vpop.permute.xlu1 %2260  ;;  %v737_v58 = vld [vmem:[#allocation2 + $0x291] sm:$0xff] }
 0x390   :  { %14704 = vst [vmem:[#allocation391_spill] sm:$0xff] %v10373_v21  ;;  %2502 = vrot.lane.b32.xlu0 %v732_v46, %s8575_s13 }
 0x391   :  { %2504 = vrot.lane.b32.xlu1 %v733_v48, %s8575_s13  ;;  %v738_v48 = vld [vmem:[#allocation2 + $0x2a1] sm:$0xff] }
 0x392   :  { %v10377_v60 = vpop.permute.xlu0 %2262 }
 0x393   :  { %14705 = vst [vmem:[#allocation392_spill] sm:$0xff] %v10377_v60  ;;  %v10379_v63 = vpop.permute.xlu1 %2264  ;;  %v739_v60 = vld [vmem:[#allocation2 + $0x2a9] sm:$0xff] }
 0x394   :  { %14706 = vst [vmem:[#allocation393_spill] sm:$0xff] %v10379_v63  ;;  %2506 = vrot.lane.b32.xlu0 %v734_v36, %s8575_s13 }
 0x395   :  { %2508 = vrot.lane.b32.xlu1 %v735_v32, %s8575_s13  ;;  %v740_v32 = vld [vmem:[#allocation2 + $0x2b9] sm:$0xff] }
 0x396   :  { %v10383_v62 = vpop.permute.xlu0 %2266 }
 0x397   :  { %14707 = vst [vmem:[#allocation394_spill] sm:$0xff] %v10383_v62  ;;  %v10385_v31 = vpop.permute.xlu1 %2268  ;;  %v741_v62 = vld [vmem:[#allocation2 + $0x2c1] sm:$0xff] }
 0x398   :  { %14708 = vst [vmem:[#allocation395_spill] sm:$0xff] %v10385_v31  ;;  %2510 = vrot.lane.b32.xlu0 %v736_v54, %s8575_s13 }
 0x399   :  { %2512 = vrot.lane.b32.xlu1 %v737_v58, %s8575_s13  ;;  %v742_v58 = vld [vmem:[#allocation2 + $0x2d1] sm:$0xff] }
 0x39a   :  { %v10389_v46 = vpop.permute.xlu0 %2270 }
 0x39b   :  { %14709 = vst [vmem:[#allocation396_spill] sm:$0xff] %v10389_v46  ;;  %v10391_v21 = vpop.permute.xlu1 %2272  ;;  %v743_v46 = vld [vmem:[#allocation2 + $0x2d9] sm:$0xff] }
 0x39c   :  { %14710 = vst [vmem:[#allocation397_spill] sm:$0xff] %v10391_v21  ;;  %2514 = vrot.lane.b32.xlu0 %v738_v48, %s8575_s13  ;;  %v79_v48 = vld [vmem:[%s14243_s1 + $0x8] sm:$0xff] }
 0x39d   :  { %2516 = vrot.lane.b32.xlu1 %v739_v60, %s8575_s13  ;;  %v78_v60 = vld [vmem:[%s14243_s1] sm:$0xff] }
 0x39e   :  { %v10395_v36 = vpop.permute.xlu0 %2274  ;;  %v749_v21 = vld [vmem:[#allocation2 + $0x321] sm:$0xff] }
 0x39f   :  { %14711 = vst [vmem:[#allocation398_spill] sm:$0xff] %v10395_v36  ;;  %v10397_v63 = vpop.permute.xlu1 %2276 }
 0x3a0   :  { %14712 = vst [vmem:[#allocation399_spill] sm:$0xff] %v10397_v63  ;;  %2518 = vrot.lane.b32.xlu0 %v740_v32, %s8575_s13  ;;  %v744_v32 = vld [vmem:[#allocation2 + $0x2e9] sm:$0xff] }
 0x3a1   :  { %2520 = vrot.lane.b32.xlu1 %v741_v62, %s8575_s13  ;;  %v8423_v62 = vpack.c.bf16 %v79_v48, %v78_v60 }
 0x3a2   :  { %v10401_v54 = vpop.permute.xlu0 %2278 }
 0x3a3   :  { %14713 = vst [vmem:[#allocation400_spill] sm:$0xff] %v10401_v54  ;;  %v10403_v31 = vpop.permute.xlu1 %2280  ;;  %v745_v54 = vld [vmem:[#allocation2 + $0x2f1] sm:$0xff]  ;;  %8424 = vmatprep.subr.bf16.mxu0 %v8423_v62 }
 0x3a4   :  { %14714 = vst [vmem:[#allocation401_spill] sm:$0xff] %v10403_v31  ;;  %2522 = vrot.lane.b32.xlu0 %v742_v58, %s8575_s13  ;;  %8426 = vmatpush3.bf16.msra.mxu0 %v8423_v62  ;;  %v80_v58 = vld [vmem:[%s14243_s1 + $0x10] sm:$0xff]  ;;  %v81_v31 = vld [vmem:[%s14243_s1 + $0x18] sm:$0xff] }
 0x3a5   :  { %2524 = vrot.lane.b32.xlu1 %v743_v46, %s8575_s13  ;;  %v746_v46 = vld [vmem:[#allocation2 + $0x301] sm:$0xff]  ;;  %v8427_v60 = vpack.c.bf16 %v81_v31, %v80_v58 }
 0x3a6   :  { %v10413_v63 = vpop.permute.xlu0 %2282 }
 0x3a7   :  { %14715 = vst [vmem:[#allocation402_spill] sm:$0xff] %v10413_v63  ;;  %v10415_v36 = vpop.permute.xlu1 %2284  ;;  %v747_v63 = vld [vmem:[#allocation2 + $0x309] sm:$0xff]  ;;  %8428 = vmatprep.subr.bf16.mxu0 %v8427_v60 }
 0x3a8   :  { %14716 = vst [vmem:[#allocation403_spill] sm:$0xff] %v10415_v36  ;;  %2526 = vrot.lane.b32.xlu0 %v744_v32, %s8575_s13  ;;  %8430 = vmatpush3.bf16.msra.mxu0 %v8427_v60  ;;  %v748_v32 = vld [vmem:[#allocation2 + $0x319] sm:$0xff] }
 0x3a9   :  { %2528 = vrot.lane.b32.xlu1 %v745_v54, %s8575_s13  ;;  %v82_v54 = vld [vmem:[%s14243_s1 + $0x20] sm:$0xf]  ;;  %s8576_s1 = smov 32  }
 0x3aa   :  { %v10425_v48 = vpop.permute.xlu0 %2286  ;;  %8219 = vmatprep.subr.msk.mxu0 %vm3578_vm3, %v82_v54 }
 0x3ab   :  { %14717 = vst [vmem:[#allocation404_spill] sm:$0xff] %v10425_v48  ;;  %v10427_v36 = vpop.permute.xlu1 %2288 }
 0x3ac   :  { %14718 = vst [vmem:[#allocation405_spill] sm:$0xff] %v10427_v36  ;;  %2530 = vrot.lane.b32.xlu0 %v746_v46, %s8575_s13  ;;  %8220 = vmatpush3.msk.msra.mxu0 %vm3578_vm3, %v82_v54  ;;  %v751_v46 = vld [vmem:[#allocation2 + $0x339] sm:$0xff]  ;;  %v752_v36 = vld [vmem:[#allocation2 + $0x349] sm:$0xff] }
 0x3ad   :  { %2532 = vrot.lane.b32.xlu1 %v747_v63, %s8575_s13  ;;  %v750_v63 = vld [vmem:[#allocation2 + $0x331] sm:$0xff]  ;;  %v755_v54 = vld [vmem:[#allocation2 + $0x3a] sm:$0xff] }
 0x3ae   :  { %v10431_v62 = vpop.permute.xlu0 %2418 }
 0x3af   :  { %v10436_v31 = vpop.permute.xlu1 %2420 }
 0x3b0   :  { %2534 = vrot.lane.b32.xlu0 %v748_v32, %s8575_s13 }
 0x3b1   :  { %2536 = vrot.lane.b32.xlu1 %v749_v21, %s8575_s13  ;;  %v754_v21 = vld [vmem:[#allocation2 + $0x32] sm:$0xff] }
 0x3b2   :  { %v10442_v58 = vpop.permute.xlu0 %2422 }
 0x3b3   :  { %v10444_v60 = vpop.permute.xlu1 %2424 }
 0x3b4   :  { %2538 = vrot.lane.b32.xlu0 %v750_v63, %s8575_s13  ;;  %v756_v63 = vld [vmem:[#allocation2 + $0x4a] sm:$0xff] }
 0x3b5   :  { %2540 = vrot.lane.b32.xlu1 %v751_v46, %s8575_s13 }
 0x3b6   :  { %v10448_v48 = vpop.permute.xlu0 %2426 }
 0x3b7   :  { %v10450_v10 = vpop.permute.xlu1 %2428 }
 0x3b8   :  { %14719 = vst [vmem:[#allocation406_spill] sm:$0xff] %v10450_v10  ;;  %2542 = vrot.lane.b32.xlu0 %v752_v36, %s8575_s13  ;;  %v8450_v10 = vld [vmem:[#allocation2 + $0x30] sm:$0xff] }
 0x3b9   :  { %2544 = vrot.lane.b32.xlu1 %v753_v35, %s8575_s13  ;;  %v758_v35 = vld [vmem:[#allocation2 + $0x62] sm:$0xff] }
 0x3ba   :  { %v10454_v32 = vpop.permute.xlu0 %2430 }
 0x3bb   :  { %14720 = vst [vmem:[#allocation407_spill] sm:$0xff] %v10454_v32  ;;  %v10456_v39 = vpop.permute.xlu1 %2432  ;;  %v759_v32 = vld [vmem:[#allocation2 + $0x6a] sm:$0xff] }
 0x3bc   :  { %14721 = vst [vmem:[#allocation408_spill] sm:$0xff] %v10456_v39  ;;  %2674 = vrot.lane.b32.xlu0 %v754_v21, %s8576_s1  ;;  %v760_v21 = vld [vmem:[#allocation2 + $0x7a] sm:$0xff] }
 0x3bd   :  { %2676 = vrot.lane.b32.xlu1 %v755_v54, %s8576_s1 }
 0x3be   :  { %v10460_v46 = vpop.permute.xlu0 %2434 }
 0x3bf   :  { %14722 = vst [vmem:[#allocation409_spill] sm:$0xff] %v10460_v46  ;;  %v10462_v2 = vpop.permute.xlu1 %2436  ;;  %v761_v46 = vld [vmem:[#allocation2 + $0x82] sm:$0xff] }
 0x3c0   :  { %14723 = vst [vmem:[#allocation410_spill] sm:$0xff] %v10462_v2  ;;  %2678 = vrot.lane.b32.xlu0 %v756_v63, %s8576_s1 }
 0x3c1   :  { %2680 = vrot.lane.b32.xlu1 %v757_v40, %s8576_s1  ;;  %v762_v40 = vld [vmem:[#allocation2 + $0x92] sm:$0xff] }
 0x3c2   :  { %v10466_v36 = vpop.permute.xlu0 %2438 }
 0x3c3   :  { %14724 = vst [vmem:[#allocation411_spill] sm:$0xff] %v10466_v36  ;;  %v10468_v39 = vpop.permute.xlu1 %2440  ;;  %v763_v36 = vld [vmem:[#allocation2 + $0x9a] sm:$0xff] }
 0x3c4   :  { %14725 = vst [vmem:[#allocation412_spill] sm:$0xff] %v10468_v39  ;;  %2682 = vrot.lane.b32.xlu0 %v758_v35, %s8576_s1 }
 0x3c5   :  { %2684 = vrot.lane.b32.xlu1 %v759_v32, %s8576_s1  ;;  %v764_v32 = vld [vmem:[#allocation2 + $0xaa] sm:$0xff] }
 0x3c6   :  { %v10472_v54 = vpop.permute.xlu0 %2442 }
 0x3c7   :  { %14726 = vst [vmem:[#allocation413_spill] sm:$0xff] %v10472_v54  ;;  %v10474_v47 = vpop.permute.xlu1 %2444  ;;  %v765_v54 = vld [vmem:[#allocation2 + $0xb2] sm:$0xff] }
 0x3c8   :  { %14727 = vst [vmem:[#allocation414_spill] sm:$0xff] %v10474_v47  ;;  %2686 = vrot.lane.b32.xlu0 %v760_v21, %s8576_s1 }
 0x3c9   :  { %2688 = vrot.lane.b32.xlu1 %v761_v46, %s8576_s1  ;;  %v766_v46 = vld [vmem:[#allocation2 + $0xc2] sm:$0xff] }
 0x3ca   :  { %v10478_v63 = vpop.permute.xlu0 %2446 }
 0x3cb   :  { %14728 = vst [vmem:[#allocation415_spill] sm:$0xff] %v10478_v63  ;;  %v10480_v2 = vpop.permute.xlu1 %2448  ;;  %v767_v63 = vld [vmem:[#allocation2 + $0xca] sm:$0xff] }
 0x3cc   :  { %14729 = vst [vmem:[#allocation416_spill] sm:$0xff] %v10480_v2  ;;  %2690 = vrot.lane.b32.xlu0 %v762_v40, %s8576_s1 }
 0x3cd   :  { %2692 = vrot.lane.b32.xlu1 %v763_v36, %s8576_s1  ;;  %v768_v36 = vld [vmem:[#allocation2 + $0xda] sm:$0xff] }
 0x3ce   :  { %v10484_v35 = vpop.permute.xlu0 %2450 }
 0x3cf   :  { %14730 = vst [vmem:[#allocation417_spill] sm:$0xff] %v10484_v35  ;;  %v10486_v39 = vpop.permute.xlu1 %2452  ;;  %v769_v35 = vld [vmem:[#allocation2 + $0xe2] sm:$0xff] }
 0x3d0   :  { %14731 = vst [vmem:[#allocation418_spill] sm:$0xff] %v10486_v39  ;;  %2694 = vrot.lane.b32.xlu0 %v764_v32, %s8576_s1 }
 0x3d1   :  { %2696 = vrot.lane.b32.xlu1 %v765_v54, %s8576_s1  ;;  %v770_v54 = vld [vmem:[#allocation2 + $0xf2] sm:$0xff] }
 0x3d2   :  { %v10490_v21 = vpop.permute.xlu0 %2454 }
 0x3d3   :  { %14732 = vst [vmem:[#allocation419_spill] sm:$0xff] %v10490_v21  ;;  %v10492_v47 = vpop.permute.xlu1 %2456  ;;  %v771_v21 = vld [vmem:[#allocation2 + $0xfa] sm:$0xff] }
 0x3d4   :  { %14733 = vst [vmem:[#allocation420_spill] sm:$0xff] %v10492_v47  ;;  %2698 = vrot.lane.b32.xlu0 %v766_v46, %s8576_s1 }
 0x3d5   :  { %2700 = vrot.lane.b32.xlu1 %v767_v63, %s8576_s1  ;;  %v772_v63 = vld [vmem:[#allocation2 + $0x10a] sm:$0xff] }
 0x3d6   :  { %v10496_v40 = vpop.permute.xlu0 %2458 }
 0x3d7   :  { %14734 = vst [vmem:[#allocation421_spill] sm:$0xff] %v10496_v40  ;;  %v10498_v2 = vpop.permute.xlu1 %2460  ;;  %v773_v40 = vld [vmem:[#allocation2 + $0x112] sm:$0xff] }
 0x3d8   :  { %14735 = vst [vmem:[#allocation422_spill] sm:$0xff] %v10498_v2  ;;  %2702 = vrot.lane.b32.xlu0 %v768_v36, %s8576_s1 }
 0x3d9   :  { %2704 = vrot.lane.b32.xlu1 %v769_v35, %s8576_s1  ;;  %v774_v35 = vld [vmem:[#allocation2 + $0x122] sm:$0xff] }
 0x3da   :  { %v10502_v32 = vpop.permute.xlu0 %2462 }
 0x3db   :  { %14736 = vst [vmem:[#allocation423_spill] sm:$0xff] %v10502_v32  ;;  %v10504_v39 = vpop.permute.xlu1 %2464  ;;  %v775_v32 = vld [vmem:[#allocation2 + $0x12a] sm:$0xff] }
 0x3dc   :  { %14737 = vst [vmem:[#allocation424_spill] sm:$0xff] %v10504_v39  ;;  %2706 = vrot.lane.b32.xlu0 %v770_v54, %s8576_s1 }
 0x3dd   :  { %2708 = vrot.lane.b32.xlu1 %v771_v21, %s8576_s1  ;;  %v776_v21 = vld [vmem:[#allocation2 + $0x13a] sm:$0xff] }
 0x3de   :  { %v10508_v46 = vpop.permute.xlu0 %2466 }
 0x3df   :  { %14738 = vst [vmem:[#allocation425_spill] sm:$0xff] %v10508_v46  ;;  %v10510_v47 = vpop.permute.xlu1 %2468  ;;  %v777_v46 = vld [vmem:[#allocation2 + $0x142] sm:$0xff] }
 0x3e0   :  { %14739 = vst [vmem:[#allocation426_spill] sm:$0xff] %v10510_v47  ;;  %2710 = vrot.lane.b32.xlu0 %v772_v63, %s8576_s1 }
 0x3e1   :  { %2712 = vrot.lane.b32.xlu1 %v773_v40, %s8576_s1  ;;  %v778_v40 = vld [vmem:[#allocation2 + $0x152] sm:$0xff] }
 0x3e2   :  { %v10514_v36 = vpop.permute.xlu0 %2470 }
 0x3e3   :  { %14740 = vst [vmem:[#allocation427_spill] sm:$0xff] %v10514_v36  ;;  %v10516_v2 = vpop.permute.xlu1 %2472  ;;  %v779_v36 = vld [vmem:[#allocation2 + $0x15a] sm:$0xff] }
 0x3e4   :  { %14741 = vst [vmem:[#allocation428_spill] sm:$0xff] %v10516_v2  ;;  %2714 = vrot.lane.b32.xlu0 %v774_v35, %s8576_s1 }
 0x3e5   :  { %2716 = vrot.lane.b32.xlu1 %v775_v32, %s8576_s1  ;;  %v780_v32 = vld [vmem:[#allocation2 + $0x16a] sm:$0xff] }
 0x3e6   :  { %v10520_v54 = vpop.permute.xlu0 %2474 }
 0x3e7   :  { %14742 = vst [vmem:[#allocation429_spill] sm:$0xff] %v10520_v54  ;;  %v10522_v39 = vpop.permute.xlu1 %2476  ;;  %v781_v54 = vld [vmem:[#allocation2 + $0x172] sm:$0xff] }
 0x3e8   :  { %14743 = vst [vmem:[#allocation430_spill] sm:$0xff] %v10522_v39  ;;  %2718 = vrot.lane.b32.xlu0 %v776_v21, %s8576_s1 }
 0x3e9   :  { %2720 = vrot.lane.b32.xlu1 %v777_v46, %s8576_s1  ;;  %v782_v46 = vld [vmem:[#allocation2 + $0x182] sm:$0xff] }
 0x3ea   :  { %v10526_v63 = vpop.permute.xlu0 %2478 }
 0x3eb   :  { %14744 = vst [vmem:[#allocation431_spill] sm:$0xff] %v10526_v63  ;;  %v10528_v47 = vpop.permute.xlu1 %2480  ;;  %v783_v63 = vld [vmem:[#allocation2 + $0x18a] sm:$0xff] }
 0x3ec   :  { %14745 = vst [vmem:[#allocation432_spill] sm:$0xff] %v10528_v47  ;;  %2722 = vrot.lane.b32.xlu0 %v778_v40, %s8576_s1 }
 0x3ed   :  { %2724 = vrot.lane.b32.xlu1 %v779_v36, %s8576_s1  ;;  %v784_v36 = vld [vmem:[#allocation2 + $0x19a] sm:$0xff] }
 0x3ee   :  { %v10532_v35 = vpop.permute.xlu0 %2482 }
 0x3ef   :  { %14746 = vst [vmem:[#allocation433_spill] sm:$0xff] %v10532_v35  ;;  %v10534_v2 = vpop.permute.xlu1 %2484  ;;  %v785_v35 = vld [vmem:[#allocation2 + $0x1a2] sm:$0xff] }
 0x3f0   :  { %14747 = vst [vmem:[#allocation434_spill] sm:$0xff] %v10534_v2  ;;  %2726 = vrot.lane.b32.xlu0 %v780_v32, %s8576_s1 }
 0x3f1   :  { %2728 = vrot.lane.b32.xlu1 %v781_v54, %s8576_s1  ;;  %v786_v54 = vld [vmem:[#allocation2 + $0x1e2] sm:$0xff] }
 0x3f2   :  { %v10538_v21 = vpop.permute.xlu0 %2486 }
 0x3f3   :  { %14748 = vst [vmem:[#allocation435_spill] sm:$0xff] %v10538_v21  ;;  %v10540_v39 = vpop.permute.xlu1 %2488  ;;  %v787_v21 = vld [vmem:[#allocation2 + $0x1ea] sm:$0xff] }
 0x3f4   :  { %14749 = vst [vmem:[#allocation436_spill] sm:$0xff] %v10540_v39  ;;  %2730 = vrot.lane.b32.xlu0 %v782_v46, %s8576_s1 }
 0x3f5   :  { %2732 = vrot.lane.b32.xlu1 %v783_v63, %s8576_s1  ;;  %v788_v63 = vld [vmem:[#allocation2 + $0x1fa] sm:$0xff] }
 0x3f6   :  { %v10544_v40 = vpop.permute.xlu0 %2490 }
 0x3f7   :  { %14750 = vst [vmem:[#allocation437_spill] sm:$0xff] %v10544_v40  ;;  %v10546_v47 = vpop.permute.xlu1 %2492  ;;  %v789_v40 = vld [vmem:[#allocation2 + $0x202] sm:$0xff] }
 0x3f8   :  { %14751 = vst [vmem:[#allocation438_spill] sm:$0xff] %v10546_v47  ;;  %2734 = vrot.lane.b32.xlu0 %v784_v36, %s8576_s1 }
 0x3f9   :  { %2736 = vrot.lane.b32.xlu1 %v785_v35, %s8576_s1  ;;  %v790_v35 = vld [vmem:[#allocation2 + $0x212] sm:$0xff] }
 0x3fa   :  { %v10550_v32 = vpop.permute.xlu0 %2494 }
 0x3fb   :  { %14752 = vst [vmem:[#allocation439_spill] sm:$0xff] %v10550_v32  ;;  %v10552_v2 = vpop.permute.xlu1 %2496  ;;  %v791_v32 = vld [vmem:[#allocation2 + $0x21a] sm:$0xff] }
 0x3fc   :  { %14753 = vst [vmem:[#allocation440_spill] sm:$0xff] %v10552_v2  ;;  %2738 = vrot.lane.b32.xlu0 %v786_v54, %s8576_s1 }
 0x3fd   :  { %2740 = vrot.lane.b32.xlu1 %v787_v21, %s8576_s1  ;;  %v792_v21 = vld [vmem:[#allocation2 + $0x22a] sm:$0xff] }
 0x3fe   :  { %v10556_v46 = vpop.permute.xlu0 %2498 }
 0x3ff   :  { %14754 = vst [vmem:[#allocation441_spill] sm:$0xff] %v10556_v46  ;;  %v10558_v39 = vpop.permute.xlu1 %2500  ;;  %v793_v46 = vld [vmem:[#allocation2 + $0x232] sm:$0xff] }
 0x400   :  { %14755 = vst [vmem:[#allocation442_spill] sm:$0xff] %v10558_v39  ;;  %2742 = vrot.lane.b32.xlu0 %v788_v63, %s8576_s1 }
 0x401   :  { %2744 = vrot.lane.b32.xlu1 %v789_v40, %s8576_s1  ;;  %v794_v40 = vld [vmem:[#allocation2 + $0x242] sm:$0xff] }
 0x402   :  { %v10562_v36 = vpop.permute.xlu0 %2502 }
 0x403   :  { %14756 = vst [vmem:[#allocation443_spill] sm:$0xff] %v10562_v36  ;;  %v10564_v47 = vpop.permute.xlu1 %2504  ;;  %v795_v36 = vld [vmem:[#allocation2 + $0x24a] sm:$0xff] }
 0x404   :  { %14757 = vst [vmem:[#allocation444_spill] sm:$0xff] %v10564_v47  ;;  %2746 = vrot.lane.b32.xlu0 %v790_v35, %s8576_s1 }
 0x405   :  { %2748 = vrot.lane.b32.xlu1 %v791_v32, %s8576_s1  ;;  %v796_v32 = vld [vmem:[#allocation2 + $0x25a] sm:$0xff] }
 0x406   :  { %v10568_v54 = vpop.permute.xlu0 %2506 }
 0x407   :  { %14758 = vst [vmem:[#allocation445_spill] sm:$0xff] %v10568_v54  ;;  %v10570_v2 = vpop.permute.xlu1 %2508  ;;  %v797_v54 = vld [vmem:[#allocation2 + $0x262] sm:$0xff] }
 0x408   :  { %14759 = vst [vmem:[#allocation446_spill] sm:$0xff] %v10570_v2  ;;  %2750 = vrot.lane.b32.xlu0 %v792_v21, %s8576_s1 }
 0x409   :  { %2752 = vrot.lane.b32.xlu1 %v793_v46, %s8576_s1  ;;  %v798_v46 = vld [vmem:[#allocation2 + $0x272] sm:$0xff] }
 0x40a   :  { %v10574_v63 = vpop.permute.xlu0 %2510 }
 0x40b   :  { %14760 = vst [vmem:[#allocation447_spill] sm:$0xff] %v10574_v63  ;;  %v10576_v39 = vpop.permute.xlu1 %2512  ;;  %v799_v63 = vld [vmem:[#allocation2 + $0x27a] sm:$0xff] }
 0x40c   :  { %14761 = vst [vmem:[#allocation448_spill] sm:$0xff] %v10576_v39  ;;  %2754 = vrot.lane.b32.xlu0 %v794_v40, %s8576_s1 }
 0x40d   :  { %2756 = vrot.lane.b32.xlu1 %v795_v36, %s8576_s1  ;;  %v800_v36 = vld [vmem:[#allocation2 + $0x28a] sm:$0xff] }
 0x40e   :  { %v10580_v35 = vpop.permute.xlu0 %2514 }
 0x40f   :  { %14762 = vst [vmem:[#allocation449_spill] sm:$0xff] %v10580_v35  ;;  %v10582_v47 = vpop.permute.xlu1 %2516  ;;  %v801_v35 = vld [vmem:[#allocation2 + $0x292] sm:$0xff] }
 0x410   :  { %14763 = vst [vmem:[#allocation450_spill] sm:$0xff] %v10582_v47  ;;  %2758 = vrot.lane.b32.xlu0 %v796_v32, %s8576_s1 }
 0x411   :  { %2760 = vrot.lane.b32.xlu1 %v797_v54, %s8576_s1  ;;  %v802_v54 = vld [vmem:[#allocation2 + $0x2a2] sm:$0xff] }
 0x412   :  { %v10586_v21 = vpop.permute.xlu0 %2518 }
 0x413   :  { %14764 = vst [vmem:[#allocation451_spill] sm:$0xff] %v10586_v21  ;;  %v10588_v2 = vpop.permute.xlu1 %2520  ;;  %v803_v21 = vld [vmem:[#allocation2 + $0x2aa] sm:$0xff] }
 0x414   :  { %14765 = vst [vmem:[#allocation452_spill] sm:$0xff] %v10588_v2  ;;  %2762 = vrot.lane.b32.xlu0 %v798_v46, %s8576_s1 }
 0x415   :  { %2764 = vrot.lane.b32.xlu1 %v799_v63, %s8576_s1  ;;  %v804_v63 = vld [vmem:[#allocation2 + $0x2ba] sm:$0xff] }
 0x416   :  { %v10592_v40 = vpop.permute.xlu0 %2522 }
 0x417   :  { %14766 = vst [vmem:[#allocation453_spill] sm:$0xff] %v10592_v40  ;;  %v10594_v39 = vpop.permute.xlu1 %2524  ;;  %v805_v40 = vld [vmem:[#allocation2 + $0x2c2] sm:$0xff] }
 0x418   :  { %14767 = vst [vmem:[#allocation454_spill] sm:$0xff] %v10594_v39  ;;  %2766 = vrot.lane.b32.xlu0 %v800_v36, %s8576_s1 }
 0x419   :  { %2768 = vrot.lane.b32.xlu1 %v801_v35, %s8576_s1  ;;  %v806_v35 = vld [vmem:[#allocation2 + $0x2d2] sm:$0xff] }
 0x41a   :  { %v10598_v32 = vpop.permute.xlu0 %2526 }
 0x41b   :  { %14768 = vst [vmem:[#allocation455_spill] sm:$0xff] %v10598_v32  ;;  %v10600_v47 = vpop.permute.xlu1 %2528  ;;  %v807_v32 = vld [vmem:[#allocation2 + $0x2da] sm:$0xff] }
 0x41c   :  { %14769 = vst [vmem:[#allocation456_spill] sm:$0xff] %v10600_v47  ;;  %2770 = vrot.lane.b32.xlu0 %v802_v54, %s8576_s1  ;;  %v241_v47 = vld [vmem:[#allocation2] sm:$0xff]  ;;  %v242_v54 = vld [vmem:[#allocation2 + $0x8] sm:$0xff] }
 0x41d   :  { %2772 = vrot.lane.b32.xlu1 %v803_v21, %s8576_s1  ;;  %v808_v21 = vld [vmem:[#allocation2 + $0x2ea] sm:$0xff] }
 0x41e   :  { %v10604_v46 = vpop.permute.xlu0 %2530 }
 0x41f   :  { %14770 = vst [vmem:[#allocation457_spill] sm:$0xff] %v10604_v46  ;;  %v10606_v2 = vpop.permute.xlu1 %2532 }
 0x420   :  { %14771 = vst [vmem:[#allocation458_spill] sm:$0xff] %v10606_v2  ;;  %2774 = vrot.lane.b32.xlu0 %v804_v63, %s8576_s1  ;;  %v809_v2 = vld [vmem:[#allocation2 + $0x2f2] sm:$0xff] }
 0x421   :  { %2776 = vrot.lane.b32.xlu1 %v805_v40, %s8576_s1  ;;  %v2866_v40 = vsel %vm88_vm0, %v241_v47, %v9239_v28  ;;  %v8448_v63 = vld [vmem:[#allocation2 + $0x18] sm:$0xff]  ;;  %v2871_v28 = vsel %vm88_vm0, %v8451_v45, %v9253_v27  ;;  %v8453_v47 = vld [vmem:[#allocation2 + $0x50] sm:$0xff]  ;;  %v810_v27 = vld [vmem:[#allocation2 + $0x302] sm:$0xff] }
 0x422   :  { %v10610_v36 = vpop.permute.xlu0 %2534 }
 0x423   :  { %14772 = vst [vmem:[#allocation459_spill] sm:$0xff] %v10610_v36  ;;  %v10612_v39 = vpop.permute.xlu1 %2536  ;;  %v2868_v36 = vsel %vm88_vm0, %v8448_v63, %v9241_v38  ;;  %v8452_v38 = vld [vmem:[#allocation2 + $0x48] sm:$0xff] }
 0x424   :  { %14773 = vst [vmem:[#allocation460_spill] sm:$0xff] %v10612_v39  ;;  %2778 = vrot.lane.b32.xlu0 %v806_v35, %s8576_s1  ;;  %v2867_v39 = vsel %vm88_vm0, %v242_v54, %v9245_v55  ;;  %v8449_v35 = vld [vmem:[#allocation2 + $0x20] sm:$0xff]  ;;  %v10635_v55 = vsel %vm88_vm0, %v8452_v38, %v9257_v61 }
 0x425   :  { %2780 = vrot.lane.b32.xlu1 %v807_v32, %s8576_s1  ;;  %v2869_v32 = vsel %vm88_vm0, %v8449_v35, %v9247_v29  ;;  %v10639_v29 = vsel %vm88_vm0, %v8453_v47, %v9259_v25  ;;  %v2932_v61 = vsel %vm2930_vm4, %v2867_v39, %v9447_v6  ;;  %v8456_v39 = vld [vmem:[#allocation2 + $0x78] sm:$0xff] }
 0x426   :  { %v10616_v46 = vpop.permute.xlu0 %2538 }
 0x427   :  { %14774 = vst [vmem:[#allocation461_spill] sm:$0xff] %v10616_v46  ;;  %v10624_v24 = vpop.permute.xlu1 %2540  ;;  %v2870_v46 = vsel %vm88_vm0, %v8450_v10, %v9251_v56  ;;  %v2931_v10 = vsel %vm2930_vm4, %v2866_v40, %v9445_v5  ;;  %v8454_v56 = vld [vmem:[#allocation2 + $0x60] sm:$0xff]  ;;  %v8455_v5 = vld [vmem:[#allocation2 + $0x68] sm:$0xff]  ;;  %v2997_v40 = vsel %vm2995_vm5, %v2932_v61, %v9653_v42  ;;  %v2933_v42 = vsel %vm2930_vm4, %v2868_v36, %v9465_v1 }
 0x428   :  { %2782 = vrot.lane.b32.xlu0 %v808_v21, %s8576_s1  ;;  %v10646_v45 = vsel %vm88_vm0, %v8454_v56, %v9263_v59  ;;  %v2996_v54 = vsel %vm2995_vm5, %v2931_v10, %v9651_v11  ;;  %v811_v21 = vld [vmem:[#allocation2 + $0x30a] sm:$0xff]  ;;  %v10666_v11 = vsel %vm88_vm0, %v8456_v39, %v9269_v44  ;;  %v3062_v63 = vsel %vm3060_vm6, %v2997_v40, %v9845_v20  ;;  %v812_v44 = vld [vmem:[#allocation2 + $0x31a] sm:$0xff]  ;;  %v813_v36 = vld [vmem:[#allocation2 + $0x322] sm:$0xff] }
 0x429   :  { %2784 = vrot.lane.b32.xlu1 %v809_v2, %s8576_s1  ;;  %v10656_v2 = vsel %vm88_vm0, %v8455_v5, %v9265_v22  ;;  %v3061_v59 = vsel %vm3060_vm6, %v2996_v54, %v9843_v50  ;;  %v3127_v50 = vsel %vm3125_vm7, %v3062_v63, %v10037_v49  ;;  %v2934_v20 = vsel %vm2930_vm4, %v2869_v32, %v9467_v7  ;;  %v815_v56 = vld [vmem:[#allocation2 + $0x33a] sm:$0xff]  ;;  %v14775_v40 = vld [vmem:[#allocation232_spill] sm:$0xff]  ;;  %v14777_v63 = vld [vmem:[#allocation233_spill] sm:$0xff] }
 0x42a   :  { %v10652_v25 = vpop.permute.xlu0 %2542  ;;  %v3126_v22 = vsel %vm3125_vm7, %v3061_v59, %v10035_v41  ;;  %v2998_v41 = vsel %vm2995_vm5, %v2933_v42, %v9657_v37  ;;  %v3192_v38 = vsel %vm3190_vm8, %v3127_v50, %v10229_v57  ;;  %v14776_v39 = vld [vmem:[#allocation406_spill] sm:$0xff] }
 0x42b   :  { %v10662_v6 = vpop.permute.xlu1 %2544  ;;  %v3191_v35 = vsel %vm3190_vm8, %v3126_v22, %v10227_v23  ;;  %v2999_v23 = vsel %vm2995_vm5, %v2934_v20, %v9659_v51  ;;  %v3063_v47 = vsel %vm3060_vm6, %v2998_v41, %v9849_v34  ;;  %v3257_v7 = vsel %vm3255_vm9, %v3192_v38, %v10436_v31  ;;  %v14778_v22 = vld [vmem:[#allocation290_spill] sm:$0xff]  ;;  %v14781_v20 = vld [vmem:[#allocation348_spill] sm:$0xff]  ;;  %v14782_v38 = vld [vmem:[#allocation121_spill] sm:$0xff] }
 0x42c   :  { %2786 = vrot.lane.b32.xlu0 %v810_v27, %s8576_s1  ;;  %v3256_v1 = vsel %vm3255_vm9, %v3191_v35, %v10431_v62  ;;  %v3064_v57 = vsel %vm3060_vm6, %v2999_v23, %v9851_v0  ;;  %v3128_v62 = vsel %vm3125_vm7, %v3063_v47, %v10041_v30  ;;  %v2935_v51 = vsel %vm2930_vm4, %v2870_v46, %v9471_v13  ;;  %v814_v0 = vld [vmem:[#allocation2 + $0x332] sm:$0xff]  ;;  %v14780_v35 = vld [vmem:[#allocation291_spill] sm:$0xff] }
 0x42d   :  { %2788 = vrot.lane.b32.xlu1 %v811_v21, %s8576_s1  ;;  %v3129_v34 = vsel %vm3125_vm7, %v3064_v57, %v10043_v26  ;;  %v3193_v31 = vsel %vm3190_vm8, %v3128_v62, %v10233_v19  ;;  %v2936_v30 = vsel %vm2930_vm4, %v2871_v28, %v9473_v17  ;;  %v3000_v27 = vsel %vm2995_vm5, %v2935_v51, %v9663_v3  ;;  %v14784_v23 = vld [vmem:[#allocation349_spill] sm:$0xff]  ;;  %v14785_v47 = vld [vmem:[#allocation407_spill] sm:$0xff]  ;;  %v14787_v62 = vld [vmem:[#allocation234_spill] sm:$0xff] }
 0x42e   :  { %v2675_v49 = vpop.permute.xlu0 %2674  ;;  %v3194_v13 = vsel %vm3190_vm8, %v3129_v34, %v10235_v12  ;;  %v3258_v26 = vsel %vm3255_vm9, %v3193_v31, %v10442_v58  ;;  %v3001_v19 = vsel %vm2995_vm5, %v2936_v30, %v9665_v33  ;;  %v3065_v61 = vsel %vm3060_vm6, %v3000_v27, %v9855_v43  ;;  %v14788_v51 = vld [vmem:[#allocation408_spill] sm:$0xff]  ;;  %v14789_v30 = vld [vmem:[#allocation63_spill] sm:$0xff] }
 0x42f   :  { %v2677_v32 = vpop.permute.xlu1 %2676  ;;  %v3321_v37 = vsel %vm3320_vm10, %v3256_v1, %v2675_v49  ;;  %v3259_v17 = vsel %vm3255_vm9, %v3194_v13, %v10444_v60  ;;  %v3066_v12 = vsel %vm3060_vm6, %v3001_v19, %v9857_v18  ;;  %v3130_v58 = vsel %vm3125_vm7, %v3065_v61, %v10047_v52  ;;  %v816_v18 = vld [vmem:[#allocation2 + $0x34a] sm:$0xff]  ;;  %v14790_v13 = vld [vmem:[#allocation235_spill] sm:$0xff] }
 0x430   :  { %v3322_v10 = vsel %vm3320_vm10, %v3257_v7, %v2677_v32  ;;  %2790 = vrot.lane.b32.xlu0 %v812_v44, %s8576_s1  ;;  %8221 = vmatprep.mubr.msk.f32.mxu0 %vm3385_vm11, %v3321_v37  ;;  %v2937_v33 = vsel %vm2930_vm4, %v10635_v55, %v9477_v9  ;;  %v3131_v43 = vsel %vm3125_vm7, %v3066_v12, %v10049_v14  ;;  %v14783_v49 = vld [vmem:[#allocation176_spill] sm:$0xff]  ;;  %v14786_v37 = vld [vmem:[#allocation177_spill] sm:$0xff] }
 0x431   :  { %2792 = vrot.lane.b32.xlu1 %v813_v36, %s8576_s1  ;;  %8222 = vmatmul.mubr.msk.f32.vlgmr.msra.gmra.mrb[0].mxu0 %vm3385_vm11, %v3322_v10  ;;  %v3195_v60 = vsel %vm3190_vm8, %v3130_v58, %v10239_v16  ;;  %v2938_v52 = vsel %vm2930_vm4, %v10639_v29, %v9479_v8  ;;  %v3002_v21 = vsel %vm2995_vm5, %v2937_v33, %v9669_v15  ;;  %v817_v16 = vld [vmem:[#allocation2 + $0x352] sm:$0xff] }
 0x432   :  { %v2679_v46 = vpop.permute.xlu0 %2678  ;;  %v3196_v9 = vsel %vm3190_vm8, %v3131_v43, %v10241_v4  ;;  %v3260_v14 = vsel %vm3255_vm9, %v3195_v60, %v10448_v48  ;;  %v3003_v5 = vsel %vm2995_vm5, %v2938_v52, %v9671_v53  ;;  %v3067_v59 = vsel %vm3060_vm6, %v3002_v21, %v14775_v40  ;;  %v14779_v53 = vld [vmem:[#allocation120_spill] sm:$0xff]  ;;  %v8458_v61 = vld [vmem:[#allocation2 + $0x90] sm:$0xff]  ;;  %v14795_v33 = vld [vmem:[#allocation350_spill] sm:$0xff] }
 0x433   :  { %v3323_v28 = vsel %vm3320_vm10, %v3258_v26, %v2679_v46  ;;  %v2681_v3 = vpop.permute.xlu1 %2680  ;;  %v3261_v8 = vsel %vm3255_vm9, %v3196_v9, %v14776_v39  ;;  %v3068_v4 = vsel %vm3060_vm6, %v3003_v5, %v14777_v63  ;;  %v3132_v48 = vsel %vm3125_vm7, %v3067_v59, %v14778_v22  ;;  %v14791_v46 = vld [vmem:[#allocation292_spill] sm:$0xff]  ;;  %v14794_v58 = vld [vmem:[#allocation293_spill] sm:$0xff]  ;;  %v14796_v60 = vld [vmem:[#allocation123_spill] sm:$0xff] }
 0x434   :  { %v3324_v54 = vsel %vm3320_vm10, %v3259_v17, %v2681_v3  ;;  %2794 = vrot.lane.b32.xlu0 %v814_v0, %s8576_s1  ;;  %8224 = vmatprep.mubr.msk.f32.mxu0 %vm3385_vm11, %v3323_v28  ;;  %v2939_v50 = vsel %vm2930_vm4, %v10646_v45, %v14779_v53  ;;  %v3133_v44 = vsel %vm3125_vm7, %v3068_v4, %v14780_v35  ;;  %v8457_v0 = vld [vmem:[#allocation2 + $0x80] sm:$0xff]  ;;  %v14792_v17 = vld [vmem:[#allocation64_spill] sm:$0xff]  ;;  %v14793_v3 = vld [vmem:[#allocation122_spill] sm:$0xff] }
 0x435   :  { %2796 = vrot.lane.b32.xlu1 %v815_v56, %s8576_s1  ;;  %8225 = vmatmul.mubr.msk.f32.gmra.mrb[2].mxu0 %vm3385_vm11, %v3324_v54  ;;  %v3197_v41 = vsel %vm3190_vm8, %v3132_v48, %v14781_v20  ;;  %v2940_v1 = vsel %vm2930_vm4, %v10656_v2, %v14782_v38  ;;  %v3004_v36 = vsel %vm2995_vm5, %v2939_v50, %v14783_v49  ;;  %v14797_v52 = vld [vmem:[#allocation178_spill] sm:$0xff]  ;;  %v14798_v9 = vld [vmem:[#allocation351_spill] sm:$0xff]  ;;  %v14801_v59 = vld [vmem:[#allocation236_spill] sm:$0xff] }
 0x436   :  { %v2683_v55 = vpop.permute.xlu0 %2682  ;;  %v3198_v45 = vsel %vm3190_vm8, %v3133_v44, %v14784_v23  ;;  %v3262_v7 = vsel %vm3255_vm9, %v3197_v41, %v14785_v47  ;;  %v3005_v57 = vsel %vm2995_vm5, %v2940_v1, %v14786_v37  ;;  %v3069_v10 = vsel %vm3060_vm6, %v3004_v36, %v14787_v62  ;;  %v14800_v5 = vld [vmem:[#allocation179_spill] sm:$0xff]  ;;  %v8459_v4 = vld [vmem:[#allocation2 + $0x98] sm:$0xff]  ;;  %v14803_v22 = vld [vmem:[#allocation65_spill] sm:$0xff] }
 0x437   :  { %v3325_v29 = vsel %vm3320_vm10, %v3260_v14, %v2683_v55  ;;  %v2685_v15 = vpop.permute.xlu1 %2684  ;;  %v3263_v34 = vsel %vm3255_vm9, %v3198_v45, %v14788_v51  ;;  %v2877_v27 = vsel %vm88_vm0, %v8457_v0, %v14789_v30  ;;  %v3070_v26 = vsel %vm3060_vm6, %v3005_v57, %v14790_v13  ;;  %v14799_v55 = vld [vmem:[#allocation409_spill] sm:$0xff]  ;;  %v14805_v50 = vld [vmem:[#allocation294_spill] sm:$0xff]  ;;  %v8460_v20 = vld [vmem:[#allocation2 + $0xa8] sm:$0xff] }
 0x438   :  { %v3326_v42 = vsel %vm3320_vm10, %v3261_v8, %v2685_v15  ;;  %2798 = vrot.lane.b32.xlu0 %v816_v18, %s8576_s1  ;;  %8227 = vmatprep.mubr.msk.f32.mxu0 %vm3385_vm11, %v3325_v29  ;;  %v3134_v56 = vsel %vm3125_vm7, %v3069_v10, %v14791_v46  ;;  %v2878_v28 = vsel %vm88_vm0, %v8458_v61, %v14792_v17  ;;  %v14802_v8 = vld [vmem:[#allocation410_spill] sm:$0xff]  ;;  %v14807_v1 = vld [vmem:[#allocation124_spill] sm:$0xff]  ;;  %v14808_v36 = vld [vmem:[#allocation295_spill] sm:$0xff] }
 0x439   :  { %2800 = vrot.lane.b32.xlu1 %v817_v16, %s8576_s1  ;;  %8228 = vmatmul.mubr.msk.f32.gmra.mrb[4].mxu0 %vm3385_vm11, %v3326_v42  ;;  %v2941_v12 = vsel %vm2930_vm4, %v10666_v11, %v14793_v3  ;;  %v3135_v54 = vsel %vm3125_vm7, %v3070_v26, %v14794_v58  ;;  %v3199_v43 = vsel %vm3190_vm8, %v3134_v56, %v14795_v33  ;;  %v14804_v42 = vld [vmem:[#allocation237_spill] sm:$0xff]  ;;  %v14806_v41 = vld [vmem:[#allocation66_spill] sm:$0xff]  ;;  %v14809_v45 = vld [vmem:[#allocation352_spill] sm:$0xff] }
 0x43a   :  { %v2687_v32 = vpop.permute.xlu0 %2686  ;;  %v2942_v18 = vsel %vm2930_vm4, %v2877_v27, %v14796_v60  ;;  %v3006_v21 = vsel %vm2995_vm5, %v2941_v12, %v14797_v52  ;;  %v3200_v14 = vsel %vm3190_vm8, %v3135_v54, %v14798_v9  ;;  %v3264_v11 = vsel %vm3255_vm9, %v3199_v43, %v14799_v55  ;;  %v14811_v37 = vld [vmem:[#allocation180_spill] sm:$0xff]  ;;  %v14812_v62 = vld [vmem:[#allocation353_spill] sm:$0xff]  ;;  %v14813_v51 = vld [vmem:[#allocation411_spill] sm:$0xff] }
 0x43b   :  { %v3327_v2 = vsel %vm3320_vm10, %v3262_v7, %v2687_v32  ;;  %v2689_v31 = vpop.permute.xlu1 %2688  ;;  %v3007_v40 = vsel %vm2995_vm5, %v2942_v18, %v14800_v5  ;;  %v3071_v39 = vsel %vm3060_vm6, %v3006_v21, %v14801_v59  ;;  %v3265_v29 = vsel %vm3255_vm9, %v3200_v14, %v14802_v8  ;;  %v14810_v7 = vld [vmem:[#allocation125_spill] sm:$0xff]  ;;  %v14815_v30 = vld [vmem:[#allocation238_spill] sm:$0xff]  ;;  %v14816_v13 = vld [vmem:[#allocation412_spill] sm:$0xff] }
 0x43c   :  { %v3328_v19 = vsel %vm3320_vm10, %v3263_v34, %v2689_v31  ;;  %8230 = vmatprep.mubr.msk.f32.mxu0 %vm3385_vm11, %v3327_v2  ;;  %v2879_v48 = vsel %vm88_vm0, %v8459_v4, %v14803_v22  ;;  %v3072_v53 = vsel %vm3060_vm6, %v3007_v40, %v14804_v42  ;;  %v3136_v35 = vsel %vm3125_vm7, %v3071_v39, %v14805_v50  ;;  %v14814_v31 = vld [vmem:[#allocation181_spill] sm:$0xff]  ;;  %v14817_v61 = vld [vmem:[#allocation67_spill] sm:$0xff]  ;;  %v14819_v12 = vld [vmem:[#allocation296_spill] sm:$0xff] }
 0x43d   :  { %8231 = vmatmul.mubr.msk.f32.gmra.mrb[6].mxu0 %vm3385_vm11, %v3328_v19  ;;  %v2880_v38 = vsel %vm88_vm0, %v8460_v20, %v14806_v41  ;;  %v2943_v49 = vsel %vm2930_vm4, %v2878_v28, %v14807_v1  ;;  %v3137_v23 = vsel %vm3125_vm7, %v3072_v53, %v14808_v36  ;;  %v3201_v47 = vsel %vm3190_vm8, %v3136_v35, %v14809_v45  ;;  %v8461_v19 = vld [vmem:[#allocation2 + $0xb0] sm:$0xff]  ;;  %v14818_v28 = vld [vmem:[#allocation239_spill] sm:$0xff]  ;;  %v14820_v43 = vld [vmem:[#allocation68_spill] sm:$0xff] }
 0x43e   :  { %v2691_v16 = vpop.permute.xlu0 %2690  ;;  %v2944_v32 = vsel %vm2930_vm4, %v2879_v48, %v14810_v7  ;;  %v3008_v57 = vsel %vm2995_vm5, %v2943_v49, %v14811_v37  ;;  %v3202_v10 = vsel %vm3190_vm8, %v3137_v23, %v14812_v62  ;;  %v3266_v34 = vsel %vm3255_vm9, %v3201_v47, %v14813_v51  ;;  %v8462_v33 = vld [vmem:[#allocation2 + $0xc0] sm:$0xff]  ;;  %v14821_v18 = vld [vmem:[#allocation126_spill] sm:$0xff]  ;;  %v14822_v21 = vld [vmem:[#allocation297_spill] sm:$0xff] }
 0x43f   :  { %v3329_v15 = vsel %vm3320_vm10, %v3264_v11, %v2691_v16  ;;  %v2693_v63 = vpop.permute.xlu1 %2692  ;;  %v3009_v0 = vsel %vm2995_vm5, %v2944_v32, %v14814_v31  ;;  %v3073_v27 = vsel %vm3060_vm6, %v3008_v57, %v14815_v30  ;;  %v3267_v26 = vsel %vm3255_vm9, %v3202_v10, %v14816_v13  ;;  %v14823_v14 = vld [vmem:[#allocation354_spill] sm:$0xff]  ;;  %v14824_v11 = vld [vmem:[#allocation127_spill] sm:$0xff]  ;;  %v14827_v8 = vld [vmem:[#allocation413_spill] sm:$0xff] }
 0x440   :  { %v3330_v44 = vsel %vm3320_vm10, %v3265_v29, %v2693_v63  ;;  %8233 = vmatprep.mubr.msk.f32.mxu0 %vm3385_vm11, %v3329_v15  ;;  %v2881_v17 = vsel %vm88_vm0, %v8461_v19, %v14817_v61  ;;  %v3074_v3 = vsel %vm3060_vm6, %v3009_v0, %v14818_v28  ;;  %v3138_v58 = vsel %vm3125_vm7, %v3073_v27, %v14819_v12  ;;  %v14825_v5 = vld [vmem:[#allocation182_spill] sm:$0xff]  ;;  %v14826_v59 = vld [vmem:[#allocation355_spill] sm:$0xff]  ;;  %v14829_v22 = vld [vmem:[#allocation240_spill] sm:$0xff] }
 0x441   :  { %8234 = vmatmul.mubr.msk.f32.gmra.mrb[8].mxu0 %vm3385_vm11, %v3330_v44  ;;  %v2882_v60 = vsel %vm88_vm0, %v8462_v33, %v14820_v43  ;;  %v2945_v52 = vsel %vm2930_vm4, %v2880_v38, %v14821_v18  ;;  %v3139_v9 = vsel %vm3125_vm7, %v3074_v3, %v14822_v21  ;;  %v3203_v55 = vsel %vm3190_vm8, %v3138_v58, %v14823_v14  ;;  %v14828_v63 = vld [vmem:[#allocation183_spill] sm:$0xff]  ;;  %v14830_v42 = vld [vmem:[#allocation414_spill] sm:$0xff]  ;;  %v8463_v44 = vld [vmem:[#allocation2 + $0xc8] sm:$0xff] }
 0x442   :  { %v2695_v2 = vpop.permute.xlu0 %2694  ;;  %v2946_v16 = vsel %vm2930_vm4, %v2881_v17, %v14824_v11  ;;  %v3010_v40 = vsel %vm2995_vm5, %v2945_v52, %v14825_v5  ;;  %v3204_v39 = vsel %vm3190_vm8, %v3139_v9, %v14826_v59  ;;  %v3268_v29 = vsel %vm3255_vm9, %v3203_v55, %v14827_v8  ;;  %v14831_v20 = vld [vmem:[#allocation69_spill] sm:$0xff]  ;;  %v14833_v49 = vld [vmem:[#allocation298_spill] sm:$0xff]  ;;  %v14835_v32 = vld [vmem:[#allocation128_spill] sm:$0xff] }
 0x443   :  { %v3331_v46 = vsel %vm3320_vm10, %v3266_v34, %v2695_v2  ;;  %v2697_v56 = vpop.permute.xlu1 %2696  ;;  %v3011_v4 = vsel %vm2995_vm5, %v2946_v16, %v14828_v63  ;;  %v3075_v48 = vsel %vm3060_vm6, %v3010_v40, %v14829_v22  ;;  %v3269_v53 = vsel %vm3255_vm9, %v3204_v39, %v14830_v42  ;;  %v14832_v38 = vld [vmem:[#allocation241_spill] sm:$0xff]  ;;  %v8464_v45 = vld [vmem:[#allocation2 + $0xd8] sm:$0xff]  ;;  %v14836_v57 = vld [vmem:[#allocation299_spill] sm:$0xff] }
 0x444   :  { %v3332_v54 = vsel %vm3320_vm10, %v3267_v26, %v2697_v56  ;;  %8236 = vmatprep.mubr.msk.f32.mxu0 %vm3385_vm11, %v3331_v46  ;;  %v2883_v41 = vsel %vm88_vm0, %v8463_v44, %v14831_v20  ;;  %v3076_v1 = vsel %vm3060_vm6, %v3011_v4, %v14832_v38  ;;  %v3140_v36 = vsel %vm3125_vm7, %v3075_v48, %v14833_v49  ;;  %v14834_v47 = vld [vmem:[#allocation70_spill] sm:$0xff]  ;;  %v14837_v10 = vld [vmem:[#allocation356_spill] sm:$0xff]  ;;  %v14838_v34 = vld [vmem:[#allocation129_spill] sm:$0xff] }
 0x445   :  { %8237 = vmatmul.mubr.msk.f32.gmra.mrb[10].mxu0 %vm3385_vm11, %v3332_v54  ;;  %v2884_v7 = vsel %vm88_vm0, %v8464_v45, %v14834_v47  ;;  %v2947_v37 = vsel %vm2930_vm4, %v2882_v60, %v14835_v32  ;;  %v3141_v62 = vsel %vm3125_vm7, %v3076_v1, %v14836_v57  ;;  %v3205_v51 = vsel %vm3190_vm8, %v3140_v36, %v14837_v10  ;;  %v14839_v31 = vld [vmem:[#allocation184_spill] sm:$0xff]  ;;  %v14840_v30 = vld [vmem:[#allocation357_spill] sm:$0xff]  ;;  %v14841_v13 = vld [vmem:[#allocation415_spill] sm:$0xff] }
 0x446   :  { %v2699_v15 = vpop.permute.xlu0 %2698  ;;  %v2948_v2 = vsel %vm2930_vm4, %v2883_v41, %v14838_v34  ;;  %v3012_v0 = vsel %vm2995_vm5, %v2947_v37, %v14839_v31  ;;  %v3206_v27 = vsel %vm3190_vm8, %v3141_v62, %v14840_v30  ;;  %v3270_v26 = vsel %vm3255_vm9, %v3205_v51, %v14841_v13  ;;  %v14842_v56 = vld [vmem:[#allocation185_spill] sm:$0xff]  ;;  %v14843_v61 = vld [vmem:[#allocation242_spill] sm:$0xff]  ;;  %v14844_v28 = vld [vmem:[#allocation416_spill] sm:$0xff] }
 0x447   :  { %v3333_v50 = vsel %vm3320_vm10, %v3268_v29, %v2699_v15  ;;  %v2701_v35 = vpop.permute.xlu1 %2700  ;;  %v3013_v19 = vsel %vm2995_vm5, %v2948_v2, %v14842_v56  ;;  %v3077_v17 = vsel %vm3060_vm6, %v3012_v0, %v14843_v61  ;;  %v3271_v3 = vsel %vm3255_vm9, %v3206_v27, %v14844_v28  ;;  %v8465_v54 = vld [vmem:[#allocation2 + $0xe0] sm:$0xff]  ;;  %v14847_v52 = vld [vmem:[#allocation300_spill] sm:$0xff]  ;;  %v8466_v14 = vld [vmem:[#allocation2 + $0xf0] sm:$0xff] }
 0x448   :  { %v3334_v23 = vsel %vm3320_vm10, %v3269_v53, %v2701_v35  ;;  %8239 = vmatprep.mubr.msk.f32.mxu0 %vm3385_vm11, %v3333_v50  ;;  %v14845_v33 = vld [vmem:[#allocation71_spill] sm:$0xff]  ;;  %v3142_v21 = vsel %vm3125_vm7, %v3077_v17, %v14847_v52  ;;  %v14848_v55 = vld [vmem:[#allocation72_spill] sm:$0xff]  ;;  %v14849_v16 = vld [vmem:[#allocation130_spill] sm:$0xff] }
 0x449   :  { %8240 = vmatmul.mubr.msk.f32.gmra.mrb[12].mxu0 %vm3385_vm11, %v3334_v23  ;;  %v2885_v43 = vsel %vm88_vm0, %v8465_v54, %v14845_v33  ;;  %v14846_v60 = vld [vmem:[#allocation243_spill] sm:$0xff]  ;;  %v2886_v11 = vsel %vm88_vm0, %v8466_v14, %v14848_v55  ;;  %v2949_v5 = vsel %vm2930_vm4, %v2884_v7, %v14849_v16  ;;  %v14850_v40 = vld [vmem:[#allocation301_spill] sm:$0xff]  ;;  %v14851_v39 = vld [vmem:[#allocation358_spill] sm:$0xff] }
 0x44a   :  { %v2703_v46 = vpop.permute.xlu0 %2702  ;;  %v3078_v18 = vsel %vm3060_vm6, %v3013_v19, %v14846_v60  ;;  %v3207_v8 = vsel %vm3190_vm8, %v3142_v21, %v14851_v39  ;;  %v14852_v29 = vld [vmem:[#allocation131_spill] sm:$0xff]  ;;  %v14853_v63 = vld [vmem:[#allocation186_spill] sm:$0xff]  ;;  %v14855_v42 = vld [vmem:[#allocation417_spill] sm:$0xff] }
 0x44b   :  { %v3335_v12 = vsel %vm3320_vm10, %v3270_v26, %v2703_v46  ;;  %v2705_v58 = vpop.permute.xlu1 %2704  ;;  %v3143_v59 = vsel %vm3125_vm7, %v3078_v18, %v14850_v40  ;;  %v2950_v15 = vsel %vm2930_vm4, %v2885_v43, %v14852_v29  ;;  %v3014_v4 = vsel %vm2995_vm5, %v2949_v5, %v14853_v63  ;;  %v14854_v22 = vld [vmem:[#allocation359_spill] sm:$0xff]  ;;  %v14857_v20 = vld [vmem:[#allocation244_spill] sm:$0xff]  ;;  %v14858_v38 = vld [vmem:[#allocation418_spill] sm:$0xff] }
 0x44c   :  { %v3336_v9 = vsel %vm3320_vm10, %v3271_v3, %v2705_v58  ;;  %8242 = vmatprep.mubr.msk.f32.mxu0 %vm3385_vm11, %v3335_v12  ;;  %v3208_v48 = vsel %vm3190_vm8, %v3143_v59, %v14854_v22  ;;  %v3272_v53 = vsel %vm3255_vm9, %v3207_v8, %v14855_v42  ;;  %v14856_v35 = vld [vmem:[#allocation187_spill] sm:$0xff]  ;;  %v3079_v41 = vsel %vm3060_vm6, %v3014_v4, %v14857_v20  ;;  %v8467_v23 = vld [vmem:[#allocation2 + $0xf8] sm:$0xff]  ;;  %v14859_v45 = vld [vmem:[#allocation73_spill] sm:$0xff] }
 0x44d   :  { %8243 = vmatmul.mubr.msk.f32.gmra.mrb[14].mxu0 %vm3385_vm11, %v3336_v9  ;;  %v3015_v44 = vsel %vm2995_vm5, %v2950_v15, %v14856_v35  ;;  %v3273_v1 = vsel %vm3255_vm9, %v3208_v48, %v14858_v38  ;;  %v2887_v47 = vsel %vm88_vm0, %v8467_v23, %v14859_v45  ;;  %v14860_v7 = vld [vmem:[#allocation245_spill] sm:$0xff]  ;;  %v14861_v37 = vld [vmem:[#allocation302_spill] sm:$0xff]  ;;  %v8468_v10 = vld [vmem:[#allocation2 + $0x108] sm:$0xff] }
 0x44e   :  { %v2707_v50 = vpop.permute.xlu0 %2706  ;;  %v3080_v32 = vsel %vm3060_vm6, %v3015_v44, %v14860_v7  ;;  %v3144_v57 = vsel %vm3125_vm7, %v3079_v41, %v14861_v37  ;;  %v14862_v51 = vld [vmem:[#allocation74_spill] sm:$0xff]  ;;  %v14863_v2 = vld [vmem:[#allocation132_spill] sm:$0xff]  ;;  %v14864_v0 = vld [vmem:[#allocation303_spill] sm:$0xff] }
 0x44f   :  { %v3337_v49 = vsel %vm3320_vm10, %v3272_v53, %v2707_v50  ;;  %v2709_v36 = vpop.permute.xlu1 %2708  ;;  %v2888_v34 = vsel %vm88_vm0, %v8468_v10, %v14862_v51  ;;  %v2951_v31 = vsel %vm2930_vm4, %v2886_v11, %v14863_v2  ;;  %v3145_v30 = vsel %vm3125_vm7, %v3080_v32, %v14864_v0  ;;  %v14865_v27 = vld [vmem:[#allocation360_spill] sm:$0xff]  ;;  %v14866_v26 = vld [vmem:[#allocation133_spill] sm:$0xff]  ;;  %v14869_v28 = vld [vmem:[#allocation419_spill] sm:$0xff] }
 0x450   :  { %v3338_v62 = vsel %vm3320_vm10, %v3273_v1, %v2709_v36  ;;  %8245 = vmatprep.mubr.msk.f32.mxu0 %vm3385_vm11, %v3337_v49  ;;  %v3209_v13 = vsel %vm3190_vm8, %v3144_v57, %v14865_v27  ;;  %v2952_v46 = vsel %vm2930_vm4, %v2887_v47, %v14866_v26  ;;  %v14867_v56 = vld [vmem:[#allocation188_spill] sm:$0xff]  ;;  %v14868_v61 = vld [vmem:[#allocation361_spill] sm:$0xff]  ;;  %v14871_v33 = vld [vmem:[#allocation246_spill] sm:$0xff] }
 0x451   :  { %8246 = vmatmul.mubr.msk.f32.gmra.mrb[16].mxu0 %vm3385_vm11, %v3338_v62  ;;  %v3016_v19 = vsel %vm2995_vm5, %v2951_v31, %v14867_v56  ;;  %v3210_v17 = vsel %vm3190_vm8, %v3145_v30, %v14868_v61  ;;  %v3274_v3 = vsel %vm3255_vm9, %v3209_v13, %v14869_v28  ;;  %v14870_v58 = vld [vmem:[#allocation189_spill] sm:$0xff]  ;;  %v14872_v60 = vld [vmem:[#allocation420_spill] sm:$0xff]  ;;  %v14873_v14 = vld [vmem:[#allocation75_spill] sm:$0xff] }
 0x452   :  { %v2711_v12 = vpop.permute.xlu0 %2710  ;;  %v3017_v54 = vsel %vm2995_vm5, %v2952_v46, %v14870_v58  ;;  %v3081_v43 = vsel %vm3060_vm6, %v3016_v19, %v14871_v33  ;;  %v3275_v18 = vsel %vm3255_vm9, %v3210_v17, %v14872_v60  ;;  %v8469_v9 = vld [vmem:[#allocation2 + $0x110] sm:$0xff]  ;;  %v14874_v11 = vld [vmem:[#allocation247_spill] sm:$0xff]  ;;  %v14875_v5 = vld [vmem:[#allocation304_spill] sm:$0xff] }
 0x453   :  { %v3339_v52 = vsel %vm3320_vm10, %v3274_v3, %v2711_v12  ;;  %v2713_v21 = vpop.permute.xlu1 %2712  ;;  %v2889_v55 = vsel %vm88_vm0, %v8469_v9, %v14873_v14  ;;  %v3082_v16 = vsel %vm3060_vm6, %v3017_v54, %v14874_v11  ;;  %v3146_v40 = vsel %vm3125_vm7, %v3081_v43, %v14875_v5  ;;  %v8470_v39 = vld [vmem:[#allocation2 + $0x120] sm:$0xff]  ;;  %v14876_v8 = vld [vmem:[#allocation76_spill] sm:$0xff]  ;;  %v14877_v15 = vld [vmem:[#allocation134_spill] sm:$0xff] }
 0x454   :  { %v3340_v59 = vsel %vm3320_vm10, %v3275_v18, %v2713_v21  ;;  %8248 = vmatprep.mubr.msk.f32.mxu0 %vm3385_vm11, %v3339_v52  ;;  %v2890_v29 = vsel %vm88_vm0, %v8470_v39, %v14876_v8  ;;  %v2953_v63 = vsel %vm2930_vm4, %v2888_v34, %v14877_v15  ;;  %v14878_v4 = vld [vmem:[#allocation305_spill] sm:$0xff]  ;;  %v14879_v48 = vld [vmem:[#allocation362_spill] sm:$0xff]  ;;  %v14880_v53 = vld [vmem:[#allocation135_spill] sm:$0xff] }
 0x455   :  { %v3147_v22 = vsel %vm3125_vm7, %v3082_v16, %v14878_v4  ;;  %v3211_v42 = vsel %vm3190_vm8, %v3146_v40, %v14879_v48  ;;  %8249 = vmatmul.mubr.msk.f32.gmra.mrb[18].mxu0 %vm3385_vm11, %v3340_v59  ;;  %v2954_v50 = vsel %vm2930_vm4, %v2889_v55, %v14880_v53  ;;  %v14881_v35 = vld [vmem:[#allocation190_spill] sm:$0xff]  ;;  %v14882_v20 = vld [vmem:[#allocation363_spill] sm:$0xff]  ;;  %v14883_v38 = vld [vmem:[#allocation421_spill] sm:$0xff] }
 0x456   :  { %v3018_v44 = vsel %vm2995_vm5, %v2953_v63, %v14881_v35  ;;  %v3212_v41 = vsel %vm3190_vm8, %v3147_v22, %v14882_v20  ;;  %v3276_v1 = vsel %vm3255_vm9, %v3211_v42, %v14883_v38  ;;  %v2715_v49 = vpop.permute.xlu0 %2714  ;;  %v14884_v36 = vld [vmem:[#allocation191_spill] sm:$0xff]  ;;  %v14885_v45 = vld [vmem:[#allocation248_spill] sm:$0xff]  ;;  %v14886_v7 = vld [vmem:[#allocation422_spill] sm:$0xff] }
 0x457   :  { %v3019_v23 = vsel %vm2995_vm5, %v2954_v50, %v14884_v36  ;;  %v3083_v47 = vsel %vm3060_vm6, %v3018_v44, %v14885_v45  ;;  %v3277_v32 = vsel %vm3255_vm9, %v3212_v41, %v14886_v7  ;;  %v3341_v37 = vsel %vm3320_vm10, %v3276_v1, %v2715_v49  ;;  %v2717_v57 = vpop.permute.xlu1 %2716  ;;  %v8471_v62 = vld [vmem:[#allocation2 + $0x128] sm:$0xff]  ;;  %v14887_v10 = vld [vmem:[#allocation77_spill] sm:$0xff]  ;;  %v14889_v31 = vld [vmem:[#allocation306_spill] sm:$0xff] }
 0x458   :  { %v2891_v51 = vsel %vm88_vm0, %v8471_v62, %v14887_v10  ;;  %v14888_v34 = vld [vmem:[#allocation249_spill] sm:$0xff]  ;;  %v3148_v0 = vsel %vm3125_vm7, %v3083_v47, %v14889_v31  ;;  %v3342_v30 = vsel %vm3320_vm10, %v3277_v32, %v2717_v57  ;;  %8251 = vmatprep.mubr.msk.f32.mxu0 %vm3385_vm11, %v3341_v37  ;;  %v8472_v27 = vld [vmem:[#allocation2 + $0x138] sm:$0xff]  ;;  %v14891_v46 = vld [vmem:[#allocation136_spill] sm:$0xff] }
 0x459   :  { %v3084_v2 = vsel %vm3060_vm6, %v3019_v23, %v14888_v34  ;;  %v14890_v13 = vld [vmem:[#allocation78_spill] sm:$0xff]  ;;  %v2955_v56 = vsel %vm2930_vm4, %v2890_v29, %v14891_v46  ;;  %v14892_v19 = vld [vmem:[#allocation307_spill] sm:$0xff]  ;;  %v14893_v17 = vld [vmem:[#allocation364_spill] sm:$0xff]  ;;  %8252 = vmatmul.mubr.msk.f32.gmra.mrb[20].mxu0 %vm3385_vm11, %v3342_v30 }
 0x45a   :  { %v2892_v26 = vsel %vm88_vm0, %v8472_v27, %v14890_v13  ;;  %v3149_v61 = vsel %vm3125_vm7, %v3084_v2, %v14892_v19  ;;  %v3213_v28 = vsel %vm3190_vm8, %v3148_v0, %v14893_v17  ;;  %v14894_v3 = vld [vmem:[#allocation137_spill] sm:$0xff]  ;;  %v14895_v58 = vld [vmem:[#allocation192_spill] sm:$0xff]  ;;  %v14897_v60 = vld [vmem:[#allocation423_spill] sm:$0xff]  ;;  %v2719_v52 = vpop.permute.xlu0 %2718 }
 0x45b   :  { %v2956_v12 = vsel %vm2930_vm4, %v2891_v51, %v14894_v3  ;;  %v3020_v54 = vsel %vm2995_vm5, %v2955_v56, %v14895_v58  ;;  %v14896_v33 = vld [vmem:[#allocation365_spill] sm:$0xff]  ;;  %v3278_v18 = vsel %vm3255_vm9, %v3213_v28, %v14897_v60  ;;  %v14899_v14 = vld [vmem:[#allocation250_spill] sm:$0xff]  ;;  %v14900_v11 = vld [vmem:[#allocation424_spill] sm:$0xff]  ;;  %v2721_v40 = vpop.permute.xlu1 %2720 }
 0x45c   :  { %v3214_v43 = vsel %vm3190_vm8, %v3149_v61, %v14896_v33  ;;  %v14898_v21 = vld [vmem:[#allocation193_spill] sm:$0xff]  ;;  %v3085_v55 = vsel %vm3060_vm6, %v3020_v54, %v14899_v14  ;;  %v3343_v5 = vsel %vm3320_vm10, %v3278_v18, %v2719_v52  ;;  %v8473_v59 = vld [vmem:[#allocation2 + $0x140] sm:$0xff]  ;;  %v14903_v63 = vld [vmem:[#allocation308_spill] sm:$0xff] }
 0x45d   :  { %v3021_v9 = vsel %vm2995_vm5, %v2956_v12, %v14898_v21  ;;  %v3279_v16 = vsel %vm3255_vm9, %v3214_v43, %v14900_v11  ;;  %v14901_v39 = vld [vmem:[#allocation79_spill] sm:$0xff]  ;;  %v3150_v4 = vsel %vm3125_vm7, %v3085_v55, %v14903_v63  ;;  %8254 = vmatprep.mubr.msk.f32.mxu0 %vm3385_vm11, %v3343_v5  ;;  %v8474_v48 = vld [vmem:[#allocation2 + $0x150] sm:$0xff]  ;;  %v14904_v42 = vld [vmem:[#allocation80_spill] sm:$0xff] }
 0x45e   :  { %v2893_v8 = vsel %vm88_vm0, %v8473_v59, %v14901_v39  ;;  %v14902_v29 = vld [vmem:[#allocation251_spill] sm:$0xff]  ;;  %v3344_v22 = vsel %vm3320_vm10, %v3279_v16, %v2721_v40  ;;  %v2894_v53 = vsel %vm88_vm0, %v8474_v48, %v14904_v42  ;;  %v14905_v50 = vld [vmem:[#allocation138_spill] sm:$0xff]  ;;  %v14906_v44 = vld [vmem:[#allocation309_spill] sm:$0xff]  ;;  %v2723_v37 = vpop.permute.xlu0 %2722 }
 0x45f   :  { %v3086_v15 = vsel %vm3060_vm6, %v3021_v9, %v14902_v29  ;;  %v2957_v35 = vsel %vm2930_vm4, %v2892_v26, %v14905_v50  ;;  %v14907_v41 = vld [vmem:[#allocation366_spill] sm:$0xff]  ;;  %8255 = vmatmul.mubr.msk.f32.gmra.mrb[22].mxu0 %vm3385_vm11, %v3344_v22  ;;  %v14908_v1 = vld [vmem:[#allocation139_spill] sm:$0xff]  ;;  %v14911_v7 = vld [vmem:[#allocation425_spill] sm:$0xff]  ;;  %v2725_v0 = vpop.permute.xlu1 %2724 }
 0x460   :  { %v3151_v20 = vsel %vm3125_vm7, %v3086_v15, %v14906_v44  ;;  %v3215_v38 = vsel %vm3190_vm8, %v3150_v4, %v14907_v41  ;;  %v2958_v49 = vsel %vm2930_vm4, %v2893_v8, %v14908_v1  ;;  %v14909_v36 = vld [vmem:[#allocation194_spill] sm:$0xff]  ;;  %v14910_v45 = vld [vmem:[#allocation367_spill] sm:$0xff]  ;;  %v14913_v10 = vld [vmem:[#allocation252_spill] sm:$0xff] }
 0x461   :  { %v3022_v23 = vsel %vm2995_vm5, %v2957_v35, %v14909_v36  ;;  %v3216_v47 = vsel %vm3190_vm8, %v3151_v20, %v14910_v45  ;;  %v3280_v32 = vsel %vm3255_vm9, %v3215_v38, %v14911_v7  ;;  %v14912_v57 = vld [vmem:[#allocation195_spill] sm:$0xff]  ;;  %v14914_v34 = vld [vmem:[#allocation426_spill] sm:$0xff]  ;;  %v14915_v27 = vld [vmem:[#allocation81_spill] sm:$0xff] }
 0x462   :  { %v3023_v62 = vsel %vm2995_vm5, %v2958_v49, %v14912_v57  ;;  %v3087_v51 = vsel %vm3060_vm6, %v3022_v23, %v14913_v10  ;;  %v3281_v2 = vsel %vm3255_vm9, %v3216_v47, %v14914_v34  ;;  %v3345_v31 = vsel %vm3320_vm10, %v3280_v32, %v2723_v37  ;;  %v8475_v30 = vld [vmem:[#allocation2 + $0x158] sm:$0xff]  ;;  %v14916_v26 = vld [vmem:[#allocation253_spill] sm:$0xff]  ;;  %v8476_v17 = vld [vmem:[#allocation2 + $0x168] sm:$0xff]  ;;  %v2727_v40 = vpop.permute.xlu0 %2726 }
 0x463   :  { %v2895_v13 = vsel %vm88_vm0, %v8475_v30, %v14915_v27  ;;  %v3088_v46 = vsel %vm3060_vm6, %v3023_v62, %v14916_v26  ;;  %v14917_v56 = vld [vmem:[#allocation310_spill] sm:$0xff]  ;;  %v3346_v61 = vsel %vm3320_vm10, %v3281_v2, %v2725_v0  ;;  %8257 = vmatprep.mubr.msk.f32.mxu0 %vm3385_vm11, %v3345_v31  ;;  %v14919_v12 = vld [vmem:[#allocation140_spill] sm:$0xff]  ;;  %v14920_v54 = vld [vmem:[#allocation311_spill] sm:$0xff]  ;;  %v2729_v22 = vpop.permute.xlu1 %2728 }
 0x464   :  { %v3152_v19 = vsel %vm3125_vm7, %v3087_v51, %v14917_v56  ;;  %v14918_v28 = vld [vmem:[#allocation82_spill] sm:$0xff]  ;;  %v2959_v58 = vsel %vm2930_vm4, %v2894_v53, %v14919_v12  ;;  %v3153_v33 = vsel %vm3125_vm7, %v3088_v46, %v14920_v54  ;;  %v14921_v43 = vld [vmem:[#allocation368_spill] sm:$0xff]  ;;  %8258 = vmatmul.mubr.msk.f32.gmra.mrb[24].mxu0 %vm3385_vm11, %v3346_v61  ;;  %v273_v18 = vld [vmem:[#allocation2 + $0x1b0] sm:$0xff] }
 0x465   :  { %v2896_v3 = vsel %vm88_vm0, %v8476_v17, %v14918_v28  ;;  %v3217_v60 = vsel %vm3190_vm8, %v3152_v19, %v14921_v43  ;;  %v14922_v52 = vld [vmem:[#allocation141_spill] sm:$0xff]  ;;  %v14923_v9 = vld [vmem:[#allocation196_spill] sm:$0xff]  ;;  %v14925_v16 = vld [vmem:[#allocation427_spill] sm:$0xff] }
 0x466   :  { %v2960_v21 = vsel %vm2930_vm4, %v2895_v13, %v14922_v52  ;;  %v3024_v14 = vsel %vm2995_vm5, %v2959_v58, %v14923_v9  ;;  %v14924_v55 = vld [vmem:[#allocation369_spill] sm:$0xff]  ;;  %v3282_v5 = vsel %vm3255_vm9, %v3217_v60, %v14925_v16  ;;  %v14927_v8 = vld [vmem:[#allocation254_spill] sm:$0xff]  ;;  %v14928_v15 = vld [vmem:[#allocation428_spill] sm:$0xff]  ;;  %v2731_v0 = vpop.permute.xlu0 %2730 }
 0x467   :  { %v3218_v11 = vsel %vm3190_vm8, %v3153_v33, %v14924_v55  ;;  %v14926_v59 = vld [vmem:[#allocation197_spill] sm:$0xff]  ;;  %v3089_v29 = vsel %vm3060_vm6, %v3024_v14, %v14927_v8  ;;  %v3347_v4 = vsel %vm3320_vm10, %v3282_v5, %v2727_v40  ;;  %v14929_v42 = vld [vmem:[#allocation83_spill] sm:$0xff]  ;;  %v14931_v44 = vld [vmem:[#allocation312_spill] sm:$0xff]  ;;  %v2733_v61 = vpop.permute.xlu1 %2732 }
 0x468   :  { %v3025_v39 = vsel %vm2995_vm5, %v2960_v21, %v14926_v59  ;;  %v3283_v63 = vsel %vm3255_vm9, %v3218_v11, %v14928_v15  ;;  %v8477_v48 = vld [vmem:[#allocation2 + $0x170] sm:$0xff]  ;;  %v14930_v50 = vld [vmem:[#allocation255_spill] sm:$0xff]  ;;  %v3154_v20 = vsel %vm3125_vm7, %v3089_v29, %v14931_v44  ;;  %8260 = vmatprep.mubr.msk.f32.mxu0 %vm3385_vm11, %v3347_v4  ;;  %v14932_v38 = vld [vmem:[#allocation84_spill] sm:$0xff] }
 0x469   :  { %v2897_v53 = vsel %vm88_vm0, %v8477_v48, %v14929_v42  ;;  %v3090_v35 = vsel %vm3060_vm6, %v3025_v39, %v14930_v50  ;;  %v3348_v41 = vsel %vm3320_vm10, %v3283_v63, %v2729_v22  ;;  %v2898_v1 = vsel %vm88_vm0, %v273_v18, %v14932_v38  ;;  %v274_v49 = vld [vmem:[#allocation2 + $0x1b8] sm:$0xff]  ;;  %v14934_v45 = vld [vmem:[#allocation313_spill] sm:$0xff]  ;;  %v14936_v37 = vld [vmem:[#allocation143_spill] sm:$0xff] }
 0x46a   :  { %v14933_v36 = vld [vmem:[#allocation142_spill] sm:$0xff]  ;;  %v3155_v47 = vsel %vm3125_vm7, %v3090_v35, %v14934_v45  ;;  %8261 = vmatmul.mubr.msk.f32.gmra.mrb[26].mxu0 %vm3385_vm11, %v3348_v41  ;;  %v2962_v57 = vsel %vm2930_vm4, %v2897_v53, %v14936_v37  ;;  %v14938_v51 = vld [vmem:[#allocation371_spill] sm:$0xff]  ;;  %v14939_v2 = vld [vmem:[#allocation429_spill] sm:$0xff]  ;;  %v2735_v63 = vpop.permute.xlu0 %2734 }
 0x46b   :  { %v2961_v23 = vsel %vm2930_vm4, %v2896_v3, %v14933_v36  ;;  %v14935_v7 = vld [vmem:[#allocation370_spill] sm:$0xff]  ;;  %v3220_v34 = vsel %vm3190_vm8, %v3155_v47, %v14938_v51  ;;  %v14940_v30 = vld [vmem:[#allocation199_spill] sm:$0xff]  ;;  %v14941_v13 = vld [vmem:[#allocation256_spill] sm:$0xff]  ;;  %v2737_v44 = vpop.permute.xlu1 %2736 }
 0x46c   :  { %v3219_v32 = vsel %vm3190_vm8, %v3154_v20, %v14935_v7  ;;  %v14937_v62 = vld [vmem:[#allocation198_spill] sm:$0xff]  ;;  %v3027_v27 = vsel %vm2995_vm5, %v2962_v57, %v14940_v30  ;;  %v14943_v17 = vld [vmem:[#allocation85_spill] sm:$0xff]  ;;  %v8478_v43 = vld [vmem:[#allocation2 + $0x1c8] sm:$0xff] }
 0x46d   :  { %v3026_v10 = vsel %vm2995_vm5, %v2961_v23, %v14937_v62  ;;  %v3284_v31 = vsel %vm3255_vm9, %v3219_v32, %v14939_v2  ;;  %v14942_v46 = vld [vmem:[#allocation430_spill] sm:$0xff]  ;;  %v2899_v28 = vsel %vm88_vm0, %v274_v49, %v14943_v17  ;;  %v14944_v3 = vld [vmem:[#allocation257_spill] sm:$0xff]  ;;  %v14946_v60 = vld [vmem:[#allocation88_spill] sm:$0xff] }
 0x46e   :  { %v3091_v26 = vsel %vm3060_vm6, %v3026_v10, %v14941_v13  ;;  %v3285_v56 = vsel %vm3255_vm9, %v3220_v34, %v14942_v46  ;;  %v3349_v19 = vsel %vm3320_vm10, %v3284_v31, %v2731_v0  ;;  %v3092_v12 = vsel %vm3060_vm6, %v3027_v27, %v14944_v3  ;;  %v14945_v58 = vld [vmem:[#allocation314_spill] sm:$0xff]  ;;  %v14947_v52 = vld [vmem:[#allocation144_spill] sm:$0xff]  ;;  %v14948_v9 = vld [vmem:[#allocation315_spill] sm:$0xff] }
 0x46f   :  { %v3156_v54 = vsel %vm3125_vm7, %v3091_v26, %v14945_v58  ;;  %v3350_v33 = vsel %vm3320_vm10, %v3285_v56, %v2733_v61  ;;  %8263 = vmatprep.mubr.msk.f32.mxu0 %vm3385_vm11, %v3349_v19  ;;  %v2900_v18 = vsel %vm88_vm0, %v8478_v43, %v14946_v60  ;;  %v2963_v21 = vsel %vm2930_vm4, %v2898_v1, %v14947_v52  ;;  %v14949_v55 = vld [vmem:[#allocation372_spill] sm:$0xff]  ;;  %v14950_v16 = vld [vmem:[#allocation145_spill] sm:$0xff]  ;;  %v14953_v29 = vld [vmem:[#allocation431_spill] sm:$0xff]  ;;  %v2739_v56 = vpop.permute.xlu0 %2738 }
 0x470   :  { %v3157_v14 = vsel %vm3125_vm7, %v3092_v12, %v14948_v9  ;;  %v3221_v11 = vsel %vm3190_vm8, %v3156_v54, %v14949_v55  ;;  %8264 = vmatmul.mubr.msk.f32.gmra.mrb[28].mxu0 %vm3385_vm11, %v3350_v33  ;;  %v2964_v5 = vsel %vm2930_vm4, %v2899_v28, %v14950_v16  ;;  %v14951_v40 = vld [vmem:[#allocation200_spill] sm:$0xff]  ;;  %v14952_v39 = vld [vmem:[#allocation373_spill] sm:$0xff]  ;;  %v14955_v48 = vld [vmem:[#allocation258_spill] sm:$0xff]  ;;  %v2741_v54 = vpop.permute.xlu1 %2740 }
 0x471   :  { %v3028_v59 = vsel %vm2995_vm5, %v2963_v21, %v14951_v40  ;;  %v3222_v8 = vsel %vm3190_vm8, %v3157_v14, %v14952_v39  ;;  %v3286_v15 = vsel %vm3255_vm9, %v3221_v11, %v14953_v29  ;;  %v14954_v4 = vld [vmem:[#allocation201_spill] sm:$0xff]  ;;  %v14956_v53 = vld [vmem:[#allocation432_spill] sm:$0xff]  ;;  %v14958_v1 = vld [vmem:[#allocation259_spill] sm:$0xff] }
 0x472   :  { %v3029_v22 = vsel %vm2995_vm5, %v2964_v5, %v14954_v4  ;;  %v3093_v42 = vsel %vm3060_vm6, %v3028_v59, %v14955_v48  ;;  %v3287_v50 = vsel %vm3255_vm9, %v3222_v8, %v14956_v53  ;;  %v3351_v35 = vsel %vm3320_vm10, %v3286_v15, %v2735_v63  ;;  %v8479_v20 = vld [vmem:[#allocation2 + $0x1d0] sm:$0xff]  ;;  %v14959_v36 = vld [vmem:[#allocation316_spill] sm:$0xff]  ;;  %v8480_v47 = vld [vmem:[#allocation2 + $0x1e0] sm:$0xff] }
 0x473   :  { %v14957_v41 = vld [vmem:[#allocation89_spill] sm:$0xff]  ;;  %v3094_v49 = vsel %vm3060_vm6, %v3029_v22, %v14958_v1  ;;  %v3158_v23 = vsel %vm3125_vm7, %v3093_v42, %v14959_v36  ;;  %v3352_v45 = vsel %vm3320_vm10, %v3287_v50, %v2737_v44  ;;  %8266 = vmatprep.mubr.msk.f32.mxu0 %vm3385_vm11, %v3351_v35  ;;  %v14960_v7 = vld [vmem:[#allocation90_spill] sm:$0xff]  ;;  %v14964_v2 = vld [vmem:[#allocation147_spill] sm:$0xff]  ;;  %v2743_v35 = vpop.permute.xlu0 %2742 }
 0x474   :  { %v2901_v38 = vsel %vm88_vm0, %v8479_v20, %v14957_v41  ;;  %v2902_v32 = vsel %vm88_vm0, %v8480_v47, %v14960_v7  ;;  %v14961_v37 = vld [vmem:[#allocation146_spill] sm:$0xff]  ;;  %v14962_v62 = vld [vmem:[#allocation317_spill] sm:$0xff]  ;;  %8267 = vmatmul.mubr.msk.f32.gmra.mrb[30].mxu0 %vm3385_vm11, %v3352_v45  ;;  %v14966_v27 = vld [vmem:[#allocation375_spill] sm:$0xff] }
 0x475   :  { %v2965_v57 = vsel %vm2930_vm4, %v2900_v18, %v14961_v37  ;;  %v3159_v10 = vsel %vm3125_vm7, %v3094_v49, %v14962_v62  ;;  %v14963_v51 = vld [vmem:[#allocation374_spill] sm:$0xff]  ;;  %v2966_v31 = vsel %vm2930_vm4, %v2901_v38, %v14964_v2  ;;  %v14967_v26 = vld [vmem:[#allocation433_spill] sm:$0xff]  ;;  %v14968_v19 = vld [vmem:[#allocation203_spill] sm:$0xff] }
 0x476   :  { %v3223_v34 = vsel %vm3190_vm8, %v3158_v23, %v14963_v51  ;;  %v14965_v0 = vld [vmem:[#allocation202_spill] sm:$0xff]  ;;  %v3224_v13 = vsel %vm3190_vm8, %v3159_v10, %v14966_v27  ;;  %v3031_v61 = vsel %vm2995_vm5, %v2966_v31, %v14968_v19  ;;  %v14969_v17 = vld [vmem:[#allocation260_spill] sm:$0xff]  ;;  %v14971_v43 = vld [vmem:[#allocation91_spill] sm:$0xff]  ;;  %v2745_v23 = vpop.permute.xlu1 %2744 }
 0x477   :  { %v3030_v30 = vsel %vm2995_vm5, %v2965_v57, %v14965_v0  ;;  %v3288_v46 = vsel %vm3255_vm9, %v3223_v34, %v14967_v26  ;;  %v14970_v3 = vld [vmem:[#allocation434_spill] sm:$0xff]  ;;  %v8481_v33 = vld [vmem:[#allocation2 + $0x1e8] sm:$0xff]  ;;  %v14972_v18 = vld [vmem:[#allocation261_spill] sm:$0xff] }
 0x478   :  { %v3095_v28 = vsel %vm3060_vm6, %v3030_v30, %v14969_v17  ;;  %v3289_v12 = vsel %vm3255_vm9, %v3224_v13, %v14970_v3  ;;  %v3353_v58 = vsel %vm3320_vm10, %v3288_v46, %v2739_v56  ;;  %v2903_v60 = vsel %vm88_vm0, %v8481_v33, %v14971_v43  ;;  %v14973_v21 = vld [vmem:[#allocation318_spill] sm:$0xff]  ;;  %v14974_v11 = vld [vmem:[#allocation92_spill] sm:$0xff]  ;;  %v14976_v59 = vld [vmem:[#allocation319_spill] sm:$0xff] }
 0x479   :  { %v3096_v52 = vsel %vm3060_vm6, %v3031_v61, %v14972_v18  ;;  %v3160_v9 = vsel %vm3125_vm7, %v3095_v28, %v14973_v21  ;;  %v3354_v14 = vsel %vm3320_vm10, %v3289_v12, %v2741_v54  ;;  %8269 = vmatprep.mubr.msk.f32.mxu0 %vm3385_vm11, %v3353_v58  ;;  %v8482_v55 = vld [vmem:[#allocation2 + $0x1f8] sm:$0xff]  ;;  %v14975_v5 = vld [vmem:[#allocation148_spill] sm:$0xff]  ;;  %v14978_v15 = vld [vmem:[#allocation149_spill] sm:$0xff]  ;;  %v2747_v58 = vpop.permute.xlu0 %2746 }
 0x47a   :  { %v2904_v16 = vsel %vm88_vm0, %v8482_v55, %v14974_v11  ;;  %v2967_v40 = vsel %vm2930_vm4, %v2902_v32, %v14975_v5  ;;  %v3161_v39 = vsel %vm3125_vm7, %v3096_v52, %v14976_v59  ;;  %v14977_v8 = vld [vmem:[#allocation376_spill] sm:$0xff]  ;;  %8270 = vmatmul.mubr.msk.f32.gmra.mrb[32].mxu0 %vm3385_vm11, %v3354_v14  ;;  %v2968_v63 = vsel %vm2930_vm4, %v2903_v60, %v14978_v15  ;;  %v14980_v48 = vld [vmem:[#allocation377_spill] sm:$0xff]  ;;  %v14981_v53 = vld [vmem:[#allocation435_spill] sm:$0xff] }
 0x47b   :  { %v3225_v29 = vsel %vm3190_vm8, %v3160_v9, %v14977_v8  ;;  %v14979_v4 = vld [vmem:[#allocation204_spill] sm:$0xff]  ;;  %v3226_v42 = vsel %vm3190_vm8, %v3161_v39, %v14980_v48  ;;  %v14982_v44 = vld [vmem:[#allocation205_spill] sm:$0xff]  ;;  %v14983_v41 = vld [vmem:[#allocation262_spill] sm:$0xff]  ;;  %v2749_v9 = vpop.permute.xlu1 %2748 }
 0x47c   :  { %v3032_v22 = vsel %vm2995_vm5, %v2967_v40, %v14979_v4  ;;  %v3290_v50 = vsel %vm3255_vm9, %v3225_v29, %v14981_v53  ;;  %v3033_v20 = vsel %vm2995_vm5, %v2968_v63, %v14982_v44  ;;  %v14984_v1 = vld [vmem:[#allocation436_spill] sm:$0xff]  ;;  %v8483_v45 = vld [vmem:[#allocation2 + $0x200] sm:$0xff]  ;;  %v14985_v47 = vld [vmem:[#allocation93_spill] sm:$0xff] }
 0x47d   :  { %v3097_v38 = vsel %vm3060_vm6, %v3032_v22, %v14983_v41  ;;  %v3291_v49 = vsel %vm3255_vm9, %v3226_v42, %v14984_v1  ;;  %v3355_v36 = vsel %vm3320_vm10, %v3290_v50, %v2743_v35  ;;  %v2905_v7 = vsel %vm88_vm0, %v8483_v45, %v14985_v47  ;;  %v14986_v32 = vld [vmem:[#allocation263_spill] sm:$0xff]  ;;  %v14987_v57 = vld [vmem:[#allocation320_spill] sm:$0xff]  ;;  %v8484_v51 = vld [vmem:[#allocation2 + $0x210] sm:$0xff] }
 0x47e   :  { %v3098_v37 = vsel %vm3060_vm6, %v3033_v20, %v14986_v32  ;;  %v3162_v62 = vsel %vm3125_vm7, %v3097_v38, %v14987_v57  ;;  %v3356_v10 = vsel %vm3320_vm10, %v3291_v49, %v2745_v23  ;;  %8272 = vmatprep.mubr.msk.f32.mxu0 %vm3385_vm11, %v3355_v36  ;;  %v14988_v34 = vld [vmem:[#allocation94_spill] sm:$0xff]  ;;  %v14990_v30 = vld [vmem:[#allocation321_spill] sm:$0xff]  ;;  %v14992_v46 = vld [vmem:[#allocation151_spill] sm:$0xff]  ;;  %v2751_v36 = vpop.permute.xlu0 %2750 }
 0x47f   :  { %v2906_v2 = vsel %vm88_vm0, %v8484_v51, %v14988_v34  ;;  %v14989_v31 = vld [vmem:[#allocation150_spill] sm:$0xff]  ;;  %v3163_v27 = vsel %vm3125_vm7, %v3098_v37, %v14990_v30  ;;  %8273 = vmatmul.mubr.msk.f32.gmra.mrb[34].mxu0 %vm3385_vm11, %v3356_v10  ;;  %v2970_v56 = vsel %vm2930_vm4, %v2905_v7, %v14992_v46  ;;  %v14994_v17 = vld [vmem:[#allocation379_spill] sm:$0xff]  ;;  %v14995_v3 = vld [vmem:[#allocation437_spill] sm:$0xff] }
 0x480   :  { %v2969_v0 = vsel %vm2930_vm4, %v2904_v16, %v14989_v31  ;;  %v14991_v13 = vld [vmem:[#allocation378_spill] sm:$0xff]  ;;  %v3228_v28 = vsel %vm3190_vm8, %v3163_v27, %v14994_v17  ;;  %v14996_v54 = vld [vmem:[#allocation207_spill] sm:$0xff]  ;;  %v14997_v43 = vld [vmem:[#allocation264_spill] sm:$0xff] }
 0x481   :  { %v3227_v26 = vsel %vm3190_vm8, %v3162_v62, %v14991_v13  ;;  %v14993_v19 = vld [vmem:[#allocation206_spill] sm:$0xff]  ;;  %v3035_v33 = vsel %vm2995_vm5, %v2970_v56, %v14996_v54  ;;  %v14999_v55 = vld [vmem:[#allocation95_spill] sm:$0xff]  ;;  %v15000_v16 = vld [vmem:[#allocation265_spill] sm:$0xff]  ;;  %v2753_v62 = vpop.permute.xlu1 %2752 }
 0x482   :  { %v3034_v61 = vsel %vm2995_vm5, %v2969_v0, %v14993_v19  ;;  %v3292_v12 = vsel %vm3255_vm9, %v3227_v26, %v14995_v3  ;;  %v14998_v18 = vld [vmem:[#allocation438_spill] sm:$0xff]  ;;  %v3100_v5 = vsel %vm3060_vm6, %v3035_v33, %v15000_v16  ;;  %v8486_v8 = vld [vmem:[#allocation2 + $0x228] sm:$0xff]  ;;  %v15004_v22 = vld [vmem:[#allocation323_spill] sm:$0xff] }
 0x483   :  { %v3099_v60 = vsel %vm3060_vm6, %v3034_v61, %v14997_v43  ;;  %v3293_v52 = vsel %vm3255_vm9, %v3228_v28, %v14998_v18  ;;  %v3357_v21 = vsel %vm3320_vm10, %v3292_v12, %v2747_v58  ;;  %v8485_v14 = vld [vmem:[#allocation2 + $0x218] sm:$0xff]  ;;  %v15002_v29 = vld [vmem:[#allocation96_spill] sm:$0xff]  ;;  %v3165_v48 = vsel %vm3125_vm7, %v3100_v5, %v15004_v22  ;;  %v15006_v50 = vld [vmem:[#allocation153_spill] sm:$0xff] }
 0x484   :  { %v2907_v11 = vsel %vm88_vm0, %v8485_v14, %v14999_v55  ;;  %v15001_v40 = vld [vmem:[#allocation322_spill] sm:$0xff]  ;;  %v3358_v39 = vsel %vm3320_vm10, %v3293_v52, %v2749_v9  ;;  %8275 = vmatprep.mubr.msk.f32.mxu0 %vm3385_vm11, %v3357_v21  ;;  %v2908_v15 = vsel %vm88_vm0, %v8486_v8, %v15002_v29  ;;  %v15003_v63 = vld [vmem:[#allocation152_spill] sm:$0xff]  ;;  %v15008_v41 = vld [vmem:[#allocation381_spill] sm:$0xff]  ;;  %v2755_v21 = vpop.permute.xlu0 %2754 }
 0x485   :  { %v3164_v59 = vsel %vm3125_vm7, %v3099_v60, %v15001_v40  ;;  %v2971_v4 = vsel %vm2930_vm4, %v2906_v2, %v15003_v63  ;;  %v15005_v42 = vld [vmem:[#allocation380_spill] sm:$0xff]  ;;  %8276 = vmatmul.mubr.msk.f32.gmra.mrb[36].mxu0 %vm3385_vm11, %v3358_v39  ;;  %v2972_v35 = vsel %vm2930_vm4, %v2907_v11, %v15006_v50  ;;  %v3230_v38 = vsel %vm3190_vm8, %v3165_v48, %v15008_v41  ;;  %v15009_v1 = vld [vmem:[#allocation439_spill] sm:$0xff]  ;;  %v15010_v23 = vld [vmem:[#allocation209_spill] sm:$0xff] }
 0x486   :  { %v3229_v53 = vsel %vm3190_vm8, %v3164_v59, %v15005_v42  ;;  %v15007_v44 = vld [vmem:[#allocation208_spill] sm:$0xff]  ;;  %v3037_v45 = vsel %vm2995_vm5, %v2972_v35, %v15010_v23  ;;  %v15011_v47 = vld [vmem:[#allocation266_spill] sm:$0xff]  ;;  %v8487_v10 = vld [vmem:[#allocation2 + $0x230] sm:$0xff]  ;;  %v2757_v59 = vpop.permute.xlu1 %2756 }
 0x487   :  { %v3036_v20 = vsel %vm2995_vm5, %v2971_v4, %v15007_v44  ;;  %v3294_v49 = vsel %vm3255_vm9, %v3229_v53, %v15009_v1  ;;  %v15012_v32 = vld [vmem:[#allocation440_spill] sm:$0xff]  ;;  %v15013_v51 = vld [vmem:[#allocation97_spill] sm:$0xff]  ;;  %v15014_v2 = vld [vmem:[#allocation267_spill] sm:$0xff] }
 0x488   :  { %v3101_v7 = vsel %vm3060_vm6, %v3036_v20, %v15011_v47  ;;  %v3295_v37 = vsel %vm3255_vm9, %v3230_v38, %v15012_v32  ;;  %v3359_v57 = vsel %vm3320_vm10, %v3294_v49, %v2751_v36  ;;  %v2909_v34 = vsel %vm88_vm0, %v8487_v10, %v15013_v51  ;;  %v15015_v0 = vld [vmem:[#allocation324_spill] sm:$0xff]  ;;  %v8488_v13 = vld [vmem:[#allocation2 + $0x240] sm:$0xff]  ;;  %v15016_v26 = vld [vmem:[#allocation98_spill] sm:$0xff] }
 0x489   :  { %v3102_v31 = vsel %vm3060_vm6, %v3037_v45, %v15014_v2  ;;  %v3166_v30 = vsel %vm3125_vm7, %v3101_v7, %v15015_v0  ;;  %v3360_v27 = vsel %vm3320_vm10, %v3295_v37, %v2753_v62  ;;  %8278 = vmatprep.mubr.msk.f32.mxu0 %vm3385_vm11, %v3359_v57  ;;  %v2910_v46 = vsel %vm88_vm0, %v8488_v13, %v15016_v26  ;;  %v15017_v56 = vld [vmem:[#allocation154_spill] sm:$0xff]  ;;  %v15018_v61 = vld [vmem:[#allocation325_spill] sm:$0xff]  ;;  %v15020_v12 = vld [vmem:[#allocation155_spill] sm:$0xff]  ;;  %v2759_v57 = vpop.permute.xlu0 %2758 }
 0x48a   :  { %v2973_v19 = vsel %vm2930_vm4, %v2908_v15, %v15017_v56  ;;  %v3167_v17 = vsel %vm3125_vm7, %v3102_v31, %v15018_v61  ;;  %v15019_v28 = vld [vmem:[#allocation382_spill] sm:$0xff]  ;;  %8279 = vmatmul.mubr.msk.f32.gmra.mrb[38].mxu0 %vm3385_vm11, %v3360_v27  ;;  %v2974_v58 = vsel %vm2930_vm4, %v2909_v34, %v15020_v12  ;;  %v15022_v43 = vld [vmem:[#allocation383_spill] sm:$0xff]  ;;  %v15023_v18 = vld [vmem:[#allocation441_spill] sm:$0xff] }
 0x48b   :  { %v3231_v3 = vsel %vm3190_vm8, %v3166_v30, %v15019_v28  ;;  %v15021_v54 = vld [vmem:[#allocation210_spill] sm:$0xff]  ;;  %v3232_v60 = vsel %vm3190_vm8, %v3167_v17, %v15022_v43  ;;  %v15024_v9 = vld [vmem:[#allocation211_spill] sm:$0xff]  ;;  %v15025_v55 = vld [vmem:[#allocation268_spill] sm:$0xff]  ;;  %v2761_v30 = vpop.permute.xlu1 %2760 }
 0x48c   :  { %v3038_v33 = vsel %vm2995_vm5, %v2973_v19, %v15021_v54  ;;  %v3296_v52 = vsel %vm3255_vm9, %v3231_v3, %v15023_v18  ;;  %v3039_v14 = vsel %vm2995_vm5, %v2974_v58, %v15024_v9  ;;  %v15026_v16 = vld [vmem:[#allocation442_spill] sm:$0xff]  ;;  %v8489_v39 = vld [vmem:[#allocation2 + $0x248] sm:$0xff]  ;;  %v15027_v8 = vld [vmem:[#allocation99_spill] sm:$0xff] }
 0x48d   :  { %v3103_v11 = vsel %vm3060_vm6, %v3038_v33, %v15025_v55  ;;  %v3297_v5 = vsel %vm3255_vm9, %v3232_v60, %v15026_v16  ;;  %v3361_v40 = vsel %vm3320_vm10, %v3296_v52, %v2755_v21  ;;  %v2911_v29 = vsel %vm88_vm0, %v8489_v39, %v15027_v8  ;;  %v15028_v15 = vld [vmem:[#allocation269_spill] sm:$0xff]  ;;  %v15029_v4 = vld [vmem:[#allocation326_spill] sm:$0xff]  ;;  %v15030_v53 = vld [vmem:[#allocation100_spill] sm:$0xff] }
 0x48e   :  { %v3104_v63 = vsel %vm3060_vm6, %v3039_v14, %v15028_v15  ;;  %v3168_v22 = vsel %vm3125_vm7, %v3103_v11, %v15029_v4  ;;  %v3362_v48 = vsel %vm3320_vm10, %v3297_v5, %v2757_v59  ;;  %8281 = vmatprep.mubr.msk.f32.mxu0 %vm3385_vm11, %v3361_v40  ;;  %v8490_v42 = vld [vmem:[#allocation2 + $0x258] sm:$0xff]  ;;  %v15031_v35 = vld [vmem:[#allocation156_spill] sm:$0xff]  ;;  %v15032_v20 = vld [vmem:[#allocation327_spill] sm:$0xff]  ;;  %v2763_v40 = vpop.permute.xlu0 %2762 }
 0x48f   :  { %v2912_v50 = vsel %vm88_vm0, %v8490_v42, %v15030_v53  ;;  %v2975_v44 = vsel %vm2930_vm4, %v2910_v46, %v15031_v35  ;;  %v3169_v41 = vsel %vm3125_vm7, %v3104_v63, %v15032_v20  ;;  %v15033_v38 = vld [vmem:[#allocation384_spill] sm:$0xff]  ;;  %8282 = vmatmul.mubr.msk.f32.gmra.mrb[40].mxu0 %vm3385_vm11, %v3362_v48  ;;  %v15034_v49 = vld [vmem:[#allocation157_spill] sm:$0xff]  ;;  %v15037_v32 = vld [vmem:[#allocation443_spill] sm:$0xff] }
 0x490   :  { %v3233_v1 = vsel %vm3190_vm8, %v3168_v22, %v15033_v38  ;;  %v2976_v36 = vsel %vm2930_vm4, %v2911_v29, %v15034_v49  ;;  %v15035_v23 = vld [vmem:[#allocation212_spill] sm:$0xff]  ;;  %v15036_v47 = vld [vmem:[#allocation385_spill] sm:$0xff]  ;;  %v15039_v51 = vld [vmem:[#allocation270_spill] sm:$0xff]  ;;  %v2765_v22 = vpop.permute.xlu1 %2764 }
 0x491   :  { %v3040_v45 = vsel %vm2995_vm5, %v2975_v44, %v15035_v23  ;;  %v3234_v7 = vsel %vm3190_vm8, %v3169_v41, %v15036_v47  ;;  %v3298_v37 = vsel %vm3255_vm9, %v3233_v1, %v15037_v32  ;;  %v15038_v62 = vld [vmem:[#allocation213_spill] sm:$0xff]  ;;  %v15040_v2 = vld [vmem:[#allocation444_spill] sm:$0xff]  ;;  %v8491_v27 = vld [vmem:[#allocation2 + $0x260] sm:$0xff] }
 0x492   :  { %v3041_v10 = vsel %vm2995_vm5, %v2976_v36, %v15038_v62  ;;  %v3105_v34 = vsel %vm3060_vm6, %v3040_v45, %v15039_v51  ;;  %v3299_v31 = vsel %vm3255_vm9, %v3234_v7, %v15040_v2  ;;  %v3363_v0 = vsel %vm3320_vm10, %v3298_v37, %v2759_v57  ;;  %v15041_v13 = vld [vmem:[#allocation101_spill] sm:$0xff]  ;;  %v15042_v46 = vld [vmem:[#allocation271_spill] sm:$0xff]  ;;  %v15043_v19 = vld [vmem:[#allocation328_spill] sm:$0xff] }
 0x493   :  { %v2913_v26 = vsel %vm88_vm0, %v8491_v27, %v15041_v13  ;;  %v3106_v56 = vsel %vm3060_vm6, %v3041_v10, %v15042_v46  ;;  %v3170_v61 = vsel %vm3125_vm7, %v3105_v34, %v15043_v19  ;;  %v3364_v17 = vsel %vm3320_vm10, %v3299_v31, %v2761_v30  ;;  %8284 = vmatprep.mubr.msk.f32.mxu0 %vm3385_vm11, %v3363_v0  ;;  %v8492_v28 = vld [vmem:[#allocation2 + $0x270] sm:$0xff]  ;;  %v15044_v3 = vld [vmem:[#allocation102_spill] sm:$0xff]  ;;  %v15048_v52 = vld [vmem:[#allocation159_spill] sm:$0xff]  ;;  %v2767_v0 = vpop.permute.xlu0 %2766 }
 0x494   :  { %v2914_v12 = vsel %vm88_vm0, %v8492_v28, %v15044_v3  ;;  %v15045_v58 = vld [vmem:[#allocation158_spill] sm:$0xff]  ;;  %v15046_v33 = vld [vmem:[#allocation329_spill] sm:$0xff]  ;;  %8285 = vmatmul.mubr.msk.f32.gmra.mrb[42].mxu0 %vm3385_vm11, %v3364_v17  ;;  %v2978_v21 = vsel %vm2930_vm4, %v2913_v26, %v15048_v52  ;;  %v15050_v55 = vld [vmem:[#allocation387_spill] sm:$0xff]  ;;  %v2769_v17 = vpop.permute.xlu1 %2768 }
 0x495   :  { %v2977_v54 = vsel %vm2930_vm4, %v2912_v50, %v15045_v58  ;;  %v3171_v43 = vsel %vm3125_vm7, %v3106_v56, %v15046_v33  ;;  %v15047_v60 = vld [vmem:[#allocation386_spill] sm:$0xff]  ;;  %v15051_v16 = vld [vmem:[#allocation445_spill] sm:$0xff]  ;;  %v15052_v59 = vld [vmem:[#allocation215_spill] sm:$0xff] }
 0x496   :  { %v3235_v18 = vsel %vm3190_vm8, %v3170_v61, %v15047_v60  ;;  %v15049_v9 = vld [vmem:[#allocation214_spill] sm:$0xff]  ;;  %v3236_v11 = vsel %vm3190_vm8, %v3171_v43, %v15050_v55  ;;  %v3043_v39 = vsel %vm2995_vm5, %v2978_v21, %v15052_v59  ;;  %v15053_v8 = vld [vmem:[#allocation272_spill] sm:$0xff]  ;;  %v15055_v42 = vld [vmem:[#allocation103_spill] sm:$0xff] }
 0x497   :  { %v3042_v14 = vsel %vm2995_vm5, %v2977_v54, %v15049_v9  ;;  %v3300_v5 = vsel %vm3255_vm9, %v3235_v18, %v15051_v16  ;;  %v15054_v15 = vld [vmem:[#allocation446_spill] sm:$0xff]  ;;  %v15056_v50 = vld [vmem:[#allocation273_spill] sm:$0xff]  ;;  %v8494_v38 = vld [vmem:[#allocation2 + $0x288] sm:$0xff] }
 0x498   :  { %v3107_v29 = vsel %vm3060_vm6, %v3042_v14, %v15053_v8  ;;  %v3301_v63 = vsel %vm3255_vm9, %v3236_v11, %v15054_v15  ;;  %v3365_v4 = vsel %vm3320_vm10, %v3300_v5, %v2763_v40  ;;  %v8493_v48 = vld [vmem:[#allocation2 + $0x278] sm:$0xff]  ;;  %v3108_v35 = vsel %vm3060_vm6, %v3043_v39, %v15056_v50  ;;  %v15058_v1 = vld [vmem:[#allocation104_spill] sm:$0xff]  ;;  %v15060_v45 = vld [vmem:[#allocation331_spill] sm:$0xff] }
 0x499   :  { %v2915_v53 = vsel %vm88_vm0, %v8493_v48, %v15055_v42  ;;  %v15057_v44 = vld [vmem:[#allocation330_spill] sm:$0xff]  ;;  %v3366_v41 = vsel %vm3320_vm10, %v3301_v63, %v2765_v22  ;;  %8287 = vmatprep.mubr.msk.f32.mxu0 %vm3385_vm11, %v3365_v4  ;;  %v2916_v49 = vsel %vm88_vm0, %v8494_v38, %v15058_v1  ;;  %v15059_v36 = vld [vmem:[#allocation160_spill] sm:$0xff]  ;;  %v3173_v47 = vsel %vm3125_vm7, %v3108_v35, %v15060_v45  ;;  %v15062_v37 = vld [vmem:[#allocation161_spill] sm:$0xff]  ;;  %v2771_v63 = vpop.permute.xlu0 %2770 }
 0x49a   :  { %v3172_v20 = vsel %vm3125_vm7, %v3107_v29, %v15057_v44  ;;  %v2979_v23 = vsel %vm2930_vm4, %v2914_v12, %v15059_v36  ;;  %v15061_v7 = vld [vmem:[#allocation388_spill] sm:$0xff]  ;;  %8288 = vmatmul.mubr.msk.f32.gmra.mrb[44].mxu0 %vm3385_vm11, %v3366_v41  ;;  %v2980_v57 = vsel %vm2930_vm4, %v2915_v53, %v15062_v37  ;;  %v15064_v51 = vld [vmem:[#allocation389_spill] sm:$0xff]  ;;  %v15065_v2 = vld [vmem:[#allocation447_spill] sm:$0xff]  ;;  %v2773_v44 = vpop.permute.xlu1 %2772 }
 0x49b   :  { %v3237_v32 = vsel %vm3190_vm8, %v3172_v20, %v15061_v7  ;;  %v15063_v62 = vld [vmem:[#allocation216_spill] sm:$0xff]  ;;  %v3238_v34 = vsel %vm3190_vm8, %v3173_v47, %v15064_v51  ;;  %v15066_v27 = vld [vmem:[#allocation217_spill] sm:$0xff]  ;;  %v15067_v26 = vld [vmem:[#allocation274_spill] sm:$0xff] }
 0x49c   :  { %v3044_v10 = vsel %vm2995_vm5, %v2979_v23, %v15063_v62  ;;  %v3302_v31 = vsel %vm3255_vm9, %v3237_v32, %v15065_v2  ;;  %v4160_v30 = vld [vmem:[#allocation2 + $0x9] sm:$0xff]  ;;  %v3045_v13 = vsel %vm2995_vm5, %v2980_v57, %v15066_v27  ;;  %v4159_v28 = vld [vmem:[#allocation2 + $0x1] sm:$0xff]  ;;  %v15072_v52 = vld [vmem:[#allocation162_spill] sm:$0xff] }
 0x49d   :  { %v3109_v46 = vsel %vm3060_vm6, %v3044_v10, %v15067_v26  ;;  %v15068_v56 = vld [vmem:[#allocation448_spill] sm:$0xff]  ;;  %v3367_v61 = vsel %vm3320_vm10, %v3302_v31, %v2767_v0  ;;  %4737 = vrot.lane.b32.xlu1 %v4160_v30, %s8569_s29  ;;  %v15069_v3 = vld [vmem:[#allocation275_spill] sm:$0xff]  ;;  %4735 = vrot.lane.b32.xlu0 %v4159_v28, %s8569_s29  ;;  %v8495_v43 = vld [vmem:[#allocation2 + $0x290] sm:$0xff]  ;;  %v2981_v21 = vsel %vm2930_vm4, %v2916_v49, %v15072_v52 }
 0x49e   :  { %v3303_v19 = vsel %vm3255_vm9, %v3238_v34, %v15068_v56  ;;  %v3110_v12 = vsel %vm3060_vm6, %v3045_v13, %v15069_v3  ;;  %v15070_v58 = vld [vmem:[#allocation332_spill] sm:$0xff]  ;;  %8290 = vmatprep.mubr.msk.f32.mxu0 %vm3385_vm11, %v3367_v61  ;;  %v15071_v60 = vld [vmem:[#allocation105_spill] sm:$0xff]  ;;  %v15074_v55 = vld [vmem:[#allocation390_spill] sm:$0xff]  ;;  %v2775_v56 = vpop.permute.xlu0 %2774 }
 0x49f   :  { %v3174_v54 = vsel %vm3125_vm7, %v3109_v46, %v15070_v58  ;;  %v3368_v33 = vsel %vm3320_vm10, %v3303_v19, %v2769_v17  ;;  %v2917_v18 = vsel %vm88_vm0, %v8495_v43, %v15071_v60  ;;  %v15073_v9 = vld [vmem:[#allocation333_spill] sm:$0xff]  ;;  %v15075_v16 = vld [vmem:[#allocation163_spill] sm:$0xff]  ;;  %v15076_v40 = vld [vmem:[#allocation218_spill] sm:$0xff] }
 0x4a0   :  { %v3175_v14 = vsel %vm3125_vm7, %v3110_v12, %v15073_v9  ;;  %v3239_v11 = vsel %vm3190_vm8, %v3174_v54, %v15074_v55  ;;  %8291 = vmatmul.mubr.msk.f32.gmra.mrb[46].mxu0 %vm3385_vm11, %v3368_v33  ;;  %v2982_v5 = vsel %vm2930_vm4, %v2917_v18, %v15075_v16  ;;  %v3046_v59 = vsel %vm2995_vm5, %v2981_v21, %v15076_v40  ;;  %v15077_v39 = vld [vmem:[#allocation391_spill] sm:$0xff]  ;;  %v15078_v29 = vld [vmem:[#allocation449_spill] sm:$0xff]  ;;  %v15080_v48 = vld [vmem:[#allocation276_spill] sm:$0xff]  ;;  %v2777_v54 = vpop.permute.xlu1 %2776 }
 0x4a1   :  { %v3240_v8 = vsel %vm3190_vm8, %v3175_v14, %v15077_v39  ;;  %v3304_v15 = vsel %vm3255_vm9, %v3239_v11, %v15078_v29  ;;  %v15079_v4 = vld [vmem:[#allocation219_spill] sm:$0xff]  ;;  %v3111_v42 = vsel %vm3060_vm6, %v3046_v59, %v15080_v48  ;;  %v15081_v53 = vld [vmem:[#allocation450_spill] sm:$0xff]  ;;  %v15083_v1 = vld [vmem:[#allocation277_spill] sm:$0xff] }
 0x4a2   :  { %v3047_v22 = vsel %vm2995_vm5, %v2982_v5, %v15079_v4  ;;  %v3305_v50 = vsel %vm3255_vm9, %v3240_v8, %v15081_v53  ;;  %v3369_v35 = vsel %vm3320_vm10, %v3304_v15, %v2771_v63  ;;  %v8496_v20 = vld [vmem:[#allocation2 + $0x2a0] sm:$0xff]  ;;  %v15082_v41 = vld [vmem:[#allocation106_spill] sm:$0xff]  ;;  %v8497_v47 = vld [vmem:[#allocation2 + $0x2a8] sm:$0xff] }
 0x4a3   :  { %v2918_v38 = vsel %vm88_vm0, %v8496_v20, %v15082_v41  ;;  %v3112_v49 = vsel %vm3060_vm6, %v3047_v22, %v15083_v1  ;;  %v15084_v36 = vld [vmem:[#allocation334_spill] sm:$0xff]  ;;  %v3370_v45 = vsel %vm3320_vm10, %v3305_v50, %v2773_v44  ;;  %8293 = vmatprep.mubr.msk.f32.mxu0 %vm3385_vm11, %v3369_v35  ;;  %v15085_v7 = vld [vmem:[#allocation107_spill] sm:$0xff]  ;;  %v15086_v37 = vld [vmem:[#allocation164_spill] sm:$0xff]  ;;  %v2779_v35 = vpop.permute.xlu0 %2778 }
 0x4a4   :  { %v3176_v23 = vsel %vm3125_vm7, %v3111_v42, %v15084_v36  ;;  %v2919_v32 = vsel %vm88_vm0, %v8497_v47, %v15085_v7  ;;  %v2983_v57 = vsel %vm2930_vm4, %v2918_v38, %v15086_v37  ;;  %v15087_v62 = vld [vmem:[#allocation335_spill] sm:$0xff]  ;;  %v15088_v51 = vld [vmem:[#allocation392_spill] sm:$0xff]  ;;  %8294 = vmatmul.mubr.msk.f32.gmra.mrb[48].mxu0 %vm3385_vm11, %v3370_v45  ;;  %v15089_v2 = vld [vmem:[#allocation165_spill] sm:$0xff] }
 0x4a5   :  { %v3177_v10 = vsel %vm3125_vm7, %v3112_v49, %v15087_v62  ;;  %v3241_v34 = vsel %vm3190_vm8, %v3176_v23, %v15088_v51  ;;  %v2984_v31 = vsel %vm2930_vm4, %v2919_v32, %v15089_v2  ;;  %v15090_v0 = vld [vmem:[#allocation220_spill] sm:$0xff]  ;;  %v15091_v27 = vld [vmem:[#allocation393_spill] sm:$0xff]  ;;  %v15092_v26 = vld [vmem:[#allocation451_spill] sm:$0xff]  ;;  %v2781_v23 = vpop.permute.xlu1 %2780 }
 0x4a6   :  { %v3048_v30 = vsel %vm2995_vm5, %v2983_v57, %v15090_v0  ;;  %v3242_v13 = vsel %vm3190_vm8, %v3177_v10, %v15091_v27  ;;  %v3306_v46 = vsel %vm3255_vm9, %v3241_v34, %v15092_v26  ;;  %v15093_v19 = vld [vmem:[#allocation221_spill] sm:$0xff]  ;;  %v15094_v17 = vld [vmem:[#allocation278_spill] sm:$0xff]  ;;  %v15095_v3 = vld [vmem:[#allocation452_spill] sm:$0xff] }
 0x4a7   :  { %v3049_v61 = vsel %vm2995_vm5, %v2984_v31, %v15093_v19  ;;  %v3113_v28 = vsel %vm3060_vm6, %v3048_v30, %v15094_v17  ;;  %v3307_v12 = vsel %vm3255_vm9, %v3242_v13, %v15095_v3  ;;  %v3371_v58 = vsel %vm3320_vm10, %v3306_v46, %v2775_v56  ;;  %v8498_v33 = vld [vmem:[#allocation2 + $0x2b8] sm:$0xff]  ;;  %v15096_v43 = vld [vmem:[#allocation108_spill] sm:$0xff]  ;;  %v15097_v18 = vld [vmem:[#allocation279_spill] sm:$0xff] }
 0x4a8   :  { %v2920_v60 = vsel %vm88_vm0, %v8498_v33, %v15096_v43  ;;  %v3114_v52 = vsel %vm3060_vm6, %v3049_v61, %v15097_v18  ;;  %v15098_v21 = vld [vmem:[#allocation336_spill] sm:$0xff]  ;;  %v3372_v14 = vsel %vm3320_vm10, %v3307_v12, %v2777_v54  ;;  %8296 = vmatprep.mubr.msk.f32.mxu0 %vm3385_vm11, %v3371_v58  ;;  %v8499_v55 = vld [vmem:[#allocation2 + $0x2c0] sm:$0xff]  ;;  %v15099_v11 = vld [vmem:[#allocation109_spill] sm:$0xff]  ;;  %v2783_v58 = vpop.permute.xlu0 %2782 }
 0x4a9   :  { %v3178_v9 = vsel %vm3125_vm7, %v3113_v28, %v15098_v21  ;;  %v2921_v16 = vsel %vm88_vm0, %v8499_v55, %v15099_v11  ;;  %v15100_v5 = vld [vmem:[#allocation166_spill] sm:$0xff]  ;;  %v15101_v59 = vld [vmem:[#allocation337_spill] sm:$0xff]  ;;  %8297 = vmatmul.mubr.msk.f32.gmra.mrb[50].mxu0 %vm3385_vm11, %v3372_v14  ;;  %v15103_v15 = vld [vmem:[#allocation167_spill] sm:$0xff] }
 0x4aa   :  { %v2985_v40 = vsel %vm2930_vm4, %v2920_v60, %v15100_v5  ;;  %v3179_v39 = vsel %vm3125_vm7, %v3114_v52, %v15101_v59  ;;  %v15102_v8 = vld [vmem:[#allocation394_spill] sm:$0xff]  ;;  %v2986_v63 = vsel %vm2930_vm4, %v2921_v16, %v15103_v15  ;;  %v15105_v48 = vld [vmem:[#allocation395_spill] sm:$0xff]  ;;  %v15106_v53 = vld [vmem:[#allocation453_spill] sm:$0xff] }
 0x4ab   :  { %v3243_v29 = vsel %vm3190_vm8, %v3178_v9, %v15102_v8  ;;  %v15104_v4 = vld [vmem:[#allocation222_spill] sm:$0xff]  ;;  %v3244_v42 = vsel %vm3190_vm8, %v3179_v39, %v15105_v48  ;;  %v15107_v44 = vld [vmem:[#allocation223_spill] sm:$0xff]  ;;  %v15108_v41 = vld [vmem:[#allocation280_spill] sm:$0xff]  ;;  %v2785_v9 = vpop.permute.xlu1 %2784 }
 0x4ac   :  { %v3050_v22 = vsel %vm2995_vm5, %v2985_v40, %v15104_v4  ;;  %v3308_v50 = vsel %vm3255_vm9, %v3243_v29, %v15106_v53  ;;  %v3051_v20 = vsel %vm2995_vm5, %v2986_v63, %v15107_v44  ;;  %v15109_v1 = vld [vmem:[#allocation454_spill] sm:$0xff]  ;;  %v8500_v45 = vld [vmem:[#allocation2 + $0x2d0] sm:$0xff]  ;;  %v15113_v34 = vld [vmem:[#allocation111_spill] sm:$0xff] }
 0x4ad   :  { %v3115_v38 = vsel %vm3060_vm6, %v3050_v22, %v15108_v41  ;;  %v3309_v49 = vsel %vm3255_vm9, %v3244_v42, %v15109_v1  ;;  %v3373_v36 = vsel %vm3320_vm10, %v3308_v50, %v2779_v35  ;;  %v15110_v47 = vld [vmem:[#allocation110_spill] sm:$0xff]  ;;  %v15111_v32 = vld [vmem:[#allocation281_spill] sm:$0xff]  ;;  %v15114_v31 = vld [vmem:[#allocation168_spill] sm:$0xff] }
 0x4ae   :  { %v2922_v7 = vsel %vm88_vm0, %v8500_v45, %v15110_v47  ;;  %v3116_v37 = vsel %vm3060_vm6, %v3051_v20, %v15111_v32  ;;  %v15112_v57 = vld [vmem:[#allocation338_spill] sm:$0xff]  ;;  %v3374_v10 = vsel %vm3320_vm10, %v3309_v49, %v2781_v23  ;;  %8299 = vmatprep.mubr.msk.f32.mxu0 %vm3385_vm11, %v3373_v36  ;;  %v15115_v30 = vld [vmem:[#allocation339_spill] sm:$0xff]  ;;  %v15116_v13 = vld [vmem:[#allocation396_spill] sm:$0xff]  ;;  %v2787_v36 = vpop.permute.xlu0 %2786 }
 0x4af   :  { %v3180_v62 = vsel %vm3125_vm7, %v3115_v38, %v15112_v57  ;;  %v8501_v51 = vld [vmem:[#allocation2 + $0x2d8] sm:$0xff]  ;;  %v2987_v0 = vsel %vm2930_vm4, %v2922_v7, %v15114_v31  ;;  %v3181_v27 = vsel %vm3125_vm7, %v3116_v37, %v15115_v30  ;;  %8300 = vmatmul.mubr.msk.f32.gmra.mrb[52].mxu0 %vm3385_vm11, %v3374_v10  ;;  %v15117_v46 = vld [vmem:[#allocation169_spill] sm:$0xff]  ;;  %v15118_v19 = vld [vmem:[#allocation224_spill] sm:$0xff] }
 0x4b0   :  { %v2923_v2 = vsel %vm88_vm0, %v8501_v51, %v15113_v34  ;;  %v3245_v26 = vsel %vm3190_vm8, %v3180_v62, %v15116_v13  ;;  %v3052_v61 = vsel %vm2995_vm5, %v2987_v0, %v15118_v19  ;;  %v15119_v17 = vld [vmem:[#allocation397_spill] sm:$0xff]  ;;  %v15120_v3 = vld [vmem:[#allocation455_spill] sm:$0xff]  ;;  %v15122_v43 = vld [vmem:[#allocation282_spill] sm:$0xff]  ;;  %v2789_v62 = vpop.permute.xlu1 %2788 }
 0x4b1   :  { %v2988_v56 = vsel %vm2930_vm4, %v2923_v2, %v15117_v46  ;;  %v3246_v28 = vsel %vm3190_vm8, %v3181_v27, %v15119_v17  ;;  %v3310_v12 = vsel %vm3255_vm9, %v3245_v26, %v15120_v3  ;;  %v15121_v54 = vld [vmem:[#allocation225_spill] sm:$0xff]  ;;  %v3117_v60 = vsel %vm3060_vm6, %v3052_v61, %v15122_v43  ;;  %v15123_v18 = vld [vmem:[#allocation456_spill] sm:$0xff]  ;;  %v15125_v16 = vld [vmem:[#allocation283_spill] sm:$0xff] }
 0x4b2   :  { %v3053_v33 = vsel %vm2995_vm5, %v2988_v56, %v15121_v54  ;;  %v3311_v52 = vsel %vm3255_vm9, %v3246_v28, %v15123_v18  ;;  %v3375_v21 = vsel %vm3320_vm10, %v3310_v12, %v2783_v58  ;;  %v8502_v14 = vld [vmem:[#allocation2 + $0x2e8] sm:$0xff]  ;;  %v8503_v8 = vld [vmem:[#allocation2 + $0x2f0] sm:$0xff]  ;;  %v15128_v63 = vld [vmem:[#allocation170_spill] sm:$0xff] }
 0x4b3   :  { %v15124_v55 = vld [vmem:[#allocation112_spill] sm:$0xff]  ;;  %v3118_v5 = vsel %vm3060_vm6, %v3053_v33, %v15125_v16  ;;  %v3376_v39 = vsel %vm3320_vm10, %v3311_v52, %v2785_v9  ;;  %8302 = vmatprep.mubr.msk.f32.mxu0 %vm3385_vm11, %v3375_v21  ;;  %v15127_v29 = vld [vmem:[#allocation113_spill] sm:$0xff]  ;;  %v15130_v42 = vld [vmem:[#allocation398_spill] sm:$0xff]  ;;  %v2791_v21 = vpop.permute.xlu0 %2790 }
 0x4b4   :  { %v2924_v11 = vsel %vm88_vm0, %v8502_v14, %v15124_v55  ;;  %v15126_v40 = vld [vmem:[#allocation340_spill] sm:$0xff]  ;;  %v2925_v15 = vsel %vm88_vm0, %v8503_v8, %v15127_v29  ;;  %v15129_v22 = vld [vmem:[#allocation341_spill] sm:$0xff]  ;;  %8303 = vmatmul.mubr.msk.f32.gmra.mrb[54].mxu0 %vm3385_vm11, %v3376_v39  ;;  %v15131_v50 = vld [vmem:[#allocation171_spill] sm:$0xff] }
 0x4b5   :  { %v3182_v59 = vsel %vm3125_vm7, %v3117_v60, %v15126_v40  ;;  %v2989_v4 = vsel %vm2930_vm4, %v2924_v11, %v15128_v63  ;;  %v3183_v48 = vsel %vm3125_vm7, %v3118_v5, %v15129_v22  ;;  %v2990_v35 = vsel %vm2930_vm4, %v2925_v15, %v15131_v50  ;;  %v15132_v44 = vld [vmem:[#allocation226_spill] sm:$0xff]  ;;  %v15133_v41 = vld [vmem:[#allocation399_spill] sm:$0xff]  ;;  %v15134_v1 = vld [vmem:[#allocation457_spill] sm:$0xff] }
 0x4b6   :  { %v3247_v53 = vsel %vm3190_vm8, %v3182_v59, %v15130_v42  ;;  %v3054_v20 = vsel %vm2995_vm5, %v2989_v4, %v15132_v44  ;;  %v3248_v38 = vsel %vm3190_vm8, %v3183_v48, %v15133_v41  ;;  %v15135_v23 = vld [vmem:[#allocation227_spill] sm:$0xff]  ;;  %v15136_v47 = vld [vmem:[#allocation284_spill] sm:$0xff]  ;;  %v15137_v32 = vld [vmem:[#allocation458_spill] sm:$0xff]  ;;  %v2793_v59 = vpop.permute.xlu1 %2792 }
 0x4b7   :  { %v3312_v49 = vsel %vm3255_vm9, %v3247_v53, %v15134_v1  ;;  %v3055_v45 = vsel %vm2995_vm5, %v2990_v35, %v15135_v23  ;;  %v3119_v7 = vsel %vm3060_vm6, %v3054_v20, %v15136_v47  ;;  %v3313_v37 = vsel %vm3255_vm9, %v3248_v38, %v15137_v32  ;;  %v8504_v10 = vld [vmem:[#allocation2 + $0x300] sm:$0xff]  ;;  %v15138_v51 = vld [vmem:[#allocation114_spill] sm:$0xff]  ;;  %v15139_v2 = vld [vmem:[#allocation285_spill] sm:$0xff] }
 0x4b8   :  { %v3377_v57 = vsel %vm3320_vm10, %v3312_v49, %v2787_v36  ;;  %v2926_v34 = vsel %vm88_vm0, %v8504_v10, %v15138_v51  ;;  %v3120_v31 = vsel %vm3060_vm6, %v3055_v45, %v15139_v2  ;;  %v15140_v0 = vld [vmem:[#allocation342_spill] sm:$0xff]  ;;  %v3378_v27 = vsel %vm3320_vm10, %v3313_v37, %v2789_v62  ;;  %v8505_v13 = vld [vmem:[#allocation2 + $0x308] sm:$0xff]  ;;  %v15141_v26 = vld [vmem:[#allocation115_spill] sm:$0xff] }
 0x4b9   :  { %v3184_v30 = vsel %vm3125_vm7, %v3119_v7, %v15140_v0  ;;  %8305 = vmatprep.mubr.msk.f32.mxu0 %vm3385_vm11, %v3377_v57  ;;  %v2927_v46 = vsel %vm88_vm0, %v8505_v13, %v15141_v26  ;;  %v15142_v56 = vld [vmem:[#allocation172_spill] sm:$0xff]  ;;  %v15143_v61 = vld [vmem:[#allocation343_spill] sm:$0xff]  ;;  %v15145_v12 = vld [vmem:[#allocation173_spill] sm:$0xff]  ;;  %v2795_v57 = vpop.permute.xlu0 %2794 }
 0x4ba   :  { %v2991_v19 = vsel %vm2930_vm4, %v2926_v34, %v15142_v56  ;;  %v3185_v17 = vsel %vm3125_vm7, %v3120_v31, %v15143_v61  ;;  %v15144_v28 = vld [vmem:[#allocation400_spill] sm:$0xff]  ;;  %8306 = vmatmul.mubr.msk.f32.gmra.mrb[56].mxu0 %vm3385_vm11, %v3378_v27  ;;  %v2992_v58 = vsel %vm2930_vm4, %v2927_v46, %v15145_v12  ;;  %v15147_v43 = vld [vmem:[#allocation401_spill] sm:$0xff]  ;;  %v15148_v18 = vld [vmem:[#allocation459_spill] sm:$0xff]  ;;  %v2797_v0 = vpop.permute.xlu1 %2796 }
 0x4bb   :  { %v3249_v3 = vsel %vm3190_vm8, %v3184_v30, %v15144_v28  ;;  %v15146_v54 = vld [vmem:[#allocation228_spill] sm:$0xff]  ;;  %v3250_v60 = vsel %vm3190_vm8, %v3185_v17, %v15147_v43  ;;  %v15149_v9 = vld [vmem:[#allocation229_spill] sm:$0xff]  ;;  %v15150_v55 = vld [vmem:[#allocation286_spill] sm:$0xff] }
 0x4bc   :  { %v3056_v33 = vsel %vm2995_vm5, %v2991_v19, %v15146_v54  ;;  %v3314_v52 = vsel %vm3255_vm9, %v3249_v3, %v15148_v18  ;;  %v3057_v14 = vsel %vm2995_vm5, %v2992_v58, %v15149_v9  ;;  %v15151_v16 = vld [vmem:[#allocation460_spill] sm:$0xff]  ;;  %v8506_v39 = vld [vmem:[#allocation2 + $0x318] sm:$0xff]  ;;  %v15153_v15 = vld [vmem:[#allocation287_spill] sm:$0xff] }
 0x4bd   :  { %v3121_v11 = vsel %vm3060_vm6, %v3056_v33, %v15150_v55  ;;  %v3315_v5 = vsel %vm3255_vm9, %v3250_v60, %v15151_v16  ;;  %v3379_v40 = vsel %vm3320_vm10, %v3314_v52, %v2791_v21  ;;  %v15152_v8 = vld [vmem:[#allocation116_spill] sm:$0xff]  ;;  %v3122_v63 = vsel %vm3060_vm6, %v3057_v14, %v15153_v15  ;;  %v8507_v42 = vld [vmem:[#allocation2 + $0x320] sm:$0xff]  ;;  %v15155_v53 = vld [vmem:[#allocation117_spill] sm:$0xff]  ;;  %v2799_v12 = vpop.permute.xlu0 %2798 }
 0x4be   :  { %v2928_v29 = vsel %vm88_vm0, %v8506_v39, %v15152_v8  ;;  %v15154_v4 = vld [vmem:[#allocation344_spill] sm:$0xff]  ;;  %v3380_v48 = vsel %vm3320_vm10, %v3315_v5, %v2793_v59  ;;  %8308 = vmatprep.mubr.msk.f32.mxu0 %vm3385_vm11, %v3379_v40  ;;  %v2929_v50 = vsel %vm88_vm0, %v8507_v42, %v15155_v53  ;;  %v15156_v35 = vld [vmem:[#allocation174_spill] sm:$0xff]  ;;  %v15157_v20 = vld [vmem:[#allocation345_spill] sm:$0xff]  ;;  %v2801_v33 = vpop.permute.xlu1 %2800 }
 0x4bf   :  { %v3186_v22 = vsel %vm3125_vm7, %v3121_v11, %v15154_v4  ;;  %v2993_v44 = vsel %vm2930_vm4, %v2928_v29, %v15156_v35  ;;  %v3187_v41 = vsel %vm3125_vm7, %v3122_v63, %v15157_v20  ;;  %v15158_v38 = vld [vmem:[#allocation402_spill] sm:$0xff]  ;;  %8309 = vmatmul.mubr.msk.f32.gmra.mrb[58].mxu0 %vm3385_vm11, %v3380_v48  ;;  %v15159_v49 = vld [vmem:[#allocation175_spill] sm:$0xff]  ;;  %v15162_v32 = vld [vmem:[#allocation461_spill] sm:$0xff] }
 0x4c0   :  { %v3251_v1 = vsel %vm3190_vm8, %v3186_v22, %v15158_v38  ;;  %v2994_v36 = vsel %vm2930_vm4, %v2929_v50, %v15159_v49  ;;  %v15160_v23 = vld [vmem:[#allocation230_spill] sm:$0xff]  ;;  %v15161_v47 = vld [vmem:[#allocation403_spill] sm:$0xff]  ;;  %v15164_v51 = vld [vmem:[#allocation288_spill] sm:$0xff] }
 0x4c1   :  { %v3058_v45 = vsel %vm2995_vm5, %v2993_v44, %v15160_v23  ;;  %v3252_v7 = vsel %vm3190_vm8, %v3187_v41, %v15161_v47  ;;  %v3316_v37 = vsel %vm3255_vm9, %v3251_v1, %v15162_v32  ;;  %v15163_v62 = vld [vmem:[#allocation231_spill] sm:$0xff]  ;;  %v15165_v30 = vld [vmem:[#allocation289_spill] sm:$0xff]  ;;  %v15166_v13 = vld [vmem:[#allocation346_spill] sm:$0xff] }
 0x4c2   :  { %v3059_v10 = vsel %vm2995_vm5, %v2994_v36, %v15163_v62  ;;  %v3123_v34 = vsel %vm3060_vm6, %v3058_v45, %v15164_v51  ;;  %v3317_v2 = vsel %vm3255_vm9, %v3252_v7, %v10624_v24  ;;  %v3381_v31 = vsel %vm3320_vm10, %v3316_v37, %v2795_v57  ;;  %v15167_v56 = vld [vmem:[#allocation347_spill] sm:$0xff]  ;;  %v15168_v61 = vld [vmem:[#allocation404_spill] sm:$0xff]  ;;  %v15169_v24 = vld [vmem:[#allocation405_spill] sm:$0xff] }
 0x4c3   :  { %v3124_v27 = vsel %vm3060_vm6, %v3059_v10, %v15165_v30  ;;  %v3188_v26 = vsel %vm3125_vm7, %v3123_v34, %v15166_v13  ;;  %v3382_v46 = vsel %vm3320_vm10, %v3317_v2, %v2797_v0  ;;  %8311 = vmatprep.mubr.msk.f32.mxu0 %vm3385_vm11, %v3381_v31 }
 0x4c4   :  { %v3189_v19 = vsel %vm3125_vm7, %v3124_v27, %v15167_v56  ;;  %v3253_v17 = vsel %vm3190_vm8, %v3188_v26, %v15168_v61  ;;  %8312 = vmatmul.mubr.msk.f32.gmra.mrb[60].mxu0 %vm3385_vm11, %v3382_v46 }
 0x4c5   :  { %v3254_v28 = vsel %vm3190_vm8, %v3189_v19, %v15169_v24  ;;  %v3318_v3 = vsel %vm3255_vm9, %v3253_v17, %v10652_v25 }
 0x4c6   :  { %v3319_v58 = vsel %vm3255_vm9, %v3254_v28, %v10662_v6  ;;  %v3383_v54 = vsel %vm3320_vm10, %v3318_v3, %v2799_v12 }
 0x4c7   :  { %v3384_v43 = vsel %vm3320_vm10, %v3319_v58, %v2801_v33  ;;  %8314 = vmatprep.mubr.msk.f32.mxu0 %vm3385_vm11, %v3383_v54 }
 0x4c8   :  { %8315 = vmatmul.mubr.msk.f32.gmra.mrb[62].mxu0 %vm3385_vm11, %v3384_v43 }
 0x504   :  { %v8223_v60 = vpop.f32.mrb[0].mxu0 }
 0x505   :  { %v3968_v18 = vmax.f32 %v8223_v60, 0.0  ;;  %v3648_v52 = vpop.f32.mrb[1].mxu0 }
 0x506   :  { %v3967_v21 = vmax.f32 %v3648_v52, 0.0 }
 0x507   :  { %4032 = vst.msk [vmem:[#allocation2 + $0x21] sm:$0xff] %vm88_vm0, %v3968_v18 }
 0x508   :  { %4031 = vst.msk [vmem:[#allocation2 + $0x19] sm:$0xff] %vm88_vm0, %v3967_v21  ;;  %v8226_v25 = vpop.f32.mrb[2].mxu0 }
 0x509   :  { %v3970_v9 = vmax.f32 %v8226_v25, 0.0  ;;  %v3658_v6 = vpop.f32.mrb[3].mxu0 }
 0x50a   :  { %v3969_v14 = vmax.f32 %v3658_v6, 0.0 }
 0x50b   :  { %4034 = vst.msk [vmem:[#allocation2 + $0x39] sm:$0xff] %vm88_vm0, %v3970_v9 }
 0x50c   :  { %4033 = vst.msk [vmem:[#allocation2 + $0x31] sm:$0xff] %vm88_vm0, %v3969_v14  ;;  %v8229_v55 = vpop.f32.mrb[4].mxu0 }
 0x50d   :  { %v3972_v11 = vmax.f32 %v8229_v55, 0.0  ;;  %v3668_v16 = vpop.f32.mrb[5].mxu0 }
 0x50e   :  { %v3971_v5 = vmax.f32 %v3668_v16, 0.0  ;;  %v4162_v40 = vld [vmem:[#allocation2 + $0x21] sm:$0xff] }
 0x50f   :  { %4036 = vst.msk [vmem:[#allocation2 + $0x51] sm:$0xff] %vm88_vm0, %v3972_v11  ;;  %4741 = vrot.lane.b32.xlu1 %v4162_v40, %s8569_s29  ;;  %v4161_v59 = vld [vmem:[#allocation2 + $0x19] sm:$0xff] }
 0x510   :  { %4035 = vst.msk [vmem:[#allocation2 + $0x49] sm:$0xff] %vm88_vm0, %v3971_v5  ;;  %4739 = vrot.lane.b32.xlu0 %v4161_v59, %s8569_s29  ;;  %v8232_v39 = vpop.f32.mrb[6].mxu0 }
 0x511   :  { %v3974_v8 = vmax.f32 %v8232_v39, 0.0  ;;  %v3678_v29 = vpop.f32.mrb[7].mxu0 }
 0x512   :  { %v3973_v15 = vmax.f32 %v3678_v29, 0.0  ;;  %v4164_v63 = vld [vmem:[#allocation2 + $0x39] sm:$0xff] }
 0x513   :  { %4038 = vst.msk [vmem:[#allocation2 + $0x69] sm:$0xff] %vm88_vm0, %v3974_v8  ;;  %4745 = vrot.lane.b32.xlu1 %v4164_v63, %s8569_s29  ;;  %v4163_v4 = vld [vmem:[#allocation2 + $0x31] sm:$0xff] }
 0x514   :  { %4037 = vst.msk [vmem:[#allocation2 + $0x61] sm:$0xff] %vm88_vm0, %v3973_v15  ;;  %4743 = vrot.lane.b32.xlu0 %v4163_v4, %s8569_s29  ;;  %v8235_v22 = vpop.f32.mrb[8].mxu0 }
 0x515   :  { %v3976_v48 = vmax.f32 %v8235_v22, 0.0  ;;  %v3688_v42 = vpop.f32.mrb[9].mxu0 }
 0x516   :  { %v3975_v53 = vmax.f32 %v3688_v42, 0.0  ;;  %v4166_v50 = vld [vmem:[#allocation2 + $0x51] sm:$0xff] }
 0x517   :  { %4040 = vst.msk [vmem:[#allocation2 + $0x81] sm:$0xff] %vm88_vm0, %v3976_v48  ;;  %4749 = vrot.lane.b32.xlu1 %v4166_v50, %s8569_s29  ;;  %v4165_v35 = vld [vmem:[#allocation2 + $0x49] sm:$0xff] }
 0x518   :  { %4039 = vst.msk [vmem:[#allocation2 + $0x79] sm:$0xff] %vm88_vm0, %v3975_v53  ;;  %4747 = vrot.lane.b32.xlu0 %v4165_v35, %s8569_s29  ;;  %v8238_v44 = vpop.f32.mrb[10].mxu0 }
 0x519   :  { %v3978_v20 = vmax.f32 %v8238_v44, 0.0  ;;  %v3698_v41 = vpop.f32.mrb[11].mxu0 }
 0x51a   :  { %v3977_v38 = vmax.f32 %v3698_v41, 0.0  ;;  %v4168_v1 = vld [vmem:[#allocation2 + $0x69] sm:$0xff] }
 0x51b   :  { %4042 = vst.msk [vmem:[#allocation2 + $0x99] sm:$0xff] %vm88_vm0, %v3978_v20  ;;  %4753 = vrot.lane.b32.xlu1 %v4168_v1, %s8569_s29  ;;  %v4167_v49 = vld [vmem:[#allocation2 + $0x61] sm:$0xff] }
 0x51c   :  { %4041 = vst.msk [vmem:[#allocation2 + $0x91] sm:$0xff] %vm88_vm0, %v3977_v38  ;;  %4751 = vrot.lane.b32.xlu0 %v4167_v49, %s8569_s29  ;;  %v8241_v36 = vpop.f32.mrb[12].mxu0 }
 0x51d   :  { %v3980_v23 = vmax.f32 %v8241_v36, 0.0  ;;  %v3708_v45 = vpop.f32.mrb[13].mxu0 }
 0x51e   :  { %v3979_v47 = vmax.f32 %v3708_v45, 0.0  ;;  %v4170_v7 = vld [vmem:[#allocation2 + $0x81] sm:$0xff] }
 0x51f   :  { %4044 = vst.msk [vmem:[#allocation2 + $0xb1] sm:$0xff] %vm88_vm0, %v3980_v23  ;;  %4757 = vrot.lane.b32.xlu1 %v4170_v7, %s8569_s29  ;;  %v4169_v32 = vld [vmem:[#allocation2 + $0x79] sm:$0xff] }
 0x520   :  { %4043 = vst.msk [vmem:[#allocation2 + $0xa9] sm:$0xff] %vm88_vm0, %v3979_v47  ;;  %4755 = vrot.lane.b32.xlu0 %v4169_v32, %s8569_s29  ;;  %v8244_v37 = vpop.f32.mrb[14].mxu0  ;;  %v4192_v47 = vld [vmem:[#allocation2 + $0x1b9] sm:$0xff] }
 0x521   :  { %v3982_v57 = vmax.f32 %v8244_v37, 0.0  ;;  %v3718_v62 = vpop.f32.mrb[15].mxu0  ;;  %v4191_v37 = vld [vmem:[#allocation2 + $0x1b1] sm:$0xff] }
 0x522   :  { %v3981_v10 = vmax.f32 %v3718_v62, 0.0  ;;  %v4172_v51 = vld [vmem:[#allocation2 + $0x99] sm:$0xff] }
 0x523   :  { %4046 = vst.msk [vmem:[#allocation2 + $0xc9] sm:$0xff] %vm88_vm0, %v3982_v57  ;;  %4761 = vrot.lane.b32.xlu1 %v4172_v51, %s8569_s29  ;;  %v4171_v34 = vld [vmem:[#allocation2 + $0x91] sm:$0xff] }
 0x524   :  { %4045 = vst.msk [vmem:[#allocation2 + $0xc1] sm:$0xff] %vm88_vm0, %v3981_v10  ;;  %4759 = vrot.lane.b32.xlu0 %v4171_v34, %s8569_s29  ;;  %v8247_v2 = vpop.f32.mrb[16].mxu0 }
 0x525   :  { %v3984_v31 = vmax.f32 %v8247_v2, 0.0  ;;  %v3728_v0 = vpop.f32.mrb[17].mxu0 }
 0x526   :  { %v3983_v30 = vmax.f32 %v3728_v0, 0.0  ;;  %v4174_v27 = vld [vmem:[#allocation2 + $0xb1] sm:$0xff] }
 0x527   :  { %4048 = vst.msk [vmem:[#allocation2 + $0xe1] sm:$0xff] %vm88_vm0, %v3984_v31  ;;  %4765 = vrot.lane.b32.xlu1 %v4174_v27, %s8569_s29  ;;  %v4173_v13 = vld [vmem:[#allocation2 + $0xa9] sm:$0xff] }
 0x528   :  { %4047 = vst.msk [vmem:[#allocation2 + $0xd9] sm:$0xff] %vm88_vm0, %v3983_v30  ;;  %4763 = vrot.lane.b32.xlu0 %v4173_v13, %s8569_s29  ;;  %v8250_v26 = vpop.f32.mrb[18].mxu0 }
 0x529   :  { %v3986_v46 = vmax.f32 %v8250_v26, 0.0  ;;  %v3738_v56 = vpop.f32.mrb[19].mxu0 }
 0x52a   :  { %v3985_v19 = vmax.f32 %v3738_v56, 0.0  ;;  %v4176_v61 = vld [vmem:[#allocation2 + $0xc9] sm:$0xff] }
 0x52b   :  { %4050 = vst.msk [vmem:[#allocation2 + $0xf9] sm:$0xff] %vm88_vm0, %v3986_v46  ;;  %4769 = vrot.lane.b32.xlu1 %v4176_v61, %s8569_s29  ;;  %v4175_v17 = vld [vmem:[#allocation2 + $0xc1] sm:$0xff] }
 0x52c   :  { %4049 = vst.msk [vmem:[#allocation2 + $0xf1] sm:$0xff] %vm88_vm0, %v3985_v19  ;;  %4767 = vrot.lane.b32.xlu0 %v4175_v17, %s8569_s29  ;;  %v8253_v24 = vpop.f32.mrb[20].mxu0 }
 0x52d   :  { %v3988_v28 = vmax.f32 %v8253_v24, 0.0  ;;  %v3748_v3 = vpop.f32.mrb[21].mxu0 }
 0x52e   :  { %v3987_v12 = vmax.f32 %v3748_v3, 0.0  ;;  %v4178_v58 = vld [vmem:[#allocation2 + $0xe1] sm:$0xff] }
 0x52f   :  { %4052 = vst.msk [vmem:[#allocation2 + $0x111] sm:$0xff] %vm88_vm0, %v3988_v28  ;;  %4773 = vrot.lane.b32.xlu1 %v4178_v58, %s8569_s29  ;;  %v4177_v54 = vld [vmem:[#allocation2 + $0xd9] sm:$0xff] }
 0x530   :  { %4051 = vst.msk [vmem:[#allocation2 + $0x109] sm:$0xff] %vm88_vm0, %v3987_v12  ;;  %4771 = vrot.lane.b32.xlu0 %v4177_v54, %s8569_s29 }
 0x532   :  { %v8256_v33 = vpop.f32.mrb[22].mxu0  ;;  %v4180_v52 = vld [vmem:[#allocation2 + $0xf9] sm:$0xff] }
 0x533   :  { %v3990_v43 = vmax.f32 %v8256_v33, 0.0  ;;  %v3758_v60 = vpop.f32.mrb[23].mxu0  ;;  %4777 = vrot.lane.b32.xlu1 %v4180_v52, %s8569_s29  ;;  %v4179_v21 = vld [vmem:[#allocation2 + $0xf1] sm:$0xff] }
 0x534   :  { %v3989_v18 = vmax.f32 %v3758_v60, 0.0  ;;  %4775 = vrot.lane.b32.xlu0 %v4179_v21, %s8569_s29 }
 0x535   :  { %4054 = vst.msk [vmem:[#allocation2 + $0x129] sm:$0xff] %vm88_vm0, %v3990_v43 }
 0x536   :  { %4053 = vst.msk [vmem:[#allocation2 + $0x121] sm:$0xff] %vm88_vm0, %v3989_v18  ;;  %v4182_v55 = vld [vmem:[#allocation2 + $0x111] sm:$0xff] }
 0x537   :  { %v8259_v25 = vpop.f32.mrb[24].mxu0  ;;  %4781 = vrot.lane.b32.xlu1 %v4182_v55, %s8569_s29  ;;  %v4181_v11 = vld [vmem:[#allocation2 + $0x109] sm:$0xff] }
 0x538   :  { %v3992_v9 = vmax.f32 %v8259_v25, 0.0  ;;  %v3768_v6 = vpop.f32.mrb[25].mxu0  ;;  %4779 = vrot.lane.b32.xlu0 %v4181_v11, %s8569_s29 }
 0x539   :  { %v3991_v14 = vmax.f32 %v3768_v6, 0.0 }
 0x53a   :  { %4056 = vst.msk [vmem:[#allocation2 + $0x141] sm:$0xff] %vm88_vm0, %v3992_v9 }
 0x53b   :  { %4055 = vst.msk [vmem:[#allocation2 + $0x139] sm:$0xff] %vm88_vm0, %v3991_v14 }
 0x53c   :  { %v4184_v39 = vld [vmem:[#allocation2 + $0x129] sm:$0xff] }
 0x53d   :  { %v8262_v16 = vpop.f32.mrb[26].mxu0  ;;  %4785 = vrot.lane.b32.xlu1 %v4184_v39, %s8569_s29  ;;  %v4183_v8 = vld [vmem:[#allocation2 + $0x121] sm:$0xff] }
 0x53e   :  { %v3994_v5 = vmax.f32 %v8262_v16, 0.0  ;;  %v3778_v40 = vpop.f32.mrb[27].mxu0  ;;  %4783 = vrot.lane.b32.xlu0 %v4183_v8, %s8569_s29 }
 0x53f   :  { %v3993_v59 = vmax.f32 %v3778_v40, 0.0 }
 0x540   :  { %4058 = vst.msk [vmem:[#allocation2 + $0x159] sm:$0xff] %vm88_vm0, %v3994_v5 }
 0x541   :  { %4057 = vst.msk [vmem:[#allocation2 + $0x151] sm:$0xff] %vm88_vm0, %v3993_v59  ;;  %v4186_v22 = vld [vmem:[#allocation2 + $0x141] sm:$0xff] }
 0x542   :  { %4789 = vrot.lane.b32.xlu1 %v4186_v22, %s8569_s29  ;;  %v4185_v48 = vld [vmem:[#allocation2 + $0x139] sm:$0xff] }
 0x543   :  { %v8265_v29 = vpop.f32.mrb[28].mxu0  ;;  %4787 = vrot.lane.b32.xlu0 %v4185_v48, %s8569_s29 }
 0x544   :  { %v3996_v15 = vmax.f32 %v8265_v29, 0.0  ;;  %v3788_v63 = vpop.f32.mrb[29].mxu0 }
 0x545   :  { %v3995_v4 = vmax.f32 %v3788_v63, 0.0 }
 0x546   :  { %4060 = vst.msk [vmem:[#allocation2 + $0x171] sm:$0xff] %vm88_vm0, %v3996_v15 }
 0x547   :  { %4059 = vst.msk [vmem:[#allocation2 + $0x169] sm:$0xff] %vm88_vm0, %v3995_v4  ;;  %v8268_v42 = vpop.f32.mrb[30].mxu0  ;;  %v4188_v44 = vld [vmem:[#allocation2 + $0x159] sm:$0xff] }
 0x548   :  { %v3998_v53 = vmax.f32 %v8268_v42, 0.0  ;;  %v3798_v50 = vpop.f32.mrb[31].mxu0  ;;  %4793 = vrot.lane.b32.xlu1 %v4188_v44, %s8569_s29  ;;  %v4187_v20 = vld [vmem:[#allocation2 + $0x151] sm:$0xff] }
 0x549   :  { %v3997_v35 = vmax.f32 %v3798_v50, 0.0  ;;  %4791 = vrot.lane.b32.xlu0 %v4187_v20, %s8569_s29 }
 0x54a   :  { %4062 = vst.msk [vmem:[#allocation2 + $0x189] sm:$0xff] %vm88_vm0, %v3998_v53 }
 0x54b   :  { %4061 = vst.msk [vmem:[#allocation2 + $0x181] sm:$0xff] %vm88_vm0, %v3997_v35 }
 0x54d   :  { %v8271_v41 = vpop.f32.mrb[32].mxu0  ;;  %v4190_v36 = vld [vmem:[#allocation2 + $0x171] sm:$0xff] }
 0x54e   :  { %v4000_v38 = vmax.f32 %v8271_v41, 0.0  ;;  %v3808_v1 = vpop.f32.mrb[33].mxu0  ;;  %4797 = vrot.lane.b32.xlu1 %v4190_v36, %s8569_s29  ;;  %v4189_v23 = vld [vmem:[#allocation2 + $0x169] sm:$0xff] }
 0x54f   :  { %v3999_v49 = vmax.f32 %v3808_v1, 0.0  ;;  %4795 = vrot.lane.b32.xlu0 %v4189_v23, %s8569_s29 }
 0x550   :  { %4064 = vst.msk [vmem:[#allocation2 + $0x1d1] sm:$0xff] %vm88_vm0, %v4000_v38 }
 0x551   :  { %4063 = vst.msk [vmem:[#allocation2 + $0x1c9] sm:$0xff] %vm88_vm0, %v3999_v49 }
 0x552   :  { %v8274_v45 = vpop.f32.mrb[34].mxu0  ;;  %4801 = vrot.lane.b32.xlu1 %v4192_v47, %s8569_s29 }
 0x553   :  { %v4002_v7 = vmax.f32 %v8274_v45, 0.0  ;;  %v3818_v32 = vpop.f32.mrb[35].mxu0  ;;  %4799 = vrot.lane.b32.xlu0 %v4191_v37, %s8569_s29 }
 0x554   :  { %v4001_v57 = vmax.f32 %v3818_v32, 0.0 }
 0x555   :  { %4066 = vst.msk [vmem:[#allocation2 + $0x1e9] sm:$0xff] %vm88_vm0, %v4002_v7 }
 0x556   :  { %4065 = vst.msk [vmem:[#allocation2 + $0x1e1] sm:$0xff] %vm88_vm0, %v4001_v57 }
 0x557   :  { %v4194_v2 = vld [vmem:[#allocation2 + $0x1d1] sm:$0xff] }
 0x558   :  { %v8277_v62 = vpop.f32.mrb[36].mxu0  ;;  %4805 = vrot.lane.b32.xlu1 %v4194_v2, %s8569_s29  ;;  %v4193_v31 = vld [vmem:[#allocation2 + $0x1c9] sm:$0xff] }
 0x559   :  { %v4004_v10 = vmax.f32 %v8277_v62, 0.0  ;;  %v3828_v51 = vpop.f32.mrb[37].mxu0  ;;  %4803 = vrot.lane.b32.xlu0 %v4193_v31, %s8569_s29 }
 0x55a   :  { %v4003_v34 = vmax.f32 %v3828_v51, 0.0 }
 0x55b   :  { %4068 = vst.msk [vmem:[#allocation2 + $0x201] sm:$0xff] %vm88_vm0, %v4004_v10 }
 0x55c   :  { %4067 = vst.msk [vmem:[#allocation2 + $0x1f9] sm:$0xff] %vm88_vm0, %v4003_v34  ;;  %v4196_v26 = vld [vmem:[#allocation2 + $0x1e9] sm:$0xff] }
 0x55d   :  { %v8280_v0 = vpop.f32.mrb[38].mxu0  ;;  %4809 = vrot.lane.b32.xlu1 %v4196_v26, %s8569_s29  ;;  %v4195_v46 = vld [vmem:[#allocation2 + $0x1e1] sm:$0xff]  ;;  %v11793_v26 = vpop.permute.xlu0 %4735 }
 0x55e   :  { %v4006_v30 = vmax.f32 %v8280_v0, 0.0  ;;  %v3838_v27 = vpop.f32.mrb[39].mxu0  ;;  %4807 = vrot.lane.b32.xlu0 %v4195_v46, %s8569_s29 }
 0x55f   :  { %v4005_v13 = vmax.f32 %v3838_v27, 0.0  ;;  %v11789_v27 = vpop.permute.xlu1 %4737 }
 0x560   :  { %4070 = vst.msk [vmem:[#allocation2 + $0x219] sm:$0xff] %vm88_vm0, %v4006_v30 }
 0x561   :  { %4069 = vst.msk [vmem:[#allocation2 + $0x211] sm:$0xff] %vm88_vm0, %v4005_v13 }
 0x562   :  { %v8283_v56 = vpop.f32.mrb[40].mxu0  ;;  %v4198_v24 = vld [vmem:[#allocation2 + $0x201] sm:$0xff] }
 0x563   :  { %v4008_v19 = vmax.f32 %v8283_v56, 0.0  ;;  %v3848_v61 = vpop.f32.mrb[41].mxu0  ;;  %4813 = vrot.lane.b32.xlu1 %v4198_v24, %s8569_s29  ;;  %v4197_v28 = vld [vmem:[#allocation2 + $0x1f9] sm:$0xff] }
 0x564   :  { %v4007_v17 = vmax.f32 %v3848_v61, 0.0  ;;  %4811 = vrot.lane.b32.xlu0 %v4197_v28, %s8569_s29 }
 0x565   :  { %4072 = vst.msk [vmem:[#allocation2 + $0x231] sm:$0xff] %vm88_vm0, %v4008_v19 }
 0x566   :  { %4071 = vst.msk [vmem:[#allocation2 + $0x229] sm:$0xff] %vm88_vm0, %v4007_v17 }
 0x567   :  { %v8286_v3 = vpop.f32.mrb[42].mxu0  ;;  %v4200_v33 = vld [vmem:[#allocation2 + $0x219] sm:$0xff] }
 0x568   :  { %v4010_v12 = vmax.f32 %v8286_v3, 0.0  ;;  %v3858_v58 = vpop.f32.mrb[43].mxu0  ;;  %4817 = vrot.lane.b32.xlu1 %v4200_v33, %s8569_s29  ;;  %v4199_v43 = vld [vmem:[#allocation2 + $0x211] sm:$0xff] }
 0x569   :  { %v4009_v54 = vmax.f32 %v3858_v58, 0.0  ;;  %4815 = vrot.lane.b32.xlu0 %v4199_v43, %s8569_s29 }
 0x56a   :  { %4074 = vst.msk [vmem:[#allocation2 + $0x249] sm:$0xff] %vm88_vm0, %v4010_v12 }
 0x56b   :  { %4073 = vst.msk [vmem:[#allocation2 + $0x241] sm:$0xff] %vm88_vm0, %v4009_v54 }
 0x56c   :  { %v4202_v25 = vld [vmem:[#allocation2 + $0x231] sm:$0xff] }
 0x56d   :  { %v8289_v60 = vpop.f32.mrb[44].mxu0  ;;  %4821 = vrot.lane.b32.xlu1 %v4202_v25, %s8569_s29  ;;  %v4201_v9 = vld [vmem:[#allocation2 + $0x229] sm:$0xff] }
 0x56e   :  { %v4012_v18 = vmax.f32 %v8289_v60, 0.0  ;;  %v3868_v52 = vpop.f32.mrb[45].mxu0  ;;  %4819 = vrot.lane.b32.xlu0 %v4201_v9, %s8569_s29  ;;  %v4224_v25 = vld [vmem:[#allocation2 + $0xa] sm:$0xff] }
 0x56f   :  { %v4011_v21 = vmax.f32 %v3868_v52, 0.0 }
 0x570   :  { %4076 = vst.msk [vmem:[#allocation2 + $0x261] sm:$0xff] %vm88_vm0, %v4012_v18 }
 0x571   :  { %4075 = vst.msk [vmem:[#allocation2 + $0x259] sm:$0xff] %vm88_vm0, %v4011_v21  ;;  %v4204_v16 = vld [vmem:[#allocation2 + $0x249] sm:$0xff] }
 0x572   :  { %4825 = vrot.lane.b32.xlu1 %v4204_v16, %s8569_s29  ;;  %v4203_v5 = vld [vmem:[#allocation2 + $0x241] sm:$0xff] }
 0x573   :  { %v8292_v6 = vpop.f32.mrb[46].mxu0  ;;  %4823 = vrot.lane.b32.xlu0 %v4203_v5, %s8569_s29  ;;  %v4226_v16 = vld [vmem:[#allocation2 + $0x22] sm:$0xff]  ;;  %v4225_v5 = vld [vmem:[#allocation2 + $0x1a] sm:$0xff] }
 0x574   :  { %v4014_v14 = vmax.f32 %v8292_v6, 0.0  ;;  %v3878_v55 = vpop.f32.mrb[47].mxu0  ;;  %v4223_v6 = vld [vmem:[#allocation2 + $0x2] sm:$0xff] }
 0x575   :  { %v4013_v11 = vmax.f32 %v3878_v55, 0.0 }
 0x576   :  { %4078 = vst.msk [vmem:[#allocation2 + $0x279] sm:$0xff] %vm88_vm0, %v4014_v14 }
 0x577   :  { %4077 = vst.msk [vmem:[#allocation2 + $0x271] sm:$0xff] %vm88_vm0, %v4013_v11  ;;  %v8295_v40 = vpop.f32.mrb[48].mxu0  ;;  %v4206_v29 = vld [vmem:[#allocation2 + $0x261] sm:$0xff] }
 0x578   :  { %v4016_v59 = vmax.f32 %v8295_v40, 0.0  ;;  %v3888_v39 = vpop.f32.mrb[49].mxu0  ;;  %4829 = vrot.lane.b32.xlu1 %v4206_v29, %s8569_s29  ;;  %v4205_v15 = vld [vmem:[#allocation2 + $0x259] sm:$0xff] }
 0x579   :  { %v4015_v8 = vmax.f32 %v3888_v39, 0.0  ;;  %4827 = vrot.lane.b32.xlu0 %v4205_v15, %s8569_s29  ;;  %v4228_v39 = vld [vmem:[#allocation2 + $0x3a] sm:$0xff] }
 0x57a   :  { %4080 = vst.msk [vmem:[#allocation2 + $0x291] sm:$0xff] %vm88_vm0, %v4016_v59 }
 0x57b   :  { %4079 = vst.msk [vmem:[#allocation2 + $0x289] sm:$0xff] %vm88_vm0, %v4015_v8  ;;  %v4227_v8 = vld [vmem:[#allocation2 + $0x32] sm:$0xff] }
 0x57c   :  { %v8298_v63 = vpop.f32.mrb[50].mxu0 }
 0x57d   :  { %v4018_v4 = vmax.f32 %v8298_v63, 0.0  ;;  %v3898_v22 = vpop.f32.mrb[51].mxu0  ;;  %v4208_v42 = vld [vmem:[#allocation2 + $0x279] sm:$0xff] }
 0x57e   :  { %v4017_v48 = vmax.f32 %v3898_v22, 0.0  ;;  %4833 = vrot.lane.b32.xlu1 %v4208_v42, %s8569_s29  ;;  %v4207_v53 = vld [vmem:[#allocation2 + $0x271] sm:$0xff] }
 0x57f   :  { %4082 = vst.msk [vmem:[#allocation2 + $0x2a9] sm:$0xff] %vm88_vm0, %v4018_v4  ;;  %4831 = vrot.lane.b32.xlu0 %v4207_v53, %s8569_s29  ;;  %v4230_v63 = vld [vmem:[#allocation2 + $0x52] sm:$0xff]  ;;  %v4229_v4 = vld [vmem:[#allocation2 + $0x4a] sm:$0xff]  ;;  %v4231_v53 = vld [vmem:[#allocation2 + $0x62] sm:$0xff] }
 0x580   :  { %4081 = vst.msk [vmem:[#allocation2 + $0x2a1] sm:$0xff] %vm88_vm0, %v4017_v48  ;;  %v4232_v42 = vld [vmem:[#allocation2 + $0x6a] sm:$0xff] }
 0x581   :  { %v4210_v41 = vld [vmem:[#allocation2 + $0x291] sm:$0xff]  ;;  %v11799_v3 = vpop.permute.xlu1 %4741 }
 0x582   :  { %v8301_v50 = vpop.f32.mrb[52].mxu0  ;;  %4837 = vrot.lane.b32.xlu1 %v4210_v41, %s8569_s29  ;;  %v4209_v38 = vld [vmem:[#allocation2 + $0x289] sm:$0xff]  ;;  %v11801_v54 = vpop.permute.xlu0 %4739 }
 0x583   :  { %v4020_v35 = vmax.f32 %v8301_v50, 0.0  ;;  %v3908_v44 = vpop.f32.mrb[53].mxu0  ;;  %4835 = vrot.lane.b32.xlu0 %v4209_v38, %s8569_s29 }
 0x584   :  { %v4019_v20 = vmax.f32 %v3908_v44, 0.0  ;;  %v4234_v44 = vld [vmem:[#allocation2 + $0x82] sm:$0xff] }
 0x585   :  { %4084 = vst.msk [vmem:[#allocation2 + $0x2c1] sm:$0xff] %vm88_vm0, %v4020_v35  ;;  %v11807_v60 = vpop.permute.xlu1 %4745 }
 0x586   :  { %4083 = vst.msk [vmem:[#allocation2 + $0x2b9] sm:$0xff] %vm88_vm0, %v4019_v20  ;;  %v4212_v45 = vld [vmem:[#allocation2 + $0x2a9] sm:$0xff]  ;;  %v11809_v18 = vpop.permute.xlu0 %4743  ;;  %v4233_v20 = vld [vmem:[#allocation2 + $0x7a] sm:$0xff] }
 0x587   :  { %v8304_v1 = vpop.f32.mrb[54].mxu0  ;;  %4841 = vrot.lane.b32.xlu1 %v4212_v45, %s8569_s29  ;;  %v4211_v47 = vld [vmem:[#allocation2 + $0x2a1] sm:$0xff]  ;;  %v4238_v45 = vld [vmem:[#allocation2 + $0xb2] sm:$0xff] }
 0x588   :  { %v4022_v49 = vmax.f32 %v8304_v1, 0.0  ;;  %v3918_v36 = vpop.f32.mrb[55].mxu0  ;;  %4839 = vrot.lane.b32.xlu0 %v4211_v47, %s8569_s29  ;;  %v4236_v1 = vld [vmem:[#allocation2 + $0x9a] sm:$0xff]  ;;  %v4237_v47 = vld [vmem:[#allocation2 + $0xaa] sm:$0xff] }
 0x589   :  { %v4021_v23 = vmax.f32 %v3918_v36, 0.0  ;;  %v11813_v9 = vpop.permute.xlu1 %4749 }
 0x58a   :  { %4086 = vst.msk [vmem:[#allocation2 + $0x2d9] sm:$0xff] %vm88_vm0, %v4022_v49  ;;  %15170 = vst [vmem:[#allocation232_spill] sm:$0xff] %v11813_v9  ;;  %v11815_v14 = vpop.permute.xlu0 %4747  ;;  %v4235_v49 = vld [vmem:[#allocation2 + $0x92] sm:$0xff]  ;;  %v12585_v9 = vld [vmem:[#allocation2 + $0x18a] sm:$0xff] }
 0x58b   :  { %4085 = vst.msk [vmem:[#allocation2 + $0x2d1] sm:$0xff] %vm88_vm0, %v4021_v23  ;;  %15171 = vst [vmem:[#allocation406_spill] sm:$0xff] %v11815_v14  ;;  %v4449_v14 = vld [vmem:[#allocation2 + $0x1e2] sm:$0xff] }
 0x58c   :  { %v4214_v62 = vld [vmem:[#allocation2 + $0x2c1] sm:$0xff]  ;;  %15381 = vst [vmem:[#allocation263_spill] sm:$0xff] %v12585_v9 }
 0x58d   :  { %v8307_v7 = vpop.f32.mrb[56].mxu0  ;;  %4845 = vrot.lane.b32.xlu1 %v4214_v62, %s8569_s29  ;;  %v4213_v10 = vld [vmem:[#allocation2 + $0x2b9] sm:$0xff]  ;;  %v11819_v55 = vpop.permute.xlu1 %4753 }
 0x58e   :  { %v4024_v32 = vmax.f32 %v8307_v7, 0.0  ;;  %v3928_v37 = vpop.f32.mrb[57].mxu0  ;;  %4843 = vrot.lane.b32.xlu0 %v4213_v10, %s8569_s29  ;;  %15172 = vst [vmem:[#allocation233_spill] sm:$0xff] %v11819_v55  ;;  %v11821_v11 = vpop.permute.xlu0 %4751  ;;  %v12537_v55 = vld [vmem:[#allocation2 + $0x12a] sm:$0xff] }
 0x58f   :  { %v4023_v57 = vmax.f32 %v3928_v37, 0.0  ;;  %15173 = vst [vmem:[#allocation290_spill] sm:$0xff] %v11821_v11  ;;  %v4240_v37 = vld [vmem:[#allocation2 + $0xca] sm:$0xff] }
 0x590   :  { %4088 = vst.msk [vmem:[#allocation2 + $0x2f1] sm:$0xff] %vm88_vm0, %v4024_v32 }
 0x591   :  { %4087 = vst.msk [vmem:[#allocation2 + $0x2e9] sm:$0xff] %vm88_vm0, %v4023_v57  ;;  %v4216_v0 = vld [vmem:[#allocation2 + $0x2d9] sm:$0xff]  ;;  %v11825_v40 = vpop.permute.xlu1 %4757  ;;  %v4239_v57 = vld [vmem:[#allocation2 + $0xc2] sm:$0xff] }
 0x592   :  { %v8310_v51 = vpop.f32.mrb[58].mxu0  ;;  %4849 = vrot.lane.b32.xlu1 %v4216_v0, %s8569_s29  ;;  %v4215_v30 = vld [vmem:[#allocation2 + $0x2d1] sm:$0xff]  ;;  %15174 = vst [vmem:[#allocation120_spill] sm:$0xff] %v11825_v40  ;;  %v11827_v59 = vpop.permute.xlu0 %4755  ;;  %v4244_v0 = vld [vmem:[#allocation2 + $0xfa] sm:$0xff] }
 0x593   :  { %v4026_v34 = vmax.f32 %v8310_v51, 0.0  ;;  %v3938_v2 = vpop.f32.mrb[59].mxu0  ;;  %4847 = vrot.lane.b32.xlu0 %v4215_v30, %s8569_s29  ;;  %15175 = vst [vmem:[#allocation291_spill] sm:$0xff] %v11827_v59  ;;  %v4242_v51 = vld [vmem:[#allocation2 + $0xe2] sm:$0xff]  ;;  %v4243_v30 = vld [vmem:[#allocation2 + $0xf2] sm:$0xff]  ;;  %v12489_v40 = vld [vmem:[#allocation2 + $0xca] sm:$0xff] }
 0x594   :  { %v4025_v31 = vmax.f32 %v3938_v2, 0.0 }
 0x595   :  { %4090 = vst.msk [vmem:[#allocation2 + $0x309] sm:$0xff] %vm88_vm0, %v4026_v34  ;;  %v11831_v29 = vpop.permute.xlu1 %4761  ;;  %v4241_v34 = vld [vmem:[#allocation2 + $0xda] sm:$0xff] }
 0x596   :  { %4089 = vst.msk [vmem:[#allocation2 + $0x301] sm:$0xff] %vm88_vm0, %v4025_v31  ;;  %15176 = vst [vmem:[#allocation348_spill] sm:$0xff] %v11831_v29  ;;  %v11833_v15 = vpop.permute.xlu0 %4759 }
 0x597   :  { %v8313_v13 = vpop.f32.mrb[60].mxu0  ;;  %v4218_v61 = vld [vmem:[#allocation2 + $0x2f1] sm:$0xff]  ;;  %15177 = vst [vmem:[#allocation121_spill] sm:$0xff] %v11833_v15 }
 0x598   :  { %v4028_v46 = vmax.f32 %v8313_v13, 0.0  ;;  %v3948_v56 = vpop.f32.mrb[61].mxu0  ;;  %4853 = vrot.lane.b32.xlu1 %v4218_v61, %s8569_s29  ;;  %v4217_v17 = vld [vmem:[#allocation2 + $0x2e9] sm:$0xff] }
 0x599   :  { %v4027_v19 = vmax.f32 %v3948_v56, 0.0  ;;  %4851 = vrot.lane.b32.xlu0 %v4217_v17, %s8569_s29  ;;  %v11837_v22 = vpop.permute.xlu1 %4765  ;;  %v4246_v56 = vld [vmem:[#allocation2 + $0x112] sm:$0xff] }
 0x59a   :  { %4092 = vst.msk [vmem:[#allocation2 + $0x321] sm:$0xff] %vm88_vm0, %v4028_v46  ;;  %15178 = vst [vmem:[#allocation176_spill] sm:$0xff] %v11837_v22  ;;  %v11839_v48 = vpop.permute.xlu0 %4763  ;;  %v12417_v22 = vld [vmem:[#allocation2 + $0x3a] sm:$0xff] }
 0x59b   :  { %4091 = vst.msk [vmem:[#allocation2 + $0x319] sm:$0xff] %vm88_vm0, %v4027_v19  ;;  %v8316_v24 = vpop.f32.mrb[62].mxu0  ;;  %15179 = vst [vmem:[#allocation349_spill] sm:$0xff] %v11839_v48  ;;  %v4245_v19 = vld [vmem:[#allocation2 + $0x10a] sm:$0xff]  ;;  %v12429_v48 = vld [vmem:[#allocation2 + $0x52] sm:$0xff] }
 0x59c   :  { %v4030_v28 = vmax.f32 %v8316_v24, 0.0  ;;  %v3958_v12 = vpop.f32.mrb[63].mxu0  ;;  %v4220_v33 = vld [vmem:[#allocation2 + $0x309] sm:$0xff] }
 0x59d   :  { %v4029_v58 = vmax.f32 %v3958_v12, 0.0  ;;  %4857 = vrot.lane.b32.xlu1 %v4220_v33, %s8569_s29  ;;  %v4219_v43 = vld [vmem:[#allocation2 + $0x301] sm:$0xff]  ;;  %v11843_v50 = vpop.permute.xlu1 %4769  ;;  %v4248_v24 = vld [vmem:[#allocation2 + $0x12a] sm:$0xff] }
 0x59e   :  { %4094 = vst.msk [vmem:[#allocation2 + $0x339] sm:$0xff] %vm88_vm0, %v4030_v28  ;;  %4855 = vrot.lane.b32.xlu0 %v4219_v43, %s8569_s29  ;;  %15180 = vst [vmem:[#allocation407_spill] sm:$0xff] %v11843_v50  ;;  %v11845_v35 = vpop.permute.xlu0 %4767  ;;  %v4247_v28 = vld [vmem:[#allocation2 + $0x122] sm:$0xff]  ;;  %v4249_v43 = vld [vmem:[#allocation2 + $0x13a] sm:$0xff] }
 0x59f   :  { %4093 = vst.msk [vmem:[#allocation2 + $0x331] sm:$0xff] %vm88_vm0, %v4029_v58  ;;  %15181 = vst [vmem:[#allocation177_spill] sm:$0xff] %v11845_v35  ;;  %v4250_v33 = vld [vmem:[#allocation2 + $0x142] sm:$0xff]  ;;  %v4364_v50 = vld [vmem:[#allocation2 + $0xb1] sm:$0xff] }
 0x5a1   :  { %v4222_v52 = vld [vmem:[#allocation2 + $0x321] sm:$0xff]  ;;  %v11849_v41 = vpop.permute.xlu1 %4773 }
 0x5a2   :  { %4861 = vrot.lane.b32.xlu1 %v4222_v52, %s8569_s29  ;;  %v4221_v21 = vld [vmem:[#allocation2 + $0x319] sm:$0xff]  ;;  %15182 = vst [vmem:[#allocation234_spill] sm:$0xff] %v11849_v41  ;;  %v11851_v38 = vpop.permute.xlu0 %4771 }
 0x5a3   :  { %4859 = vrot.lane.b32.xlu0 %v4221_v21, %s8569_s29  ;;  %15183 = vst [vmem:[#allocation408_spill] sm:$0xff] %v11851_v38  ;;  %v4362_v41 = vld [vmem:[#allocation2 + $0x99] sm:$0xff]  ;;  %v4361_v38 = vld [vmem:[#allocation2 + $0x91] sm:$0xff] }
 0x5a5   :  { %v11855_v36 = vpop.permute.xlu1 %4777 }
 0x5a6   :  { %4993 = vrot.lane.b32.xlu1 %v4224_v25, %s8570_s27  ;;  %15184 = vst [vmem:[#allocation63_spill] sm:$0xff] %v11855_v36  ;;  %v11857_v23 = vpop.permute.xlu0 %4775  ;;  %v4252_v25 = vld [vmem:[#allocation2 + $0x15a] sm:$0xff] }
 0x5a7   :  { %4991 = vrot.lane.b32.xlu0 %v4223_v6, %s8570_s27  ;;  %15185 = vst [vmem:[#allocation235_spill] sm:$0xff] %v11857_v23  ;;  %v4251_v6 = vld [vmem:[#allocation2 + $0x152] sm:$0xff]  ;;  %v4360_v36 = vld [vmem:[#allocation2 + $0x81] sm:$0xff] }
 0x5a8   :  { %v4359_v23 = vld [vmem:[#allocation2 + $0x79] sm:$0xff] }
 0x5a9   :  { %v11861_v7 = vpop.permute.xlu1 %4781 }
 0x5aa   :  { %4997 = vrot.lane.b32.xlu1 %v4226_v16, %s8570_s27  ;;  %15186 = vst [vmem:[#allocation292_spill] sm:$0xff] %v11861_v7  ;;  %v11863_v32 = vpop.permute.xlu0 %4779  ;;  %v12231_v7 = vld [vmem:[#allocation2 + $0x69] sm:$0xff] }
 0x5ab   :  { %4995 = vrot.lane.b32.xlu0 %v4225_v5, %s8570_s27  ;;  %15187 = vst [vmem:[#allocation64_spill] sm:$0xff] %v11863_v32  ;;  %v12235_v32 = vld [vmem:[#allocation2 + $0x61] sm:$0xff] }
 0x5ae   :  { %5001 = vrot.lane.b32.xlu1 %v4228_v39, %s8570_s27  ;;  %v4254_v39 = vld [vmem:[#allocation2 + $0x172] sm:$0xff] }
 0x5af   :  { %4999 = vrot.lane.b32.xlu0 %v4227_v8, %s8570_s27  ;;  %v11867_v62 = vpop.permute.xlu1 %4785  ;;  %v4253_v8 = vld [vmem:[#allocation2 + $0x16a] sm:$0xff] }
 0x5b0   :  { %15188 = vst [vmem:[#allocation122_spill] sm:$0xff] %v11867_v62  ;;  %v11869_v10 = vpop.permute.xlu0 %4783  ;;  %v12207_v62 = vld [vmem:[#allocation2 + $0x39] sm:$0xff] }
 0x5b1   :  { %15189 = vst [vmem:[#allocation293_spill] sm:$0xff] %v11869_v10  ;;  %v12219_v10 = vld [vmem:[#allocation2 + $0x51] sm:$0xff] }
 0x5b2   :  { %5005 = vrot.lane.b32.xlu1 %v4230_v63, %s8570_s27  ;;  %v4256_v63 = vld [vmem:[#allocation2 + $0x1ba] sm:$0xff] }
 0x5b3   :  { %5003 = vrot.lane.b32.xlu0 %v4229_v4, %s8570_s27 }
 0x5b4   :  { %v11873_v2 = vpop.permute.xlu1 %4789 }
 0x5b5   :  { %15190 = vst [vmem:[#allocation350_spill] sm:$0xff] %v11873_v2  ;;  %v11875_v31 = vpop.permute.xlu0 %4787  ;;  %v4350_v2 = vld [vmem:[#allocation2 + $0x338] sm:$0xff] }
 0x5b6   :  { %5009 = vrot.lane.b32.xlu1 %v4232_v42, %s8570_s27  ;;  %15191 = vst [vmem:[#allocation123_spill] sm:$0xff] %v11875_v31  ;;  %v4255_v42 = vld [vmem:[#allocation2 + $0x1b2] sm:$0xff] }
 0x5b7   :  { %5007 = vrot.lane.b32.xlu0 %v4231_v53, %s8570_s27 }
 0x5ba   :  { %5013 = vrot.lane.b32.xlu1 %v4234_v44, %s8570_s27  ;;  %v11879_v13 = vpop.permute.xlu1 %4793 }
 0x5bb   :  { %5011 = vrot.lane.b32.xlu0 %v4233_v20, %s8570_s27  ;;  %15192 = vst [vmem:[#allocation178_spill] sm:$0xff] %v11879_v13  ;;  %v11881_v46 = vpop.permute.xlu0 %4791 }
 0x5bc   :  { %15193 = vst [vmem:[#allocation351_spill] sm:$0xff] %v11881_v46  ;;  %v4119_v46 = vld [vmem:[#allocation2 + $0x120] sm:$0xff] }
 0x5be   :  { %5017 = vrot.lane.b32.xlu1 %v4236_v1, %s8570_s27  ;;  %v4258_v1 = vld [vmem:[#allocation2 + $0x1d2] sm:$0xff] }
 0x5bf   :  { %5015 = vrot.lane.b32.xlu0 %v4235_v49, %s8570_s27  ;;  %v4257_v49 = vld [vmem:[#allocation2 + $0x1ca] sm:$0xff] }
 0x5c0   :  { %v11885_v61 = vpop.permute.xlu1 %4797 }
 0x5c1   :  { %15194 = vst [vmem:[#allocation409_spill] sm:$0xff] %v11885_v61  ;;  %v11887_v17 = vpop.permute.xlu0 %4795 }
 0x5c2   :  { %5021 = vrot.lane.b32.xlu1 %v4238_v45, %s8570_s27  ;;  %15195 = vst [vmem:[#allocation179_spill] sm:$0xff] %v11887_v17  ;;  %v4117_v17 = vld [vmem:[#allocation2 + $0x108] sm:$0xff] }
 0x5c3   :  { %5019 = vrot.lane.b32.xlu0 %v4237_v47, %s8570_s27 }
 0x5c4   :  { %v11891_v12 = vpop.permute.xlu1 %4801 }
 0x5c5   :  { %15196 = vst [vmem:[#allocation236_spill] sm:$0xff] %v11891_v12  ;;  %v11893_v58 = vpop.permute.xlu0 %4799 }
 0x5c6   :  { %5025 = vrot.lane.b32.xlu1 %v4240_v37, %s8570_s27  ;;  %15197 = vst [vmem:[#allocation410_spill] sm:$0xff] %v11893_v58  ;;  %v4260_v37 = vld [vmem:[#allocation2 + $0x1ea] sm:$0xff] }
 0x5c7   :  { %5023 = vrot.lane.b32.xlu0 %v4239_v57, %s8570_s27  ;;  %v4259_v57 = vld [vmem:[#allocation2 + $0x1e2] sm:$0xff]  ;;  %v4115_v58 = vld [vmem:[#allocation2 + $0xf0] sm:$0xff] }
 0x5ca   :  { %5029 = vrot.lane.b32.xlu1 %v4242_v51, %s8570_s27  ;;  %v11897_v52 = vpop.permute.xlu1 %4805 }
 0x5cb   :  { %5027 = vrot.lane.b32.xlu0 %v4241_v34, %s8570_s27  ;;  %15198 = vst [vmem:[#allocation65_spill] sm:$0xff] %v11897_v52  ;;  %v11899_v21 = vpop.permute.xlu0 %4803 }
 0x5cc   :  { %15199 = vst [vmem:[#allocation237_spill] sm:$0xff] %v11899_v21  ;;  %v4113_v21 = vld [vmem:[#allocation2 + $0xd8] sm:$0xff] }
 0x5ce   :  { %5033 = vrot.lane.b32.xlu1 %v4244_v0, %s8570_s27  ;;  %v4262_v0 = vld [vmem:[#allocation2 + $0x202] sm:$0xff] }
 0x5cf   :  { %5031 = vrot.lane.b32.xlu0 %v4243_v30, %s8570_s27  ;;  %v11903_v16 = vpop.permute.xlu1 %4809  ;;  %v4261_v30 = vld [vmem:[#allocation2 + $0x1fa] sm:$0xff] }
 0x5d0   :  { %15200 = vst [vmem:[#allocation294_spill] sm:$0xff] %v11903_v16  ;;  %v11905_v5 = vpop.permute.xlu0 %4807 }
 0x5d1   :  { %15201 = vst [vmem:[#allocation66_spill] sm:$0xff] %v11905_v5  ;;  %v4111_v5 = vld [vmem:[#allocation2 + $0xc0] sm:$0xff] }
 0x5d2   :  { %5037 = vrot.lane.b32.xlu1 %v4246_v56, %s8570_s27 }
 0x5d3   :  { %5035 = vrot.lane.b32.xlu0 %v4245_v19, %s8570_s27 }
 0x5d5   :  { %v11909_v4 = vpop.permute.xlu1 %4813 }
 0x5d6   :  { %5041 = vrot.lane.b32.xlu1 %v4248_v24, %s8570_s27  ;;  %15202 = vst [vmem:[#allocation124_spill] sm:$0xff] %v11909_v4  ;;  %v11911_v53 = vpop.permute.xlu0 %4811  ;;  %v4264_v24 = vld [vmem:[#allocation2 + $0x21a] sm:$0xff] }
 0x5d7   :  { %5039 = vrot.lane.b32.xlu0 %v4247_v28, %s8570_s27  ;;  %15203 = vst [vmem:[#allocation295_spill] sm:$0xff] %v11911_v53  ;;  %v4263_v28 = vld [vmem:[#allocation2 + $0x212] sm:$0xff]  ;;  %v4109_v53 = vld [vmem:[#allocation2 + $0xa8] sm:$0xff] }
 0x5da   :  { %5045 = vrot.lane.b32.xlu1 %v4250_v33, %s8570_s27  ;;  %v11915_v44 = vpop.permute.xlu1 %4817 }
 0x5db   :  { %5043 = vrot.lane.b32.xlu0 %v4249_v43, %s8570_s27  ;;  %15204 = vst [vmem:[#allocation352_spill] sm:$0xff] %v11915_v44  ;;  %v11917_v20 = vpop.permute.xlu0 %4815 }
 0x5dc   :  { %15205 = vst [vmem:[#allocation125_spill] sm:$0xff] %v11917_v20  ;;  %v4107_v20 = vld [vmem:[#allocation2 + $0x90] sm:$0xff] }
 0x5de   :  { %5049 = vrot.lane.b32.xlu1 %v4252_v25, %s8570_s27  ;;  %v4266_v25 = vld [vmem:[#allocation2 + $0x232] sm:$0xff] }
 0x5df   :  { %5047 = vrot.lane.b32.xlu0 %v4251_v6, %s8570_s27  ;;  %v11921_v45 = vpop.permute.xlu1 %4821  ;;  %v4265_v6 = vld [vmem:[#allocation2 + $0x22a] sm:$0xff] }
 0x5e0   :  { %15206 = vst [vmem:[#allocation180_spill] sm:$0xff] %v11921_v45  ;;  %v11923_v47 = vpop.permute.xlu0 %4819 }
 0x5e1   :  { %15207 = vst [vmem:[#allocation353_spill] sm:$0xff] %v11923_v47  ;;  %v4105_v47 = vld [vmem:[#allocation2 + $0x78] sm:$0xff] }
 0x5e2   :  { %5053 = vrot.lane.b32.xlu1 %v4254_v39, %s8570_s27 }
 0x5e3   :  { %5051 = vrot.lane.b32.xlu0 %v4253_v8, %s8570_s27 }
 0x5e4   :  { %v11927_v51 = vpop.permute.xlu1 %4825 }
 0x5e5   :  { %15208 = vst [vmem:[#allocation411_spill] sm:$0xff] %v11927_v51  ;;  %v11929_v34 = vpop.permute.xlu0 %4823 }
 0x5e6   :  { %5057 = vrot.lane.b32.xlu1 %v4256_v63, %s8570_s27  ;;  %15209 = vst [vmem:[#allocation181_spill] sm:$0xff] %v11929_v34  ;;  %v4268_v63 = vld [vmem:[#allocation2 + $0x24a] sm:$0xff]  ;;  %v4103_v34 = vld [vmem:[#allocation2 + $0x60] sm:$0xff] }
 0x5e7   :  { %5055 = vrot.lane.b32.xlu0 %v4255_v42, %s8570_s27  ;;  %v4267_v42 = vld [vmem:[#allocation2 + $0x242] sm:$0xff] }
 0x5ea   :  { %5061 = vrot.lane.b32.xlu1 %v4258_v1, %s8570_s27  ;;  %v11933_v56 = vpop.permute.xlu1 %4829 }
 0x5eb   :  { %5059 = vrot.lane.b32.xlu0 %v4257_v49, %s8570_s27  ;;  %15210 = vst [vmem:[#allocation238_spill] sm:$0xff] %v11933_v56  ;;  %v11935_v19 = vpop.permute.xlu0 %4827 }
 0x5ec   :  { %15211 = vst [vmem:[#allocation412_spill] sm:$0xff] %v11935_v19  ;;  %v4101_v19 = vld [vmem:[#allocation2 + $0x48] sm:$0xff] }
 0x5ee   :  { %5065 = vrot.lane.b32.xlu1 %v4260_v37, %s8570_s27  ;;  %v4270_v37 = vld [vmem:[#allocation2 + $0x262] sm:$0xff] }
 0x5ef   :  { %5063 = vrot.lane.b32.xlu0 %v4259_v57, %s8570_s27  ;;  %v4269_v57 = vld [vmem:[#allocation2 + $0x25a] sm:$0xff] }
 0x5f0   :  { %v11939_v33 = vpop.permute.xlu1 %4833 }
 0x5f1   :  { %15212 = vst [vmem:[#allocation67_spill] sm:$0xff] %v11939_v33  ;;  %v11941_v43 = vpop.permute.xlu0 %4831 }
 0x5f2   :  { %5069 = vrot.lane.b32.xlu1 %v4262_v0, %s8570_s27  ;;  %15213 = vst [vmem:[#allocation239_spill] sm:$0xff] %v11941_v43  ;;  %v4099_v43 = vld [vmem:[#allocation2 + $0x30] sm:$0xff] }
 0x5f3   :  { %5067 = vrot.lane.b32.xlu0 %v4261_v30, %s8570_s27 }
 0x5f4   :  { %v11945_v39 = vpop.permute.xlu1 %4837 }
 0x5f5   :  { %15214 = vst [vmem:[#allocation296_spill] sm:$0xff] %v11945_v39  ;;  %v11947_v8 = vpop.permute.xlu0 %4835 }
 0x5f6   :  { %5073 = vrot.lane.b32.xlu1 %v4264_v24, %s8570_s27  ;;  %15215 = vst [vmem:[#allocation68_spill] sm:$0xff] %v11947_v8  ;;  %v4272_v24 = vld [vmem:[#allocation2 + $0x27a] sm:$0xff] }
 0x5f7   :  { %5071 = vrot.lane.b32.xlu0 %v4263_v28, %s8570_s27  ;;  %v4271_v28 = vld [vmem:[#allocation2 + $0x272] sm:$0xff] }
 0x5f8   :  { %v4097_v8 = vld [vmem:[#allocation2 + $0x18] sm:$0xff] }
 0x5f9   :  { %v11951_v1 = vpop.permute.xlu1 %4841 }
 0x5fa   :  { %5077 = vrot.lane.b32.xlu1 %v4266_v25, %s8570_s27  ;;  %15216 = vst [vmem:[#allocation126_spill] sm:$0xff] %v11951_v1  ;;  %v11953_v49 = vpop.permute.xlu0 %4839  ;;  %v4286_v1 = vld [vmem:[#allocation2 + $0x322] sm:$0xff] }
 0x5fb   :  { %5075 = vrot.lane.b32.xlu0 %v4265_v6, %s8570_s27  ;;  %15217 = vst [vmem:[#allocation297_spill] sm:$0xff] %v11953_v49  ;;  %v4098_v49 = vld [vmem:[#allocation2 + $0x20] sm:$0xff] }
 0x5fe   :  { %5081 = vrot.lane.b32.xlu1 %v4268_v63, %s8570_s27  ;;  %v4274_v63 = vld [vmem:[#allocation2 + $0x292] sm:$0xff] }
 0x5ff   :  { %5079 = vrot.lane.b32.xlu0 %v4267_v42, %s8570_s27  ;;  %v11957_v0 = vpop.permute.xlu1 %4845  ;;  %v4273_v42 = vld [vmem:[#allocation2 + $0x28a] sm:$0xff] }
 0x600   :  { %15218 = vst [vmem:[#allocation354_spill] sm:$0xff] %v11957_v0  ;;  %v11959_v30 = vpop.permute.xlu0 %4843  ;;  %v4276_v0 = vld [vmem:[#allocation2 + $0x2aa] sm:$0xff] }
 0x601   :  { %15219 = vst [vmem:[#allocation127_spill] sm:$0xff] %v11959_v30 }
 0x602   :  { %5085 = vrot.lane.b32.xlu1 %v4270_v37, %s8570_s27 }
 0x603   :  { %5083 = vrot.lane.b32.xlu0 %v4269_v57, %s8570_s27 }
 0x604   :  { %v11963_v25 = vpop.permute.xlu1 %4849 }
 0x605   :  { %15220 = vst [vmem:[#allocation182_spill] sm:$0xff] %v11963_v25  ;;  %v11965_v6 = vpop.permute.xlu0 %4847 }
 0x606   :  { %5089 = vrot.lane.b32.xlu1 %v4272_v24, %s8570_s27  ;;  %15221 = vst [vmem:[#allocation355_spill] sm:$0xff] %v11965_v6  ;;  %v4275_v24 = vld [vmem:[#allocation2 + $0x2a2] sm:$0xff] }
 0x607   :  { %5087 = vrot.lane.b32.xlu0 %v4271_v28, %s8570_s27  ;;  %v4278_v6 = vld [vmem:[#allocation2 + $0x2c2] sm:$0xff] }
 0x60a   :  { %5093 = vrot.lane.b32.xlu1 %v4274_v63, %s8570_s27  ;;  %v11969_v37 = vpop.permute.xlu1 %4853  ;;  %v4277_v63 = vld [vmem:[#allocation2 + $0x2ba] sm:$0xff] }
 0x60b   :  { %5091 = vrot.lane.b32.xlu0 %v4273_v42, %s8570_s27  ;;  %15222 = vst [vmem:[#allocation413_spill] sm:$0xff] %v11969_v37  ;;  %v11971_v57 = vpop.permute.xlu0 %4851 }
 0x60c   :  { %15223 = vst [vmem:[#allocation183_spill] sm:$0xff] %v11971_v57  ;;  %v4280_v57 = vld [vmem:[#allocation2 + $0x2da] sm:$0xff] }
 0x60e   :  { %5097 = vrot.lane.b32.xlu1 %v4276_v0, %s8570_s27  ;;  %v4279_v0 = vld [vmem:[#allocation2 + $0x2d2] sm:$0xff] }
 0x60f   :  { %5095 = vrot.lane.b32.xlu0 %v4275_v24, %s8570_s27  ;;  %v11975_v28 = vpop.permute.xlu1 %4857 }
 0x610   :  { %15224 = vst [vmem:[#allocation240_spill] sm:$0xff] %v11975_v28  ;;  %v11977_v25 = vpop.permute.xlu0 %4855 }
 0x611   :  { %15225 = vst [vmem:[#allocation414_spill] sm:$0xff] %v11977_v25  ;;  %v4282_v25 = vld [vmem:[#allocation2 + $0x2f2] sm:$0xff] }
 0x612   :  { %5101 = vrot.lane.b32.xlu1 %v4278_v6, %s8570_s27  ;;  %v4281_v6 = vld [vmem:[#allocation2 + $0x2ea] sm:$0xff] }
 0x613   :  { %5099 = vrot.lane.b32.xlu0 %v4277_v63, %s8570_s27 }
 0x614   :  { %v11981_v42 = vpop.permute.xlu1 %4861 }
 0x615   :  { %15226 = vst [vmem:[#allocation69_spill] sm:$0xff] %v11981_v42  ;;  %v11983_v37 = vpop.permute.xlu0 %4859 }
 0x616   :  { %15227 = vst [vmem:[#allocation241_spill] sm:$0xff] %v11983_v37  ;;  %5105 = vrot.lane.b32.xlu1 %v4280_v57, %s8570_s27  ;;  %v4284_v37 = vld [vmem:[#allocation2 + $0x30a] sm:$0xff]  ;;  %v4283_v57 = vld [vmem:[#allocation2 + $0x302] sm:$0xff] }
 0x617   :  { %5103 = vrot.lane.b32.xlu0 %v4279_v0, %s8570_s27 }
 0x618   :  { %v11987_v24 = vpop.permute.xlu1 %4993 }
 0x619   :  { %v11989_v28 = vpop.permute.xlu0 %4991 }
 0x61a   :  { %5109 = vrot.lane.b32.xlu1 %v4282_v25, %s8570_s27  ;;  %v4285_v25 = vld [vmem:[#allocation2 + $0x31a] sm:$0xff] }
 0x61b   :  { %5107 = vrot.lane.b32.xlu0 %v4281_v6, %s8570_s27 }
 0x61c   :  { %v11993_v63 = vpop.permute.xlu1 %4997 }
 0x61d   :  { %v11995_v42 = vpop.permute.xlu0 %4995 }
 0x61e   :  { %5113 = vrot.lane.b32.xlu1 %v4284_v37, %s8570_s27 }
 0x61f   :  { %5111 = vrot.lane.b32.xlu0 %v4283_v57, %s8570_s27  ;;  %v4100_v57 = vld [vmem:[#allocation2 + $0x38] sm:$0xff] }
 0x620   :  { %v11999_v0 = vpop.permute.xlu1 %5001 }
 0x621   :  { %v12001_v30 = vpop.permute.xlu0 %4999 }
 0x622   :  { %5117 = vrot.lane.b32.xlu1 %v4286_v1, %s8570_s27 }
 0x623   :  { %5115 = vrot.lane.b32.xlu0 %v4285_v25, %s8570_s27  ;;  %v4102_v25 = vld [vmem:[#allocation2 + $0x50] sm:$0xff] }
 0x624   :  { %v12005_v6 = vpop.permute.xlu1 %5005 }
 0x625   :  { %15228 = vst [vmem:[#allocation298_spill] sm:$0xff] %v12005_v6  ;;  %v12007_v39 = vpop.permute.xlu0 %5003  ;;  %v12573_v6 = vld [vmem:[#allocation2 + $0x172] sm:$0xff] }
 0x626   :  { %15229 = vst [vmem:[#allocation70_spill] sm:$0xff] %v12007_v39  ;;  %5249 = vrot.lane.b32.xlu1 %v4098_v49, %s8571_s0  ;;  %v4104_v49 = vld [vmem:[#allocation2 + $0x68] sm:$0xff]  ;;  %15377 = vst [vmem:[#allocation205_spill] sm:$0xff] %v12573_v6 }
 0x627   :  { %5247 = vrot.lane.b32.xlu0 %v4097_v8, %s8571_s0 }
 0x628   :  { %v12011_v37 = vpop.permute.xlu1 %5009 }
 0x629   :  { %15230 = vst [vmem:[#allocation128_spill] sm:$0xff] %v12011_v37  ;;  %v12013_v33 = vpop.permute.xlu0 %5007  ;;  %v12525_v37 = vld [vmem:[#allocation2 + $0x112] sm:$0xff] }
 0x62a   :  { %15231 = vst [vmem:[#allocation299_spill] sm:$0xff] %v12013_v33  ;;  %5253 = vrot.lane.b32.xlu1 %v4100_v57, %s8571_s0  ;;  %v4106_v57 = vld [vmem:[#allocation2 + $0x80] sm:$0xff] }
 0x62b   :  { %5251 = vrot.lane.b32.xlu0 %v4099_v43, %s8571_s0 }
 0x62c   :  { %v12017_v1 = vpop.permute.xlu1 %5013 }
 0x62d   :  { %15232 = vst [vmem:[#allocation356_spill] sm:$0xff] %v12017_v1  ;;  %v12019_v56 = vpop.permute.xlu0 %5011  ;;  %v12477_v1 = vld [vmem:[#allocation2 + $0xb2] sm:$0xff] }
 0x62e   :  { %15233 = vst [vmem:[#allocation129_spill] sm:$0xff] %v12019_v56  ;;  %5257 = vrot.lane.b32.xlu1 %v4102_v25, %s8571_s0  ;;  %v4108_v25 = vld [vmem:[#allocation2 + $0x98] sm:$0xff] }
 0x62f   :  { %5255 = vrot.lane.b32.xlu0 %v4101_v19, %s8571_s0 }
 0x630   :  { %v12023_v8 = vpop.permute.xlu1 %5017 }
 0x631   :  { %15234 = vst [vmem:[#allocation184_spill] sm:$0xff] %v12023_v8  ;;  %v12025_v51 = vpop.permute.xlu0 %5015  ;;  %v12441_v8 = vld [vmem:[#allocation2 + $0x6a] sm:$0xff] }
 0x632   :  { %15235 = vst [vmem:[#allocation357_spill] sm:$0xff] %v12025_v51  ;;  %5261 = vrot.lane.b32.xlu1 %v4104_v49, %s8571_s0  ;;  %v4110_v49 = vld [vmem:[#allocation2 + $0xb0] sm:$0xff]  ;;  %v12445_v51 = vld [vmem:[#allocation2 + $0x62] sm:$0xff] }
 0x633   :  { %5259 = vrot.lane.b32.xlu0 %v4103_v34, %s8571_s0 }
 0x634   :  { %v12029_v43 = vpop.permute.xlu1 %5021 }
 0x635   :  { %15236 = vst [vmem:[#allocation415_spill] sm:$0xff] %v12029_v43  ;;  %v12031_v45 = vpop.permute.xlu0 %5019  ;;  %v4416_v43 = vld [vmem:[#allocation2 + $0x22] sm:$0xff] }
 0x636   :  { %15237 = vst [vmem:[#allocation185_spill] sm:$0xff] %v12031_v45  ;;  %5265 = vrot.lane.b32.xlu1 %v4106_v57, %s8571_s0  ;;  %v4112_v57 = vld [vmem:[#allocation2 + $0xc8] sm:$0xff] }
 0x637   :  { %5263 = vrot.lane.b32.xlu0 %v4105_v47, %s8571_s0 }
 0x638   :  { %v12035_v19 = vpop.permute.xlu1 %5025 }
 0x639   :  { %15238 = vst [vmem:[#allocation242_spill] sm:$0xff] %v12035_v19  ;;  %v12037_v44 = vpop.permute.xlu0 %5023 }
 0x63a   :  { %15239 = vst [vmem:[#allocation416_spill] sm:$0xff] %v12037_v44  ;;  %5269 = vrot.lane.b32.xlu1 %v4108_v25, %s8571_s0  ;;  %v4114_v25 = vld [vmem:[#allocation2 + $0xe0] sm:$0xff] }
 0x63b   :  { %5267 = vrot.lane.b32.xlu0 %v4107_v20, %s8571_s0 }
 0x63c   :  { %v12041_v34 = vpop.permute.xlu1 %5029 }
 0x63d   :  { %15240 = vst [vmem:[#allocation71_spill] sm:$0xff] %v12041_v34  ;;  %v12043_v4 = vpop.permute.xlu0 %5027 }
 0x63e   :  { %15241 = vst [vmem:[#allocation243_spill] sm:$0xff] %v12043_v4  ;;  %5273 = vrot.lane.b32.xlu1 %v4110_v49, %s8571_s0  ;;  %v4116_v49 = vld [vmem:[#allocation2 + $0xf8] sm:$0xff] }
 0x63f   :  { %5271 = vrot.lane.b32.xlu0 %v4109_v53, %s8571_s0 }
 0x640   :  { %v12047_v47 = vpop.permute.xlu1 %5033 }
 0x641   :  { %15242 = vst [vmem:[#allocation300_spill] sm:$0xff] %v12047_v47  ;;  %v12049_v16 = vpop.permute.xlu0 %5031 }
 0x642   :  { %15243 = vst [vmem:[#allocation72_spill] sm:$0xff] %v12049_v16  ;;  %5277 = vrot.lane.b32.xlu1 %v4112_v57, %s8571_s0  ;;  %v4118_v57 = vld [vmem:[#allocation2 + $0x110] sm:$0xff] }
 0x643   :  { %5275 = vrot.lane.b32.xlu0 %v4111_v5, %s8571_s0 }
 0x644   :  { %v12053_v20 = vpop.permute.xlu1 %5037 }
 0x645   :  { %15244 = vst [vmem:[#allocation130_spill] sm:$0xff] %v12053_v20  ;;  %v12055_v52 = vpop.permute.xlu0 %5035 }
 0x646   :  { %15245 = vst [vmem:[#allocation301_spill] sm:$0xff] %v12055_v52  ;;  %5281 = vrot.lane.b32.xlu1 %v4114_v25, %s8571_s0  ;;  %v4120_v25 = vld [vmem:[#allocation2 + $0x128] sm:$0xff] }
 0x647   :  { %5279 = vrot.lane.b32.xlu0 %v4113_v21, %s8571_s0 }
 0x648   :  { %v12059_v53 = vpop.permute.xlu1 %5041 }
 0x649   :  { %15246 = vst [vmem:[#allocation358_spill] sm:$0xff] %v12059_v53  ;;  %v12061_v12 = vpop.permute.xlu0 %5039  ;;  %v4352_v53 = vld [vmem:[#allocation2 + $0x21] sm:$0xff] }
 0x64a   :  { %15247 = vst [vmem:[#allocation131_spill] sm:$0xff] %v12061_v12  ;;  %5285 = vrot.lane.b32.xlu1 %v4116_v49, %s8571_s0  ;;  %v4122_v49 = vld [vmem:[#allocation2 + $0x140] sm:$0xff] }
 0x64b   :  { %5283 = vrot.lane.b32.xlu0 %v4115_v58, %s8571_s0 }
 0x64c   :  { %v12065_v5 = vpop.permute.xlu1 %5045 }
 0x64d   :  { %15248 = vst [vmem:[#allocation186_spill] sm:$0xff] %v12065_v5  ;;  %v12067_v61 = vpop.permute.xlu0 %5043 }
 0x64e   :  { %15249 = vst [vmem:[#allocation359_spill] sm:$0xff] %v12067_v61  ;;  %5289 = vrot.lane.b32.xlu1 %v4118_v57, %s8571_s0  ;;  %v4121_v61 = vld [vmem:[#allocation2 + $0x138] sm:$0xff] }
 0x64f   :  { %5287 = vrot.lane.b32.xlu0 %v4117_v17, %s8571_s0  ;;  %v4124_v57 = vld [vmem:[#allocation2 + $0x158] sm:$0xff] }
 0x650   :  { %v12071_v21 = vpop.permute.xlu1 %5049 }
 0x651   :  { %15250 = vst [vmem:[#allocation417_spill] sm:$0xff] %v12071_v21  ;;  %v12073_v13 = vpop.permute.xlu0 %5047 }
 0x652   :  { %15251 = vst [vmem:[#allocation187_spill] sm:$0xff] %v12073_v13  ;;  %5293 = vrot.lane.b32.xlu1 %v4120_v25, %s8571_s0  ;;  %v4123_v13 = vld [vmem:[#allocation2 + $0x150] sm:$0xff] }
 0x653   :  { %5291 = vrot.lane.b32.xlu0 %v4119_v46, %s8571_s0  ;;  %v4126_v25 = vld [vmem:[#allocation2 + $0x170] sm:$0xff] }
 0x654   :  { %v12077_v58 = vpop.permute.xlu1 %5053 }
 0x655   :  { %15252 = vst [vmem:[#allocation244_spill] sm:$0xff] %v12077_v58  ;;  %v12079_v5 = vpop.permute.xlu0 %5051 }
 0x656   :  { %15253 = vst [vmem:[#allocation418_spill] sm:$0xff] %v12079_v5  ;;  %5297 = vrot.lane.b32.xlu1 %v4122_v49, %s8571_s0  ;;  %v4125_v5 = vld [vmem:[#allocation2 + $0x168] sm:$0xff] }
 0x657   :  { %5295 = vrot.lane.b32.xlu0 %v4121_v61, %s8571_s0 }
 0x658   :  { %v12083_v17 = vpop.permute.xlu1 %5057 }
 0x659   :  { %15254 = vst [vmem:[#allocation73_spill] sm:$0xff] %v12083_v17  ;;  %v12085_v21 = vpop.permute.xlu0 %5055  ;;  %v4318_v17 = vld [vmem:[#allocation2 + $0x188] sm:$0xff] }
 0x65a   :  { %15255 = vst [vmem:[#allocation245_spill] sm:$0xff] %v12085_v21  ;;  %5301 = vrot.lane.b32.xlu1 %v4124_v57, %s8571_s0  ;;  %v4317_v57 = vld [vmem:[#allocation2 + $0x180] sm:$0xff] }
 0x65b   :  { %5299 = vrot.lane.b32.xlu0 %v4123_v13, %s8571_s0 }
 0x65c   :  { %v12089_v46 = vpop.permute.xlu1 %5061 }
 0x65d   :  { %15256 = vst [vmem:[#allocation302_spill] sm:$0xff] %v12089_v46  ;;  %v12091_v58 = vpop.permute.xlu0 %5059  ;;  %v4130_v46 = vld [vmem:[#allocation2 + $0x1d0] sm:$0xff] }
 0x65e   :  { %15257 = vst [vmem:[#allocation74_spill] sm:$0xff] %v12091_v58  ;;  %5305 = vrot.lane.b32.xlu1 %v4126_v25, %s8571_s0  ;;  %v4129_v58 = vld [vmem:[#allocation2 + $0x1c8] sm:$0xff] }
 0x65f   :  { %5303 = vrot.lane.b32.xlu0 %v4125_v5, %s8571_s0  ;;  %v4132_v25 = vld [vmem:[#allocation2 + $0x1e8] sm:$0xff] }
 0x660   :  { %v12095_v61 = vpop.permute.xlu1 %5065 }
 0x661   :  { %15258 = vst [vmem:[#allocation132_spill] sm:$0xff] %v12095_v61  ;;  %v12097_v49 = vpop.permute.xlu0 %5063 }
 0x662   :  { %15259 = vst [vmem:[#allocation303_spill] sm:$0xff] %v12097_v49  ;;  %5309 = vrot.lane.b32.xlu1 %v4318_v17, %s8571_s0  ;;  %v4131_v49 = vld [vmem:[#allocation2 + $0x1e0] sm:$0xff] }
 0x663   :  { %5307 = vrot.lane.b32.xlu0 %v4317_v57, %s8571_s0  ;;  %v4134_v57 = vld [vmem:[#allocation2 + $0x200] sm:$0xff] }
 0x664   :  { %v12101_v13 = vpop.permute.xlu1 %5069 }
 0x665   :  { %15260 = vst [vmem:[#allocation360_spill] sm:$0xff] %v12101_v13  ;;  %v12103_v21 = vpop.permute.xlu0 %5067 }
 0x666   :  { %15261 = vst [vmem:[#allocation133_spill] sm:$0xff] %v12103_v21  ;;  %5313 = vrot.lane.b32.xlu1 %v4130_v46, %s8571_s0  ;;  %v4133_v21 = vld [vmem:[#allocation2 + $0x1f8] sm:$0xff] }
 0x667   :  { %5311 = vrot.lane.b32.xlu0 %v4129_v58, %s8571_s0  ;;  %v4136_v46 = vld [vmem:[#allocation2 + $0x218] sm:$0xff] }
 0x668   :  { %v12107_v5 = vpop.permute.xlu1 %5073 }
 0x669   :  { %15262 = vst [vmem:[#allocation188_spill] sm:$0xff] %v12107_v5  ;;  %v12109_v61 = vpop.permute.xlu0 %5071 }
 0x66a   :  { %15263 = vst [vmem:[#allocation361_spill] sm:$0xff] %v12109_v61  ;;  %5317 = vrot.lane.b32.xlu1 %v4132_v25, %s8571_s0  ;;  %v4135_v61 = vld [vmem:[#allocation2 + $0x210] sm:$0xff] }
 0x66b   :  { %5315 = vrot.lane.b32.xlu0 %v4131_v49, %s8571_s0  ;;  %v4138_v25 = vld [vmem:[#allocation2 + $0x230] sm:$0xff] }
 0x66c   :  { %v12113_v17 = vpop.permute.xlu1 %5077 }
 0x66d   :  { %15264 = vst [vmem:[#allocation419_spill] sm:$0xff] %v12113_v17  ;;  %v12115_v13 = vpop.permute.xlu0 %5075 }
 0x66e   :  { %15265 = vst [vmem:[#allocation189_spill] sm:$0xff] %v12115_v13  ;;  %5321 = vrot.lane.b32.xlu1 %v4134_v57, %s8571_s0  ;;  %v4137_v13 = vld [vmem:[#allocation2 + $0x228] sm:$0xff] }
 0x66f   :  { %5319 = vrot.lane.b32.xlu0 %v4133_v21, %s8571_s0  ;;  %v4140_v57 = vld [vmem:[#allocation2 + $0x248] sm:$0xff] }
 0x670   :  { %v12119_v58 = vpop.permute.xlu1 %5081 }
 0x671   :  { %15266 = vst [vmem:[#allocation246_spill] sm:$0xff] %v12119_v58  ;;  %v12121_v5 = vpop.permute.xlu0 %5079 }
 0x672   :  { %15267 = vst [vmem:[#allocation420_spill] sm:$0xff] %v12121_v5  ;;  %5325 = vrot.lane.b32.xlu1 %v4136_v46, %s8571_s0  ;;  %v4139_v5 = vld [vmem:[#allocation2 + $0x240] sm:$0xff] }
 0x673   :  { %5323 = vrot.lane.b32.xlu0 %v4135_v61, %s8571_s0  ;;  %v4142_v46 = vld [vmem:[#allocation2 + $0x260] sm:$0xff] }
 0x674   :  { %v12125_v49 = vpop.permute.xlu1 %5085 }
 0x675   :  { %15268 = vst [vmem:[#allocation75_spill] sm:$0xff] %v12125_v49  ;;  %v12127_v17 = vpop.permute.xlu0 %5083 }
 0x676   :  { %15269 = vst [vmem:[#allocation247_spill] sm:$0xff] %v12127_v17  ;;  %5329 = vrot.lane.b32.xlu1 %v4138_v25, %s8571_s0  ;;  %v4141_v17 = vld [vmem:[#allocation2 + $0x258] sm:$0xff] }
 0x677   :  { %5327 = vrot.lane.b32.xlu0 %v4137_v13, %s8571_s0  ;;  %v4144_v25 = vld [vmem:[#allocation2 + $0x278] sm:$0xff] }
 0x678   :  { %v12131_v21 = vpop.permute.xlu1 %5089 }
 0x679   :  { %15270 = vst [vmem:[#allocation304_spill] sm:$0xff] %v12131_v21  ;;  %v12133_v58 = vpop.permute.xlu0 %5087 }
 0x67a   :  { %15271 = vst [vmem:[#allocation76_spill] sm:$0xff] %v12133_v58  ;;  %5333 = vrot.lane.b32.xlu1 %v4140_v57, %s8571_s0  ;;  %v4143_v58 = vld [vmem:[#allocation2 + $0x270] sm:$0xff] }
 0x67b   :  { %5331 = vrot.lane.b32.xlu0 %v4139_v5, %s8571_s0  ;;  %v4146_v57 = vld [vmem:[#allocation2 + $0x290] sm:$0xff] }
 0x67c   :  { %v12137_v61 = vpop.permute.xlu1 %5093 }
 0x67d   :  { %15272 = vst [vmem:[#allocation134_spill] sm:$0xff] %v12137_v61  ;;  %v12139_v49 = vpop.permute.xlu0 %5091 }
 0x67e   :  { %15273 = vst [vmem:[#allocation305_spill] sm:$0xff] %v12139_v49  ;;  %5337 = vrot.lane.b32.xlu1 %v4142_v46, %s8571_s0  ;;  %v4145_v49 = vld [vmem:[#allocation2 + $0x288] sm:$0xff] }
 0x67f   :  { %5335 = vrot.lane.b32.xlu0 %v4141_v17, %s8571_s0  ;;  %v4148_v46 = vld [vmem:[#allocation2 + $0x2a8] sm:$0xff] }
 0x680   :  { %v12143_v13 = vpop.permute.xlu1 %5097 }
 0x681   :  { %15274 = vst [vmem:[#allocation362_spill] sm:$0xff] %v12143_v13  ;;  %v12145_v21 = vpop.permute.xlu0 %5095 }
 0x682   :  { %15275 = vst [vmem:[#allocation135_spill] sm:$0xff] %v12145_v21  ;;  %5341 = vrot.lane.b32.xlu1 %v4144_v25, %s8571_s0  ;;  %v4147_v21 = vld [vmem:[#allocation2 + $0x2a0] sm:$0xff] }
 0x683   :  { %5339 = vrot.lane.b32.xlu0 %v4143_v58, %s8571_s0  ;;  %v4150_v25 = vld [vmem:[#allocation2 + $0x2c0] sm:$0xff] }
 0x684   :  { %v12149_v5 = vpop.permute.xlu1 %5101 }
 0x685   :  { %15276 = vst [vmem:[#allocation190_spill] sm:$0xff] %v12149_v5  ;;  %v12151_v61 = vpop.permute.xlu0 %5099 }
 0x686   :  { %15277 = vst [vmem:[#allocation363_spill] sm:$0xff] %v12151_v61  ;;  %5345 = vrot.lane.b32.xlu1 %v4146_v57, %s8571_s0  ;;  %v4149_v61 = vld [vmem:[#allocation2 + $0x2b8] sm:$0xff] }
 0x687   :  { %5343 = vrot.lane.b32.xlu0 %v4145_v49, %s8571_s0  ;;  %v4152_v57 = vld [vmem:[#allocation2 + $0x2d8] sm:$0xff] }
 0x688   :  { %v12155_v17 = vpop.permute.xlu1 %5105 }
 0x689   :  { %15278 = vst [vmem:[#allocation421_spill] sm:$0xff] %v12155_v17  ;;  %v12157_v13 = vpop.permute.xlu0 %5103 }
 0x68a   :  { %15279 = vst [vmem:[#allocation191_spill] sm:$0xff] %v12157_v13  ;;  %5349 = vrot.lane.b32.xlu1 %v4148_v46, %s8571_s0  ;;  %v4151_v13 = vld [vmem:[#allocation2 + $0x2d0] sm:$0xff] }
 0x68b   :  { %5347 = vrot.lane.b32.xlu0 %v4147_v21, %s8571_s0  ;;  %v4154_v46 = vld [vmem:[#allocation2 + $0x2f0] sm:$0xff] }
 0x68c   :  { %v12161_v58 = vpop.permute.xlu1 %5109 }
 0x68d   :  { %15280 = vst [vmem:[#allocation248_spill] sm:$0xff] %v12161_v58  ;;  %v12163_v5 = vpop.permute.xlu0 %5107 }
 0x68e   :  { %15281 = vst [vmem:[#allocation422_spill] sm:$0xff] %v12163_v5  ;;  %5353 = vrot.lane.b32.xlu1 %v4150_v25, %s8571_s0  ;;  %v4153_v5 = vld [vmem:[#allocation2 + $0x2e8] sm:$0xff] }
 0x68f   :  { %5351 = vrot.lane.b32.xlu0 %v4149_v61, %s8571_s0  ;;  %v4156_v25 = vld [vmem:[#allocation2 + $0x308] sm:$0xff] }
 0x690   :  { %v12167_v49 = vpop.permute.xlu1 %5113 }
 0x691   :  { %15282 = vst [vmem:[#allocation77_spill] sm:$0xff] %v12167_v49  ;;  %v12169_v17 = vpop.permute.xlu0 %5111 }
 0x692   :  { %15283 = vst [vmem:[#allocation249_spill] sm:$0xff] %v12169_v17  ;;  %5357 = vrot.lane.b32.xlu1 %v4152_v57, %s8571_s0  ;;  %v4155_v17 = vld [vmem:[#allocation2 + $0x300] sm:$0xff] }
 0x693   :  { %5355 = vrot.lane.b32.xlu0 %v4151_v13, %s8571_s0  ;;  %v4158_v57 = vld [vmem:[#allocation2 + $0x320] sm:$0xff] }
 0x694   :  { %v12173_v21 = vpop.permute.xlu1 %5117 }
 0x695   :  { %15284 = vst [vmem:[#allocation306_spill] sm:$0xff] %v12173_v21  ;;  %v12175_v58 = vpop.permute.xlu0 %5115 }
 0x696   :  { %15285 = vst [vmem:[#allocation78_spill] sm:$0xff] %v12175_v58  ;;  %5361 = vrot.lane.b32.xlu1 %v4154_v46, %s8571_s0  ;;  %v4157_v58 = vld [vmem:[#allocation2 + $0x318] sm:$0xff] }
 0x697   :  { %5359 = vrot.lane.b32.xlu0 %v4153_v5, %s8571_s0 }
 0x698   :  { %v12179_v61 = vpop.permute.xlu1 %5249 }
 0x699   :  { %v12181_v49 = vpop.permute.xlu0 %5247 }
 0x69a   :  { %5365 = vrot.lane.b32.xlu1 %v4156_v25, %s8571_s0  ;;  %v4349_v25 = vld [vmem:[#allocation2 + $0x330] sm:$0xff] }
 0x69b   :  { %5363 = vrot.lane.b32.xlu0 %v4155_v17, %s8571_s0 }
 0x69c   :  { %v12185_v13 = vpop.permute.xlu1 %5253 }
 0x69d   :  { %v12187_v21 = vpop.permute.xlu0 %5251 }
 0x69e   :  { %5369 = vrot.lane.b32.xlu1 %v4158_v57, %s8571_s0  ;;  %v4351_v57 = vld [vmem:[#allocation2 + $0x19] sm:$0xff] }
 0x69f   :  { %5367 = vrot.lane.b32.xlu0 %v4157_v58, %s8571_s0 }
 0x6a0   :  { %v12191_v5 = vpop.permute.xlu1 %5257 }
 0x6a1   :  { %v12193_v46 = vpop.permute.xlu0 %5255 }
 0x6a2   :  { %5373 = vrot.lane.b32.xlu1 %v4350_v2, %s8571_s0  ;;  %v12211_v2 = vld [vmem:[#allocation2 + $0x31] sm:$0xff] }
 0x6a3   :  { %5371 = vrot.lane.b32.xlu0 %v4349_v25, %s8571_s0 }
 0x6a4   :  { %v12197_v17 = vpop.permute.xlu1 %5261 }
 0x6a5   :  { %15286 = vst [vmem:[#allocation136_spill] sm:$0xff] %v12197_v17  ;;  %v12199_v31 = vpop.permute.xlu0 %5259  ;;  %v12561_v17 = vld [vmem:[#allocation2 + $0x15a] sm:$0xff] }
 0x6a6   :  { %15287 = vst [vmem:[#allocation307_spill] sm:$0xff] %v12199_v31  ;;  %5505 = vrot.lane.b32.xlu1 %v4352_v53, %s8572_s10  ;;  %15373 = vst [vmem:[#allocation149_spill] sm:$0xff] %v12561_v17 }
 0x6a7   :  { %5503 = vrot.lane.b32.xlu0 %v4351_v57, %s8572_s10  ;;  %v12223_v57 = vld [vmem:[#allocation2 + $0x49] sm:$0xff] }
 0x6a8   :  { %v12203_v58 = vpop.permute.xlu1 %5265 }
 0x6a9   :  { %15288 = vst [vmem:[#allocation364_spill] sm:$0xff] %v12203_v58  ;;  %v12205_v12 = vpop.permute.xlu0 %5263  ;;  %v12513_v58 = vld [vmem:[#allocation2 + $0xfa] sm:$0xff] }
 0x6aa   :  { %15289 = vst [vmem:[#allocation137_spill] sm:$0xff] %v12205_v12  ;;  %5509 = vrot.lane.b32.xlu1 %v12207_v62, %s8572_s10 }
 0x6ab   :  { %5507 = vrot.lane.b32.xlu0 %v12211_v2, %s8572_s10 }
 0x6ac   :  { %v12215_v25 = vpop.permute.xlu1 %5269 }
 0x6ad   :  { %15290 = vst [vmem:[#allocation192_spill] sm:$0xff] %v12215_v25  ;;  %v12217_v53 = vpop.permute.xlu0 %5267  ;;  %v12465_v25 = vld [vmem:[#allocation2 + $0x9a] sm:$0xff] }
 0x6ae   :  { %15291 = vst [vmem:[#allocation365_spill] sm:$0xff] %v12217_v53  ;;  %5513 = vrot.lane.b32.xlu1 %v12219_v10, %s8572_s10 }
 0x6af   :  { %5511 = vrot.lane.b32.xlu0 %v12223_v57, %s8572_s10 }
 0x6b0   :  { %v12227_v20 = vpop.permute.xlu1 %5273 }
 0x6b1   :  { %15292 = vst [vmem:[#allocation423_spill] sm:$0xff] %v12227_v20  ;;  %v12229_v52 = vpop.permute.xlu0 %5271 }
 0x6b2   :  { %15293 = vst [vmem:[#allocation193_spill] sm:$0xff] %v12229_v52  ;;  %5517 = vrot.lane.b32.xlu1 %v12231_v7, %s8572_s10 }
 0x6b3   :  { %5515 = vrot.lane.b32.xlu0 %v12235_v32, %s8572_s10 }
 0x6b4   :  { %v12239_v47 = vpop.permute.xlu1 %5277 }
 0x6b5   :  { %15294 = vst [vmem:[#allocation250_spill] sm:$0xff] %v12239_v47  ;;  %v12241_v16 = vpop.permute.xlu0 %5275  ;;  %v4414_v47 = vld [vmem:[#allocation2 + $0x339] sm:$0xff] }
 0x6b6   :  { %15295 = vst [vmem:[#allocation424_spill] sm:$0xff] %v12241_v16  ;;  %5521 = vrot.lane.b32.xlu1 %v4360_v36, %s8572_s10  ;;  %v4363_v36 = vld [vmem:[#allocation2 + $0xa9] sm:$0xff] }
 0x6b7   :  { %5519 = vrot.lane.b32.xlu0 %v4359_v23, %s8572_s10 }
 0x6b8   :  { %v12245_v34 = vpop.permute.xlu1 %5281 }
 0x6b9   :  { %15296 = vst [vmem:[#allocation79_spill] sm:$0xff] %v12245_v34  ;;  %v12247_v4 = vpop.permute.xlu0 %5279 }
 0x6ba   :  { %15297 = vst [vmem:[#allocation251_spill] sm:$0xff] %v12247_v4  ;;  %5525 = vrot.lane.b32.xlu1 %v4362_v41, %s8572_s10  ;;  %v4366_v4 = vld [vmem:[#allocation2 + $0xc9] sm:$0xff]  ;;  %v4365_v41 = vld [vmem:[#allocation2 + $0xc1] sm:$0xff] }
 0x6bb   :  { %5523 = vrot.lane.b32.xlu0 %v4361_v38, %s8572_s10 }
 0x6bc   :  { %v12251_v19 = vpop.permute.xlu1 %5285 }
 0x6bd   :  { %15298 = vst [vmem:[#allocation308_spill] sm:$0xff] %v12251_v19  ;;  %v12253_v44 = vpop.permute.xlu0 %5283 }
 0x6be   :  { %15299 = vst [vmem:[#allocation80_spill] sm:$0xff] %v12253_v44  ;;  %5529 = vrot.lane.b32.xlu1 %v4364_v50, %s8572_s10  ;;  %v4368_v44 = vld [vmem:[#allocation2 + $0xe1] sm:$0xff]  ;;  %v4367_v50 = vld [vmem:[#allocation2 + $0xd9] sm:$0xff] }
 0x6bf   :  { %5527 = vrot.lane.b32.xlu0 %v4363_v36, %s8572_s10 }
 0x6c0   :  { %v12257_v23 = vpop.permute.xlu1 %5289 }
 0x6c1   :  { %15300 = vst [vmem:[#allocation138_spill] sm:$0xff] %v12257_v23  ;;  %v12259_v34 = vpop.permute.xlu0 %5287 }
 0x6c2   :  { %15301 = vst [vmem:[#allocation309_spill] sm:$0xff] %v12259_v34  ;;  %5533 = vrot.lane.b32.xlu1 %v4366_v4, %s8572_s10  ;;  %v4370_v34 = vld [vmem:[#allocation2 + $0xf9] sm:$0xff]  ;;  %v4369_v4 = vld [vmem:[#allocation2 + $0xf1] sm:$0xff] }
 0x6c3   :  { %5531 = vrot.lane.b32.xlu0 %v4365_v41, %s8572_s10 }
 0x6c4   :  { %v12263_v38 = vpop.permute.xlu1 %5293 }
 0x6c5   :  { %15302 = vst [vmem:[#allocation366_spill] sm:$0xff] %v12263_v38  ;;  %v12265_v19 = vpop.permute.xlu0 %5291 }
 0x6c6   :  { %15303 = vst [vmem:[#allocation139_spill] sm:$0xff] %v12265_v19  ;;  %5537 = vrot.lane.b32.xlu1 %v4368_v44, %s8572_s10  ;;  %v4372_v19 = vld [vmem:[#allocation2 + $0x111] sm:$0xff]  ;;  %v4371_v44 = vld [vmem:[#allocation2 + $0x109] sm:$0xff] }
 0x6c7   :  { %5535 = vrot.lane.b32.xlu0 %v4367_v50, %s8572_s10 }
 0x6c8   :  { %v12269_v36 = vpop.permute.xlu1 %5297 }
 0x6c9   :  { %15304 = vst [vmem:[#allocation194_spill] sm:$0xff] %v12269_v36  ;;  %v12271_v23 = vpop.permute.xlu0 %5295 }
 0x6ca   :  { %15305 = vst [vmem:[#allocation367_spill] sm:$0xff] %v12271_v23  ;;  %5541 = vrot.lane.b32.xlu1 %v4370_v34, %s8572_s10  ;;  %v4374_v23 = vld [vmem:[#allocation2 + $0x129] sm:$0xff]  ;;  %v4373_v34 = vld [vmem:[#allocation2 + $0x121] sm:$0xff] }
 0x6cb   :  { %5539 = vrot.lane.b32.xlu0 %v4369_v4, %s8572_s10 }
 0x6cc   :  { %v12275_v41 = vpop.permute.xlu1 %5301 }
 0x6cd   :  { %15306 = vst [vmem:[#allocation425_spill] sm:$0xff] %v12275_v41  ;;  %v12277_v38 = vpop.permute.xlu0 %5299 }
 0x6ce   :  { %15307 = vst [vmem:[#allocation195_spill] sm:$0xff] %v12277_v38  ;;  %5545 = vrot.lane.b32.xlu1 %v4372_v19, %s8572_s10  ;;  %v4376_v38 = vld [vmem:[#allocation2 + $0x141] sm:$0xff]  ;;  %v4375_v19 = vld [vmem:[#allocation2 + $0x139] sm:$0xff] }
 0x6cf   :  { %5543 = vrot.lane.b32.xlu0 %v4371_v44, %s8572_s10 }
 0x6d0   :  { %v12281_v50 = vpop.permute.xlu1 %5305 }
 0x6d1   :  { %15308 = vst [vmem:[#allocation252_spill] sm:$0xff] %v12281_v50  ;;  %v12283_v36 = vpop.permute.xlu0 %5303 }
 0x6d2   :  { %15309 = vst [vmem:[#allocation426_spill] sm:$0xff] %v12283_v36  ;;  %5549 = vrot.lane.b32.xlu1 %v4374_v23, %s8572_s10  ;;  %v4378_v36 = vld [vmem:[#allocation2 + $0x159] sm:$0xff]  ;;  %v4377_v23 = vld [vmem:[#allocation2 + $0x151] sm:$0xff] }
 0x6d3   :  { %5547 = vrot.lane.b32.xlu0 %v4373_v34, %s8572_s10 }
 0x6d4   :  { %v12287_v4 = vpop.permute.xlu1 %5309 }
 0x6d5   :  { %15310 = vst [vmem:[#allocation81_spill] sm:$0xff] %v12287_v4  ;;  %v12289_v41 = vpop.permute.xlu0 %5307 }
 0x6d6   :  { %15311 = vst [vmem:[#allocation253_spill] sm:$0xff] %v12289_v41  ;;  %5553 = vrot.lane.b32.xlu1 %v4376_v38, %s8572_s10  ;;  %v4380_v41 = vld [vmem:[#allocation2 + $0x171] sm:$0xff]  ;;  %v4379_v38 = vld [vmem:[#allocation2 + $0x169] sm:$0xff] }
 0x6d7   :  { %5551 = vrot.lane.b32.xlu0 %v4375_v19, %s8572_s10 }
 0x6d8   :  { %v12293_v44 = vpop.permute.xlu1 %5313 }
 0x6d9   :  { %15312 = vst [vmem:[#allocation310_spill] sm:$0xff] %v12293_v44  ;;  %v12295_v50 = vpop.permute.xlu0 %5311 }
 0x6da   :  { %15313 = vst [vmem:[#allocation82_spill] sm:$0xff] %v12295_v50  ;;  %5557 = vrot.lane.b32.xlu1 %v4378_v36, %s8572_s10  ;;  %v4382_v50 = vld [vmem:[#allocation2 + $0x189] sm:$0xff]  ;;  %v4381_v36 = vld [vmem:[#allocation2 + $0x181] sm:$0xff] }
 0x6db   :  { %5555 = vrot.lane.b32.xlu0 %v4377_v23, %s8572_s10 }
 0x6dc   :  { %v12299_v34 = vpop.permute.xlu1 %5317 }
 0x6dd   :  { %15314 = vst [vmem:[#allocation140_spill] sm:$0xff] %v12299_v34  ;;  %v12301_v4 = vpop.permute.xlu0 %5315 }
 0x6de   :  { %15315 = vst [vmem:[#allocation311_spill] sm:$0xff] %v12301_v4  ;;  %5561 = vrot.lane.b32.xlu1 %v4380_v41, %s8572_s10  ;;  %v4384_v4 = vld [vmem:[#allocation2 + $0x1d1] sm:$0xff]  ;;  %v4383_v41 = vld [vmem:[#allocation2 + $0x1c9] sm:$0xff] }
 0x6df   :  { %5559 = vrot.lane.b32.xlu0 %v4379_v38, %s8572_s10 }
 0x6e0   :  { %v12305_v19 = vpop.permute.xlu1 %5321 }
 0x6e1   :  { %15316 = vst [vmem:[#allocation368_spill] sm:$0xff] %v12305_v19  ;;  %v12307_v44 = vpop.permute.xlu0 %5319 }
 0x6e2   :  { %15317 = vst [vmem:[#allocation141_spill] sm:$0xff] %v12307_v44  ;;  %5565 = vrot.lane.b32.xlu1 %v4382_v50, %s8572_s10  ;;  %v4386_v44 = vld [vmem:[#allocation2 + $0x1e9] sm:$0xff]  ;;  %v4385_v50 = vld [vmem:[#allocation2 + $0x1e1] sm:$0xff] }
 0x6e3   :  { %5563 = vrot.lane.b32.xlu0 %v4381_v36, %s8572_s10 }
 0x6e4   :  { %v12311_v23 = vpop.permute.xlu1 %5325 }
 0x6e5   :  { %15318 = vst [vmem:[#allocation196_spill] sm:$0xff] %v12311_v23  ;;  %v12313_v34 = vpop.permute.xlu0 %5323 }
 0x6e6   :  { %15319 = vst [vmem:[#allocation369_spill] sm:$0xff] %v12313_v34  ;;  %5569 = vrot.lane.b32.xlu1 %v4384_v4, %s8572_s10  ;;  %v4388_v34 = vld [vmem:[#allocation2 + $0x201] sm:$0xff]  ;;  %v4387_v4 = vld [vmem:[#allocation2 + $0x1f9] sm:$0xff] }
 0x6e7   :  { %5567 = vrot.lane.b32.xlu0 %v4383_v41, %s8572_s10 }
 0x6e8   :  { %v12317_v38 = vpop.permute.xlu1 %5329 }
 0x6e9   :  { %15320 = vst [vmem:[#allocation427_spill] sm:$0xff] %v12317_v38  ;;  %v12319_v19 = vpop.permute.xlu0 %5327 }
 0x6ea   :  { %15321 = vst [vmem:[#allocation197_spill] sm:$0xff] %v12319_v19  ;;  %5573 = vrot.lane.b32.xlu1 %v4386_v44, %s8572_s10  ;;  %v4390_v19 = vld [vmem:[#allocation2 + $0x219] sm:$0xff]  ;;  %v4389_v44 = vld [vmem:[#allocation2 + $0x211] sm:$0xff] }
 0x6eb   :  { %5571 = vrot.lane.b32.xlu0 %v4385_v50, %s8572_s10 }
 0x6ec   :  { %v12323_v36 = vpop.permute.xlu1 %5333 }
 0x6ed   :  { %15322 = vst [vmem:[#allocation254_spill] sm:$0xff] %v12323_v36  ;;  %v12325_v23 = vpop.permute.xlu0 %5331 }
 0x6ee   :  { %15323 = vst [vmem:[#allocation428_spill] sm:$0xff] %v12325_v23  ;;  %5577 = vrot.lane.b32.xlu1 %v4388_v34, %s8572_s10  ;;  %v4392_v23 = vld [vmem:[#allocation2 + $0x231] sm:$0xff]  ;;  %v4391_v34 = vld [vmem:[#allocation2 + $0x229] sm:$0xff] }
 0x6ef   :  { %5575 = vrot.lane.b32.xlu0 %v4387_v4, %s8572_s10 }
 0x6f0   :  { %v12329_v41 = vpop.permute.xlu1 %5337 }
 0x6f1   :  { %15324 = vst [vmem:[#allocation83_spill] sm:$0xff] %v12329_v41  ;;  %v12331_v38 = vpop.permute.xlu0 %5335 }
 0x6f2   :  { %15325 = vst [vmem:[#allocation255_spill] sm:$0xff] %v12331_v38  ;;  %5581 = vrot.lane.b32.xlu1 %v4390_v19, %s8572_s10  ;;  %v4394_v38 = vld [vmem:[#allocation2 + $0x249] sm:$0xff]  ;;  %v4393_v19 = vld [vmem:[#allocation2 + $0x241] sm:$0xff] }
 0x6f3   :  { %5579 = vrot.lane.b32.xlu0 %v4389_v44, %s8572_s10 }
 0x6f4   :  { %v12335_v50 = vpop.permute.xlu1 %5341 }
 0x6f5   :  { %15326 = vst [vmem:[#allocation312_spill] sm:$0xff] %v12335_v50  ;;  %v12337_v36 = vpop.permute.xlu0 %5339 }
 0x6f6   :  { %15327 = vst [vmem:[#allocation84_spill] sm:$0xff] %v12337_v36  ;;  %5585 = vrot.lane.b32.xlu1 %v4392_v23, %s8572_s10  ;;  %v4396_v36 = vld [vmem:[#allocation2 + $0x261] sm:$0xff]  ;;  %v4395_v23 = vld [vmem:[#allocation2 + $0x259] sm:$0xff] }
 0x6f7   :  { %5583 = vrot.lane.b32.xlu0 %v4391_v34, %s8572_s10 }
 0x6f8   :  { %v12341_v4 = vpop.permute.xlu1 %5345 }
 0x6f9   :  { %15328 = vst [vmem:[#allocation142_spill] sm:$0xff] %v12341_v4  ;;  %v12343_v41 = vpop.permute.xlu0 %5343 }
 0x6fa   :  { %15329 = vst [vmem:[#allocation313_spill] sm:$0xff] %v12343_v41  ;;  %5589 = vrot.lane.b32.xlu1 %v4394_v38, %s8572_s10  ;;  %v4398_v41 = vld [vmem:[#allocation2 + $0x279] sm:$0xff]  ;;  %v4397_v38 = vld [vmem:[#allocation2 + $0x271] sm:$0xff] }
 0x6fb   :  { %5587 = vrot.lane.b32.xlu0 %v4393_v19, %s8572_s10 }
 0x6fc   :  { %v12347_v44 = vpop.permute.xlu1 %5349 }
 0x6fd   :  { %15330 = vst [vmem:[#allocation370_spill] sm:$0xff] %v12347_v44  ;;  %v12349_v50 = vpop.permute.xlu0 %5347 }
 0x6fe   :  { %15331 = vst [vmem:[#allocation143_spill] sm:$0xff] %v12349_v50  ;;  %5593 = vrot.lane.b32.xlu1 %v4396_v36, %s8572_s10  ;;  %v4400_v50 = vld [vmem:[#allocation2 + $0x291] sm:$0xff]  ;;  %v4399_v36 = vld [vmem:[#allocation2 + $0x289] sm:$0xff] }
 0x6ff   :  { %5591 = vrot.lane.b32.xlu0 %v4395_v23, %s8572_s10 }
 0x700   :  { %v12353_v34 = vpop.permute.xlu1 %5353 }
 0x701   :  { %15332 = vst [vmem:[#allocation198_spill] sm:$0xff] %v12353_v34  ;;  %v12355_v4 = vpop.permute.xlu0 %5351 }
 0x702   :  { %15333 = vst [vmem:[#allocation371_spill] sm:$0xff] %v12355_v4  ;;  %5597 = vrot.lane.b32.xlu1 %v4398_v41, %s8572_s10  ;;  %v4402_v4 = vld [vmem:[#allocation2 + $0x2a9] sm:$0xff]  ;;  %v4401_v41 = vld [vmem:[#allocation2 + $0x2a1] sm:$0xff] }
 0x703   :  { %5595 = vrot.lane.b32.xlu0 %v4397_v38, %s8572_s10 }
 0x704   :  { %v12359_v19 = vpop.permute.xlu1 %5357 }
 0x705   :  { %15334 = vst [vmem:[#allocation429_spill] sm:$0xff] %v12359_v19  ;;  %v12361_v44 = vpop.permute.xlu0 %5355 }
 0x706   :  { %15335 = vst [vmem:[#allocation199_spill] sm:$0xff] %v12361_v44  ;;  %5601 = vrot.lane.b32.xlu1 %v4400_v50, %s8572_s10  ;;  %v4404_v44 = vld [vmem:[#allocation2 + $0x2c1] sm:$0xff]  ;;  %v4403_v50 = vld [vmem:[#allocation2 + $0x2b9] sm:$0xff] }
 0x707   :  { %5599 = vrot.lane.b32.xlu0 %v4399_v36, %s8572_s10 }
 0x708   :  { %v12365_v23 = vpop.permute.xlu1 %5361 }
 0x709   :  { %15336 = vst [vmem:[#allocation256_spill] sm:$0xff] %v12365_v23  ;;  %v12367_v34 = vpop.permute.xlu0 %5359 }
 0x70a   :  { %15337 = vst [vmem:[#allocation430_spill] sm:$0xff] %v12367_v34  ;;  %5605 = vrot.lane.b32.xlu1 %v4402_v4, %s8572_s10  ;;  %v4406_v34 = vld [vmem:[#allocation2 + $0x2d9] sm:$0xff]  ;;  %v4405_v4 = vld [vmem:[#allocation2 + $0x2d1] sm:$0xff] }
 0x70b   :  { %5603 = vrot.lane.b32.xlu0 %v4401_v41, %s8572_s10 }
 0x70c   :  { %v12371_v38 = vpop.permute.xlu1 %5365 }
 0x70d   :  { %15338 = vst [vmem:[#allocation85_spill] sm:$0xff] %v12371_v38  ;;  %v12373_v19 = vpop.permute.xlu0 %5363 }
 0x70e   :  { %15339 = vst [vmem:[#allocation257_spill] sm:$0xff] %v12373_v19  ;;  %5609 = vrot.lane.b32.xlu1 %v4404_v44, %s8572_s10  ;;  %v4408_v19 = vld [vmem:[#allocation2 + $0x2f1] sm:$0xff]  ;;  %v4407_v44 = vld [vmem:[#allocation2 + $0x2e9] sm:$0xff] }
 0x70f   :  { %5607 = vrot.lane.b32.xlu0 %v4403_v50, %s8572_s10 }
 0x710   :  { %v12377_v36 = vpop.permute.xlu1 %5369 }
 0x711   :  { %15340 = vst [vmem:[#allocation314_spill] sm:$0xff] %v12377_v36  ;;  %v12379_v23 = vpop.permute.xlu0 %5367 }
 0x712   :  { %15341 = vst [vmem:[#allocation88_spill] sm:$0xff] %v12379_v23  ;;  %5613 = vrot.lane.b32.xlu1 %v4406_v34, %s8572_s10  ;;  %v4410_v23 = vld [vmem:[#allocation2 + $0x309] sm:$0xff]  ;;  %v4409_v34 = vld [vmem:[#allocation2 + $0x301] sm:$0xff] }
 0x713   :  { %5611 = vrot.lane.b32.xlu0 %v4405_v4, %s8572_s10 }
 0x714   :  { %v12383_v41 = vpop.permute.xlu1 %5373 }
 0x715   :  { %15342 = vst [vmem:[#allocation144_spill] sm:$0xff] %v12383_v41  ;;  %v12385_v38 = vpop.permute.xlu0 %5371 }
 0x716   :  { %15343 = vst [vmem:[#allocation315_spill] sm:$0xff] %v12385_v38  ;;  %5617 = vrot.lane.b32.xlu1 %v4408_v19, %s8572_s10  ;;  %v4412_v38 = vld [vmem:[#allocation2 + $0x321] sm:$0xff]  ;;  %v4411_v19 = vld [vmem:[#allocation2 + $0x319] sm:$0xff] }
 0x717   :  { %5615 = vrot.lane.b32.xlu0 %v4407_v44, %s8572_s10 }
 0x718   :  { %v12389_v50 = vpop.permute.xlu1 %5505 }
 0x719   :  { %v12391_v36 = vpop.permute.xlu0 %5503 }
 0x71a   :  { %5621 = vrot.lane.b32.xlu1 %v4410_v23, %s8572_s10  ;;  %v4413_v23 = vld [vmem:[#allocation2 + $0x331] sm:$0xff] }
 0x71b   :  { %5619 = vrot.lane.b32.xlu0 %v4409_v34, %s8572_s10 }
 0x71c   :  { %v12395_v4 = vpop.permute.xlu1 %5509 }
 0x71d   :  { %v12397_v41 = vpop.permute.xlu0 %5507 }
 0x71e   :  { %5625 = vrot.lane.b32.xlu1 %v4412_v38, %s8572_s10  ;;  %v4415_v38 = vld [vmem:[#allocation2 + $0x1a] sm:$0xff] }
 0x71f   :  { %5623 = vrot.lane.b32.xlu0 %v4411_v19, %s8572_s10 }
 0x720   :  { %v12401_v44 = vpop.permute.xlu1 %5513 }
 0x721   :  { %15344 = vst [vmem:[#allocation372_spill] sm:$0xff] %v12401_v44  ;;  %v12403_v35 = vpop.permute.xlu0 %5511 }
 0x722   :  { %5629 = vrot.lane.b32.xlu1 %v4414_v47, %s8572_s10  ;;  %v12421_v47 = vld [vmem:[#allocation2 + $0x32] sm:$0xff] }
 0x723   :  { %5627 = vrot.lane.b32.xlu0 %v4413_v23, %s8572_s10 }
 0x724   :  { %v12407_v34 = vpop.permute.xlu1 %5517 }
 0x725   :  { %15345 = vst [vmem:[#allocation145_spill] sm:$0xff] %v12407_v34  ;;  %v12409_v16 = vpop.permute.xlu0 %5515  ;;  %v12549_v34 = vld [vmem:[#allocation2 + $0x142] sm:$0xff] }
 0x726   :  { %15346 = vst [vmem:[#allocation200_spill] sm:$0xff] %v12409_v16  ;;  %5761 = vrot.lane.b32.xlu1 %v4416_v43, %s8573_s11 }
 0x727   :  { %5759 = vrot.lane.b32.xlu0 %v4415_v38, %s8573_s11  ;;  %v12433_v38 = vld [vmem:[#allocation2 + $0x4a] sm:$0xff] }
 0x728   :  { %v12413_v19 = vpop.permute.xlu1 %5521 }
 0x729   :  { %15347 = vst [vmem:[#allocation373_spill] sm:$0xff] %v12413_v19  ;;  %v12415_v45 = vpop.permute.xlu0 %5519  ;;  %v12501_v19 = vld [vmem:[#allocation2 + $0xe2] sm:$0xff] }
 0x72a   :  { %15348 = vst [vmem:[#allocation431_spill] sm:$0xff] %v12415_v45  ;;  %5765 = vrot.lane.b32.xlu1 %v12417_v22, %s8573_s11 }
 0x72b   :  { %5763 = vrot.lane.b32.xlu0 %v12421_v47, %s8573_s11 }
 0x72c   :  { %v12425_v23 = vpop.permute.xlu1 %5525 }
 0x72d   :  { %15349 = vst [vmem:[#allocation201_spill] sm:$0xff] %v12425_v23  ;;  %v12427_v43 = vpop.permute.xlu0 %5523  ;;  %v12453_v23 = vld [vmem:[#allocation2 + $0x82] sm:$0xff] }
 0x72e   :  { %15350 = vst [vmem:[#allocation258_spill] sm:$0xff] %v12427_v43  ;;  %5769 = vrot.lane.b32.xlu1 %v12429_v48, %s8573_s11 }
 0x72f   :  { %5767 = vrot.lane.b32.xlu0 %v12433_v38, %s8573_s11 }
 0x730   :  { %v12437_v20 = vpop.permute.xlu1 %5529 }
 0x731   :  { %15351 = vst [vmem:[#allocation432_spill] sm:$0xff] %v12437_v20  ;;  %v12439_v52 = vpop.permute.xlu0 %5527  ;;  %v12457_v20 = vld [vmem:[#allocation2 + $0x7a] sm:$0xff] }
 0x732   :  { %15352 = vst [vmem:[#allocation89_spill] sm:$0xff] %v12439_v52  ;;  %5773 = vrot.lane.b32.xlu1 %v12441_v8, %s8573_s11 }
 0x733   :  { %5771 = vrot.lane.b32.xlu0 %v12445_v51, %s8573_s11 }
 0x734   :  { %v12449_v29 = vpop.permute.xlu1 %5533 }
 0x735   :  { %15353 = vst [vmem:[#allocation259_spill] sm:$0xff] %v12449_v29  ;;  %v12451_v15 = vpop.permute.xlu0 %5531  ;;  %v12469_v29 = vld [vmem:[#allocation2 + $0x92] sm:$0xff] }
 0x736   :  { %15354 = vst [vmem:[#allocation316_spill] sm:$0xff] %v12451_v15  ;;  %5777 = vrot.lane.b32.xlu1 %v12453_v23, %s8573_s11 }
 0x737   :  { %5775 = vrot.lane.b32.xlu0 %v12457_v20, %s8573_s11 }
 0x738   :  { %v12461_v52 = vpop.permute.xlu1 %5537 }
 0x739   :  { %15355 = vst [vmem:[#allocation90_spill] sm:$0xff] %v12461_v52  ;;  %v12463_v43 = vpop.permute.xlu0 %5535  ;;  %v12481_v52 = vld [vmem:[#allocation2 + $0xaa] sm:$0xff] }
 0x73a   :  { %15356 = vst [vmem:[#allocation146_spill] sm:$0xff] %v12463_v43  ;;  %5781 = vrot.lane.b32.xlu1 %v12465_v25, %s8573_s11 }
 0x73b   :  { %5779 = vrot.lane.b32.xlu0 %v12469_v29, %s8573_s11 }
 0x73c   :  { %v12473_v15 = vpop.permute.xlu1 %5541 }
 0x73d   :  { %15357 = vst [vmem:[#allocation317_spill] sm:$0xff] %v12473_v15  ;;  %v12475_v53 = vpop.permute.xlu0 %5539  ;;  %v12493_v15 = vld [vmem:[#allocation2 + $0xc2] sm:$0xff] }
 0x73e   :  { %15358 = vst [vmem:[#allocation374_spill] sm:$0xff] %v12475_v53  ;;  %5785 = vrot.lane.b32.xlu1 %v12477_v1, %s8573_s11 }
 0x73f   :  { %5783 = vrot.lane.b32.xlu0 %v12481_v52, %s8573_s11 }
 0x740   :  { %v12485_v43 = vpop.permute.xlu1 %5545 }
 0x741   :  { %15359 = vst [vmem:[#allocation147_spill] sm:$0xff] %v12485_v43  ;;  %v12487_v56 = vpop.permute.xlu0 %5543  ;;  %v12505_v43 = vld [vmem:[#allocation2 + $0xda] sm:$0xff] }
 0x742   :  { %15360 = vst [vmem:[#allocation202_spill] sm:$0xff] %v12487_v56  ;;  %5789 = vrot.lane.b32.xlu1 %v12489_v40, %s8573_s11 }
 0x743   :  { %5787 = vrot.lane.b32.xlu0 %v12493_v15, %s8573_s11 }
 0x744   :  { %v12497_v53 = vpop.permute.xlu1 %5549 }
 0x745   :  { %15361 = vst [vmem:[#allocation375_spill] sm:$0xff] %v12497_v53  ;;  %v12499_v59 = vpop.permute.xlu0 %5547  ;;  %v12517_v53 = vld [vmem:[#allocation2 + $0xf2] sm:$0xff] }
 0x746   :  { %15362 = vst [vmem:[#allocation433_spill] sm:$0xff] %v12499_v59  ;;  %5793 = vrot.lane.b32.xlu1 %v12501_v19, %s8573_s11 }
 0x747   :  { %5791 = vrot.lane.b32.xlu0 %v12505_v43, %s8573_s11 }
 0x748   :  { %v12509_v56 = vpop.permute.xlu1 %5553 }
 0x749   :  { %15363 = vst [vmem:[#allocation203_spill] sm:$0xff] %v12509_v56  ;;  %v12511_v45 = vpop.permute.xlu0 %5551  ;;  %v12529_v56 = vld [vmem:[#allocation2 + $0x10a] sm:$0xff] }
 0x74a   :  { %15364 = vst [vmem:[#allocation260_spill] sm:$0xff] %v12511_v45  ;;  %5797 = vrot.lane.b32.xlu1 %v12513_v58, %s8573_s11 }
 0x74b   :  { %5795 = vrot.lane.b32.xlu0 %v12517_v53, %s8573_s11 }
 0x74c   :  { %v12521_v59 = vpop.permute.xlu1 %5557 }
 0x74d   :  { %15365 = vst [vmem:[#allocation434_spill] sm:$0xff] %v12521_v59  ;;  %v12523_v12 = vpop.permute.xlu0 %5555  ;;  %v12541_v59 = vld [vmem:[#allocation2 + $0x122] sm:$0xff] }
 0x74e   :  { %15366 = vst [vmem:[#allocation91_spill] sm:$0xff] %v12523_v12  ;;  %5801 = vrot.lane.b32.xlu1 %v12525_v37, %s8573_s11 }
 0x74f   :  { %5799 = vrot.lane.b32.xlu0 %v12529_v56, %s8573_s11 }
 0x750   :  { %v12533_v45 = vpop.permute.xlu1 %5561 }
 0x751   :  { %15367 = vst [vmem:[#allocation261_spill] sm:$0xff] %v12533_v45  ;;  %v12535_v33 = vpop.permute.xlu0 %5559  ;;  %v12553_v45 = vld [vmem:[#allocation2 + $0x13a] sm:$0xff] }
 0x752   :  { %15368 = vst [vmem:[#allocation318_spill] sm:$0xff] %v12535_v33  ;;  %5805 = vrot.lane.b32.xlu1 %v12537_v55, %s8573_s11 }
 0x753   :  { %5803 = vrot.lane.b32.xlu0 %v12541_v59, %s8573_s11 }
 0x754   :  { %v12545_v12 = vpop.permute.xlu1 %5565 }
 0x755   :  { %15369 = vst [vmem:[#allocation92_spill] sm:$0xff] %v12545_v12  ;;  %v12547_v11 = vpop.permute.xlu0 %5563  ;;  %v12565_v12 = vld [vmem:[#allocation2 + $0x152] sm:$0xff] }
 0x756   :  { %15370 = vst [vmem:[#allocation148_spill] sm:$0xff] %v12547_v11  ;;  %5809 = vrot.lane.b32.xlu1 %v12549_v34, %s8573_s11  ;;  %15374 = vst [vmem:[#allocation204_spill] sm:$0xff] %v12565_v12 }
 0x757   :  { %5807 = vrot.lane.b32.xlu0 %v12553_v45, %s8573_s11 }
 0x758   :  { %v12557_v33 = vpop.permute.xlu1 %5569 }
 0x759   :  { %15371 = vst [vmem:[#allocation319_spill] sm:$0xff] %v12557_v33  ;;  %v12559_v16 = vpop.permute.xlu0 %5567  ;;  %v12577_v33 = vld [vmem:[#allocation2 + $0x16a] sm:$0xff] }
 0x75a   :  { %15372 = vst [vmem:[#allocation376_spill] sm:$0xff] %v12559_v16  ;;  %5813 = vrot.lane.b32.xlu1 %v12561_v17, %s8573_s11  ;;  %15378 = vst [vmem:[#allocation262_spill] sm:$0xff] %v12577_v33  ;;  %v4469_v17 = vld [vmem:[#allocation2 + $0x2d2] sm:$0xff] }
 0x75b   :  { %5811 = vrot.lane.b32.xlu0 %v12565_v12, %s8573_s11  ;;  %v4448_v12 = vld [vmem:[#allocation2 + $0x1d2] sm:$0xff] }
 0x75c   :  { %v12569_v11 = vpop.permute.xlu1 %5573 }
 0x75d   :  { %15375 = vst [vmem:[#allocation377_spill] sm:$0xff] %v12569_v11  ;;  %v12571_v31 = vpop.permute.xlu0 %5571  ;;  %v12589_v11 = vld [vmem:[#allocation2 + $0x182] sm:$0xff] }
 0x75e   :  { %15376 = vst [vmem:[#allocation435_spill] sm:$0xff] %v12571_v31  ;;  %5817 = vrot.lane.b32.xlu1 %v12573_v6, %s8573_s11  ;;  %15382 = vst [vmem:[#allocation320_spill] sm:$0xff] %v12589_v11 }
 0x75f   :  { %5815 = vrot.lane.b32.xlu0 %v12577_v33, %s8573_s11 }
 0x760   :  { %v12581_v16 = vpop.permute.xlu1 %5577 }
 0x761   :  { %15379 = vst [vmem:[#allocation436_spill] sm:$0xff] %v12581_v16  ;;  %v12583_v39 = vpop.permute.xlu0 %5575  ;;  %v4447_v16 = vld [vmem:[#allocation2 + $0x1ca] sm:$0xff] }
 0x762   :  { %15380 = vst [vmem:[#allocation93_spill] sm:$0xff] %v12583_v39  ;;  %5821 = vrot.lane.b32.xlu1 %v12585_v9, %s8573_s11  ;;  %v4450_v9 = vld [vmem:[#allocation2 + $0x1ea] sm:$0xff] }
 0x763   :  { %5819 = vrot.lane.b32.xlu0 %v12589_v11, %s8573_s11 }
 0x764   :  { %v12593_v31 = vpop.permute.xlu1 %5581 }
 0x765   :  { %15383 = vst [vmem:[#allocation94_spill] sm:$0xff] %v12593_v31  ;;  %v12595_v6 = vpop.permute.xlu0 %5579 }
 0x766   :  { %15384 = vst [vmem:[#allocation150_spill] sm:$0xff] %v12595_v6  ;;  %5825 = vrot.lane.b32.xlu1 %v4448_v12, %s8573_s11  ;;  %v4452_v6 = vld [vmem:[#allocation2 + $0x202] sm:$0xff]  ;;  %v4451_v12 = vld [vmem:[#allocation2 + $0x1fa] sm:$0xff] }
 0x767   :  { %5823 = vrot.lane.b32.xlu0 %v4447_v16, %s8573_s11 }
 0x768   :  { %v12599_v39 = vpop.permute.xlu1 %5585 }
 0x769   :  { %15385 = vst [vmem:[#allocation321_spill] sm:$0xff] %v12599_v39  ;;  %v12601_v33 = vpop.permute.xlu0 %5583 }
 0x76a   :  { %15386 = vst [vmem:[#allocation378_spill] sm:$0xff] %v12601_v33  ;;  %5829 = vrot.lane.b32.xlu1 %v4450_v9, %s8573_s11  ;;  %v4454_v33 = vld [vmem:[#allocation2 + $0x21a] sm:$0xff]  ;;  %v4453_v9 = vld [vmem:[#allocation2 + $0x212] sm:$0xff] }
 0x76b   :  { %5827 = vrot.lane.b32.xlu0 %v4449_v14, %s8573_s11 }
 0x76c   :  { %v12605_v11 = vpop.permute.xlu1 %5589 }
 0x76d   :  { %15387 = vst [vmem:[#allocation151_spill] sm:$0xff] %v12605_v11  ;;  %v12607_v31 = vpop.permute.xlu0 %5587 }
 0x76e   :  { %15388 = vst [vmem:[#allocation206_spill] sm:$0xff] %v12607_v31  ;;  %5833 = vrot.lane.b32.xlu1 %v4452_v6, %s8573_s11  ;;  %v4456_v31 = vld [vmem:[#allocation2 + $0x232] sm:$0xff]  ;;  %v4455_v6 = vld [vmem:[#allocation2 + $0x22a] sm:$0xff] }
 0x76f   :  { %5831 = vrot.lane.b32.xlu0 %v4451_v12, %s8573_s11 }
 0x770   :  { %v12611_v16 = vpop.permute.xlu1 %5593 }
 0x771   :  { %15389 = vst [vmem:[#allocation379_spill] sm:$0xff] %v12611_v16  ;;  %v12613_v39 = vpop.permute.xlu0 %5591 }
 0x772   :  { %15390 = vst [vmem:[#allocation437_spill] sm:$0xff] %v12613_v39  ;;  %5837 = vrot.lane.b32.xlu1 %v4454_v33, %s8573_s11  ;;  %v4458_v39 = vld [vmem:[#allocation2 + $0x24a] sm:$0xff]  ;;  %v4457_v33 = vld [vmem:[#allocation2 + $0x242] sm:$0xff] }
 0x773   :  { %5835 = vrot.lane.b32.xlu0 %v4453_v9, %s8573_s11 }
 0x774   :  { %v12617_v14 = vpop.permute.xlu1 %5597 }
 0x775   :  { %15391 = vst [vmem:[#allocation207_spill] sm:$0xff] %v12617_v14  ;;  %v12619_v11 = vpop.permute.xlu0 %5595 }
 0x776   :  { %15392 = vst [vmem:[#allocation264_spill] sm:$0xff] %v12619_v11  ;;  %5841 = vrot.lane.b32.xlu1 %v4456_v31, %s8573_s11  ;;  %v4460_v11 = vld [vmem:[#allocation2 + $0x262] sm:$0xff]  ;;  %v4459_v31 = vld [vmem:[#allocation2 + $0x25a] sm:$0xff] }
 0x777   :  { %5839 = vrot.lane.b32.xlu0 %v4455_v6, %s8573_s11 }
 0x778   :  { %v12623_v12 = vpop.permute.xlu1 %5601 }
 0x779   :  { %15393 = vst [vmem:[#allocation438_spill] sm:$0xff] %v12623_v12  ;;  %v12625_v16 = vpop.permute.xlu0 %5599 }
 0x77a   :  { %15394 = vst [vmem:[#allocation95_spill] sm:$0xff] %v12625_v16  ;;  %5845 = vrot.lane.b32.xlu1 %v4458_v39, %s8573_s11  ;;  %v4462_v16 = vld [vmem:[#allocation2 + $0x27a] sm:$0xff]  ;;  %v4461_v39 = vld [vmem:[#allocation2 + $0x272] sm:$0xff] }
 0x77b   :  { %5843 = vrot.lane.b32.xlu0 %v4457_v33, %s8573_s11 }
 0x77c   :  { %v12629_v9 = vpop.permute.xlu1 %5605 }
 0x77d   :  { %15395 = vst [vmem:[#allocation265_spill] sm:$0xff] %v12629_v9  ;;  %v12631_v14 = vpop.permute.xlu0 %5603 }
 0x77e   :  { %15396 = vst [vmem:[#allocation322_spill] sm:$0xff] %v12631_v14  ;;  %5849 = vrot.lane.b32.xlu1 %v4460_v11, %s8573_s11  ;;  %v4464_v14 = vld [vmem:[#allocation2 + $0x292] sm:$0xff]  ;;  %v4463_v11 = vld [vmem:[#allocation2 + $0x28a] sm:$0xff] }
 0x77f   :  { %5847 = vrot.lane.b32.xlu0 %v4459_v31, %s8573_s11 }
 0x780   :  { %v12635_v6 = vpop.permute.xlu1 %5609 }
 0x781   :  { %15397 = vst [vmem:[#allocation96_spill] sm:$0xff] %v12635_v6  ;;  %v12637_v12 = vpop.permute.xlu0 %5607 }
 0x782   :  { %15398 = vst [vmem:[#allocation152_spill] sm:$0xff] %v12637_v12  ;;  %5853 = vrot.lane.b32.xlu1 %v4462_v16, %s8573_s11  ;;  %v4466_v12 = vld [vmem:[#allocation2 + $0x2aa] sm:$0xff]  ;;  %v4465_v16 = vld [vmem:[#allocation2 + $0x2a2] sm:$0xff] }
 0x783   :  { %5851 = vrot.lane.b32.xlu0 %v4461_v39, %s8573_s11  ;;  %v83_v39 = vld [vmem:[%s14244_s2] sm:$0xff] }
 0x784   :  { %v12641_v33 = vpop.permute.xlu1 %5613 }
 0x785   :  { %15399 = vst [vmem:[#allocation323_spill] sm:$0xff] %v12641_v33  ;;  %v12643_v9 = vpop.permute.xlu0 %5611 }
 0x786   :  { %15400 = vst [vmem:[#allocation380_spill] sm:$0xff] %v12643_v9  ;;  %5857 = vrot.lane.b32.xlu1 %v4464_v14, %s8573_s11  ;;  %v84_v14 = vld [vmem:[%s14244_s2 + $0x8] sm:$0xff]  ;;  %v86_v9 = vld [vmem:[%s14244_s2 + $0x18] sm:$0xff] }
 0x787   :  { %5855 = vrot.lane.b32.xlu0 %v4463_v11, %s8573_s11  ;;  %v8431_v11 = vpack.c.bf16 %v84_v14, %v83_v39 }
 0x788   :  { %v12647_v31 = vpop.permute.xlu1 %5617 }
 0x789   :  { %15401 = vst [vmem:[#allocation153_spill] sm:$0xff] %v12647_v31  ;;  %v12649_v6 = vpop.permute.xlu0 %5615  ;;  %8432 = vmatprep.subr.bf16.mxu1 %v8431_v11 }
 0x78a   :  { %15402 = vst [vmem:[#allocation208_spill] sm:$0xff] %v12649_v6  ;;  %5861 = vrot.lane.b32.xlu1 %v4466_v12, %s8573_s11  ;;  %v4468_v6 = vld [vmem:[#allocation2 + $0x2c2] sm:$0xff]  ;;  %v4467_v12 = vld [vmem:[#allocation2 + $0x2ba] sm:$0xff]  ;;  %8434 = vmatpush3.bf16.msra.mxu1 %v8431_v11 }
 0x78b   :  { %5859 = vrot.lane.b32.xlu0 %v4465_v16, %s8573_s11  ;;  %v85_v16 = vld [vmem:[%s14244_s2 + $0x10] sm:$0xff]  ;;  %v4480_v11 = vld [vmem:[#allocation2 + $0x38] sm:$0xff] }
 0x78c   :  { %v12659_v33 = vpop.permute.xlu1 %5621 }
 0x78d   :  { %15403 = vst [vmem:[#allocation381_spill] sm:$0xff] %v12659_v33  ;;  %v12661_v31 = vpop.permute.xlu0 %5619  ;;  %v8435_v33 = vpack.c.bf16 %v86_v9, %v85_v16 }
 0x78e   :  { %15404 = vst [vmem:[#allocation439_spill] sm:$0xff] %v12661_v31  ;;  %5865 = vrot.lane.b32.xlu1 %v4468_v6, %s8573_s11  ;;  %v4470_v31 = vld [vmem:[#allocation2 + $0x2da] sm:$0xff] }
 0x78f   :  { %5863 = vrot.lane.b32.xlu0 %v4467_v12, %s8573_s11  ;;  %8436 = vmatprep.subr.bf16.mxu1 %v8435_v33  ;;  %v87_v6 = vld [vmem:[%s14244_s2 + $0x20] sm:$0xf]  ;;  %v4479_v12 = vld [vmem:[#allocation2 + $0x30] sm:$0xff] }
 0x790   :  { %v12671_v39 = vpop.permute.xlu1 %5625  ;;  %8438 = vmatpush3.bf16.msra.mxu1 %v8435_v33 }
 0x791   :  { %15405 = vst [vmem:[#allocation209_spill] sm:$0xff] %v12671_v39  ;;  %v12673_v14 = vpop.permute.xlu0 %5623  ;;  %8325 = vmatprep.subr.msk.mxu1 %vm3578_vm3, %v87_v6 }
 0x792   :  { %15406 = vst [vmem:[#allocation266_spill] sm:$0xff] %v12673_v14  ;;  %5869 = vrot.lane.b32.xlu1 %v4470_v31, %s8573_s11  ;;  %v4486_v14 = vld [vmem:[#allocation2 + $0x80] sm:$0xff] }
 0x793   :  { %5867 = vrot.lane.b32.xlu0 %v4469_v17, %s8573_s11 }
 0x794   :  { %v12680_v44 = vpop.permute.xlu1 %5629  ;;  %8326 = vmatpush3.msk.msra.mxu1 %vm3578_vm3, %v87_v6 }
 0x795   :  { %15407 = vst [vmem:[#allocation440_spill] sm:$0xff] %v12680_v44  ;;  %v12683_v9 = vpop.permute.xlu0 %5627 }
 0x796   :  { %15408 = vst [vmem:[#allocation97_spill] sm:$0xff] %v12683_v9  ;;  %6017 = vrot.lane.b32.xlu1 %v4480_v11, %s8574_s12  ;;  %v4484_v9 = vld [vmem:[#allocation2 + $0x68] sm:$0xff] }
 0x797   :  { %6015 = vrot.lane.b32.xlu0 %v4479_v12, %s8574_s12  ;;  %v4482_v12 = vld [vmem:[#allocation2 + $0x50] sm:$0xff] }
 0x798   :  { %v12688_v16 = vpop.permute.xlu1 %5761 }
 0x799   :  { %v12690_v31 = vpop.permute.xlu0 %5759 }
 0x79a   :  { %6273 = vrot.lane.b32.xlu1 %v12207_v62, %s8575_s13  ;;  %v4481_v62 = vld [vmem:[#allocation2 + $0x48] sm:$0xff] }
 0x79b   :  { %6271 = vrot.lane.b32.xlu0 %v12211_v2, %s8575_s13 }
 0x79c   :  { %v12696_v17 = vpop.permute.xlu1 %5765 }
 0x79d   :  { %v12698_v33 = vpop.permute.xlu0 %5763 }
 0x79e   :  { %6529 = vrot.lane.b32.xlu1 %v12417_v22, %s8576_s1 }
 0x79f   :  { %6527 = vrot.lane.b32.xlu0 %v12421_v47, %s8576_s1 }
 0x7a0   :  { %v12704_v6 = vpop.permute.xlu1 %5769 }
 0x7a1   :  { %v12706_v11 = vpop.permute.xlu0 %5767 }
 0x7a2   :  { %6021 = vrot.lane.b32.xlu1 %v4482_v12, %s8574_s12 }
 0x7a3   :  { %6019 = vrot.lane.b32.xlu0 %v4481_v62, %s8574_s12 }
 0x7a4   :  { %v12710_v2 = vpop.permute.xlu1 %5773 }
 0x7a5   :  { %v12712_v44 = vpop.permute.xlu0 %5771 }
 0x7a6   :  { %6277 = vrot.lane.b32.xlu1 %v12219_v10, %s8575_s13  ;;  %v4483_v10 = vld [vmem:[#allocation2 + $0x60] sm:$0xff] }
 0x7a7   :  { %6275 = vrot.lane.b32.xlu0 %v12223_v57, %s8575_s13 }
 0x7a8   :  { %v12718_v22 = vpop.permute.xlu1 %5777 }
 0x7a9   :  { %v12720_v47 = vpop.permute.xlu0 %5775 }
 0x7aa   :  { %6533 = vrot.lane.b32.xlu1 %v12429_v48, %s8576_s1 }
 0x7ab   :  { %6531 = vrot.lane.b32.xlu0 %v12433_v38, %s8576_s1 }
 0x7ac   :  { %v12726_v12 = vpop.permute.xlu1 %5781 }
 0x7ad   :  { %v12728_v62 = vpop.permute.xlu0 %5779 }
 0x7ae   :  { %6025 = vrot.lane.b32.xlu1 %v4484_v9, %s8574_s12 }
 0x7af   :  { %6023 = vrot.lane.b32.xlu0 %v4483_v10, %s8574_s12 }
 0x7b0   :  { %v12732_v57 = vpop.permute.xlu1 %5785 }
 0x7b1   :  { %v12734_v39 = vpop.permute.xlu0 %5783 }
 0x7b2   :  { %6281 = vrot.lane.b32.xlu1 %v12231_v7, %s8575_s13  ;;  %v4485_v7 = vld [vmem:[#allocation2 + $0x78] sm:$0xff] }
 0x7b3   :  { %6279 = vrot.lane.b32.xlu0 %v12235_v32, %s8575_s13 }
 0x7b4   :  { %v12740_v48 = vpop.permute.xlu1 %5789 }
 0x7b5   :  { %15409 = vst [vmem:[#allocation267_spill] sm:$0xff] %v12740_v48  ;;  %v12742_v38 = vpop.permute.xlu0 %5787 }
 0x7b6   :  { %15410 = vst [vmem:[#allocation324_spill] sm:$0xff] %v12742_v38  ;;  %6537 = vrot.lane.b32.xlu1 %v12441_v8, %s8576_s1  ;;  %v4550_v38 = vld [vmem:[#allocation2 + $0x81] sm:$0xff]  ;;  %v4549_v8 = vld [vmem:[#allocation2 + $0x79] sm:$0xff] }
 0x7b7   :  { %6535 = vrot.lane.b32.xlu0 %v12445_v51, %s8576_s1 }
 0x7b8   :  { %v12748_v9 = vpop.permute.xlu1 %5793 }
 0x7b9   :  { %15411 = vst [vmem:[#allocation98_spill] sm:$0xff] %v12748_v9  ;;  %v12750_v10 = vpop.permute.xlu0 %5791 }
 0x7ba   :  { %6029 = vrot.lane.b32.xlu1 %v4486_v14, %s8574_s12 }
 0x7bb   :  { %6027 = vrot.lane.b32.xlu0 %v4485_v7, %s8574_s12 }
 0x7bc   :  { %v12754_v32 = vpop.permute.xlu1 %5797 }
 0x7bd   :  { %15412 = vst [vmem:[#allocation154_spill] sm:$0xff] %v12754_v32  ;;  %v12756_v48 = vpop.permute.xlu0 %5795  ;;  %v4488_v32 = vld [vmem:[#allocation2 + $0x98] sm:$0xff] }
 0x7be   :  { %6285 = vrot.lane.b32.xlu1 %v4550_v38, %s8575_s13  ;;  %v4487_v38 = vld [vmem:[#allocation2 + $0x90] sm:$0xff] }
 0x7bf   :  { %6283 = vrot.lane.b32.xlu0 %v4549_v8, %s8575_s13 }
 0x7c0   :  { %v12760_v51 = vpop.permute.xlu1 %5801 }
 0x7c1   :  { %15413 = vst [vmem:[#allocation325_spill] sm:$0xff] %v12760_v51  ;;  %v12762_v9 = vpop.permute.xlu0 %5799 }
 0x7c2   :  { %15414 = vst [vmem:[#allocation382_spill] sm:$0xff] %v12762_v9  ;;  %6541 = vrot.lane.b32.xlu1 %v12453_v23, %s8576_s1  ;;  %v4552_v9 = vld [vmem:[#allocation2 + $0x99] sm:$0xff]  ;;  %v4551_v23 = vld [vmem:[#allocation2 + $0x91] sm:$0xff] }
 0x7c3   :  { %6539 = vrot.lane.b32.xlu0 %v12457_v20, %s8576_s1 }
 0x7c4   :  { %v12768_v14 = vpop.permute.xlu1 %5805 }
 0x7c5   :  { %15415 = vst [vmem:[#allocation155_spill] sm:$0xff] %v12768_v14  ;;  %v12770_v7 = vpop.permute.xlu0 %5803 }
 0x7c6   :  { %6033 = vrot.lane.b32.xlu1 %v4488_v32, %s8574_s12 }
 0x7c7   :  { %6031 = vrot.lane.b32.xlu0 %v4487_v38, %s8574_s12 }
 0x7c8   :  { %v12774_v8 = vpop.permute.xlu1 %5809 }
 0x7c9   :  { %15416 = vst [vmem:[#allocation210_spill] sm:$0xff] %v12774_v8  ;;  %v12776_v51 = vpop.permute.xlu0 %5807  ;;  %v4490_v8 = vld [vmem:[#allocation2 + $0xb0] sm:$0xff] }
 0x7ca   :  { %6289 = vrot.lane.b32.xlu1 %v4552_v9, %s8575_s13  ;;  %v4489_v9 = vld [vmem:[#allocation2 + $0xa8] sm:$0xff] }
 0x7cb   :  { %6287 = vrot.lane.b32.xlu0 %v4551_v23, %s8575_s13 }
 0x7cc   :  { %v12780_v20 = vpop.permute.xlu1 %5813 }
 0x7cd   :  { %15417 = vst [vmem:[#allocation383_spill] sm:$0xff] %v12780_v20  ;;  %v12782_v14 = vpop.permute.xlu0 %5811 }
 0x7ce   :  { %15418 = vst [vmem:[#allocation441_spill] sm:$0xff] %v12782_v14  ;;  %6545 = vrot.lane.b32.xlu1 %v12465_v25, %s8576_s1  ;;  %v4554_v14 = vld [vmem:[#allocation2 + $0xb1] sm:$0xff]  ;;  %v4553_v25 = vld [vmem:[#allocation2 + $0xa9] sm:$0xff] }
 0x7cf   :  { %6543 = vrot.lane.b32.xlu0 %v12469_v29, %s8576_s1 }
 0x7d0   :  { %v12788_v32 = vpop.permute.xlu1 %5817 }
 0x7d1   :  { %15419 = vst [vmem:[#allocation211_spill] sm:$0xff] %v12788_v32  ;;  %v12790_v38 = vpop.permute.xlu0 %5815 }
 0x7d2   :  { %6037 = vrot.lane.b32.xlu1 %v4490_v8, %s8574_s12 }
 0x7d3   :  { %6035 = vrot.lane.b32.xlu0 %v4489_v9, %s8574_s12 }
 0x7d4   :  { %v12794_v23 = vpop.permute.xlu1 %5821 }
 0x7d5   :  { %15420 = vst [vmem:[#allocation268_spill] sm:$0xff] %v12794_v23  ;;  %v12796_v20 = vpop.permute.xlu0 %5819  ;;  %v4492_v23 = vld [vmem:[#allocation2 + $0xc8] sm:$0xff] }
 0x7d6   :  { %6293 = vrot.lane.b32.xlu1 %v4554_v14, %s8575_s13  ;;  %v4491_v14 = vld [vmem:[#allocation2 + $0xc0] sm:$0xff] }
 0x7d7   :  { %6291 = vrot.lane.b32.xlu0 %v4553_v25, %s8575_s13 }
 0x7d8   :  { %v12800_v29 = vpop.permute.xlu1 %5825 }
 0x7d9   :  { %15421 = vst [vmem:[#allocation442_spill] sm:$0xff] %v12800_v29  ;;  %v12802_v32 = vpop.permute.xlu0 %5823 }
 0x7da   :  { %15422 = vst [vmem:[#allocation99_spill] sm:$0xff] %v12802_v32  ;;  %6549 = vrot.lane.b32.xlu1 %v12477_v1, %s8576_s1  ;;  %v4556_v32 = vld [vmem:[#allocation2 + $0xc9] sm:$0xff]  ;;  %v4555_v1 = vld [vmem:[#allocation2 + $0xc1] sm:$0xff] }
 0x7db   :  { %6547 = vrot.lane.b32.xlu0 %v12481_v52, %s8576_s1 }
 0x7dc   :  { %v12808_v8 = vpop.permute.xlu1 %5829 }
 0x7dd   :  { %15423 = vst [vmem:[#allocation269_spill] sm:$0xff] %v12808_v8  ;;  %v12810_v9 = vpop.permute.xlu0 %5827 }
 0x7de   :  { %6041 = vrot.lane.b32.xlu1 %v4492_v23, %s8574_s12 }
 0x7df   :  { %6039 = vrot.lane.b32.xlu0 %v4491_v14, %s8574_s12 }
 0x7e0   :  { %v12814_v25 = vpop.permute.xlu1 %5833 }
 0x7e1   :  { %15424 = vst [vmem:[#allocation326_spill] sm:$0xff] %v12814_v25  ;;  %v12816_v29 = vpop.permute.xlu0 %5831  ;;  %v4494_v25 = vld [vmem:[#allocation2 + $0xe0] sm:$0xff] }
 0x7e2   :  { %6297 = vrot.lane.b32.xlu1 %v4556_v32, %s8575_s13  ;;  %v4493_v32 = vld [vmem:[#allocation2 + $0xd8] sm:$0xff] }
 0x7e3   :  { %6295 = vrot.lane.b32.xlu0 %v4555_v1, %s8575_s13 }
 0x7e4   :  { %v12820_v52 = vpop.permute.xlu1 %5837 }
 0x7e5   :  { %15425 = vst [vmem:[#allocation100_spill] sm:$0xff] %v12820_v52  ;;  %v12822_v8 = vpop.permute.xlu0 %5835 }
 0x7e6   :  { %15426 = vst [vmem:[#allocation156_spill] sm:$0xff] %v12822_v8  ;;  %6553 = vrot.lane.b32.xlu1 %v12489_v40, %s8576_s1  ;;  %v4558_v8 = vld [vmem:[#allocation2 + $0xe1] sm:$0xff]  ;;  %v4557_v40 = vld [vmem:[#allocation2 + $0xd9] sm:$0xff] }
 0x7e7   :  { %6551 = vrot.lane.b32.xlu0 %v12493_v15, %s8576_s1 }
 0x7e8   :  { %v12828_v23 = vpop.permute.xlu1 %5841 }
 0x7e9   :  { %15427 = vst [vmem:[#allocation327_spill] sm:$0xff] %v12828_v23  ;;  %v12830_v14 = vpop.permute.xlu0 %5839 }
 0x7ea   :  { %6045 = vrot.lane.b32.xlu1 %v4494_v25, %s8574_s12 }
 0x7eb   :  { %6043 = vrot.lane.b32.xlu0 %v4493_v32, %s8574_s12 }
 0x7ec   :  { %v12834_v1 = vpop.permute.xlu1 %5845 }
 0x7ed   :  { %15428 = vst [vmem:[#allocation384_spill] sm:$0xff] %v12834_v1  ;;  %v12836_v52 = vpop.permute.xlu0 %5843  ;;  %v4496_v1 = vld [vmem:[#allocation2 + $0xf8] sm:$0xff] }
 0x7ee   :  { %6301 = vrot.lane.b32.xlu1 %v4558_v8, %s8575_s13  ;;  %v4495_v8 = vld [vmem:[#allocation2 + $0xf0] sm:$0xff] }
 0x7ef   :  { %6299 = vrot.lane.b32.xlu0 %v4557_v40, %s8575_s13 }
 0x7f0   :  { %v12840_v15 = vpop.permute.xlu1 %5849 }
 0x7f1   :  { %15429 = vst [vmem:[#allocation157_spill] sm:$0xff] %v12840_v15  ;;  %v12842_v23 = vpop.permute.xlu0 %5847 }
 0x7f2   :  { %15430 = vst [vmem:[#allocation212_spill] sm:$0xff] %v12842_v23  ;;  %6557 = vrot.lane.b32.xlu1 %v12501_v19, %s8576_s1  ;;  %v4560_v23 = vld [vmem:[#allocation2 + $0xf9] sm:$0xff]  ;;  %v4559_v19 = vld [vmem:[#allocation2 + $0xf1] sm:$0xff] }
 0x7f3   :  { %6555 = vrot.lane.b32.xlu0 %v12505_v43, %s8576_s1 }
 0x7f4   :  { %v12848_v25 = vpop.permute.xlu1 %5853 }
 0x7f5   :  { %15431 = vst [vmem:[#allocation385_spill] sm:$0xff] %v12848_v25  ;;  %v12850_v32 = vpop.permute.xlu0 %5851 }
 0x7f6   :  { %15432 = vst [vmem:[#allocation443_spill] sm:$0xff] %v12850_v32  ;;  %6049 = vrot.lane.b32.xlu1 %v4496_v1, %s8574_s12  ;;  %v4500_v32 = vld [vmem:[#allocation2 + $0x128] sm:$0xff] }
 0x7f7   :  { %6047 = vrot.lane.b32.xlu0 %v4495_v8, %s8574_s12 }
 0x7f8   :  { %v12854_v40 = vpop.permute.xlu1 %5857 }
 0x7f9   :  { %15433 = vst [vmem:[#allocation213_spill] sm:$0xff] %v12854_v40  ;;  %v12856_v15 = vpop.permute.xlu0 %5855  ;;  %v4498_v40 = vld [vmem:[#allocation2 + $0x110] sm:$0xff] }
 0x7fa   :  { %15434 = vst [vmem:[#allocation270_spill] sm:$0xff] %v12856_v15  ;;  %6305 = vrot.lane.b32.xlu1 %v4560_v23, %s8575_s13  ;;  %v4497_v23 = vld [vmem:[#allocation2 + $0x108] sm:$0xff] }
 0x7fb   :  { %6303 = vrot.lane.b32.xlu0 %v4559_v19, %s8575_s13  ;;  %v4096_v15 = vld [vmem:[#allocation2 + $0x8] sm:$0xff] }
 0x7fc   :  { %v12860_v43 = vpop.permute.xlu1 %5861 }
 0x7fd   :  { %15435 = vst [vmem:[#allocation444_spill] sm:$0xff] %v12860_v43  ;;  %v12862_v25 = vpop.permute.xlu0 %5859 }
 0x7fe   :  { %15436 = vst [vmem:[#allocation101_spill] sm:$0xff] %v12862_v25  ;;  %6561 = vrot.lane.b32.xlu1 %v12513_v58, %s8576_s1  ;;  %v4562_v25 = vld [vmem:[#allocation2 + $0x111] sm:$0xff]  ;;  %v4561_v58 = vld [vmem:[#allocation2 + $0x109] sm:$0xff] }
 0x7ff   :  { %6559 = vrot.lane.b32.xlu0 %v12517_v53, %s8576_s1  ;;  %v4095_v53 = vld [vmem:[#allocation2] sm:$0xff] }
 0x800   :  { %v12868_v1 = vpop.permute.xlu1 %5865 }
 0x801   :  { %15437 = vst [vmem:[#allocation271_spill] sm:$0xff] %v12868_v1  ;;  %v12870_v8 = vpop.permute.xlu0 %5863 }
 0x802   :  { %15438 = vst [vmem:[#allocation328_spill] sm:$0xff] %v12870_v8  ;;  %6053 = vrot.lane.b32.xlu1 %v4498_v40, %s8574_s12  ;;  %v6719_v40 = vsel %vm88_vm0, %v4095_v53, %v11793_v26 }
 0x803   :  { %6051 = vrot.lane.b32.xlu0 %v4497_v23, %s8574_s12  ;;  %v6720_v23 = vsel %vm88_vm0, %v4096_v15, %v11789_v27  ;;  %v4499_v27 = vld [vmem:[#allocation2 + $0x120] sm:$0xff] }
 0x804   :  { %v12874_v19 = vpop.permute.xlu1 %5869 }
 0x805   :  { %15439 = vst [vmem:[#allocation102_spill] sm:$0xff] %v12874_v19  ;;  %v12876_v43 = vpop.permute.xlu0 %5867  ;;  %v6784_v19 = vsel %vm2930_vm4, %v6720_v23, %v11987_v24 }
 0x806   :  { %15440 = vst [vmem:[#allocation158_spill] sm:$0xff] %v12876_v43  ;;  %6309 = vrot.lane.b32.xlu1 %v4562_v25, %s8575_s13  ;;  %v6783_v25 = vsel %vm2930_vm4, %v6719_v40, %v11989_v28  ;;  %v6848_v26 = vsel %vm2995_vm5, %v6784_v19, %v12179_v61 }
 0x807   :  { %6307 = vrot.lane.b32.xlu0 %v4561_v58, %s8575_s13  ;;  %v6847_v43 = vsel %vm2995_vm5, %v6783_v25, %v12181_v49  ;;  %v6912_v28 = vsel %vm3060_vm6, %v6848_v26, %v12389_v50  ;;  %v4563_v50 = vld [vmem:[#allocation2 + $0x121] sm:$0xff] }
 0x808   :  { %v6018_v1 = vpop.permute.xlu1 %6017  ;;  %v6976_v49 = vsel %vm3125_vm7, %v6912_v28, %v12688_v16  ;;  %v8509_v25 = vld [vmem:[#allocation2 + $0x20] sm:$0xff] }
 0x809   :  { %v6016_v8 = vpop.permute.xlu0 %6015  ;;  %v7040_v19 = vsel %vm3190_vm8, %v6976_v49, %v6018_v1  ;;  %v4502_v28 = vld [vmem:[#allocation2 + $0x140] sm:$0xff] }
 0x80a   :  { %6565 = vrot.lane.b32.xlu1 %v12525_v37, %s8576_s1 }
 0x80b   :  { %6563 = vrot.lane.b32.xlu0 %v12529_v56, %s8576_s1  ;;  %v6911_v56 = vsel %vm3060_vm6, %v6847_v43, %v12391_v36  ;;  %v4564_v43 = vld [vmem:[#allocation2 + $0x129] sm:$0xff] }
 0x80c   :  { %v6274_v58 = vpop.permute.xlu1 %6273  ;;  %v6975_v24 = vsel %vm3125_vm7, %v6911_v56, %v12690_v31 }
 0x80d   :  { %v6272_v37 = vpop.permute.xlu0 %6271  ;;  %v7039_v15 = vsel %vm3190_vm8, %v6975_v24, %v6016_v8  ;;  %v7104_v53 = vsel %vm3255_vm9, %v7040_v19, %v6274_v58  ;;  %v8508_v8 = vld [vmem:[#allocation2 + $0x18] sm:$0xff]  ;;  %v6722_v58 = vsel %vm88_vm0, %v8509_v25, %v11799_v3  ;;  %v15441_v25 = vld [vmem:[#allocation372_spill] sm:$0xff] }
 0x80e   :  { %6057 = vrot.lane.b32.xlu1 %v4500_v32, %s8574_s12  ;;  %v7103_v36 = vsel %vm3255_vm9, %v7039_v15, %v6272_v37  ;;  %v6721_v23 = vsel %vm88_vm0, %v8508_v8, %v11801_v54  ;;  %v6786_v56 = vsel %vm2930_vm4, %v6722_v58, %v11993_v63  ;;  %v4501_v3 = vld [vmem:[#allocation2 + $0x138] sm:$0xff] }
 0x80f   :  { %6055 = vrot.lane.b32.xlu0 %v4499_v27, %s8574_s12  ;;  %v6785_v37 = vsel %vm2930_vm4, %v6721_v23, %v11995_v42  ;;  %v6850_v54 = vsel %vm2995_vm5, %v6786_v56, %v12185_v13  ;;  %v4504_v23 = vld [vmem:[#allocation2 + $0x158] sm:$0xff] }
 0x810   :  { %v6530_v61 = vpop.permute.xlu1 %6529  ;;  %v6914_v42 = vsel %vm3060_vm6, %v6850_v54, %v12395_v4  ;;  %v4568_v56 = vld [vmem:[#allocation2 + $0x159] sm:$0xff] }
 0x811   :  { %v6528_v32 = vpop.permute.xlu0 %6527  ;;  %v7168_v40 = vsel %vm3320_vm10, %v7104_v53, %v6530_v61  ;;  %v4566_v61 = vld [vmem:[#allocation2 + $0x141] sm:$0xff] }
 0x812   :  { %6313 = vrot.lane.b32.xlu1 %v4564_v43, %s8575_s13  ;;  %v7167_v31 = vsel %vm3320_vm10, %v7103_v36, %v6528_v32  ;;  %v8510_v43 = vld [vmem:[#allocation2 + $0x30] sm:$0xff] }
 0x813   :  { %6311 = vrot.lane.b32.xlu0 %v4563_v50, %s8575_s13  ;;  %8327 = vmatprep.mubr.msk.f32.mxu1 %vm3385_vm11, %v7167_v31  ;;  %v6723_v53 = vsel %vm88_vm0, %v8510_v43, %v11809_v18  ;;  %v8511_v50 = vld [vmem:[#allocation2 + $0x38] sm:$0xff]  ;;  %v15449_v43 = vld [vmem:[#allocation136_spill] sm:$0xff] }
 0x814   :  { %v6022_v16 = vpop.permute.xlu1 %6021  ;;  %8328 = vmatmul.mubr.msk.f32.vlgmr.msra.gmra.mrb[0].mxu1 %vm3385_vm11, %v7168_v40  ;;  %v6724_v31 = vsel %vm88_vm0, %v8511_v50, %v11807_v60  ;;  %v6787_v40 = vsel %vm2930_vm4, %v6723_v53, %v12001_v30  ;;  %v4503_v60 = vld [vmem:[#allocation2 + $0x150] sm:$0xff]  ;;  %v15450_v50 = vld [vmem:[#allocation200_spill] sm:$0xff] }
 0x815   :  { %v6020_v1 = vpop.permute.xlu0 %6019 }
 0x816   :  { %6569 = vrot.lane.b32.xlu1 %v12537_v55, %s8576_s1  ;;  %v6849_v55 = vsel %vm2995_vm5, %v6785_v37, %v12187_v21  ;;  %v6978_v21 = vsel %vm3125_vm7, %v6914_v42, %v12696_v17  ;;  %v15443_v42 = vld [vmem:[#allocation406_spill] sm:$0xff] }
 0x817   :  { %6567 = vrot.lane.b32.xlu0 %v12541_v59, %s8576_s1  ;;  %v6913_v59 = vsel %vm3060_vm6, %v6849_v55, %v12397_v41  ;;  %v7042_v49 = vsel %vm3190_vm8, %v6978_v21, %v6022_v16  ;;  %v15444_v21 = vld [vmem:[#allocation204_spill] sm:$0xff] }
 0x818   :  { %v6278_v26 = vpop.permute.xlu1 %6277  ;;  %v6977_v63 = vsel %vm3125_vm7, %v6913_v59, %v12698_v33  ;;  %v4565_v33 = vld [vmem:[#allocation2 + $0x139] sm:$0xff]  ;;  %v15442_v59 = vld [vmem:[#allocation149_spill] sm:$0xff] }
 0x819   :  { %v6276_v27 = vpop.permute.xlu0 %6275  ;;  %v7041_v24 = vsel %vm3190_vm8, %v6977_v63, %v6020_v1  ;;  %v7106_v19 = vsel %vm3255_vm9, %v7042_v49, %v6278_v26  ;;  %v6788_v1 = vsel %vm2930_vm4, %v6724_v31, %v11999_v0 }
 0x81a   :  { %6061 = vrot.lane.b32.xlu1 %v4502_v28, %s8574_s12  ;;  %v7105_v41 = vsel %vm3255_vm9, %v7041_v24, %v6276_v27  ;;  %v6852_v18 = vsel %vm2995_vm5, %v6788_v1, %v12191_v5  ;;  %v8513_v24 = vld [vmem:[#allocation2 + $0x50] sm:$0xff] }
 0x81b   :  { %6059 = vrot.lane.b32.xlu0 %v4501_v3, %s8574_s12  ;;  %v6916_v30 = vsel %vm3060_vm6, %v6852_v18, %v15441_v25  ;;  %v8512_v3 = vld [vmem:[#allocation2 + $0x48] sm:$0xff] }
 0x81c   :  { %v6534_v13 = vpop.permute.xlu1 %6533  ;;  %v6725_v63 = vsel %vm88_vm0, %v8512_v3, %v15443_v42  ;;  %v15457_v3 = vld [vmem:[#allocation128_spill] sm:$0xff] }
 0x81d   :  { %v6532_v15 = vpop.permute.xlu0 %6531  ;;  %v7170_v36 = vsel %vm3320_vm10, %v7106_v19, %v6534_v13  ;;  %v15445_v13 = vld [vmem:[#allocation232_spill] sm:$0xff]  ;;  %v15447_v19 = vld [vmem:[#allocation298_spill] sm:$0xff] }
 0x81e   :  { %v7169_v4 = vsel %vm3320_vm10, %v7105_v41, %v6532_v15  ;;  %6317 = vrot.lane.b32.xlu1 %v4566_v61, %s8575_s13  ;;  %v6726_v49 = vsel %vm88_vm0, %v8513_v24, %v15445_v13  ;;  %v15446_v41 = vld [vmem:[#allocation70_spill] sm:$0xff]  ;;  %v4508_v13 = vld [vmem:[#allocation2 + $0x188] sm:$0xff] }
 0x81f   :  { %6315 = vrot.lane.b32.xlu0 %v4565_v33, %s8575_s13  ;;  %8330 = vmatprep.mubr.msk.f32.mxu1 %vm3385_vm11, %v7169_v4  ;;  %v6789_v15 = vsel %vm2930_vm4, %v6725_v63, %v15446_v41  ;;  %v6790_v4 = vsel %vm2930_vm4, %v6726_v49, %v15447_v19  ;;  %v15448_v33 = vld [vmem:[#allocation307_spill] sm:$0xff]  ;;  %v15458_v63 = vld [vmem:[#allocation137_spill] sm:$0xff]  ;;  %v15459_v49 = vld [vmem:[#allocation364_spill] sm:$0xff] }
 0x820   :  { %v6026_v17 = vpop.permute.xlu1 %6025  ;;  %8331 = vmatmul.mubr.msk.f32.gmra.mrb[2].mxu1 %vm3385_vm11, %v7170_v36  ;;  %v6853_v36 = vsel %vm2995_vm5, %v6789_v15, %v15448_v33  ;;  %v6854_v53 = vsel %vm2995_vm5, %v6790_v4, %v15449_v43  ;;  %v15460_v15 = vld [vmem:[#allocation431_spill] sm:$0xff]  ;;  %v15461_v4 = vld [vmem:[#allocation373_spill] sm:$0xff] }
 0x821   :  { %v6024_v32 = vpop.permute.xlu0 %6023  ;;  %v6917_v31 = vsel %vm3060_vm6, %v6853_v36, %v15450_v50  ;;  %v4507_v19 = vld [vmem:[#allocation2 + $0x180] sm:$0xff] }
 0x822   :  { %6573 = vrot.lane.b32.xlu1 %v12549_v34, %s8576_s1  ;;  %v6851_v34 = vsel %vm2995_vm5, %v6787_v40, %v12193_v46  ;;  %v6980_v46 = vsel %vm3125_vm7, %v6916_v30, %v12704_v6  ;;  %v4505_v40 = vld [vmem:[#allocation2 + $0x168] sm:$0xff]  ;;  %v4570_v30 = vld [vmem:[#allocation2 + $0x171] sm:$0xff] }
 0x823   :  { %6571 = vrot.lane.b32.xlu0 %v12553_v45, %s8576_s1  ;;  %v6915_v45 = vsel %vm3060_vm6, %v6851_v34, %v12403_v35  ;;  %v7044_v37 = vsel %vm3190_vm8, %v6980_v46, %v6026_v17  ;;  %v6981_v34 = vsel %vm3125_vm7, %v6917_v31, %v12712_v44  ;;  %v4569_v44 = vld [vmem:[#allocation2 + $0x169] sm:$0xff] }
 0x824   :  { %v6282_v16 = vpop.permute.xlu1 %6281  ;;  %v6979_v0 = vsel %vm3125_vm7, %v6915_v45, %v12706_v11  ;;  %v4567_v11 = vld [vmem:[#allocation2 + $0x151] sm:$0xff] }
 0x825   :  { %v6280_v8 = vpop.permute.xlu0 %6279  ;;  %v7043_v58 = vsel %vm3190_vm8, %v6979_v0, %v6024_v32  ;;  %v7108_v55 = vsel %vm3255_vm9, %v7044_v37, %v6282_v16  ;;  %v4506_v32 = vld [vmem:[#allocation2 + $0x170] sm:$0xff] }
 0x826   :  { %6065 = vrot.lane.b32.xlu1 %v4504_v23, %s8574_s12  ;;  %v7107_v35 = vsel %vm3255_vm9, %v7043_v58, %v6280_v8  ;;  %v15451_v16 = vld [vmem:[#allocation145_spill] sm:$0xff] }
 0x827   :  { %6063 = vrot.lane.b32.xlu0 %v4503_v60, %s8574_s12  ;;  %v6918_v1 = vsel %vm3060_vm6, %v6854_v53, %v15451_v16  ;;  %v15452_v37 = vld [vmem:[#allocation205_spill] sm:$0xff] }
 0x828   :  { %v6538_v5 = vpop.permute.xlu1 %6537  ;;  %v6982_v8 = vsel %vm3125_vm7, %v6918_v1, %v12710_v2 }
 0x829   :  { %v6536_v26 = vpop.permute.xlu0 %6535  ;;  %v7172_v28 = vsel %vm3320_vm10, %v7108_v55, %v6538_v5  ;;  %v15454_v55 = vld [vmem:[#allocation262_spill] sm:$0xff] }
 0x82a   :  { %v7171_v27 = vsel %vm3320_vm10, %v7107_v35, %v6536_v26  ;;  %6321 = vrot.lane.b32.xlu1 %v4568_v56, %s8575_s13  ;;  %v8514_v35 = vld [vmem:[#allocation2 + $0x60] sm:$0xff]  ;;  %v15453_v26 = vld [vmem:[#allocation290_spill] sm:$0xff] }
 0x82b   :  { %6319 = vrot.lane.b32.xlu0 %v4567_v11, %s8575_s13  ;;  %8333 = vmatprep.mubr.msk.f32.mxu1 %vm3385_vm11, %v7171_v27  ;;  %v6727_v56 = vsel %vm88_vm0, %v8514_v35, %v15453_v26  ;;  %v8515_v27 = vld [vmem:[#allocation2 + $0x68] sm:$0xff]  ;;  %v15455_v11 = vld [vmem:[#allocation233_spill] sm:$0xff] }
 0x82c   :  { %v6030_v6 = vpop.permute.xlu1 %6029  ;;  %8334 = vmatmul.mubr.msk.f32.gmra.mrb[4].mxu1 %vm3385_vm11, %v7172_v28  ;;  %v6728_v28 = vsel %vm88_vm0, %v8515_v27, %v15455_v11  ;;  %v15467_v35 = vld [vmem:[#allocation356_spill] sm:$0xff] }
 0x82d   :  { %v6028_v54 = vpop.permute.xlu0 %6027  ;;  %v7046_v45 = vsel %vm3190_vm8, %v6982_v8, %v6030_v6  ;;  %v15456_v6 = vld [vmem:[#allocation299_spill] sm:$0xff]  ;;  %v6792_v42 = vsel %vm2930_vm4, %v6728_v28, %v15457_v3  ;;  %v15469_v11 = vld [vmem:[#allocation192_spill] sm:$0xff] }
 0x82e   :  { %6577 = vrot.lane.b32.xlu1 %v15442_v59, %s8576_s1  ;;  %v7045_v23 = vsel %vm3190_vm8, %v6981_v34, %v6028_v54  ;;  %v6791_v54 = vsel %vm2930_vm4, %v6727_v56, %v15456_v6  ;;  %v6856_v41 = vsel %vm2995_vm5, %v6792_v42, %v15459_v49  ;;  %v15468_v56 = vld [vmem:[#allocation365_spill] sm:$0xff]  ;;  %v15470_v6 = vld [vmem:[#allocation258_spill] sm:$0xff] }
 0x82f   :  { %6575 = vrot.lane.b32.xlu0 %v15444_v21, %s8576_s1  ;;  %v6855_v21 = vsel %vm2995_vm5, %v6791_v54, %v15458_v63  ;;  %v6920_v33 = vsel %vm3060_vm6, %v6856_v41, %v15461_v4  ;;  %v4574_v63 = vld [vmem:[#allocation2 + $0x1a1] sm:$0xff]  ;;  %v4573_v49 = vld [vmem:[#allocation2 + $0x199] sm:$0xff] }
 0x830   :  { %v6286_v61 = vpop.permute.xlu1 %6285 }
 0x831   :  { %v6284_v17 = vpop.permute.xlu0 %6283  ;;  %v7110_v0 = vsel %vm3255_vm9, %v7046_v45, %v6286_v61  ;;  %v6919_v61 = vsel %vm3060_vm6, %v6855_v21, %v15460_v15  ;;  %v15463_v45 = vld [vmem:[#allocation291_spill] sm:$0xff] }
 0x832   :  { %6069 = vrot.lane.b32.xlu1 %v4506_v32, %s8574_s12  ;;  %v7109_v60 = vsel %vm3255_vm9, %v7045_v23, %v6284_v17  ;;  %v6983_v36 = vsel %vm3125_vm7, %v6919_v61, %v12720_v47  ;;  %v6984_v17 = vsel %vm3125_vm7, %v6920_v33, %v12718_v22  ;;  %v4571_v47 = vld [vmem:[#allocation2 + $0x181] sm:$0xff] }
 0x833   :  { %6067 = vrot.lane.b32.xlu0 %v4505_v40, %s8574_s12  ;;  %v4572_v40 = vld [vmem:[#allocation2 + $0x189] sm:$0xff]  ;;  %v15462_v23 = vld [vmem:[#allocation263_spill] sm:$0xff] }
 0x834   :  { %v6542_v18 = vpop.permute.xlu1 %6541 }
 0x835   :  { %v6540_v25 = vpop.permute.xlu0 %6539  ;;  %v7174_v58 = vsel %vm3320_vm10, %v7110_v0, %v6542_v18  ;;  %v8516_v18 = vld [vmem:[#allocation2 + $0x78] sm:$0xff]  ;;  %v8517_v0 = vld [vmem:[#allocation2 + $0x80] sm:$0xff] }
 0x836   :  { %v7173_v46 = vsel %vm3320_vm10, %v7109_v60, %v6540_v25  ;;  %6325 = vrot.lane.b32.xlu1 %v4570_v30, %s8575_s13  ;;  %v6729_v60 = vsel %vm88_vm0, %v8516_v18, %v15463_v45  ;;  %v15464_v25 = vld [vmem:[#allocation320_spill] sm:$0xff]  ;;  %v4510_v30 = vld [vmem:[#allocation2 + $0x1a0] sm:$0xff] }
 0x837   :  { %6323 = vrot.lane.b32.xlu0 %v4569_v44, %s8575_s13  ;;  %8336 = vmatprep.mubr.msk.f32.mxu1 %vm3385_vm11, %v7173_v46  ;;  %v15465_v46 = vld [vmem:[#allocation120_spill] sm:$0xff] }
 0x838   :  { %v6034_v2 = vpop.permute.xlu1 %6033  ;;  %8337 = vmatmul.mubr.msk.f32.gmra.mrb[6].mxu1 %vm3385_vm11, %v7174_v58  ;;  %v6730_v44 = vsel %vm88_vm0, %v8517_v0, %v15465_v46  ;;  %v15466_v58 = vld [vmem:[#allocation129_spill] sm:$0xff]  ;;  %v4512_v45 = vld [vmem:[#allocation2 + $0x1e8] sm:$0xff]  ;;  %v4511_v46 = vld [vmem:[#allocation2 + $0x1e0] sm:$0xff] }
 0x839   :  { %v6032_v5 = vpop.permute.xlu0 %6031  ;;  %v7048_v53 = vsel %vm3190_vm8, %v6984_v17, %v6034_v2  ;;  %v6793_v2 = vsel %vm2930_vm4, %v6729_v60, %v15466_v58  ;;  %v6794_v26 = vsel %vm2930_vm4, %v6730_v44, %v15467_v35  ;;  %v15477_v60 = vld [vmem:[#allocation423_spill] sm:$0xff]  ;;  %v15479_v44 = vld [vmem:[#allocation432_spill] sm:$0xff] }
 0x83a   :  { %6581 = vrot.lane.b32.xlu1 %v15452_v37, %s8576_s1  ;;  %v7047_v32 = vsel %vm3190_vm8, %v6983_v36, %v6032_v5  ;;  %v4509_v37 = vld [vmem:[#allocation2 + $0x198] sm:$0xff]  ;;  %v6858_v28 = vsel %vm2995_vm5, %v6794_v26, %v15469_v11 }
 0x83b   :  { %6579 = vrot.lane.b32.xlu0 %v15454_v55, %s8576_s1  ;;  %v6857_v55 = vsel %vm2995_vm5, %v6793_v2, %v15468_v56  ;;  %v4637_v36 = vld [vmem:[#allocation2 + $0x19a] sm:$0xff] }
 0x83c   :  { %v6290_v59 = vpop.permute.xlu1 %6289  ;;  %v6921_v54 = vsel %vm3060_vm6, %v6857_v55, %v15470_v6 }
 0x83d   :  { %v6288_v24 = vpop.permute.xlu0 %6287  ;;  %v7112_v16 = vsel %vm3255_vm9, %v7048_v53, %v6290_v59  ;;  %v15471_v59 = vld [vmem:[#allocation201_spill] sm:$0xff]  ;;  %v6985_v42 = vsel %vm3125_vm7, %v6921_v54, %v12728_v62 }
 0x83e   :  { %6073 = vrot.lane.b32.xlu1 %v4508_v13, %s8574_s12  ;;  %v7111_v50 = vsel %vm3255_vm9, %v7047_v32, %v6288_v24  ;;  %v6922_v3 = vsel %vm3060_vm6, %v6858_v28, %v15471_v59  ;;  %v8518_v32 = vld [vmem:[#allocation2 + $0x90] sm:$0xff] }
 0x83f   :  { %6071 = vrot.lane.b32.xlu0 %v4507_v19, %s8574_s12  ;;  %v6986_v21 = vsel %vm3125_vm7, %v6922_v3, %v12726_v12  ;;  %v4638_v12 = vld [vmem:[#allocation2 + $0x1a2] sm:$0xff]  ;;  %v4640_v59 = vld [vmem:[#allocation2 + $0x1ea] sm:$0xff] }
 0x840   :  { %v6546_v43 = vpop.permute.xlu1 %6545  ;;  %v4639_v3 = vld [vmem:[#allocation2 + $0x1e2] sm:$0xff] }
 0x841   :  { %v6544_v31 = vpop.permute.xlu0 %6543  ;;  %v7176_v34 = vsel %vm3320_vm10, %v7112_v16, %v6546_v43  ;;  %v15472_v43 = vld [vmem:[#allocation121_spill] sm:$0xff] }
 0x842   :  { %v7175_v1 = vsel %vm3320_vm10, %v7111_v50, %v6544_v31  ;;  %6329 = vrot.lane.b32.xlu1 %v4572_v40, %s8575_s13  ;;  %v6731_v53 = vsel %vm88_vm0, %v8518_v32, %v15472_v43  ;;  %v8519_v50 = vld [vmem:[#allocation2 + $0x98] sm:$0xff]  ;;  %v15473_v31 = vld [vmem:[#allocation348_spill] sm:$0xff]  ;;  %v15474_v16 = vld [vmem:[#allocation357_spill] sm:$0xff] }
 0x843   :  { %6327 = vrot.lane.b32.xlu0 %v4571_v47, %s8575_s13  ;;  %8339 = vmatprep.mubr.msk.f32.mxu1 %vm3385_vm11, %v7175_v1  ;;  %v6732_v40 = vsel %vm88_vm0, %v8519_v50, %v15473_v31  ;;  %v6795_v1 = vsel %vm2930_vm4, %v6731_v53, %v15474_v16  ;;  %v15486_v43 = vld [vmem:[#allocation316_spill] sm:$0xff]  ;;  %v4513_v50 = vld [vmem:[#allocation2 + $0x1f8] sm:$0xff]  ;;  %v15487_v31 = vld [vmem:[#allocation259_spill] sm:$0xff] }
 0x844   :  { %v6038_v22 = vpop.permute.xlu1 %6037  ;;  %8340 = vmatmul.mubr.msk.f32.gmra.mrb[8].mxu1 %vm3385_vm11, %v7176_v34  ;;  %v15475_v34 = vld [vmem:[#allocation184_spill] sm:$0xff] }
 0x845   :  { %v6036_v8 = vpop.permute.xlu0 %6035  ;;  %v7050_v41 = vsel %vm3190_vm8, %v6986_v21, %v6038_v22  ;;  %v6796_v22 = vsel %vm2930_vm4, %v6732_v40, %v15475_v34  ;;  %v15488_v16 = vld [vmem:[#allocation324_spill] sm:$0xff] }
 0x846   :  { %6585 = vrot.lane.b32.xlu1 %v15462_v23, %s8576_s1  ;;  %v7049_v24 = vsel %vm3190_vm8, %v6985_v42, %v6036_v8  ;;  %v15476_v8 = vld [vmem:[#allocation193_spill] sm:$0xff]  ;;  %v8520_v42 = vld [vmem:[#allocation2 + $0xa8] sm:$0xff] }
 0x847   :  { %6583 = vrot.lane.b32.xlu0 %v15464_v25, %s8576_s1  ;;  %v6859_v23 = vsel %vm2995_vm5, %v6795_v1, %v15476_v8  ;;  %v6860_v25 = vsel %vm2995_vm5, %v6796_v22, %v15477_v60  ;;  %v4578_v60 = vld [vmem:[#allocation2 + $0x201] sm:$0xff] }
 0x848   :  { %v6294_v5 = vpop.permute.xlu1 %6293  ;;  %v6924_v58 = vsel %vm3060_vm6, %v6860_v25, %v15479_v44 }
 0x849   :  { %v6292_v27 = vpop.permute.xlu0 %6291  ;;  %v7114_v19 = vsel %vm3255_vm9, %v7050_v41, %v6294_v5  ;;  %v6988_v5 = vsel %vm3125_vm7, %v6924_v58, %v12732_v57  ;;  %v15482_v41 = vld [vmem:[#allocation185_spill] sm:$0xff] }
 0x84a   :  { %6077 = vrot.lane.b32.xlu1 %v4510_v30, %s8574_s12  ;;  %v7113_v15 = vsel %vm3255_vm9, %v7049_v24, %v6292_v27  ;;  %v15478_v30 = vld [vmem:[#allocation89_spill] sm:$0xff] }
 0x84b   :  { %6075 = vrot.lane.b32.xlu0 %v4509_v37, %s8574_s12  ;;  %v6923_v0 = vsel %vm3060_vm6, %v6859_v23, %v15478_v30  ;;  %v4576_v27 = vld [vmem:[#allocation2 + $0x1e9] sm:$0xff] }
 0x84c   :  { %v6550_v13 = vpop.permute.xlu1 %6549  ;;  %v6987_v2 = vsel %vm3125_vm7, %v6923_v0, %v12734_v39  ;;  %v4575_v39 = vld [vmem:[#allocation2 + $0x1e1] sm:$0xff]  ;;  %v8521_v24 = vld [vmem:[#allocation2 + $0xb0] sm:$0xff]  ;;  %v4577_v0 = vld [vmem:[#allocation2 + $0x1f9] sm:$0xff] }
 0x84d   :  { %v6548_v61 = vpop.permute.xlu0 %6547  ;;  %v7178_v62 = vsel %vm3320_vm10, %v7114_v19, %v6550_v13  ;;  %v15481_v13 = vld [vmem:[#allocation176_spill] sm:$0xff]  ;;  %v15483_v19 = vld [vmem:[#allocation415_spill] sm:$0xff] }
 0x84e   :  { %v7177_v4 = vsel %vm3320_vm10, %v7113_v15, %v6548_v61  ;;  %6333 = vrot.lane.b32.xlu1 %v4574_v63, %s8575_s13  ;;  %v15480_v63 = vld [vmem:[#allocation349_spill] sm:$0xff] }
 0x84f   :  { %6331 = vrot.lane.b32.xlu0 %v4573_v49, %s8575_s13  ;;  %8342 = vmatprep.mubr.msk.f32.mxu1 %vm3385_vm11, %v7177_v4  ;;  %v6733_v21 = vsel %vm88_vm0, %v8520_v42, %v15480_v63  ;;  %v6734_v49 = vsel %vm88_vm0, %v8521_v24, %v15481_v13  ;;  %v4516_v42 = vld [vmem:[#allocation2 + $0x218] sm:$0xff]  ;;  %v15495_v63 = vld [vmem:[#allocation79_spill] sm:$0xff] }
 0x850   :  { %v6042_v33 = vpop.permute.xlu1 %6041  ;;  %8343 = vmatmul.mubr.msk.f32.gmra.mrb[10].mxu1 %vm3385_vm11, %v7178_v62  ;;  %v6797_v15 = vsel %vm2930_vm4, %v6733_v21, %v15482_v41  ;;  %v6798_v4 = vsel %vm2930_vm4, %v6734_v49, %v15483_v19  ;;  %v15484_v62 = vld [vmem:[#allocation424_spill] sm:$0xff]  ;;  %v15496_v24 = vld [vmem:[#allocation146_spill] sm:$0xff]  ;;  %v4515_v49 = vld [vmem:[#allocation2 + $0x210] sm:$0xff] }
 0x851   :  { %v6040_v17 = vpop.permute.xlu0 %6039  ;;  %v7052_v26 = vsel %vm3190_vm8, %v6988_v5, %v6042_v33  ;;  %v4641_v5 = vld [vmem:[#allocation2 + $0x1fa] sm:$0xff] }
 0x852   :  { %6589 = vrot.lane.b32.xlu1 %v4638_v12, %s8576_s1  ;;  %v7051_v37 = vsel %vm3190_vm8, %v6987_v2, %v6040_v17  ;;  %v6861_v12 = vsel %vm2995_vm5, %v6797_v15, %v15484_v62  ;;  %v15485_v17 = vld [vmem:[#allocation250_spill] sm:$0xff]  ;;  %v4642_v2 = vld [vmem:[#allocation2 + $0x202] sm:$0xff] }
 0x853   :  { %6587 = vrot.lane.b32.xlu0 %v4637_v36, %s8576_s1  ;;  %v4514_v36 = vld [vmem:[#allocation2 + $0x200] sm:$0xff]  ;;  %v6862_v32 = vsel %vm2995_vm5, %v6798_v4, %v15485_v17  ;;  %v6925_v53 = vsel %vm3060_vm6, %v6861_v12, %v15486_v43  ;;  %v15497_v41 = vld [vmem:[#allocation90_spill] sm:$0xff] }
 0x854   :  { %v6298_v47 = vpop.permute.xlu1 %6297  ;;  %v6926_v40 = vsel %vm3060_vm6, %v6862_v32, %v15487_v31  ;;  %v6989_v1 = vsel %vm3125_vm7, %v6925_v53, %v15488_v16  ;;  %v15498_v19 = vld [vmem:[#allocation98_spill] sm:$0xff] }
 0x855   :  { %v6296_v18 = vpop.permute.xlu0 %6295  ;;  %v7116_v11 = vsel %vm3255_vm9, %v7052_v26, %v6298_v47  ;;  %v15489_v47 = vld [vmem:[#allocation267_spill] sm:$0xff] }
 0x856   :  { %6081 = vrot.lane.b32.xlu1 %v4512_v45, %s8574_s12  ;;  %v7115_v56 = vsel %vm3255_vm9, %v7051_v37, %v6296_v18  ;;  %v6990_v34 = vsel %vm3125_vm7, %v6926_v40, %v15489_v47  ;;  %v8522_v37 = vld [vmem:[#allocation2 + $0xc0] sm:$0xff]  ;;  %v8524_v47 = vld [vmem:[#allocation2 + $0xd8] sm:$0xff] }
 0x857   :  { %6079 = vrot.lane.b32.xlu0 %v4511_v46, %s8574_s12  ;;  %v4580_v32 = vld [vmem:[#allocation2 + $0x219] sm:$0xff] }
 0x858   :  { %v6554_v35 = vpop.permute.xlu1 %6553  ;;  %v4644_v16 = vld [vmem:[#allocation2 + $0x21a] sm:$0xff] }
 0x859   :  { %v6552_v55 = vpop.permute.xlu0 %6551  ;;  %v7180_v6 = vsel %vm3320_vm10, %v7116_v11, %v6554_v35  ;;  %v15490_v35 = vld [vmem:[#allocation177_spill] sm:$0xff]  ;;  %v15492_v11 = vld [vmem:[#allocation416_spill] sm:$0xff] }
 0x85a   :  { %v7179_v28 = vsel %vm3320_vm10, %v7115_v56, %v6552_v55  ;;  %6337 = vrot.lane.b32.xlu1 %v4576_v27, %s8575_s13  ;;  %v6735_v26 = vsel %vm88_vm0, %v8522_v37, %v15490_v35  ;;  %v8523_v56 = vld [vmem:[#allocation2 + $0xc8] sm:$0xff]  ;;  %v15491_v55 = vld [vmem:[#allocation407_spill] sm:$0xff]  ;;  %v15505_v35 = vld [vmem:[#allocation374_spill] sm:$0xff] }
 0x85b   :  { %6335 = vrot.lane.b32.xlu0 %v4575_v39, %s8575_s13  ;;  %8345 = vmatprep.mubr.msk.f32.mxu1 %vm3385_vm11, %v7179_v28  ;;  %v6736_v27 = vsel %vm88_vm0, %v8523_v56, %v15491_v55  ;;  %v6799_v28 = vsel %vm2930_vm4, %v6735_v26, %v15492_v11  ;;  %v4517_v56 = vld [vmem:[#allocation2 + $0x228] sm:$0xff]  ;;  %v15506_v55 = vld [vmem:[#allocation317_spill] sm:$0xff] }
 0x85c   :  { %v6046_v57 = vpop.permute.xlu1 %6045  ;;  %8346 = vmatmul.mubr.msk.f32.gmra.mrb[12].mxu1 %vm3385_vm11, %v7180_v6  ;;  %v15493_v6 = vld [vmem:[#allocation242_spill] sm:$0xff] }
 0x85d   :  { %v6044_v54 = vpop.permute.xlu0 %6043  ;;  %v7054_v23 = vsel %vm3190_vm8, %v6990_v34, %v6046_v57  ;;  %v6800_v57 = vsel %vm2930_vm4, %v6736_v27, %v15493_v6  ;;  %v15499_v34 = vld [vmem:[#allocation408_spill] sm:$0xff] }
 0x85e   :  { %6593 = vrot.lane.b32.xlu1 %v4640_v59, %s8576_s1  ;;  %v7053_v22 = vsel %vm3190_vm8, %v6989_v1, %v6044_v54  ;;  %v15494_v54 = vld [vmem:[#allocation251_spill] sm:$0xff]  ;;  %v6864_v21 = vsel %vm2995_vm5, %v6800_v57, %v15495_v63  ;;  %v4643_v1 = vld [vmem:[#allocation2 + $0x212] sm:$0xff] }
 0x85f   :  { %6591 = vrot.lane.b32.xlu0 %v4639_v3, %s8576_s1  ;;  %v6863_v59 = vsel %vm2995_vm5, %v6799_v28, %v15494_v54  ;;  %v6928_v15 = vsel %vm3060_vm6, %v6864_v21, %v15497_v41  ;;  %v15507_v28 = vld [vmem:[#allocation154_spill] sm:$0xff] }
 0x860   :  { %v6302_v61 = vpop.permute.xlu1 %6301  ;;  %v6927_v13 = vsel %vm3060_vm6, %v6863_v59, %v15496_v24  ;;  %v6992_v4 = vsel %vm3125_vm7, %v6928_v15, %v15498_v19  ;;  %v4646_v41 = vld [vmem:[#allocation2 + $0x232] sm:$0xff]  ;;  %v4645_v15 = vld [vmem:[#allocation2 + $0x22a] sm:$0xff]  ;;  %v15508_v19 = vld [vmem:[#allocation235_spill] sm:$0xff] }
 0x861   :  { %v6300_v33 = vpop.permute.xlu0 %6299  ;;  %v7118_v25 = vsel %vm3255_vm9, %v7054_v23, %v6302_v61  ;;  %v6991_v61 = vsel %vm3125_vm7, %v6927_v13, %v12750_v10  ;;  %v4579_v10 = vld [vmem:[#allocation2 + $0x211] sm:$0xff] }
 0x862   :  { %6085 = vrot.lane.b32.xlu1 %v4514_v36, %s8574_s12  ;;  %v7117_v18 = vsel %vm3255_vm9, %v7053_v22, %v6300_v33  ;;  %v6737_v22 = vsel %vm88_vm0, %v8524_v47, %v15499_v34  ;;  %v15500_v23 = vld [vmem:[#allocation234_spill] sm:$0xff] }
 0x863   :  { %6083 = vrot.lane.b32.xlu0 %v4513_v50, %s8574_s12  ;;  %v15514_v47 = vld [vmem:[#allocation202_spill] sm:$0xff] }
 0x864   :  { %v6558_v8 = vpop.permute.xlu1 %6557 }
 0x865   :  { %v6556_v45 = vpop.permute.xlu0 %6555  ;;  %v7182_v46 = vsel %vm3320_vm10, %v7118_v25, %v6558_v8  ;;  %v8525_v8 = vld [vmem:[#allocation2 + $0xe0] sm:$0xff] }
 0x866   :  { %v7181_v30 = vsel %vm3320_vm10, %v7117_v18, %v6556_v45  ;;  %6341 = vrot.lane.b32.xlu1 %v4578_v60, %s8575_s13  ;;  %v6738_v18 = vsel %vm88_vm0, %v8525_v8, %v15500_v23  ;;  %v15501_v45 = vld [vmem:[#allocation243_spill] sm:$0xff] }
 0x867   :  { %6339 = vrot.lane.b32.xlu0 %v4577_v0, %s8575_s13  ;;  %8348 = vmatprep.mubr.msk.f32.mxu1 %vm3385_vm11, %v7181_v30  ;;  %v6801_v60 = vsel %vm2930_vm4, %v6737_v22, %v15501_v45  ;;  %v15502_v30 = vld [vmem:[#allocation71_spill] sm:$0xff] }
 0x868   :  { %v6050_v44 = vpop.permute.xlu1 %6049  ;;  %8349 = vmatmul.mubr.msk.f32.gmra.mrb[14].mxu1 %vm3385_vm11, %v7182_v46  ;;  %v6802_v0 = vsel %vm2930_vm4, %v6738_v18, %v15502_v30  ;;  %v15503_v46 = vld [vmem:[#allocation80_spill] sm:$0xff]  ;;  %v4519_v22 = vld [vmem:[#allocation2 + $0x240] sm:$0xff]  ;;  %v15516_v18 = vld [vmem:[#allocation382_spill] sm:$0xff] }
 0x869   :  { %v6048_v58 = vpop.permute.xlu0 %6047  ;;  %v7056_v33 = vsel %vm3190_vm8, %v6992_v4, %v6050_v44  ;;  %v6865_v44 = vsel %vm2995_vm5, %v6801_v60, %v15503_v46  ;;  %v15515_v8 = vld [vmem:[#allocation147_spill] sm:$0xff]  ;;  %v15517_v60 = vld [vmem:[#allocation325_spill] sm:$0xff] }
 0x86a   :  { %6597 = vrot.lane.b32.xlu1 %v4642_v2, %s8576_s1  ;;  %v7055_v62 = vsel %vm3190_vm8, %v6991_v61, %v6048_v58  ;;  %v4518_v2 = vld [vmem:[#allocation2 + $0x230] sm:$0xff]  ;;  %v6929_v26 = vsel %vm3060_vm6, %v6865_v44, %v15505_v35  ;;  %v4583_v35 = vld [vmem:[#allocation2 + $0x241] sm:$0xff] }
 0x86b   :  { %6595 = vrot.lane.b32.xlu0 %v4641_v5, %s8576_s1  ;;  %v15504_v5 = vld [vmem:[#allocation308_spill] sm:$0xff]  ;;  %v6993_v11 = vsel %vm3125_vm7, %v6929_v26, %v12756_v48  ;;  %v8526_v61 = vld [vmem:[#allocation2 + $0xf0] sm:$0xff] }
 0x86c   :  { %v6306_v39 = vpop.permute.xlu1 %6305  ;;  %v6866_v37 = vsel %vm2995_vm5, %v6802_v0, %v15504_v5  ;;  %v4581_v48 = vld [vmem:[#allocation2 + $0x229] sm:$0xff]  ;;  %v6739_v4 = vsel %vm88_vm0, %v8526_v61, %v15508_v19 }
 0x86d   :  { %v6304_v3 = vpop.permute.xlu0 %6303  ;;  %v7120_v43 = vsel %vm3255_vm9, %v7056_v33, %v6306_v39  ;;  %v6930_v27 = vsel %vm3060_vm6, %v6866_v37, %v15506_v55  ;;  %v15524_v19 = vld [vmem:[#allocation433_spill] sm:$0xff] }
 0x86e   :  { %6089 = vrot.lane.b32.xlu1 %v4516_v42, %s8574_s12  ;;  %v7119_v36 = vsel %vm3255_vm9, %v7055_v62, %v6304_v3  ;;  %v6994_v39 = vsel %vm3125_vm7, %v6930_v27, %v15507_v28  ;;  %v4582_v42 = vld [vmem:[#allocation2 + $0x231] sm:$0xff]  ;;  %v8528_v28 = vld [vmem:[#allocation2 + $0x108] sm:$0xff] }
 0x86f   :  { %6087 = vrot.lane.b32.xlu0 %v4515_v49, %s8574_s12  ;;  %v8527_v62 = vld [vmem:[#allocation2 + $0xf8] sm:$0xff]  ;;  %v4648_v27 = vld [vmem:[#allocation2 + $0x24a] sm:$0xff] }
 0x870   :  { %v6562_v12 = vpop.permute.xlu1 %6561 }
 0x871   :  { %v6560_v17 = vpop.permute.xlu0 %6559  ;;  %v7184_v50 = vsel %vm3320_vm10, %v7120_v43, %v6562_v12  ;;  %v15509_v12 = vld [vmem:[#allocation63_spill] sm:$0xff]  ;;  %v15511_v43 = vld [vmem:[#allocation300_spill] sm:$0xff] }
 0x872   :  { %v7183_v53 = vsel %vm3320_vm10, %v7119_v36, %v6560_v17  ;;  %6345 = vrot.lane.b32.xlu1 %v4580_v32, %s8575_s13  ;;  %v6740_v33 = vsel %vm88_vm0, %v8527_v62, %v15509_v12  ;;  %v15510_v36 = vld [vmem:[#allocation72_spill] sm:$0xff]  ;;  %v4521_v62 = vld [vmem:[#allocation2 + $0x258] sm:$0xff]  ;;  %v15525_v12 = vld [vmem:[#allocation375_spill] sm:$0xff] }
 0x873   :  { %6343 = vrot.lane.b32.xlu0 %v4579_v10, %s8575_s13  ;;  %8351 = vmatprep.mubr.msk.f32.mxu1 %vm3385_vm11, %v7183_v53  ;;  %v6803_v17 = vsel %vm2930_vm4, %v6739_v4, %v15510_v36  ;;  %v6804_v53 = vsel %vm2930_vm4, %v6740_v33, %v15511_v43  ;;  %v15512_v10 = vld [vmem:[#allocation309_spill] sm:$0xff] }
 0x874   :  { %v6054_v31 = vpop.permute.xlu1 %6053  ;;  %8352 = vmatmul.mubr.msk.f32.gmra.mrb[16].mxu1 %vm3385_vm11, %v7184_v50  ;;  %v6867_v50 = vsel %vm2995_vm5, %v6803_v17, %v15512_v10  ;;  %v15526_v17 = vld [vmem:[#allocation155_spill] sm:$0xff] }
 0x875   :  { %v6052_v40 = vpop.permute.xlu0 %6051  ;;  %v7058_v54 = vsel %vm3190_vm8, %v6994_v39, %v6054_v31  ;;  %v6931_v34 = vsel %vm3060_vm6, %v6867_v50, %v15514_v47  ;;  %v15518_v39 = vld [vmem:[#allocation64_spill] sm:$0xff] }
 0x876   :  { %6601 = vrot.lane.b32.xlu1 %v4644_v16, %s8576_s1  ;;  %v7057_v6 = vsel %vm3190_vm8, %v6993_v11, %v6052_v40  ;;  %v4520_v40 = vld [vmem:[#allocation2 + $0x248] sm:$0xff]  ;;  %v15513_v16 = vld [vmem:[#allocation138_spill] sm:$0xff]  ;;  %v6995_v45 = vsel %vm3125_vm7, %v6931_v34, %v15516_v18  ;;  %v8530_v18 = vld [vmem:[#allocation2 + $0x120] sm:$0xff] }
 0x877   :  { %6599 = vrot.lane.b32.xlu0 %v4643_v1, %s8576_s1  ;;  %v6868_v1 = vsel %vm2995_vm5, %v6804_v53, %v15513_v16  ;;  %v4647_v11 = vld [vmem:[#allocation2 + $0x242] sm:$0xff] }
 0x878   :  { %v6310_v25 = vpop.permute.xlu1 %6309  ;;  %v6932_v23 = vsel %vm3060_vm6, %v6868_v1, %v15515_v8  ;;  %v4650_v8 = vld [vmem:[#allocation2 + $0x262] sm:$0xff] }
 0x879   :  { %v6308_v58 = vpop.permute.xlu0 %6307  ;;  %v7122_v63 = vsel %vm3255_vm9, %v7058_v54, %v6310_v25  ;;  %v6996_v25 = vsel %vm3125_vm7, %v6932_v23, %v15517_v60  ;;  %v15519_v54 = vld [vmem:[#allocation292_spill] sm:$0xff]  ;;  %v4649_v23 = vld [vmem:[#allocation2 + $0x25a] sm:$0xff] }
 0x87a   :  { %6093 = vrot.lane.b32.xlu1 %v4518_v2, %s8574_s12  ;;  %v7121_v59 = vsel %vm3255_vm9, %v7057_v6, %v6308_v58  ;;  %v4584_v2 = vld [vmem:[#allocation2 + $0x249] sm:$0xff]  ;;  %v6741_v6 = vsel %vm88_vm0, %v8528_v28, %v15518_v39 }
 0x87b   :  { %6091 = vrot.lane.b32.xlu0 %v4517_v56, %s8574_s12  ;;  %v4523_v39 = vld [vmem:[#allocation2 + $0x270] sm:$0xff] }
 0x87c   :  { %v6566_v57 = vpop.permute.xlu1 %6565 }
 0x87d   :  { %v6564_v3 = vpop.permute.xlu0 %6563  ;;  %v7186_v24 = vsel %vm3320_vm10, %v7122_v63, %v6566_v57  ;;  %v8529_v57 = vld [vmem:[#allocation2 + $0x110] sm:$0xff] }
 0x87e   :  { %v7185_v21 = vsel %vm3320_vm10, %v7121_v59, %v6564_v3  ;;  %6349 = vrot.lane.b32.xlu1 %v4582_v42, %s8575_s13  ;;  %v6742_v59 = vsel %vm88_vm0, %v8529_v57, %v15519_v54  ;;  %v15520_v3 = vld [vmem:[#allocation301_spill] sm:$0xff] }
 0x87f   :  { %6347 = vrot.lane.b32.xlu0 %v4581_v48, %s8575_s13  ;;  %8354 = vmatprep.mubr.msk.f32.mxu1 %vm3385_vm11, %v7185_v21  ;;  %v6805_v42 = vsel %vm2930_vm4, %v6741_v6, %v15520_v3  ;;  %v15521_v21 = vld [vmem:[#allocation130_spill] sm:$0xff]  ;;  %v15534_v6 = vld [vmem:[#allocation203_spill] sm:$0xff] }
 0x880   :  { %v6058_v13 = vpop.permute.xlu1 %6057  ;;  %8355 = vmatmul.mubr.msk.f32.gmra.mrb[18].mxu1 %vm3385_vm11, %v7186_v24  ;;  %v6806_v48 = vsel %vm2930_vm4, %v6742_v59, %v15521_v21  ;;  %v15522_v24 = vld [vmem:[#allocation139_spill] sm:$0xff]  ;;  %v15535_v59 = vld [vmem:[#allocation210_spill] sm:$0xff] }
 0x881   :  { %v6056_v49 = vpop.permute.xlu0 %6055  ;;  %v7060_v46 = vsel %vm3190_vm8, %v6996_v25, %v6058_v13  ;;  %v6869_v13 = vsel %vm2995_vm5, %v6805_v42, %v15522_v24  ;;  %v8531_v25 = vld [vmem:[#allocation2 + $0x128] sm:$0xff] }
 0x882   :  { %6605 = vrot.lane.b32.xlu1 %v4646_v41, %s8576_s1  ;;  %v7059_v30 = vsel %vm3190_vm8, %v6995_v45, %v6056_v49  ;;  %v4522_v41 = vld [vmem:[#allocation2 + $0x260] sm:$0xff]  ;;  %v6933_v4 = vsel %vm3060_vm6, %v6869_v13, %v15524_v19  ;;  %v15527_v45 = vld [vmem:[#allocation293_spill] sm:$0xff] }
 0x883   :  { %6603 = vrot.lane.b32.xlu0 %v4645_v15, %s8576_s1  ;;  %v15523_v15 = vld [vmem:[#allocation366_spill] sm:$0xff]  ;;  %v6997_v36 = vsel %vm3125_vm7, %v6933_v4, %v12770_v7  ;;  %v6743_v60 = vsel %vm88_vm0, %v8530_v18, %v15527_v45  ;;  %v4525_v18 = vld [vmem:[#allocation2 + $0x288] sm:$0xff] }
 0x884   :  { %v6314_v32 = vpop.permute.xlu1 %6313  ;;  %v6870_v61 = vsel %vm2995_vm5, %v6806_v48, %v15523_v15  ;;  %v4585_v7 = vld [vmem:[#allocation2 + $0x259] sm:$0xff] }
 0x885   :  { %v6312_v31 = vpop.permute.xlu0 %6311  ;;  %v7124_v5 = vsel %vm3255_vm9, %v7060_v46, %v6314_v32  ;;  %v6934_v33 = vsel %vm3060_vm6, %v6870_v61, %v15525_v12  ;;  %v15529_v46 = vld [vmem:[#allocation131_spill] sm:$0xff]  ;;  %v8532_v12 = vld [vmem:[#allocation2 + $0x138] sm:$0xff] }
 0x886   :  { %6097 = vrot.lane.b32.xlu1 %v4520_v40, %s8574_s12  ;;  %v7123_v44 = vsel %vm3255_vm9, %v7059_v30, %v6312_v31  ;;  %v6998_v32 = vsel %vm3125_vm7, %v6934_v33, %v15526_v17  ;;  %v4586_v40 = vld [vmem:[#allocation2 + $0x261] sm:$0xff]  ;;  %v15528_v30 = vld [vmem:[#allocation122_spill] sm:$0xff] }
 0x887   :  { %6095 = vrot.lane.b32.xlu0 %v4519_v22, %s8574_s12  ;;  %v4588_v13 = vld [vmem:[#allocation2 + $0x279] sm:$0xff] }
 0x888   :  { %v6570_v0 = vpop.permute.xlu1 %6569  ;;  %v4652_v4 = vld [vmem:[#allocation2 + $0x27a] sm:$0xff] }
 0x889   :  { %v6568_v58 = vpop.permute.xlu0 %6567  ;;  %v7188_v26 = vsel %vm3320_vm10, %v7124_v5, %v6570_v0  ;;  %v6744_v0 = vsel %vm88_vm0, %v8531_v25, %v15528_v30  ;;  %v15536_v33 = vld [vmem:[#allocation123_spill] sm:$0xff]  ;;  %v15543_v45 = vld [vmem:[#allocation434_spill] sm:$0xff]  ;;  %v15544_v25 = vld [vmem:[#allocation441_spill] sm:$0xff] }
 0x88a   :  { %v7187_v37 = vsel %vm3320_vm10, %v7123_v44, %v6568_v58  ;;  %6353 = vrot.lane.b32.xlu1 %v4584_v2, %s8575_s13  ;;  %v6807_v44 = vsel %vm2930_vm4, %v6743_v60, %v15529_v46  ;;  %v15530_v2 = vld [vmem:[#allocation358_spill] sm:$0xff]  ;;  %v8533_v17 = vld [vmem:[#allocation2 + $0x140] sm:$0xff] }
 0x88b   :  { %6351 = vrot.lane.b32.xlu0 %v4583_v35, %s8575_s13  ;;  %8357 = vmatprep.mubr.msk.f32.mxu1 %vm3385_vm11, %v7187_v37  ;;  %v6808_v5 = vsel %vm2930_vm4, %v6744_v0, %v15530_v2  ;;  %v15531_v37 = vld [vmem:[#allocation367_spill] sm:$0xff] }
 0x88c   :  { %v6062_v56 = vpop.permute.xlu1 %6061  ;;  %8358 = vmatmul.mubr.msk.f32.gmra.mrb[20].mxu1 %vm3385_vm11, %v7188_v26  ;;  %v6871_v35 = vsel %vm2995_vm5, %v6807_v44, %v15531_v37  ;;  %v15545_v0 = vld [vmem:[#allocation383_spill] sm:$0xff] }
 0x88d   :  { %v6060_v55 = vpop.permute.xlu0 %6059  ;;  %v7062_v10 = vsel %vm3190_vm8, %v6998_v32, %v6062_v56  ;;  %v4524_v56 = vld [vmem:[#allocation2 + $0x278] sm:$0xff] }
 0x88e   :  { %6609 = vrot.lane.b32.xlu1 %v4648_v27, %s8576_s1  ;;  %v7061_v43 = vsel %vm3190_vm8, %v6997_v36, %v6060_v55  ;;  %v15532_v55 = vld [vmem:[#allocation194_spill] sm:$0xff]  ;;  %v6745_v36 = vsel %vm88_vm0, %v8532_v12, %v15536_v33  ;;  %v4527_v33 = vld [vmem:[#allocation2 + $0x2a0] sm:$0xff] }
 0x88f   :  { %6607 = vrot.lane.b32.xlu0 %v4647_v11, %s8576_s1  ;;  %v6872_v27 = vsel %vm2995_vm5, %v6808_v5, %v15532_v55  ;;  %v15533_v11 = vld [vmem:[#allocation260_spill] sm:$0xff]  ;;  %v15537_v32 = vld [vmem:[#allocation350_spill] sm:$0xff] }
 0x890   :  { %v6318_v63 = vpop.permute.xlu1 %6317  ;;  %v6935_v28 = vsel %vm3060_vm6, %v6871_v35, %v15533_v11  ;;  %v6936_v57 = vsel %vm3060_vm6, %v6872_v27, %v15534_v6  ;;  %v4590_v35 = vld [vmem:[#allocation2 + $0x291] sm:$0xff]  ;;  %v4589_v55 = vld [vmem:[#allocation2 + $0x289] sm:$0xff] }
 0x891   :  { %v6316_v49 = vpop.permute.xlu0 %6315  ;;  %v7126_v16 = vsel %vm3255_vm9, %v7062_v10, %v6318_v63  ;;  %v6999_v54 = vsel %vm3125_vm7, %v6935_v28, %v12776_v51  ;;  %v7000_v3 = vsel %vm3125_vm7, %v6936_v57, %v15535_v59  ;;  %v4587_v51 = vld [vmem:[#allocation2 + $0x271] sm:$0xff] }
 0x892   :  { %6101 = vrot.lane.b32.xlu1 %v4522_v41, %s8574_s12  ;;  %v7125_v50 = vsel %vm3255_vm9, %v7061_v43, %v6316_v49  ;;  %v6746_v43 = vsel %vm88_vm0, %v8533_v17, %v15537_v32  ;;  %v4653_v6 = vld [vmem:[#allocation2 + $0x28a] sm:$0xff] }
 0x893   :  { %6099 = vrot.lane.b32.xlu0 %v4521_v62, %s8574_s12  ;;  %v4651_v62 = vld [vmem:[#allocation2 + $0x272] sm:$0xff] }
 0x894   :  { %v6574_v53 = vpop.permute.xlu1 %6573  ;;  %v8534_v57 = vld [vmem:[#allocation2 + $0x150] sm:$0xff] }
 0x895   :  { %v6572_v31 = vpop.permute.xlu0 %6571  ;;  %v7190_v47 = vsel %vm3320_vm10, %v7126_v16, %v6574_v53  ;;  %v15538_v53 = vld [vmem:[#allocation359_spill] sm:$0xff] }
 0x896   :  { %v7189_v1 = vsel %vm3320_vm10, %v7125_v50, %v6572_v31  ;;  %6357 = vrot.lane.b32.xlu1 %v4586_v40, %s8575_s13  ;;  %v6809_v10 = vsel %vm2930_vm4, %v6745_v36, %v15538_v53  ;;  %v15539_v31 = vld [vmem:[#allocation186_spill] sm:$0xff]  ;;  %v15540_v16 = vld [vmem:[#allocation195_spill] sm:$0xff]  ;;  %v15553_v36 = vld [vmem:[#allocation261_spill] sm:$0xff] }
 0x897   :  { %6355 = vrot.lane.b32.xlu0 %v4585_v7, %s8575_s13  ;;  %8360 = vmatprep.mubr.msk.f32.mxu1 %vm3385_vm11, %v7189_v1  ;;  %v6810_v40 = vsel %vm2930_vm4, %v6746_v43, %v15539_v31  ;;  %v6873_v1 = vsel %vm2995_vm5, %v6809_v10, %v15540_v16  ;;  %v15554_v43 = vld [vmem:[#allocation211_spill] sm:$0xff] }
 0x898   :  { %v6066_v34 = vpop.permute.xlu1 %6065  ;;  %8361 = vmatmul.mubr.msk.f32.gmra.mrb[22].mxu1 %vm3385_vm11, %v7190_v47  ;;  %v4526_v47 = vld [vmem:[#allocation2 + $0x290] sm:$0xff] }
 0x899   :  { %v6064_v22 = vpop.permute.xlu0 %6063  ;;  %v7064_v21 = vsel %vm3190_vm8, %v7000_v3, %v6066_v34  ;;  %v15541_v34 = vld [vmem:[#allocation425_spill] sm:$0xff]  ;;  %v8535_v3 = vld [vmem:[#allocation2 + $0x158] sm:$0xff] }
 0x89a   :  { %6613 = vrot.lane.b32.xlu1 %v4650_v8, %s8576_s1  ;;  %v7063_v42 = vsel %vm3190_vm8, %v6999_v54, %v6064_v22  ;;  %v6874_v22 = vsel %vm2995_vm5, %v6810_v40, %v15541_v34  ;;  %v15542_v8 = vld [vmem:[#allocation91_spill] sm:$0xff] }
 0x89b   :  { %6611 = vrot.lane.b32.xlu0 %v4649_v23, %s8576_s1  ;;  %v6937_v23 = vsel %vm3060_vm6, %v6873_v1, %v15542_v8  ;;  %v6938_v60 = vsel %vm3060_vm6, %v6874_v22, %v15543_v45  ;;  %v15546_v54 = vld [vmem:[#allocation351_spill] sm:$0xff]  ;;  %v4592_v1 = vld [vmem:[#allocation2 + $0x2a9] sm:$0xff] }
 0x89c   :  { %v6322_v58 = vpop.permute.xlu1 %6321  ;;  %v7001_v30 = vsel %vm3125_vm7, %v6937_v23, %v15544_v25  ;;  %v7002_v46 = vsel %vm3125_vm7, %v6938_v60, %v15545_v0  ;;  %v6747_v59 = vsel %vm88_vm0, %v8534_v57, %v15546_v54  ;;  %v4656_v23 = vld [vmem:[#allocation2 + $0x2aa] sm:$0xff]  ;;  %v15555_v60 = vld [vmem:[#allocation179_spill] sm:$0xff] }
 0x89d   :  { %v6320_v26 = vpop.permute.xlu0 %6319  ;;  %v7128_v49 = vsel %vm3255_vm9, %v7064_v21, %v6322_v58  ;;  %v15548_v21 = vld [vmem:[#allocation187_spill] sm:$0xff]  ;;  %v8536_v45 = vld [vmem:[#allocation2 + $0x168] sm:$0xff]  ;;  %v15556_v0 = vld [vmem:[#allocation409_spill] sm:$0xff] }
 0x89e   :  { %6105 = vrot.lane.b32.xlu1 %v4524_v56, %s8574_s12  ;;  %v7127_v48 = vsel %vm3255_vm9, %v7063_v42, %v6320_v26  ;;  %v15547_v42 = vld [vmem:[#allocation178_spill] sm:$0xff]  ;;  %v6749_v25 = vsel %vm88_vm0, %v8536_v45, %v15555_v60  ;;  %v15562_v57 = vld [vmem:[#allocation92_spill] sm:$0xff]  ;;  %v15572_v60 = vld [vmem:[#allocation99_spill] sm:$0xff] }
 0x89f   :  { %6103 = vrot.lane.b32.xlu0 %v4523_v39, %s8574_s12  ;;  %v4654_v39 = vld [vmem:[#allocation2 + $0x292] sm:$0xff] }
 0x8a0   :  { %v6578_v63 = vpop.permute.xlu1 %6577 }
 0x8a1   :  { %v6576_v24 = vpop.permute.xlu0 %6575  ;;  %v7192_v15 = vsel %vm3320_vm10, %v7128_v49, %v6578_v63  ;;  %v6748_v63 = vsel %vm88_vm0, %v8535_v3, %v15547_v42  ;;  %v15563_v3 = vld [vmem:[#allocation268_spill] sm:$0xff] }
 0x8a2   :  { %v7191_v41 = vsel %vm3320_vm10, %v7127_v48, %v6576_v24  ;;  %6361 = vrot.lane.b32.xlu1 %v4588_v13, %s8575_s13  ;;  %v6811_v48 = vsel %vm2930_vm4, %v6747_v59, %v15548_v21  ;;  %v15549_v13 = vld [vmem:[#allocation417_spill] sm:$0xff] }
 0x8a3   :  { %6359 = vrot.lane.b32.xlu0 %v4587_v51, %s8575_s13  ;;  %8363 = vmatprep.mubr.msk.f32.mxu1 %vm3385_vm11, %v7191_v41  ;;  %v6812_v49 = vsel %vm2930_vm4, %v6748_v63, %v15549_v13  ;;  %v15550_v41 = vld [vmem:[#allocation426_spill] sm:$0xff] }
 0x8a4   :  { %v6070_v61 = vpop.permute.xlu1 %6069  ;;  %8364 = vmatmul.mubr.msk.f32.gmra.mrb[24].mxu1 %vm3385_vm11, %v7192_v15  ;;  %v6875_v51 = vsel %vm2995_vm5, %v6811_v48, %v15550_v41 }
 0x8a5   :  { %v6068_v19 = vpop.permute.xlu0 %6067  ;;  %v7066_v2 = vsel %vm3190_vm8, %v7002_v46, %v6070_v61  ;;  %v4528_v61 = vld [vmem:[#allocation2 + $0x2a8] sm:$0xff] }
 0x8a6   :  { %6617 = vrot.lane.b32.xlu1 %v4652_v4, %s8576_s1  ;;  %v7065_v44 = vsel %vm3190_vm8, %v7001_v30, %v6068_v19  ;;  %v15551_v19 = vld [vmem:[#allocation252_spill] sm:$0xff]  ;;  %v8537_v30 = vld [vmem:[#allocation2 + $0x170] sm:$0xff] }
 0x8a7   :  { %6615 = vrot.lane.b32.xlu0 %v4651_v62, %s8576_s1  ;;  %v6876_v4 = vsel %vm2995_vm5, %v6812_v49, %v15551_v19  ;;  %v15552_v62 = vld [vmem:[#allocation318_spill] sm:$0xff]  ;;  %v6750_v46 = vsel %vm88_vm0, %v8537_v30, %v15556_v0  ;;  %v4594_v49 = vld [vmem:[#allocation2 + $0x2c1] sm:$0xff] }
 0x8a8   :  { %v6326_v50 = vpop.permute.xlu1 %6325  ;;  %v6939_v12 = vsel %vm3060_vm6, %v6875_v51, %v15552_v62  ;;  %v6940_v17 = vsel %vm3060_vm6, %v6876_v4, %v15553_v36  ;;  %v4128_v4 = vld [vmem:[#allocation2 + $0x1b8] sm:$0xff] }
 0x8a9   :  { %v6324_v7 = vpop.permute.xlu0 %6323  ;;  %v7130_v26 = vsel %vm3255_vm9, %v7066_v2, %v6326_v50  ;;  %v7003_v32 = vsel %vm3125_vm7, %v6939_v12, %v12790_v38  ;;  %v7004_v53 = vsel %vm3125_vm7, %v6940_v17, %v15554_v43  ;;  %v4591_v38 = vld [vmem:[#allocation2 + $0x2a1] sm:$0xff]  ;;  %v15564_v36 = vld [vmem:[#allocation410_spill] sm:$0xff] }
 0x8aa   :  { %6109 = vrot.lane.b32.xlu1 %v4526_v47, %s8574_s12  ;;  %v7129_v5 = vsel %vm3255_vm9, %v7065_v44, %v6324_v7  ;;  %v15557_v44 = vld [vmem:[#allocation418_spill] sm:$0xff]  ;;  %v4658_v12 = vld [vmem:[#allocation2 + $0x2c2] sm:$0xff] }
 0x8ab   :  { %6107 = vrot.lane.b32.xlu0 %v4525_v18, %s8574_s12  ;;  %v4655_v18 = vld [vmem:[#allocation2 + $0x2a2] sm:$0xff]  ;;  %v15573_v30 = vld [vmem:[#allocation442_spill] sm:$0xff] }
 0x8ac   :  { %v6582_v58 = vpop.permute.xlu1 %6581 }
 0x8ad   :  { %v6580_v37 = vpop.permute.xlu0 %6579  ;;  %v7194_v27 = vsel %vm3320_vm10, %v7130_v26, %v6582_v58  ;;  %v6813_v58 = vsel %vm2930_vm4, %v6749_v25, %v15557_v44 }
 0x8ae   :  { %v7193_v56 = vsel %vm3320_vm10, %v7129_v5, %v6580_v37  ;;  %6365 = vrot.lane.b32.xlu1 %v4590_v35, %s8575_s13  ;;  %v15558_v5 = vld [vmem:[#allocation244_spill] sm:$0xff]  ;;  %v15559_v35 = vld [vmem:[#allocation253_spill] sm:$0xff] }
 0x8af   :  { %6363 = vrot.lane.b32.xlu0 %v4589_v55, %s8575_s13  ;;  %8366 = vmatprep.mubr.msk.f32.mxu1 %vm3385_vm11, %v7193_v56  ;;  %v6814_v37 = vsel %vm2930_vm4, %v6750_v46, %v15558_v5  ;;  %v6877_v26 = vsel %vm2995_vm5, %v6813_v58, %v15559_v35  ;;  %v4530_v55 = vld [vmem:[#allocation2 + $0x2c0] sm:$0xff] }
 0x8b0   :  { %v6074_v11 = vpop.permute.xlu1 %6073  ;;  %8367 = vmatmul.mubr.msk.f32.gmra.mrb[26].mxu1 %vm3385_vm11, %v7194_v27  ;;  %v15560_v27 = vld [vmem:[#allocation81_spill] sm:$0xff] }
 0x8b1   :  { %v6072_v28 = vpop.permute.xlu0 %6071  ;;  %v7068_v31 = vsel %vm3190_vm8, %v7004_v53, %v6074_v11  ;;  %v6878_v11 = vsel %vm2995_vm5, %v6814_v37, %v15560_v27  ;;  %v15566_v53 = vld [vmem:[#allocation245_spill] sm:$0xff]  ;;  %v4596_v37 = vld [vmem:[#allocation2 + $0x2d9] sm:$0xff] }
 0x8b2   :  { %6621 = vrot.lane.b32.xlu1 %v4654_v39, %s8576_s1  ;;  %v7067_v10 = vsel %vm3190_vm8, %v7003_v32, %v6072_v28  ;;  %v15561_v28 = vld [vmem:[#allocation148_spill] sm:$0xff]  ;;  %v6942_v54 = vsel %vm3060_vm6, %v6878_v11, %v15562_v57  ;;  %v15574_v57 = vld [vmem:[#allocation237_spill] sm:$0xff] }
 0x8b3   :  { %6619 = vrot.lane.b32.xlu0 %v4653_v6, %s8576_s1  ;;  %v6941_v39 = vsel %vm3060_vm6, %v6877_v26, %v15561_v28  ;;  %v4529_v6 = vld [vmem:[#allocation2 + $0x2b8] sm:$0xff]  ;;  %v7006_v42 = vsel %vm3125_vm7, %v6942_v54, %v15563_v3  ;;  %v15565_v32 = vld [vmem:[#allocation236_spill] sm:$0xff]  ;;  %v15575_v3 = vld [vmem:[#allocation65_spill] sm:$0xff] }
 0x8b4   :  { %v6330_v24 = vpop.permute.xlu1 %6329  ;;  %v7005_v59 = vsel %vm3125_vm7, %v6941_v39, %v12796_v20  ;;  %v4593_v20 = vld [vmem:[#allocation2 + $0x2b9] sm:$0xff]  ;;  %v6752_v43 = vsel %vm88_vm0, %v4128_v4, %v15565_v32 }
 0x8b5   :  { %v6328_v15 = vpop.permute.xlu0 %6327  ;;  %v7132_v7 = vsel %vm3255_vm9, %v7068_v31, %v6330_v24  ;;  %v15567_v31 = vld [vmem:[#allocation73_spill] sm:$0xff]  ;;  %v4660_v28 = vld [vmem:[#allocation2 + $0x2da] sm:$0xff] }
 0x8b6   :  { %6113 = vrot.lane.b32.xlu1 %v4528_v61, %s8574_s12  ;;  %v7131_v40 = vsel %vm3255_vm9, %v7067_v10, %v6328_v15  ;;  %v4127_v61 = vld [vmem:[#allocation2 + $0x1b0] sm:$0xff] }
 0x8b7   :  { %6111 = vrot.lane.b32.xlu0 %v4527_v33, %s8574_s12  ;;  %v4657_v33 = vld [vmem:[#allocation2 + $0x2ba] sm:$0xff]  ;;  %v6751_v17 = vsel %vm88_vm0, %v4127_v61, %v15564_v36  ;;  %v4659_v39 = vld [vmem:[#allocation2 + $0x2d2] sm:$0xff] }
 0x8b8   :  { %v6586_v50 = vpop.permute.xlu1 %6585  ;;  %v6815_v10 = vsel %vm2930_vm4, %v6751_v17, %v15566_v53  ;;  %v15582_v17 = vld [vmem:[#allocation269_spill] sm:$0xff] }
 0x8b9   :  { %v6584_v16 = vpop.permute.xlu0 %6583  ;;  %v7196_v34 = vsel %vm3320_vm10, %v7132_v7, %v6586_v50 }
 0x8ba   :  { %v7195_v47 = vsel %vm3320_vm10, %v7131_v40, %v6584_v16  ;;  %6369 = vrot.lane.b32.xlu1 %v4592_v1, %s8575_s13  ;;  %v6816_v40 = vsel %vm2930_vm4, %v6752_v43, %v15567_v31  ;;  %v15568_v16 = vld [vmem:[#allocation82_spill] sm:$0xff] }
 0x8bb   :  { %6367 = vrot.lane.b32.xlu0 %v4591_v38, %s8575_s13  ;;  %8369 = vmatprep.mubr.msk.f32.mxu1 %vm3385_vm11, %v7195_v47  ;;  %v6879_v1 = vsel %vm2995_vm5, %v6815_v10, %v15568_v16  ;;  %v4532_v47 = vld [vmem:[#allocation2 + $0x2d8] sm:$0xff] }
 0x8bc   :  { %v6078_v22 = vpop.permute.xlu1 %6077  ;;  %8370 = vmatmul.mubr.msk.f32.gmra.mrb[28].mxu1 %vm3385_vm11, %v7196_v34  ;;  %v15569_v38 = vld [vmem:[#allocation310_spill] sm:$0xff] }
 0x8bd   :  { %v6076_v8 = vpop.permute.xlu0 %6075  ;;  %v7070_v48 = vsel %vm3190_vm8, %v7006_v42, %v6078_v22  ;;  %v6880_v34 = vsel %vm2995_vm5, %v6816_v40, %v15569_v38  ;;  %v15570_v22 = vld [vmem:[#allocation376_spill] sm:$0xff]  ;;  %v4598_v40 = vld [vmem:[#allocation2 + $0x2f1] sm:$0xff] }
 0x8be   :  { %6625 = vrot.lane.b32.xlu1 %v4656_v23, %s8576_s1  ;;  %v7069_v63 = vsel %vm3190_vm8, %v7005_v59, %v6076_v8  ;;  %v6943_v8 = vsel %vm3060_vm6, %v6879_v1, %v15570_v22  ;;  %v4531_v23 = vld [vmem:[#allocation2 + $0x2d0] sm:$0xff]  ;;  %v8540_v22 = vld [vmem:[#allocation2 + $0x1e0] sm:$0xff] }
 0x8bf   :  { %6623 = vrot.lane.b32.xlu0 %v4655_v18, %s8576_s1  ;;  %v15571_v18 = vld [vmem:[#allocation319_spill] sm:$0xff]  ;;  %v7007_v25 = vsel %vm3125_vm7, %v6943_v8, %v15572_v60  ;;  %v8539_v59 = vld [vmem:[#allocation2 + $0x1d0] sm:$0xff]  ;;  %v15583_v8 = vld [vmem:[#allocation66_spill] sm:$0xff] }
 0x8c0   :  { %v6334_v2 = vpop.permute.xlu1 %6333  ;;  %v6944_v45 = vsel %vm3060_vm6, %v6880_v34, %v15571_v18  ;;  %v6754_v42 = vsel %vm88_vm0, %v8539_v59, %v15575_v3  ;;  %v4471_v34 = vld [vmem:[#allocation2 + $0x2ea] sm:$0xff] }
 0x8c1   :  { %v6332_v56 = vpop.permute.xlu0 %6331  ;;  %v7134_v41 = vsel %vm3255_vm9, %v7070_v48, %v6334_v2  ;;  %v7008_v0 = vsel %vm3125_vm7, %v6944_v45, %v15573_v30  ;;  %v8541_v18 = vld [vmem:[#allocation2 + $0x1e8] sm:$0xff]  ;;  %v15584_v45 = vld [vmem:[#allocation294_spill] sm:$0xff] }
 0x8c2   :  { %6117 = vrot.lane.b32.xlu1 %v4530_v55, %s8574_s12  ;;  %v7133_v24 = vsel %vm3255_vm9, %v7069_v63, %v6332_v56  ;;  %v4595_v56 = vld [vmem:[#allocation2 + $0x2d1] sm:$0xff]  ;;  %v6756_v60 = vsel %vm88_vm0, %v8541_v18, %v15584_v45  ;;  %v15592_v59 = vld [vmem:[#allocation4_spill] sm:$0xff] }
 0x8c3   :  { %6115 = vrot.lane.b32.xlu0 %v4529_v6, %s8574_s12  ;;  %v8538_v6 = vld [vmem:[#allocation2 + $0x1c8] sm:$0xff]  ;;  %v15576_v63 = vld [vmem:[#allocation74_spill] sm:$0xff] }
 0x8c4   :  { %v6590_v21 = vpop.permute.xlu1 %6589  ;;  %v6753_v54 = vsel %vm88_vm0, %v8538_v6, %v15574_v57  ;;  %v15591_v6 = vld [vmem:[#allocation326_spill] sm:$0xff]  ;;  %v15602_v18 = vld [vmem:[#allocation156_spill] sm:$0xff] }
 0x8c5   :  { %v6588_v13 = vpop.permute.xlu0 %6587  ;;  %v7198_v15 = vsel %vm3320_vm10, %v7134_v41, %v6590_v21  ;;  %v6817_v21 = vsel %vm2930_vm4, %v6753_v54, %v15576_v63 }
 0x8c6   :  { %v7197_v51 = vsel %vm3320_vm10, %v7133_v24, %v6588_v13  ;;  %6373 = vrot.lane.b32.xlu1 %v4594_v49, %s8575_s13  ;;  %v15577_v24 = vld [vmem:[#allocation302_spill] sm:$0xff]  ;;  %v15578_v49 = vld [vmem:[#allocation311_spill] sm:$0xff] }
 0x8c7   :  { %6371 = vrot.lane.b32.xlu0 %v4593_v20, %s8575_s13  ;;  %8372 = vmatprep.mubr.msk.f32.mxu1 %vm3385_vm11, %v7197_v51  ;;  %v6818_v13 = vsel %vm2930_vm4, %v6754_v42, %v15577_v24  ;;  %v6881_v41 = vsel %vm2995_vm5, %v6817_v21, %v15578_v49  ;;  %v4534_v20 = vld [vmem:[#allocation2 + $0x2f0] sm:$0xff]  ;;  %v15593_v24 = vld [vmem:[#allocation3_spill] sm:$0xff] }
 0x8c8   :  { %v6082_v19 = vpop.permute.xlu1 %6081  ;;  %8373 = vmatmul.mubr.msk.f32.gmra.mrb[30].mxu1 %vm3385_vm11, %v7198_v15  ;;  %v15579_v15 = vld [vmem:[#allocation140_spill] sm:$0xff] }
 0x8c9   :  { %v6080_v62 = vpop.permute.xlu0 %6079  ;;  %v7072_v58 = vsel %vm3190_vm8, %v7008_v0, %v6082_v19  ;;  %v6882_v61 = vsel %vm2995_vm5, %v6818_v13, %v15579_v15  ;;  %v15580_v19 = vld [vmem:[#allocation435_spill] sm:$0xff] }
 0x8ca   :  { %6629 = vrot.lane.b32.xlu1 %v4658_v12, %s8576_s1  ;;  %v7071_v46 = vsel %vm3190_vm8, %v7007_v25, %v6080_v62  ;;  %v6945_v4 = vsel %vm3060_vm6, %v6881_v41, %v15580_v19  ;;  %v4533_v62 = vld [vmem:[#allocation2 + $0x2e8] sm:$0xff]  ;;  %v15581_v12 = vld [vmem:[#allocation377_spill] sm:$0xff]  ;;  %v15585_v25 = vld [vmem:[#allocation303_spill] sm:$0xff] }
 0x8cb   :  { %6627 = vrot.lane.b32.xlu0 %v4657_v33, %s8576_s1  ;;  %v6946_v33 = vsel %vm3060_vm6, %v6882_v61, %v15581_v12  ;;  %v7009_v36 = vsel %vm3125_vm7, %v6945_v4, %v12810_v9  ;;  %v4597_v9 = vld [vmem:[#allocation2 + $0x2e9] sm:$0xff]  ;;  %v8542_v12 = vld [vmem:[#allocation2 + $0x1f8] sm:$0xff] }
 0x8cc   :  { %v6338_v50 = vpop.permute.xlu1 %6337  ;;  %v7010_v32 = vsel %vm3125_vm7, %v6946_v33, %v15582_v17  ;;  %v4600_v4 = vld [vmem:[#allocation2 + $0x309] sm:$0xff]  ;;  %v15594_v33 = vld [vmem:[#allocation295_spill] sm:$0xff] }
 0x8cd   :  { %v6336_v7 = vpop.permute.xlu0 %6335  ;;  %v7136_v35 = vsel %vm3255_vm9, %v7072_v58, %v6338_v50  ;;  %v15587_v58 = vld [vmem:[#allocation141_spill] sm:$0xff]  ;;  %v8543_v17 = vld [vmem:[#allocation2 + $0x200] sm:$0xff] }
 0x8ce   :  { %6121 = vrot.lane.b32.xlu1 %v4532_v47, %s8574_s12  ;;  %v7135_v2 = vsel %vm3255_vm9, %v7071_v46, %v6336_v7  ;;  %v15586_v46 = vld [vmem:[#allocation132_spill] sm:$0xff] }
 0x8cf   :  { %6119 = vrot.lane.b32.xlu0 %v4531_v23, %s8574_s12  ;;  %v6755_v23 = vsel %vm88_vm0, %v8540_v22, %v15583_v8  ;;  %v15601_v8 = vld [vmem:[#allocation94_spill] sm:$0xff] }
 0x8d0   :  { %v6594_v44 = vpop.permute.xlu1 %6593  ;;  %v6819_v30 = vsel %vm2930_vm4, %v6755_v23, %v15585_v25  ;;  %v15603_v25 = vld [vmem:[#allocation100_spill] sm:$0xff] }
 0x8d1   :  { %v6592_v5 = vpop.permute.xlu0 %6591  ;;  %v7200_v55 = vsel %vm3320_vm10, %v7136_v35, %v6594_v44  ;;  %v6820_v44 = vsel %vm2930_vm4, %v6756_v60, %v15586_v46  ;;  %v15588_v35 = vld [vmem:[#allocation368_spill] sm:$0xff]  ;;  %v15604_v46 = vld [vmem:[#allocation6_spill] sm:$0xff] }
 0x8d2   :  { %v7199_v26 = vsel %vm3320_vm10, %v7135_v2, %v6592_v5  ;;  %6377 = vrot.lane.b32.xlu1 %v4596_v37, %s8575_s13  ;;  %v6883_v2 = vsel %vm2995_vm5, %v6819_v30, %v15587_v58  ;;  %v4472_v37 = vld [vmem:[#allocation2 + $0x2f2] sm:$0xff] }
 0x8d3   :  { %6375 = vrot.lane.b32.xlu0 %v4595_v56, %s8575_s13  ;;  %8375 = vmatprep.mubr.msk.f32.mxu1 %vm3385_vm11, %v7199_v26  ;;  %v6884_v26 = vsel %vm2995_vm5, %v6820_v44, %v15588_v35  ;;  %v15589_v56 = vld [vmem:[#allocation93_spill] sm:$0xff] }
 0x8d4   :  { %v6086_v27 = vpop.permute.xlu1 %6085  ;;  %8376 = vmatmul.mubr.msk.f32.gmra.mrb[32].mxu1 %vm3385_vm11, %v7200_v55  ;;  %v6947_v55 = vsel %vm3060_vm6, %v6883_v2, %v15589_v56  ;;  %v15605_v35 = vld [vmem:[#allocation5_spill] sm:$0xff] }
 0x8d5   :  { %v6084_v11 = vpop.permute.xlu0 %6083  ;;  %v7074_v10 = vsel %vm3190_vm8, %v7010_v32, %v6086_v27  ;;  %v15590_v27 = vld [vmem:[#allocation436_spill] sm:$0xff] }
 0x8d6   :  { %6633 = vrot.lane.b32.xlu1 %v4660_v28, %s8576_s1  ;;  %v7073_v43 = vsel %vm3190_vm8, %v7009_v36, %v6084_v11  ;;  %v6948_v11 = vsel %vm3060_vm6, %v6884_v26, %v15590_v27  ;;  %v7011_v28 = vsel %vm3125_vm7, %v6947_v55, %v12816_v29  ;;  %v4536_v29 = vld [vmem:[#allocation2 + $0x308] sm:$0xff]  ;;  %v6757_v36 = vsel %vm88_vm0, %v8542_v12, %v15594_v33  ;;  %v4601_v33 = vld [vmem:[#allocation2 + $0x319] sm:$0xff] }
 0x8d7   :  { %6631 = vrot.lane.b32.xlu0 %v4659_v39, %s8576_s1  ;;  %v7012_v57 = vsel %vm3125_vm7, %v6948_v11, %v15591_v6  ;;  %v15595_v32 = vld [vmem:[#allocation124_spill] sm:$0xff] }
 0x8d8   :  { %v6342_v48 = vpop.permute.xlu1 %6341  ;;  %v4474_v55 = vld [vmem:[#allocation2 + $0x30a] sm:$0xff] }
 0x8d9   :  { %v6340_v51 = vpop.permute.xlu0 %6339  ;;  %v7138_v16 = vsel %vm3255_vm9, %v7074_v10, %v6342_v48 }
 0x8da   :  { %6125 = vrot.lane.b32.xlu1 %v4534_v20, %s8574_s12  ;;  %v7137_v50 = vsel %vm3255_vm9, %v7073_v43, %v6340_v51  ;;  %v4535_v20 = vld [vmem:[#allocation2 + $0x300] sm:$0xff]  ;;  %v6758_v43 = vsel %vm88_vm0, %v8543_v17, %v15595_v32 }
 0x8db   :  { %6123 = vrot.lane.b32.xlu0 %v4533_v62, %s8574_s12  ;;  %v4599_v62 = vld [vmem:[#allocation2 + $0x301] sm:$0xff] }
 0x8dc   :  { %v6598_v53 = vpop.permute.xlu1 %6597 }
 0x8dd   :  { %v6596_v31 = vpop.permute.xlu0 %6595  ;;  %v7202_v7 = vsel %vm3320_vm10, %v7138_v16, %v6598_v53  ;;  %v15596_v53 = vld [vmem:[#allocation133_spill] sm:$0xff] }
 0x8de   :  { %v7201_v1 = vsel %vm3320_vm10, %v7137_v50, %v6596_v31  ;;  %6381 = vrot.lane.b32.xlu1 %v4598_v40, %s8575_s13  ;;  %v6821_v10 = vsel %vm2930_vm4, %v6757_v36, %v15596_v53  ;;  %v15597_v31 = vld [vmem:[#allocation360_spill] sm:$0xff]  ;;  %v15598_v16 = vld [vmem:[#allocation369_spill] sm:$0xff]  ;;  %v15614_v53 = vld [vmem:[#allocation327_spill] sm:$0xff] }
 0x8df   :  { %6379 = vrot.lane.b32.xlu0 %v4597_v9, %s8575_s13  ;;  %8378 = vmatprep.mubr.msk.f32.mxu1 %vm3385_vm11, %v7201_v1  ;;  %v6822_v40 = vsel %vm2930_vm4, %v6758_v43, %v15597_v31  ;;  %v6885_v1 = vsel %vm2995_vm5, %v6821_v10, %v15598_v16  ;;  %v15613_v36 = vld [vmem:[#allocation321_spill] sm:$0xff]  ;;  %v15615_v31 = vld [vmem:[#allocation8_spill] sm:$0xff] }
 0x8e0   :  { %v6090_v47 = vpop.permute.xlu1 %6089  ;;  %8379 = vmatmul.mubr.msk.f32.gmra.mrb[34].mxu1 %vm3385_vm11, %v7202_v7  ;;  %v4473_v7 = vld [vmem:[#allocation2 + $0x302] sm:$0xff] }
 0x8e1   :  { %v6088_v38 = vpop.permute.xlu0 %6087  ;;  %v7076_v21 = vsel %vm3190_vm8, %v7012_v57, %v6090_v47  ;;  %v15599_v47 = vld [vmem:[#allocation196_spill] sm:$0xff]  ;;  %v4538_v57 = vld [vmem:[#allocation2 + $0x320] sm:$0xff] }
 0x8e2   :  { %5871 = vrot.lane.b32.xlu1 %v4471_v34, %s8573_s11  ;;  %v7075_v54 = vsel %vm3190_vm8, %v7011_v28, %v6088_v38  ;;  %v6886_v38 = vsel %vm2995_vm5, %v6822_v40, %v15599_v47  ;;  %v15616_v47 = vld [vmem:[#allocation7_spill] sm:$0xff] }
 0x8e3   :  { %6635 = vrot.lane.b32.xlu0 %v4471_v34, %s8576_s1  ;;  %v15600_v34 = vld [vmem:[#allocation150_spill] sm:$0xff]  ;;  %v6950_v23 = vsel %vm3060_vm6, %v6886_v38, %v15601_v8 }
 0x8e4   :  { %v6346_v0 = vpop.permute.xlu1 %6345  ;;  %v6949_v22 = vsel %vm3060_vm6, %v6885_v1, %v15600_v34  ;;  %v7014_v30 = vsel %vm3125_vm7, %v6950_v23, %v15603_v25  ;;  %v8546_v25 = vld [vmem:[#allocation2 + $0x228] sm:$0xff] }
 0x8e5   :  { %v6344_v5 = vpop.permute.xlu0 %6343  ;;  %v7140_v41 = vsel %vm3255_vm9, %v7076_v21, %v6346_v0  ;;  %v7013_v45 = vsel %vm3125_vm7, %v6949_v22, %v15602_v18  ;;  %v15607_v21 = vld [vmem:[#allocation352_spill] sm:$0xff] }
 0x8e6   :  { %5873 = vrot.lane.b32.xlu1 %v4472_v37, %s8573_s11  ;;  %v7139_v48 = vsel %vm3255_vm9, %v7075_v54, %v6344_v5  ;;  %v4537_v54 = vld [vmem:[#allocation2 + $0x318] sm:$0xff] }
 0x8e7   :  { %v8329_v39 = vpop.f32.mrb[0].mxu1  ;;  %6637 = vrot.lane.b32.xlu0 %v4472_v37, %s8576_s1 }
 0x8e8   :  { %v7812_v3 = vadd.f32 %v8329_v39, %v15592_v59  ;;  %v6602_v42 = vpop.permute.xlu1 %6601  ;;  %v7492_v63 = vpop.f32.mrb[1].mxu1  ;;  %v8544_v59 = vld [vmem:[#allocation2 + $0x210] sm:$0xff] }
 0x8e9   :  { %v7811_v13 = vadd.f32 %v7492_v63, %v15593_v24  ;;  %v6600_v49 = vpop.permute.xlu0 %6599  ;;  %v7204_v15 = vsel %vm3320_vm10, %v7140_v41, %v6602_v42  ;;  %v8545_v63 = vld [vmem:[#allocation2 + $0x218] sm:$0xff]  ;;  %v15608_v24 = vld [vmem:[#allocation361_spill] sm:$0xff] }
 0x8ea   :  { %7876 = vst.msk [vmem:[%s14245_s3 + $0x8] sm:$0xff] %vm88_vm0, %v7812_v3  ;;  %v7203_v51 = vsel %vm3320_vm10, %v7139_v48, %v6600_v49  ;;  %6129 = vrot.lane.b32.xlu1 %v4536_v29, %s8574_s12  ;;  %v15606_v3 = vld [vmem:[#allocation125_spill] sm:$0xff]  ;;  %v6760_v48 = vsel %vm88_vm0, %v8545_v63, %v15607_v21  ;;  %v15609_v29 = vld [vmem:[#allocation188_spill] sm:$0xff] }
 0x8eb   :  { %7875 = vst.msk [vmem:[%s14245_s3] sm:$0xff] %vm88_vm0, %v7811_v13  ;;  %6127 = vrot.lane.b32.xlu0 %v4535_v20, %s8574_s12  ;;  %8381 = vmatprep.mubr.msk.f32.mxu1 %vm3385_vm11, %v7203_v51  ;;  %v6759_v42 = vsel %vm88_vm0, %v8544_v59, %v15606_v3  ;;  %v6824_v41 = vsel %vm2930_vm4, %v6760_v48, %v15609_v29  ;;  %v15610_v51 = vld [vmem:[#allocation197_spill] sm:$0xff]  ;;  %v15624_v59 = vld [vmem:[#allocation151_spill] sm:$0xff]  ;;  %v15625_v21 = vld [vmem:[#allocation384_spill] sm:$0xff] }
 0x8ec   :  { %v6094_v61 = vpop.permute.xlu1 %6093  ;;  %8382 = vmatmul.mubr.msk.f32.gmra.mrb[36].mxu1 %vm3385_vm11, %v7204_v15  ;;  %v6823_v13 = vsel %vm2930_vm4, %v6759_v42, %v15608_v24 }
 0x8ed   :  { %v6092_v19 = vpop.permute.xlu0 %6091  ;;  %v7078_v5 = vsel %vm3190_vm8, %v7014_v30, %v6094_v61  ;;  %v6887_v20 = vsel %vm2995_vm5, %v6823_v13, %v15610_v51  ;;  %v4602_v61 = vld [vmem:[#allocation2 + $0x321] sm:$0xff]  ;;  %v15617_v30 = vld [vmem:[#allocation353_spill] sm:$0xff]  ;;  %v15626_v13 = vld [vmem:[#allocation10_spill] sm:$0xff] }
 0x8ee   :  { %6385 = vrot.lane.b32.xlu1 %v4600_v4, %s8575_s13  ;;  %v7077_v0 = vsel %vm3190_vm8, %v7013_v45, %v6092_v19  ;;  %v15611_v19 = vld [vmem:[#allocation427_spill] sm:$0xff] }
 0x8ef   :  { %6383 = vrot.lane.b32.xlu0 %v4599_v62, %s8575_s13  ;;  %v6888_v4 = vsel %vm2995_vm5, %v6824_v41, %v15611_v19  ;;  %v15612_v62 = vld [vmem:[#allocation378_spill] sm:$0xff] }
 0x8f0   :  { %v6350_v50 = vpop.permute.xlu1 %6349  ;;  %v6951_v12 = vsel %vm3060_vm6, %v6887_v20, %v15612_v62  ;;  %v6952_v17 = vsel %vm3060_vm6, %v6888_v4, %v15613_v36 }
 0x8f1   :  { %v6348_v9 = vpop.permute.xlu0 %6347  ;;  %v7142_v27 = vsel %vm3255_vm9, %v7078_v5, %v6350_v50  ;;  %v7015_v32 = vsel %vm3125_vm7, %v6951_v12, %v12830_v14  ;;  %v7016_v10 = vsel %vm3125_vm7, %v6952_v17, %v15614_v53  ;;  %v4475_v14 = vld [vmem:[#allocation2 + $0x31a] sm:$0xff]  ;;  %v4603_v12 = vld [vmem:[#allocation2 + $0x331] sm:$0xff] }
 0x8f2   :  { %5875 = vrot.lane.b32.xlu1 %v4473_v7, %s8573_s11  ;;  %v7141_v37 = vsel %vm3255_vm9, %v7077_v0, %v6348_v9  ;;  %v6761_v0 = vsel %vm88_vm0, %v8546_v25, %v15617_v30  ;;  %v15628_v53 = vld [vmem:[#allocation181_spill] sm:$0xff]  ;;  %v15636_v30 = vld [vmem:[#allocation212_spill] sm:$0xff] }
 0x8f3   :  { %v8332_v60 = vpop.f32.mrb[2].mxu1  ;;  %6639 = vrot.lane.b32.xlu0 %v4473_v7, %s8576_s1 }
 0x8f4   :  { %v7814_v44 = vadd.f32 %v8332_v60, %v15604_v46  ;;  %v6606_v58 = vpop.permute.xlu1 %6605  ;;  %v7502_v2 = vpop.f32.mrb[3].mxu1  ;;  %v4476_v60 = vld [vmem:[#allocation2 + $0x322] sm:$0xff]  ;;  %v8547_v46 = vld [vmem:[#allocation2 + $0x230] sm:$0xff] }
 0x8f5   :  { %v7813_v26 = vadd.f32 %v7502_v2, %v15605_v35  ;;  %v6604_v56 = vpop.permute.xlu0 %6603  ;;  %v7206_v28 = vsel %vm3320_vm10, %v7142_v27, %v6606_v58  ;;  %v15619_v2 = vld [vmem:[#allocation189_spill] sm:$0xff]  ;;  %v15620_v35 = vld [vmem:[#allocation419_spill] sm:$0xff] }
 0x8f6   :  { %7878 = vst.msk [vmem:[%s14245_s3 + $0x18] sm:$0xff] %vm88_vm0, %v7814_v44  ;;  %v7205_v11 = vsel %vm3320_vm10, %v7141_v37, %v6604_v56  ;;  %5877 = vrot.lane.b32.xlu1 %v4474_v55, %s8573_s11  ;;  %v15618_v44 = vld [vmem:[#allocation180_spill] sm:$0xff]  ;;  %v6825_v5 = vsel %vm2930_vm4, %v6761_v0, %v15619_v2 }
 0x8f7   :  { %7877 = vst.msk [vmem:[%s14245_s3 + $0x10] sm:$0xff] %vm88_vm0, %v7813_v26  ;;  %6641 = vrot.lane.b32.xlu0 %v4474_v55, %s8576_s1  ;;  %8384 = vmatprep.mubr.msk.f32.mxu1 %vm3385_vm11, %v7205_v11  ;;  %v6762_v58 = vsel %vm88_vm0, %v8547_v46, %v15618_v44  ;;  %v15621_v56 = vld [vmem:[#allocation428_spill] sm:$0xff]  ;;  %v4540_v11 = vld [vmem:[#allocation2 + $0x338] sm:$0xff]  ;;  %v4542_v44 = vld [vmem:[#allocation2 + $0x350] sm:$0xff] }
 0x8f8   :  { %v6098_v39 = vpop.permute.xlu1 %6097  ;;  %8385 = vmatmul.mubr.msk.f32.gmra.mrb[38].mxu1 %vm3385_vm11, %v7206_v28  ;;  %v6826_v26 = vsel %vm2930_vm4, %v6762_v58, %v15620_v35  ;;  %v6889_v55 = vsel %vm2995_vm5, %v6825_v5, %v15621_v56  ;;  %v15622_v28 = vld [vmem:[#allocation254_spill] sm:$0xff]  ;;  %v15637_v58 = vld [vmem:[#allocation157_spill] sm:$0xff] }
 0x8f9   :  { %v6096_v6 = vpop.permute.xlu0 %6095  ;;  %v7080_v9 = vsel %vm3190_vm8, %v7016_v10, %v6098_v39  ;;  %v6890_v39 = vsel %vm2995_vm5, %v6826_v26, %v15622_v28  ;;  %v15639_v28 = vld [vmem:[#allocation11_spill] sm:$0xff] }
 0x8fa   :  { %6133 = vrot.lane.b32.xlu1 %v4538_v57, %s8574_s12  ;;  %v7079_v50 = vsel %vm3190_vm8, %v7015_v32, %v6096_v6  ;;  %v15623_v6 = vld [vmem:[#allocation206_spill] sm:$0xff]  ;;  %v6954_v3 = vsel %vm3060_vm6, %v6890_v39, %v15624_v59 }
 0x8fb   :  { %6131 = vrot.lane.b32.xlu0 %v4537_v54, %s8574_s12  ;;  %v6953_v57 = vsel %vm3060_vm6, %v6889_v55, %v15623_v6  ;;  %v4539_v54 = vld [vmem:[#allocation2 + $0x330] sm:$0xff]  ;;  %v7018_v48 = vsel %vm3125_vm7, %v6954_v3, %v15625_v21  ;;  %v4541_v55 = vld [vmem:[#allocation2 + $0x348] sm:$0xff] }
 0x8fc   :  { %v6354_v49 = vpop.permute.xlu1 %6353  ;;  %v7017_v42 = vsel %vm3125_vm7, %v6953_v57, %v12836_v52  ;;  %v4604_v52 = vld [vmem:[#allocation2 + $0x339] sm:$0xff]  ;;  %v4606_v3 = vld [vmem:[#allocation2 + $0x351] sm:$0xff] }
 0x8fd   :  { %v6352_v15 = vpop.permute.xlu0 %6351  ;;  %v7144_v22 = vsel %vm3255_vm9, %v7080_v9, %v6354_v49  ;;  %v4477_v32 = vld [vmem:[#allocation2 + $0x332] sm:$0xff] }
 0x8fe   :  { %6389 = vrot.lane.b32.xlu1 %v4602_v61, %s8575_s13  ;;  %v7143_v7 = vsel %vm3255_vm9, %v7079_v50, %v6352_v15  ;;  %v15627_v15 = vld [vmem:[#allocation9_spill] sm:$0xff]  ;;  %v8549_v50 = vld [vmem:[#allocation2 + $0x248] sm:$0xff] }
 0x8ff   :  { %v8335_v43 = vpop.f32.mrb[4].mxu1  ;;  %6387 = vrot.lane.b32.xlu0 %v4601_v33, %s8575_s13 }
 0x900   :  { %v7816_v40 = vadd.f32 %v8335_v43, %v15615_v31  ;;  %v6610_v16 = vpop.permute.xlu1 %6609  ;;  %v7512_v1 = vpop.f32.mrb[5].mxu1  ;;  %v8548_v43 = vld [vmem:[#allocation2 + $0x240] sm:$0xff] }
 0x901   :  { %v7815_v38 = vadd.f32 %v7512_v1, %v15616_v47  ;;  %v6608_v34 = vpop.permute.xlu0 %6607  ;;  %v7208_v23 = vsel %vm3320_vm10, %v7144_v22, %v6610_v16  ;;  %v6763_v10 = vsel %vm88_vm0, %v8548_v43, %v15628_v53  ;;  %v15629_v31 = vld [vmem:[#allocation411_spill] sm:$0xff]  ;;  %v15630_v16 = vld [vmem:[#allocation420_spill] sm:$0xff] }
 0x902   :  { %7880 = vst.msk [vmem:[%s14245_s3 + $0x28] sm:$0xff] %vm88_vm0, %v7816_v40  ;;  %v7207_v8 = vsel %vm3320_vm10, %v7143_v7, %v6608_v34  ;;  %5879 = vrot.lane.b32.xlu1 %v4475_v14, %s8573_s11  ;;  %v6764_v40 = vsel %vm88_vm0, %v8549_v50, %v15629_v31  ;;  %v6827_v1 = vsel %vm2930_vm4, %v6763_v10, %v15630_v16  ;;  %v15631_v7 = vld [vmem:[#allocation246_spill] sm:$0xff]  ;;  %v15647_v53 = vld [vmem:[#allocation207_spill] sm:$0xff]  ;;  %v15649_v16 = vld [vmem:[#allocation385_spill] sm:$0xff] }
 0x903   :  { %7879 = vst.msk [vmem:[%s14245_s3 + $0x20] sm:$0xff] %vm88_vm0, %v7815_v38  ;;  %6643 = vrot.lane.b32.xlu0 %v4475_v14, %s8576_s1  ;;  %8387 = vmatprep.mubr.msk.f32.mxu1 %vm3385_vm11, %v7207_v8  ;;  %v6828_v47 = vsel %vm2930_vm4, %v6764_v40, %v15631_v7  ;;  %v15632_v38 = vld [vmem:[#allocation255_spill] sm:$0xff]  ;;  %v15650_v7 = vld [vmem:[#allocation14_spill] sm:$0xff] }
 0x904   :  { %v6102_v18 = vpop.permute.xlu1 %6101  ;;  %8388 = vmatmul.mubr.msk.f32.gmra.mrb[40].mxu1 %vm3385_vm11, %v7208_v23  ;;  %v6891_v34 = vsel %vm2995_vm5, %v6827_v1, %v15632_v38  ;;  %v4478_v22 = vld [vmem:[#allocation2 + $0x33a] sm:$0xff] }
 0x905   :  { %v6100_v45 = vpop.permute.xlu0 %6099  ;;  %v7082_v51 = vsel %vm3190_vm8, %v7018_v48, %v6102_v18  ;;  %v15633_v8 = vld [vmem:[#allocation83_spill] sm:$0xff]  ;;  %v15634_v18 = vld [vmem:[#allocation437_spill] sm:$0xff]  ;;  %v8550_v48 = vld [vmem:[#allocation2 + $0x258] sm:$0xff] }
 0x906   :  { %5881 = vrot.lane.b32.xlu1 %v4476_v60, %s8573_s11  ;;  %v7081_v24 = vsel %vm3190_vm8, %v7017_v42, %v6100_v45  ;;  %v6892_v23 = vsel %vm2995_vm5, %v6828_v47, %v15633_v8  ;;  %v6955_v45 = vsel %vm3060_vm6, %v6891_v34, %v15634_v18  ;;  %v15648_v50 = vld [vmem:[#allocation443_spill] sm:$0xff]  ;;  %v15651_v8 = vld [vmem:[#allocation13_spill] sm:$0xff] }
 0x907   :  { %6645 = vrot.lane.b32.xlu0 %v4476_v60, %s8576_s1  ;;  %v15635_v60 = vld [vmem:[#allocation379_spill] sm:$0xff]  ;;  %v7019_v0 = vsel %vm3125_vm7, %v6955_v45, %v15636_v30 }
 0x908   :  { %v6358_v37 = vpop.permute.xlu1 %6357  ;;  %v6956_v25 = vsel %vm3060_vm6, %v6892_v23, %v15635_v60 }
 0x909   :  { %v6356_v27 = vpop.permute.xlu0 %6355  ;;  %v7146_v4 = vsel %vm3255_vm9, %v7082_v51, %v6358_v37  ;;  %v7020_v2 = vsel %vm3125_vm7, %v6956_v25, %v15637_v58  ;;  %v15638_v37 = vld [vmem:[#allocation12_spill] sm:$0xff] }
 0x90a   :  { %6137 = vrot.lane.b32.xlu1 %v4540_v11, %s8574_s12  ;;  %v7145_v20 = vsel %vm3255_vm9, %v7081_v24, %v6356_v27  ;;  %v15640_v24 = vld [vmem:[#allocation412_spill] sm:$0xff] }
 0x90b   :  { %v8338_v63 = vpop.f32.mrb[6].mxu1  ;;  %6135 = vrot.lane.b32.xlu0 %v4539_v54, %s8574_s12 }
 0x90c   :  { %v7818_v49 = vadd.f32 %v8338_v63, %v15626_v13  ;;  %v6614_v29 = vpop.permute.xlu1 %6613  ;;  %v7522_v41 = vpop.f32.mrb[7].mxu1  ;;  %v4605_v63 = vld [vmem:[#allocation2 + $0x349] sm:$0xff]  ;;  %v6765_v13 = vsel %vm88_vm0, %v8550_v48, %v15640_v24 }
 0x90d   :  { %v7817_v61 = vadd.f32 %v7522_v41, %v15627_v15  ;;  %v6612_v19 = vpop.permute.xlu0 %6611  ;;  %v7210_v33 = vsel %vm3320_vm10, %v7146_v4, %v6614_v29  ;;  %v8551_v29 = vld [vmem:[#allocation2 + $0x260] sm:$0xff]  ;;  %v15641_v41 = vld [vmem:[#allocation238_spill] sm:$0xff]  ;;  %v15661_v24 = vld [vmem:[#allocation213_spill] sm:$0xff] }
 0x90e   :  { %7882 = vst.msk [vmem:[%s14245_s3 + $0x38] sm:$0xff] %vm88_vm0, %v7818_v49  ;;  %v7209_v62 = vsel %vm3320_vm10, %v7145_v20, %v6612_v19  ;;  %6393 = vrot.lane.b32.xlu1 %v4604_v52, %s8575_s13  ;;  %v4670_v49 = vld [vmem:[#allocation2 + $0x352] sm:$0xff]  ;;  %v6766_v51 = vsel %vm88_vm0, %v8551_v29, %v15641_v41  ;;  %v15642_v20 = vld [vmem:[#allocation247_spill] sm:$0xff]  ;;  %v4669_v19 = vld [vmem:[#allocation2 + $0x34a] sm:$0xff] }
 0x90f   :  { %7881 = vst.msk [vmem:[%s14245_s3 + $0x30] sm:$0xff] %vm88_vm0, %v7817_v61  ;;  %6391 = vrot.lane.b32.xlu0 %v4603_v12, %s8575_s13  ;;  %8390 = vmatprep.mubr.msk.f32.mxu1 %vm3385_vm11, %v7209_v62  ;;  %v6829_v15 = vsel %vm2930_vm4, %v6765_v13, %v15642_v20  ;;  %v15643_v52 = vld [vmem:[#allocation75_spill] sm:$0xff]  ;;  %v15644_v62 = vld [vmem:[#allocation84_spill] sm:$0xff] }
 0x910   :  { %v6106_v36 = vpop.permute.xlu1 %6105  ;;  %8391 = vmatmul.mubr.msk.f32.gmra.mrb[42].mxu1 %vm3385_vm11, %v7210_v33  ;;  %v6830_v4 = vsel %vm2930_vm4, %v6766_v51, %v15643_v52  ;;  %v6893_v12 = vsel %vm2995_vm5, %v6829_v15, %v15644_v62  ;;  %v15662_v29 = vld [vmem:[#allocation16_spill] sm:$0xff] }
 0x911   :  { %v6104_v17 = vpop.permute.xlu0 %6103  ;;  %v7084_v27 = vsel %vm3190_vm8, %v7020_v2, %v6106_v36  ;;  %v15645_v36 = vld [vmem:[#allocation312_spill] sm:$0xff]  ;;  %v8553_v2 = vld [vmem:[#allocation2 + $0x278] sm:$0xff] }
 0x912   :  { %5883 = vrot.lane.b32.xlu1 %v4477_v32, %s8573_s11  ;;  %v7083_v5 = vsel %vm3190_vm8, %v7019_v0, %v6104_v17  ;;  %v6894_v17 = vsel %vm2995_vm5, %v6830_v4, %v15645_v36 }
 0x913   :  { %6647 = vrot.lane.b32.xlu0 %v4477_v32, %s8576_s1  ;;  %v15646_v32 = vld [vmem:[#allocation264_spill] sm:$0xff]  ;;  %v6958_v10 = vsel %vm3060_vm6, %v6894_v17, %v15647_v53 }
 0x914   :  { %v6362_v9 = vpop.permute.xlu1 %6361  ;;  %v6957_v43 = vsel %vm3060_vm6, %v6893_v12, %v15646_v32  ;;  %v7022_v1 = vsel %vm3125_vm7, %v6958_v10, %v15649_v16  ;;  %v8554_v32 = vld [vmem:[#allocation2 + $0x288] sm:$0xff]  ;;  %v8555_v10 = vld [vmem:[#allocation2 + $0x290] sm:$0xff] }
 0x915   :  { %v6360_v14 = vpop.permute.xlu0 %6359  ;;  %v7148_v57 = vsel %vm3255_vm9, %v7084_v27, %v6362_v9  ;;  %v7021_v31 = vsel %vm3125_vm7, %v6957_v43, %v15648_v50  ;;  %v15664_v43 = vld [vmem:[#allocation68_spill] sm:$0xff] }
 0x916   :  { %5885 = vrot.lane.b32.xlu1 %v4478_v22, %s8573_s11  ;;  %v7147_v11 = vsel %vm3255_vm9, %v7083_v5, %v6360_v14  ;;  %v15653_v5 = vld [vmem:[#allocation67_spill] sm:$0xff]  ;;  %v6769_v53 = vsel %vm88_vm0, %v8554_v32, %v15664_v43  ;;  %v15665_v50 = vld [vmem:[#allocation296_spill] sm:$0xff] }
 0x917   :  { %v8341_v46 = vpop.f32.mrb[8].mxu1  ;;  %6649 = vrot.lane.b32.xlu0 %v4478_v22, %s8576_s1 }
 0x918   :  { %v7820_v35 = vadd.f32 %v8341_v46, %v15638_v37  ;;  %v6618_v26 = vpop.permute.xlu1 %6617  ;;  %v7532_v56 = vpop.f32.mrb[9].mxu1  ;;  %v8552_v46 = vld [vmem:[#allocation2 + $0x270] sm:$0xff]  ;;  %v6768_v37 = vsel %vm88_vm0, %v8553_v2, %v15653_v5 }
 0x919   :  { %v7819_v39 = vadd.f32 %v7532_v56, %v15639_v28  ;;  %v6616_v6 = vpop.permute.xlu0 %6615  ;;  %v7212_v59 = vsel %vm3320_vm10, %v7148_v57, %v6618_v26 }
 0x91a   :  { %7884 = vst.msk [vmem:[%s14245_s3 + $0x48] sm:$0xff] %vm88_vm0, %v7820_v35  ;;  %v7211_v54 = vsel %vm3320_vm10, %v7147_v11, %v6616_v6  ;;  %6141 = vrot.lane.b32.xlu1 %v4542_v44, %s8574_s12  ;;  %v15652_v44 = vld [vmem:[#allocation239_spill] sm:$0xff]  ;;  %v15654_v35 = vld [vmem:[#allocation76_spill] sm:$0xff]  ;;  %v15656_v11 = vld [vmem:[#allocation313_spill] sm:$0xff] }
 0x91b   :  { %7883 = vst.msk [vmem:[%s14245_s3 + $0x40] sm:$0xff] %vm88_vm0, %v7819_v39  ;;  %6139 = vrot.lane.b32.xlu0 %v4541_v55, %s8574_s12  ;;  %8393 = vmatprep.mubr.msk.f32.mxu1 %vm3385_vm11, %v7211_v54  ;;  %v6767_v58 = vsel %vm88_vm0, %v8552_v46, %v15652_v44  ;;  %v15655_v55 = vld [vmem:[#allocation304_spill] sm:$0xff]  ;;  %v15657_v6 = vld [vmem:[#allocation142_spill] sm:$0xff]  ;;  %v15658_v54 = vld [vmem:[#allocation95_spill] sm:$0xff] }
 0x91c   :  { %v6110_v42 = vpop.permute.xlu1 %6109  ;;  %8394 = vmatmul.mubr.msk.f32.gmra.mrb[44].mxu1 %vm3385_vm11, %v7212_v59  ;;  %v6831_v26 = vsel %vm2930_vm4, %v6767_v58, %v15654_v35  ;;  %v6832_v27 = vsel %vm2930_vm4, %v6768_v37, %v15655_v55  ;;  %v15674_v58 = vld [vmem:[#allocation18_spill] sm:$0xff] }
 0x91d   :  { %v6108_v21 = vpop.permute.xlu0 %6107  ;;  %v7086_v14 = vsel %vm3190_vm8, %v7022_v1, %v6110_v42  ;;  %v6895_v28 = vsel %vm2995_vm5, %v6831_v26, %v15656_v11  ;;  %v6896_v57 = vsel %vm2995_vm5, %v6832_v27, %v15657_v6 }
 0x91e   :  { %6397 = vrot.lane.b32.xlu1 %v4606_v3, %s8575_s13  ;;  %v7085_v9 = vsel %vm3190_vm8, %v7021_v31, %v6108_v21  ;;  %v6959_v59 = vsel %vm3060_vm6, %v6895_v28, %v15658_v54  ;;  %v15659_v3 = vld [vmem:[#allocation438_spill] sm:$0xff]  ;;  %v6770_v31 = vsel %vm88_vm0, %v8555_v10, %v15665_v50  ;;  %v8556_v54 = vld [vmem:[#allocation2 + $0x2a0] sm:$0xff] }
 0x91f   :  { %6395 = vrot.lane.b32.xlu0 %v4605_v63, %s8575_s13  ;;  %v6960_v42 = vsel %vm3060_vm6, %v6896_v57, %v15659_v3  ;;  %v15660_v63 = vld [vmem:[#allocation270_spill] sm:$0xff] }
 0x920   :  { %v6366_v61 = vpop.permute.xlu1 %6365  ;;  %v7023_v21 = vsel %vm3125_vm7, %v6959_v59, %v15660_v63  ;;  %v7024_v13 = vsel %vm3125_vm7, %v6960_v42, %v15661_v24  ;;  %v15676_v59 = vld [vmem:[#allocation297_spill] sm:$0xff]  ;;  %v8557_v42 = vld [vmem:[#allocation2 + $0x2a8] sm:$0xff]  ;;  %v15677_v63 = vld [vmem:[#allocation126_spill] sm:$0xff] }
 0x921   :  { %v6364_v33 = vpop.permute.xlu0 %6363  ;;  %v7150_v45 = vsel %vm3255_vm9, %v7086_v14, %v6366_v61  ;;  %v15669_v14 = vld [vmem:[#allocation370_spill] sm:$0xff]  ;;  %v6771_v3 = vsel %vm88_vm0, %v8556_v54, %v15676_v59  ;;  %v15696_v54 = vld [vmem:[#allocation429_spill] sm:$0xff] }
 0x922   :  { %6653 = vrot.lane.b32.xlu1 %v4670_v49, %s8576_s1  ;;  %v7149_v22 = vsel %vm3255_vm9, %v7085_v9, %v6364_v33  ;;  %v15667_v9 = vld [vmem:[#allocation134_spill] sm:$0xff] }
 0x923   :  { %v8344_v40 = vpop.f32.mrb[10].mxu1  ;;  %6651 = vrot.lane.b32.xlu0 %v4669_v19, %s8576_s1  ;;  %v15663_v19 = vld [vmem:[#allocation15_spill] sm:$0xff] }
 0x924   :  { %v7822_v47 = vadd.f32 %v8344_v40, %v15650_v7  ;;  %v6622_v38 = vpop.permute.xlu1 %6621  ;;  %v7542_v34 = vpop.f32.mrb[11].mxu1  ;;  %v15666_v40 = vld [vmem:[#allocation305_spill] sm:$0xff]  ;;  %v6834_v7 = vsel %vm2930_vm4, %v6770_v31, %v15667_v9 }
 0x925   :  { %v7821_v23 = vadd.f32 %v7542_v34, %v15651_v8  ;;  %v6620_v18 = vpop.permute.xlu0 %6619  ;;  %v7214_v25 = vsel %vm3320_vm10, %v7150_v45, %v6622_v38  ;;  %v6833_v16 = vsel %vm2930_vm4, %v6769_v53, %v15666_v40  ;;  %v15670_v8 = vld [vmem:[#allocation322_spill] sm:$0xff]  ;;  %v15686_v53 = vld [vmem:[#allocation20_spill] sm:$0xff] }
 0x926   :  { %7886 = vst.msk [vmem:[%s14245_s3 + $0x58] sm:$0xff] %vm88_vm0, %v7822_v47  ;;  %v7213_v60 = vsel %vm3320_vm10, %v7149_v22, %v6620_v18  ;;  %v15668_v47 = vld [vmem:[#allocation143_spill] sm:$0xff]  ;;  %v6898_v22 = vsel %vm2995_vm5, %v6834_v7, %v15669_v14  ;;  %v15671_v18 = vld [vmem:[#allocation265_spill] sm:$0xff] }
 0x927   :  { %7885 = vst.msk [vmem:[%s14245_s3 + $0x50] sm:$0xff] %vm88_vm0, %v7821_v23  ;;  %8396 = vmatprep.mubr.msk.f32.mxu1 %vm3385_vm11, %v7213_v60  ;;  %v6897_v38 = vsel %vm2995_vm5, %v6833_v16, %v15668_v47  ;;  %v6962_v45 = vsel %vm3060_vm6, %v6898_v22, %v15671_v18  ;;  %v15672_v60 = vld [vmem:[#allocation101_spill] sm:$0xff] }
 0x928   :  { %v6114_v30 = vpop.permute.xlu1 %6113  ;;  %8397 = vmatmul.mubr.msk.f32.gmra.mrb[46].mxu1 %vm3385_vm11, %v7214_v25  ;;  %v6961_v23 = vsel %vm3060_vm6, %v6897_v38, %v15670_v8  ;;  %v8558_v8 = vld [vmem:[#allocation2 + $0x2b8] sm:$0xff] }
 0x929   :  { %v6112_v0 = vpop.permute.xlu0 %6111  ;;  %v7088_v15 = vsel %vm3190_vm8, %v7024_v13, %v6114_v30  ;;  %v7025_v25 = vsel %vm3125_vm7, %v6961_v23, %v15672_v60  ;;  %v15688_v23 = vld [vmem:[#allocation127_spill] sm:$0xff] }
 0x92a   :  { %v7087_v49 = vsel %vm3190_vm8, %v7023_v21, %v6112_v0  ;;  %v15673_v0 = vld [vmem:[#allocation444_spill] sm:$0xff]  ;;  %v6772_v21 = vsel %vm88_vm0, %v8557_v42, %v15677_v63  ;;  %v6773_v18 = vsel %vm88_vm0, %v8558_v8, %v15688_v23  ;;  %v15697_v42 = vld [vmem:[#allocation21_spill] sm:$0xff] }
 0x92b   :  { %v7026_v46 = vsel %vm3125_vm7, %v6962_v45, %v15673_v0  ;;  %v15689_v45 = vld [vmem:[#allocation363_spill] sm:$0xff] }
 0x92c   :  { %v6370_v56 = vpop.permute.xlu1 %6369  ;;  %v6837_v60 = vsel %vm2930_vm4, %v6773_v18, %v15689_v45  ;;  %v15708_v45 = vld [vmem:[#allocation256_spill] sm:$0xff] }
 0x92d   :  { %v6368_v39 = vpop.permute.xlu0 %6367  ;;  %v7152_v62 = vsel %vm3255_vm9, %v7088_v15, %v6370_v56  ;;  %v15675_v56 = vld [vmem:[#allocation17_spill] sm:$0xff]  ;;  %v15681_v15 = vld [vmem:[#allocation198_spill] sm:$0xff] }
 0x92e   :  { %v7151_v61 = vsel %vm3255_vm9, %v7087_v49, %v6368_v39  ;;  %v15679_v49 = vld [vmem:[#allocation362_spill] sm:$0xff] }
 0x92f   :  { %v8347_v48 = vpop.f32.mrb[12].mxu1 }
 0x930   :  { %v7824_v41 = vadd.f32 %v8347_v48, %v15662_v29  ;;  %v6626_v51 = vpop.permute.xlu1 %6625  ;;  %v7552_v20 = vpop.f32.mrb[13].mxu1  ;;  %v15678_v48 = vld [vmem:[#allocation135_spill] sm:$0xff]  ;;  %v6836_v29 = vsel %vm2930_vm4, %v6772_v21, %v15679_v49  ;;  %v15699_v49 = vld [vmem:[#allocation102_spill] sm:$0xff] }
 0x931   :  { %v7823_v52 = vadd.f32 %v7552_v20, %v15663_v19  ;;  %v6624_v4 = vpop.permute.xlu0 %6623  ;;  %v7216_v33 = vsel %vm3320_vm10, %v7152_v62, %v6626_v51  ;;  %v6835_v24 = vsel %vm2930_vm4, %v6771_v3, %v15678_v48  ;;  %v15682_v19 = vld [vmem:[#allocation152_spill] sm:$0xff]  ;;  %v15698_v48 = vld [vmem:[#allocation323_spill] sm:$0xff] }
 0x932   :  { %7888 = vst.msk [vmem:[%s14245_s3 + $0x68] sm:$0xff] %vm88_vm0, %v7824_v41  ;;  %v7215_v12 = vsel %vm3320_vm10, %v7151_v61, %v6624_v4  ;;  %v15680_v41 = vld [vmem:[#allocation371_spill] sm:$0xff]  ;;  %v6900_v61 = vsel %vm2995_vm5, %v6836_v29, %v15681_v15  ;;  %v15683_v4 = vld [vmem:[#allocation96_spill] sm:$0xff] }
 0x933   :  { %7887 = vst.msk [vmem:[%s14245_s3 + $0x60] sm:$0xff] %vm88_vm0, %v7823_v52  ;;  %8399 = vmatprep.mubr.msk.f32.mxu1 %vm3385_vm11, %v7215_v12  ;;  %v6899_v51 = vsel %vm2995_vm5, %v6835_v24, %v15680_v41  ;;  %v6964_v62 = vsel %vm3060_vm6, %v6900_v61, %v15683_v4  ;;  %v15684_v12 = vld [vmem:[#allocation328_spill] sm:$0xff]  ;;  %v8560_v4 = vld [vmem:[#allocation2 + $0x2d0] sm:$0xff] }
 0x934   :  { %v6118_v36 = vpop.permute.xlu1 %6117  ;;  %8400 = vmatmul.mubr.msk.f32.gmra.mrb[48].mxu1 %vm3385_vm11, %v7216_v33  ;;  %v6963_v52 = vsel %vm3060_vm6, %v6899_v51, %v15682_v19 }
 0x935   :  { %v6116_v17 = vpop.permute.xlu0 %6115  ;;  %v7090_v35 = vsel %vm3190_vm8, %v7026_v46, %v6118_v36  ;;  %v7027_v33 = vsel %vm3125_vm7, %v6963_v52, %v15684_v12 }
 0x936   :  { %v7089_v44 = vsel %vm3190_vm8, %v7025_v25, %v6116_v17  ;;  %v15685_v17 = vld [vmem:[#allocation271_spill] sm:$0xff] }
 0x937   :  { %v7028_v32 = vsel %vm3125_vm7, %v6964_v62, %v15685_v17  ;;  %v15700_v62 = vld [vmem:[#allocation355_spill] sm:$0xff] }
 0x938   :  { %v6374_v1 = vpop.permute.xlu1 %6373  ;;  %v6775_v12 = vsel %vm88_vm0, %v8560_v4, %v15700_v62  ;;  %v15718_v62 = vld [vmem:[#allocation85_spill] sm:$0xff] }
 0x939   :  { %v6372_v34 = vpop.permute.xlu0 %6371  ;;  %v7154_v11 = vsel %vm3255_vm9, %v7090_v35, %v6374_v1  ;;  %v15687_v1 = vld [vmem:[#allocation19_spill] sm:$0xff]  ;;  %v15693_v35 = vld [vmem:[#allocation158_spill] sm:$0xff] }
 0x93a   :  { %v7153_v26 = vsel %vm3255_vm9, %v7089_v44, %v6372_v34  ;;  %v15691_v44 = vld [vmem:[#allocation380_spill] sm:$0xff] }
 0x93b   :  { %v8350_v30 = vpop.f32.mrb[14].mxu1 }
 0x93c   :  { %v7826_v2 = vadd.f32 %v8350_v30, %v15674_v58  ;;  %v6630_v5 = vpop.permute.xlu1 %6629  ;;  %v7562_v37 = vpop.f32.mrb[15].mxu1  ;;  %v15690_v30 = vld [vmem:[#allocation199_spill] sm:$0xff] }
 0x93d   :  { %v7825_v55 = vadd.f32 %v7562_v37, %v15675_v56  ;;  %v6628_v27 = vpop.permute.xlu0 %6627  ;;  %v7218_v39 = vsel %vm3320_vm10, %v7154_v11, %v6630_v5  ;;  %v6901_v0 = vsel %vm2995_vm5, %v6837_v60, %v15690_v30  ;;  %v15692_v5 = vld [vmem:[#allocation354_spill] sm:$0xff] }
 0x93e   :  { %7890 = vst.msk [vmem:[%s14245_s3 + $0x78] sm:$0xff] %vm88_vm0, %v7826_v2  ;;  %v7217_v28 = vsel %vm3320_vm10, %v7153_v26, %v6628_v27  ;;  %v6965_v58 = vsel %vm3060_vm6, %v6901_v0, %v15691_v44  ;;  %v8559_v2 = vld [vmem:[#allocation2 + $0x2c0] sm:$0xff]  ;;  %v15709_v0 = vld [vmem:[#allocation153_spill] sm:$0xff] }
 0x93f   :  { %7889 = vst.msk [vmem:[%s14245_s3 + $0x70] sm:$0xff] %vm88_vm0, %v7825_v55  ;;  %8402 = vmatprep.mubr.msk.f32.mxu1 %vm3385_vm11, %v7217_v28  ;;  %v6774_v37 = vsel %vm88_vm0, %v8559_v2, %v15692_v5  ;;  %v7029_v26 = vsel %vm3125_vm7, %v6965_v58, %v15693_v35  ;;  %v15694_v55 = vld [vmem:[#allocation190_spill] sm:$0xff] }
 0x940   :  { %v6122_v6 = vpop.permute.xlu1 %6121  ;;  %8403 = vmatmul.mubr.msk.f32.gmra.mrb[50].mxu1 %vm3385_vm11, %v7218_v39  ;;  %v6838_v27 = vsel %vm2930_vm4, %v6774_v37, %v15694_v55  ;;  %v15695_v28 = vld [vmem:[#allocation22_spill] sm:$0xff] }
 0x941   :  { %v6120_v57 = vpop.permute.xlu0 %6119  ;;  %v7092_v40 = vsel %vm3190_vm8, %v7028_v32, %v6122_v6  ;;  %v6902_v59 = vsel %vm2995_vm5, %v6838_v27, %v15696_v54  ;;  %v15702_v32 = vld [vmem:[#allocation24_spill] sm:$0xff]  ;;  %v15710_v55 = vld [vmem:[#allocation26_spill] sm:$0xff] }
 0x942   :  { %v7091_v43 = vsel %vm3190_vm8, %v7027_v33, %v6120_v57  ;;  %v6966_v24 = vsel %vm3060_vm6, %v6902_v59, %v15698_v48  ;;  %v8562_v54 = vld [vmem:[#allocation2 + $0x2e8] sm:$0xff]  ;;  %v15712_v59 = vld [vmem:[#allocation183_spill] sm:$0xff]  ;;  %v15714_v48 = vld [vmem:[#allocation257_spill] sm:$0xff] }
 0x943   :  { %v7030_v29 = vsel %vm3125_vm7, %v6966_v24, %v15699_v49  ;;  %v15715_v49 = vld [vmem:[#allocation439_spill] sm:$0xff] }
 0x944   :  { %v6378_v13 = vpop.permute.xlu1 %6377 }
 0x945   :  { %v6376_v20 = vpop.permute.xlu0 %6375  ;;  %v7156_v47 = vsel %vm3255_vm9, %v7092_v40, %v6378_v13  ;;  %v15704_v40 = vld [vmem:[#allocation23_spill] sm:$0xff] }
 0x946   :  { %v7155_v16 = vsel %vm3255_vm9, %v7091_v43, %v6376_v20 }
 0x947   :  { %v8353_v36 = vpop.f32.mrb[16].mxu1 }
 0x948   :  { %v7828_v10 = vadd.f32 %v8353_v36, %v15686_v53  ;;  %v6634_v50 = vpop.permute.xlu1 %6633  ;;  %v7572_v31 = vpop.f32.mrb[17].mxu1  ;;  %v15701_v36 = vld [vmem:[#allocation191_spill] sm:$0xff] }
 0x949   :  { %v7827_v9 = vadd.f32 %v7572_v31, %v15687_v1  ;;  %v6632_v7 = vpop.permute.xlu0 %6631  ;;  %v7220_v34 = vsel %vm3320_vm10, %v7156_v47, %v6634_v50  ;;  %v6839_v17 = vsel %vm2930_vm4, %v6775_v12, %v15701_v36  ;;  %v15703_v50 = vld [vmem:[#allocation430_spill] sm:$0xff] }
 0x94a   :  { %7892 = vst.msk [vmem:[%s14245_s3 + $0x88] sm:$0xff] %vm88_vm0, %v7828_v10  ;;  %v7219_v38 = vsel %vm3320_vm10, %v7155_v16, %v6632_v7  ;;  %v6903_v31 = vsel %vm2995_vm5, %v6839_v17, %v15703_v50  ;;  %v8561_v47 = vld [vmem:[#allocation2 + $0x2d8] sm:$0xff]  ;;  %v15719_v17 = vld [vmem:[#allocation381_spill] sm:$0xff] }
 0x94b   :  { %7891 = vst.msk [vmem:[%s14245_s3 + $0x80] sm:$0xff] %vm88_vm0, %v7827_v9  ;;  %8405 = vmatprep.mubr.msk.f32.mxu1 %vm3385_vm11, %v7219_v38  ;;  %v15705_v9 = vld [vmem:[#allocation208_spill] sm:$0xff]  ;;  %v15706_v38 = vld [vmem:[#allocation182_spill] sm:$0xff] }
 0x94c   :  { %v6126_v14 = vpop.permute.xlu1 %6125  ;;  %8406 = vmatmul.mubr.msk.f32.gmra.mrb[52].mxu1 %vm3385_vm11, %v7220_v34  ;;  %v6967_v7 = vsel %vm3060_vm6, %v6903_v31, %v15705_v9  ;;  %v6776_v34 = vsel %vm88_vm0, %v8561_v47, %v15706_v38  ;;  %v15720_v31 = vld [vmem:[#allocation28_spill] sm:$0xff] }
 0x94d   :  { %v6124_v22 = vpop.permute.xlu0 %6123  ;;  %v7094_v41 = vsel %vm3190_vm8, %v7030_v29, %v6126_v14 }
 0x94e   :  { %v7093_v11 = vsel %vm3190_vm8, %v7029_v26, %v6124_v22  ;;  %v15707_v22 = vld [vmem:[#allocation421_spill] sm:$0xff] }
 0x94f   :  { %v6840_v8 = vsel %vm2930_vm4, %v6776_v34, %v15707_v22 }
 0x950   :  { %v6382_v25 = vpop.permute.xlu1 %6381  ;;  %v6904_v60 = vsel %vm2995_vm5, %v6840_v8, %v15708_v45  ;;  %v8564_v8 = vld [vmem:[#allocation2 + $0x300] sm:$0xff]  ;;  %v15723_v45 = vld [vmem:[#allocation249_spill] sm:$0xff] }
 0x951   :  { %v6380_v46 = vpop.permute.xlu0 %6379  ;;  %v7158_v20 = vsel %vm3255_vm9, %v7094_v41, %v6382_v25  ;;  %v8563_v41 = vld [vmem:[#allocation2 + $0x2f0] sm:$0xff] }
 0x952   :  { %v7157_v3 = vsel %vm3255_vm9, %v7093_v11, %v6380_v46  ;;  %v6968_v46 = vsel %vm3060_vm6, %v6904_v60, %v15709_v0 }
 0x953   :  { %v8356_v56 = vpop.f32.mrb[18].mxu1 }
 0x954   :  { %v7830_v39 = vadd.f32 %v8356_v56, %v15695_v28  ;;  %v5872_v6 = vpop.permute.xlu1 %5871  ;;  %v7582_v57 = vpop.f32.mrb[19].mxu1 }
 0x955   :  { %v7829_v63 = vadd.f32 %v7582_v57, %v15697_v42  ;;  %v6636_v21 = vpop.permute.xlu0 %6635  ;;  %v7031_v14 = vsel %vm3125_vm7, %v6967_v7, %v5872_v6  ;;  %v15713_v42 = vld [vmem:[#allocation422_spill] sm:$0xff]  ;;  %v15721_v7 = vld [vmem:[#allocation27_spill] sm:$0xff] }
 0x956   :  { %7894 = vst.msk [vmem:[%s14245_s3 + $0x98] sm:$0xff] %vm88_vm0, %v7830_v39  ;;  %v7221_v13 = vsel %vm3320_vm10, %v7157_v3, %v6636_v21  ;;  %v15711_v39 = vld [vmem:[#allocation25_spill] sm:$0xff]  ;;  %v6777_v3 = vsel %vm88_vm0, %v8562_v54, %v15712_v59 }
 0x957   :  { %7893 = vst.msk [vmem:[%s14245_s3 + $0x90] sm:$0xff] %vm88_vm0, %v7829_v63  ;;  %8408 = vmatprep.mubr.msk.f32.mxu1 %vm3385_vm11, %v7221_v13  ;;  %v6841_v63 = vsel %vm2930_vm4, %v6777_v3, %v15713_v42  ;;  %v15730_v3 = vld [vmem:[#allocation29_spill] sm:$0xff] }
 0x958   :  { %v5874_v51 = vpop.permute.xlu1 %5873  ;;  %v6905_v24 = vsel %vm2995_vm5, %v6841_v63, %v15714_v48 }
 0x959   :  { %v6638_v15 = vpop.permute.xlu0 %6637  ;;  %v7032_v58 = vsel %vm3125_vm7, %v6968_v46, %v5874_v51  ;;  %v6969_v29 = vsel %vm3060_vm6, %v6905_v24, %v15715_v49  ;;  %v15716_v51 = vld [vmem:[#allocation413_spill] sm:$0xff] }
 0x95a   :  { %v7222_v61 = vsel %vm3320_vm10, %v7158_v20, %v6638_v15  ;;  %v6778_v20 = vsel %vm88_vm0, %v8563_v41, %v15716_v51 }
 0x95b   :  { %8409 = vmatmul.mubr.msk.f32.gmra.mrb[54].mxu1 %vm3385_vm11, %v7222_v61  ;;  %v15717_v61 = vld [vmem:[#allocation248_spill] sm:$0xff] }
 0x95c   :  { %v6130_v19 = vpop.permute.xlu1 %6129 }
 0x95d   :  { %v6128_v52 = vpop.permute.xlu0 %6127  ;;  %v7096_v2 = vsel %vm3190_vm8, %v7032_v58, %v6130_v19  ;;  %v6842_v19 = vsel %vm2930_vm4, %v6778_v20, %v15717_v61 }
 0x95e   :  { %v7095_v23 = vsel %vm3190_vm8, %v7031_v14, %v6128_v52  ;;  %v6906_v12 = vsel %vm2995_vm5, %v6842_v19, %v15718_v62  ;;  %v8566_v19 = vld [vmem:[#allocation2 + $0x318] sm:$0xff] }
 0x95f   :  { %v8359_v33 = vpop.f32.mrb[20].mxu1 }
 0x960   :  { %v7832_v43 = vadd.f32 %v8359_v33, %v15702_v32  ;;  %v6386_v53 = vpop.permute.xlu1 %6385  ;;  %v7592_v10 = vpop.f32.mrb[21].mxu1  ;;  %v6970_v32 = vsel %vm3060_vm6, %v6906_v12, %v15719_v17  ;;  %v8567_v12 = vld [vmem:[#allocation2 + $0x320] sm:$0xff]  ;;  %v15734_v17 = vld [vmem:[#allocation78_spill] sm:$0xff] }
 0x961   :  { %v7831_v16 = vadd.f32 %v7592_v10, %v15704_v40  ;;  %v6384_v1 = vpop.permute.xlu0 %6383  ;;  %v7160_v37 = vsel %vm3255_vm9, %v7096_v2, %v6386_v53  ;;  %v8565_v2 = vld [vmem:[#allocation2 + $0x308] sm:$0xff] }
 0x962   :  { %7896 = vst.msk [vmem:[%s14245_s3 + $0xa8] sm:$0xff] %vm88_vm0, %v7832_v43  ;;  %v7159_v25 = vsel %vm3255_vm9, %v7095_v23, %v6384_v1  ;;  %v15722_v23 = vld [vmem:[#allocation414_spill] sm:$0xff] }
 0x963   :  { %7895 = vst.msk [vmem:[%s14245_s3 + $0xa0] sm:$0xff] %vm88_vm0, %v7831_v16 }
 0x964   :  { %v5876_v18 = vpop.permute.xlu1 %5875 }
 0x965   :  { %v6640_v30 = vpop.permute.xlu0 %6639  ;;  %v7033_v15 = vsel %vm3125_vm7, %v6969_v29, %v5876_v18  ;;  %v6779_v18 = vsel %vm88_vm0, %v8564_v8, %v15722_v23  ;;  %v15741_v8 = vld [vmem:[#allocation440_spill] sm:$0xff] }
 0x966   :  { %v7223_v44 = vsel %vm3320_vm10, %v7159_v25, %v6640_v30  ;;  %v6843_v60 = vsel %vm2930_vm4, %v6779_v18, %v15723_v45  ;;  %v15724_v30 = vld [vmem:[#allocation88_spill] sm:$0xff] }
 0x967   :  { %8411 = vmatprep.mubr.msk.f32.mxu1 %vm3385_vm11, %v7223_v44  ;;  %v6907_v0 = vsel %vm2995_vm5, %v6843_v60, %v15724_v30  ;;  %v15725_v44 = vld [vmem:[#allocation266_spill] sm:$0xff] }
 0x968   :  { %v5878_v5 = vpop.permute.xlu1 %5877  ;;  %v6971_v58 = vsel %vm3060_vm6, %v6907_v0, %v15725_v44 }
 0x969   :  { %v6642_v35 = vpop.permute.xlu0 %6641  ;;  %v7034_v53 = vsel %vm3125_vm7, %v6970_v32, %v5878_v5  ;;  %v15726_v5 = vld [vmem:[#allocation240_spill] sm:$0xff] }
 0x96a   :  { %v7224_v26 = vsel %vm3320_vm10, %v7160_v37, %v6642_v35  ;;  %v6780_v37 = vsel %vm88_vm0, %v8565_v2, %v15726_v5 }
 0x96b   :  { %v8362_v56 = vpop.f32.mrb[22].mxu1  ;;  %8412 = vmatmul.mubr.msk.f32.gmra.mrb[56].mxu1 %vm3385_vm11, %v7224_v26 }
 0x96c   :  { %v7834_v27 = vadd.f32 %v8362_v56, %v15710_v55  ;;  %v6134_v11 = vpop.permute.xlu1 %6133  ;;  %v7602_v28 = vpop.f32.mrb[23].mxu1  ;;  %v15727_v56 = vld [vmem:[#allocation77_spill] sm:$0xff] }
 0x96d   :  { %v7833_v6 = vadd.f32 %v7602_v28, %v15711_v39  ;;  %v6132_v57 = vpop.permute.xlu0 %6131  ;;  %v7098_v50 = vsel %vm3190_vm8, %v7034_v53, %v6134_v11  ;;  %v6844_v55 = vsel %vm2930_vm4, %v6780_v37, %v15727_v56  ;;  %v15728_v11 = vld [vmem:[#allocation30_spill] sm:$0xff]  ;;  %v15742_v37 = vld [vmem:[#allocation87_spill] sm:$0xff] }
 0x96e   :  { %7898 = vst.msk [vmem:[%s14245_s3 + $0xb8] sm:$0xff] %vm88_vm0, %v7834_v27  ;;  %v7097_v52 = vsel %vm3190_vm8, %v7033_v15, %v6132_v57  ;;  %v15729_v57 = vld [vmem:[#allocation314_spill] sm:$0xff] }
 0x96f   :  { %7897 = vst.msk [vmem:[%s14245_s3 + $0xb0] sm:$0xff] %vm88_vm0, %v7833_v6  ;;  %v6908_v54 = vsel %vm2995_vm5, %v6844_v55, %v15729_v57  ;;  %v15743_v56 = vld [vmem:[#allocation86_spill] sm:$0xff] }
 0x970   :  { %v6390_v21 = vpop.permute.xlu1 %6389 }
 0x971   :  { %v6388_v13 = vpop.permute.xlu0 %6387  ;;  %v7162_v9 = vsel %vm3255_vm9, %v7098_v50, %v6390_v21  ;;  %v15731_v21 = vld [vmem:[#allocation209_spill] sm:$0xff] }
 0x972   :  { %v7161_v33 = vsel %vm3255_vm9, %v7097_v52, %v6388_v13  ;;  %v6972_v48 = vsel %vm3060_vm6, %v6908_v54, %v15731_v21  ;;  %v15732_v52 = vld [vmem:[#allocation241_spill] sm:$0xff] }
 0x974   :  { %v5880_v4 = vpop.permute.xlu1 %5879 }
 0x975   :  { %v6644_v36 = vpop.permute.xlu0 %6643  ;;  %v7035_v35 = vsel %vm3125_vm7, %v6971_v58, %v5880_v4  ;;  %v6781_v4 = vsel %vm88_vm0, %v8566_v19, %v15732_v52  ;;  %v15751_v19 = vld [vmem:[#allocation39_spill] sm:$0xff] }
 0x976   :  { %v7225_v43 = vsel %vm3320_vm10, %v7161_v33, %v6644_v36  ;;  %v15733_v33 = vld [vmem:[#allocation69_spill] sm:$0xff]  ;;  %v6845_v32 = vsel %vm2930_vm4, %v6781_v4, %v15734_v17 }
 0x977   :  { %v8365_v10 = vpop.f32.mrb[24].mxu1  ;;  %8414 = vmatprep.mubr.msk.f32.mxu1 %vm3385_vm11, %v7225_v43  ;;  %v6782_v36 = vsel %vm88_vm0, %v8567_v12, %v15733_v33  ;;  %v15735_v43 = vld [vmem:[#allocation32_spill] sm:$0xff] }
 0x978   :  { %v7836_v40 = vadd.f32 %v8365_v10, %v15720_v31  ;;  %v5882_v16 = vpop.permute.xlu1 %5881  ;;  %v7612_v1 = vpop.f32.mrb[25].mxu1  ;;  %v15736_v31 = vld [vmem:[#allocation306_spill] sm:$0xff] }
 0x979   :  { %v7835_v47 = vadd.f32 %v7612_v1, %v15721_v7  ;;  %v6646_v38 = vpop.permute.xlu0 %6645  ;;  %v7036_v13 = vsel %vm3125_vm7, %v6972_v48, %v5882_v16  ;;  %v15737_v16 = vld [vmem:[#allocation315_spill] sm:$0xff] }
 0x97a   :  { %7900 = vst.msk [vmem:[%s14245_s3 + $0xc8] sm:$0xff] %vm88_vm0, %v7836_v40  ;;  %v7226_v34 = vsel %vm3320_vm10, %v7162_v9, %v6646_v38  ;;  %v6846_v40 = vsel %vm2930_vm4, %v6782_v36, %v15736_v31  ;;  %v6909_v1 = vsel %vm2995_vm5, %v6845_v32, %v15737_v16  ;;  %v15738_v9 = vld [vmem:[#allocation31_spill] sm:$0xff]  ;;  %v15739_v38 = vld [vmem:[#allocation144_spill] sm:$0xff]  ;;  %v15753_v36 = vld [vmem:[#allocation41_spill] sm:$0xff] }
 0x97b   :  { %7899 = vst.msk [vmem:[%s14245_s3 + $0xc0] sm:$0xff] %vm88_vm0, %v7835_v47  ;;  %8415 = vmatmul.mubr.msk.f32.gmra.mrb[58].mxu1 %vm3385_vm11, %v7226_v34  ;;  %v6910_v34 = vsel %vm2995_vm5, %v6846_v40, %v15739_v38  ;;  %v15756_v16 = vld [vmem:[#allocation46_spill] sm:$0xff] }
 0x97c   :  { %v6138_v14 = vpop.permute.xlu1 %6137  ;;  %v6974_v23 = vsel %vm3060_vm6, %v6910_v34, %v15741_v8  ;;  %v15758_v34 = vld [vmem:[#allocation48_spill] sm:$0xff]  ;;  %v15759_v8 = vld [vmem:[#allocation47_spill] sm:$0xff] }
 0x97d   :  { %v6136_v22 = vpop.permute.xlu0 %6135  ;;  %v7100_v49 = vsel %vm3190_vm8, %v7036_v13, %v6138_v14  ;;  %v15740_v14 = vld [vmem:[#allocation97_spill] sm:$0xff] }
 0x97e   :  { %v7099_v27 = vsel %vm3190_vm8, %v7035_v35, %v6136_v22  ;;  %v6973_v22 = vsel %vm3060_vm6, %v6909_v1, %v15740_v14 }
 0x980   :  { %v6394_v25 = vpop.permute.xlu1 %6393 }
 0x981   :  { %v6392_v46 = vpop.permute.xlu0 %6391  ;;  %v7164_v41 = vsel %vm3255_vm9, %v7100_v49, %v6394_v25 }
 0x982   :  { %v7163_v59 = vsel %vm3255_vm9, %v7099_v27, %v6392_v46 }
 0x983   :  { %v8368_v26 = vpop.f32.mrb[26].mxu1 }
 0x984   :  { %v7838_v28 = vadd.f32 %v8368_v26, %v15728_v11  ;;  %v5884_v39 = vpop.permute.xlu1 %5883  ;;  %v7622_v6 = vpop.f32.mrb[27].mxu1  ;;  %v15744_v11 = vld [vmem:[#allocation34_spill] sm:$0xff] }
 0x985   :  { %v7837_v42 = vadd.f32 %v7622_v6, %v15730_v3  ;;  %v6648_v63 = vpop.permute.xlu0 %6647  ;;  %v7037_v18 = vsel %vm3125_vm7, %v6973_v22, %v5884_v39  ;;  %v15745_v6 = vld [vmem:[#allocation33_spill] sm:$0xff] }
 0x986   :  { %7902 = vst.msk [vmem:[%s14245_s3 + $0xd8] sm:$0xff] %vm88_vm0, %v7838_v28  ;;  %v7227_v24 = vsel %vm3320_vm10, %v7163_v59, %v6648_v63  ;;  %v15746_v59 = vld [vmem:[#allocation36_spill] sm:$0xff]  ;;  %v15747_v63 = vld [vmem:[#allocation35_spill] sm:$0xff] }
 0x987   :  { %7901 = vst.msk [vmem:[%s14245_s3 + $0xd0] sm:$0xff] %vm88_vm0, %v7837_v42  ;;  %8417 = vmatprep.mubr.msk.f32.mxu1 %vm3385_vm11, %v7227_v24  ;;  %v15748_v24 = vld [vmem:[#allocation38_spill] sm:$0xff] }
 0x988   :  { %v5886_v29 = vpop.permute.xlu1 %5885 }
 0x989   :  { %v6650_v51 = vpop.permute.xlu0 %6649  ;;  %v7038_v45 = vsel %vm3125_vm7, %v6974_v23, %v5886_v29  ;;  %v15749_v29 = vld [vmem:[#allocation37_spill] sm:$0xff] }
 0x98a   :  { %v7228_v20 = vsel %vm3320_vm10, %v7164_v41, %v6650_v51 }
 0x98b   :  { %8418 = vmatmul.mubr.msk.f32.gmra.mrb[60].mxu1 %vm3385_vm11, %v7228_v20  ;;  %v15750_v20 = vld [vmem:[#allocation40_spill] sm:$0xff] }
 0x98c   :  { %v6142_v15 = vpop.permute.xlu1 %6141 }
 0x98d   :  { %v6140_v61 = vpop.permute.xlu0 %6139  ;;  %v7102_v30 = vsel %vm3190_vm8, %v7038_v45, %v6142_v15  ;;  %v15760_v45 = vld [vmem:[#allocation50_spill] sm:$0xff] }
 0x98e   :  { %v7101_v60 = vsel %vm3190_vm8, %v7037_v18, %v6140_v61 }
 0x98f   :  { %v8371_v62 = vpop.f32.mrb[28].mxu1 }
 0x990   :  { %v7840_v53 = vadd.f32 %v8371_v62, %v15735_v43  ;;  %v6398_v10 = vpop.permute.xlu1 %6397  ;;  %v7632_v50 = vpop.f32.mrb[29].mxu1  ;;  %v15752_v62 = vld [vmem:[#allocation42_spill] sm:$0xff]  ;;  %v15754_v43 = vld [vmem:[#allocation44_spill] sm:$0xff] }
 0x991   :  { %v7839_v7 = vadd.f32 %v7632_v50, %v15738_v9  ;;  %v6396_v47 = vpop.permute.xlu0 %6395  ;;  %v7166_v44 = vsel %vm3255_vm9, %v7102_v30, %v6398_v10  ;;  %v15755_v50 = vld [vmem:[#allocation43_spill] sm:$0xff]  ;;  %v15761_v30 = vld [vmem:[#allocation49_spill] sm:$0xff] }
 0x992   :  { %7904 = vst.msk [vmem:[%s14245_s3 + $0xe8] sm:$0xff] %vm88_vm0, %v7840_v53  ;;  %v7165_v0 = vsel %vm3255_vm9, %v7101_v60, %v6396_v47 }
 0x993   :  { %7903 = vst.msk [vmem:[%s14245_s3 + $0xe0] sm:$0xff] %vm88_vm0, %v7839_v7  ;;  %v15757_v7 = vld [vmem:[#allocation45_spill] sm:$0xff] }
 0x994   :  { %v6654_v25 = vpop.permute.xlu1 %6653 }
 0x995   :  { %v6652_v46 = vpop.permute.xlu0 %6651  ;;  %v7230_v2 = vsel %vm3320_vm10, %v7166_v44, %v6654_v25  ;;  %v15762_v44 = vld [vmem:[#allocation52_spill] sm:$0xff] }
 0x996   :  { %v7229_v58 = vsel %vm3320_vm10, %v7165_v0, %v6652_v46 }
 0x997   :  { %8420 = vmatprep.mubr.msk.f32.mxu1 %vm3385_vm11, %v7229_v58 }
 0x998   :  { %8421 = vmatmul.mubr.msk.f32.gmra.mrb[62].mxu1 %vm3385_vm11, %v7230_v2 }
 0x99b   :  { %v8374_v5 = vpop.f32.mrb[30].mxu1 }
 0x99c   :  { %v7842_v35 = vadd.f32 %v8374_v5, %v15742_v37  ;;  %v7642_v26 = vpop.f32.mrb[31].mxu1  ;;  %v15763_v5 = vld [vmem:[#allocation51_spill] sm:$0xff] }
 0x99d   :  { %v7841_v55 = vadd.f32 %v7642_v26, %v15743_v56  ;;  %v15764_v26 = vld [vmem:[#allocation54_spill] sm:$0xff] }
 0x99e   :  { %7906 = vst.msk [vmem:[%s14245_s3 + $0xf8] sm:$0xff] %vm88_vm0, %v7842_v35 }
 0x99f   :  { %7905 = vst.msk [vmem:[%s14245_s3 + $0xf0] sm:$0xff] %vm88_vm0, %v7841_v55 }
 0x9a7   :  { %v8377_v27 = vpop.f32.mrb[32].mxu1 }
 0x9a8   :  { %v7844_v28 = vadd.f32 %v8377_v27, %v15744_v11  ;;  %v7652_v39 = vpop.f32.mrb[33].mxu1  ;;  %v15765_v27 = vld [vmem:[#allocation53_spill] sm:$0xff] }
 0x9a9   :  { %v7843_v57 = vadd.f32 %v7652_v39, %v15745_v6  ;;  %v15766_v39 = vld [vmem:[#allocation56_spill] sm:$0xff] }
 0x9aa   :  { %7908 = vst.msk [vmem:[%s14245_s3 + $0x108] sm:$0xff] %vm88_vm0, %v7844_v28 }
 0x9ab   :  { %7907 = vst.msk [vmem:[%s14245_s3 + $0x100] sm:$0xff] %vm88_vm0, %v7843_v57 }
 0x9b3   :  { %v8380_v54 = vpop.f32.mrb[34].mxu1 }
 0x9b4   :  { %v7846_v3 = vadd.f32 %v8380_v54, %v15746_v59  ;;  %v7662_v42 = vpop.f32.mrb[35].mxu1  ;;  %v15767_v54 = vld [vmem:[#allocation55_spill] sm:$0xff] }
 0x9b5   :  { %v7845_v21 = vadd.f32 %v7662_v42, %v15747_v63  ;;  %v15768_v42 = vld [vmem:[#allocation58_spill] sm:$0xff] }
 0x9b6   :  { %7910 = vst.msk [vmem:[%s14245_s3 + $0x118] sm:$0xff] %vm88_vm0, %v7846_v3 }
 0x9b7   :  { %7909 = vst.msk [vmem:[%s14245_s3 + $0x110] sm:$0xff] %vm88_vm0, %v7845_v21 }
 0x9bf   :  { %v8383_v48 = vpop.f32.mrb[36].mxu1 }
 0x9c0   :  { %v7848_v13 = vadd.f32 %v8383_v48, %v15748_v24  ;;  %v7672_v49 = vpop.f32.mrb[37].mxu1  ;;  %v15769_v48 = vld [vmem:[#allocation57_spill] sm:$0xff] }
 0x9c1   :  { %v7847_v41 = vadd.f32 %v7672_v49, %v15749_v29  ;;  %v15770_v49 = vld [vmem:[#allocation60_spill] sm:$0xff] }
 0x9c2   :  { %7912 = vst.msk [vmem:[%s14245_s3 + $0x128] sm:$0xff] %vm88_vm0, %v7848_v13 }
 0x9c3   :  { %7911 = vst.msk [vmem:[%s14245_s3 + $0x120] sm:$0xff] %vm88_vm0, %v7847_v41 }
 0x9cb   :  { %v8386_v51 = vpop.f32.mrb[38].mxu1 }
 0x9cc   :  { %v7850_v15 = vadd.f32 %v8386_v51, %v15750_v20  ;;  %v7682_v61 = vpop.f32.mrb[39].mxu1  ;;  %v15771_v51 = vld [vmem:[#allocation59_spill] sm:$0xff] }
 0x9cd   :  { %v7849_v52 = vadd.f32 %v7682_v61, %v15751_v19  ;;  %v15772_v61 = vld [vmem:[#allocation62_spill] sm:$0xff] }
 0x9ce   :  { %7914 = vst.msk [vmem:[%s14245_s3 + $0x138] sm:$0xff] %vm88_vm0, %v7850_v15 }
 0x9cf   :  { %7913 = vst.msk [vmem:[%s14245_s3 + $0x130] sm:$0xff] %vm88_vm0, %v7849_v52 }
 0x9d7   :  { %v8389_v4 = vpop.f32.mrb[40].mxu1 }
 0x9d8   :  { %v7852_v12 = vadd.f32 %v8389_v4, %v15752_v62  ;;  %v7692_v33 = vpop.f32.mrb[41].mxu1  ;;  %v15773_v4 = vld [vmem:[#allocation61_spill] sm:$0xff] }
 0x9d9   :  { %v7851_v17 = vadd.f32 %v7692_v33, %v15753_v36  ;;  %v15774_v33 = vld [vmem:[#allocation119_spill] sm:$0xff] }
 0x9da   :  { %7916 = vst.msk [vmem:[%s14245_s3 + $0x148] sm:$0xff] %vm88_vm0, %v7852_v12 }
 0x9db   :  { %7915 = vst.msk [vmem:[%s14245_s3 + $0x140] sm:$0xff] %vm88_vm0, %v7851_v17 }
 0x9e3   :  { %v8392_v32 = vpop.f32.mrb[42].mxu1 }
 0x9e4   :  { %v7854_v53 = vadd.f32 %v8392_v32, %v15754_v43  ;;  %v7702_v10 = vpop.f32.mrb[43].mxu1  ;;  %v15775_v32 = vld [vmem:[#allocation118_spill] sm:$0xff] }
 0x9e5   :  { %v7853_v31 = vadd.f32 %v7702_v10, %v15755_v50 }
 0x9e6   :  { %7918 = vst.msk [vmem:[%s14245_s3 + $0x158] sm:$0xff] %vm88_vm0, %v7854_v53 }
 0x9e7   :  { %7917 = vst.msk [vmem:[%s14245_s3 + $0x150] sm:$0xff] %vm88_vm0, %v7853_v31 }
 0x9ef   :  { %v8395_v40 = vpop.f32.mrb[44].mxu1 }
 0x9f0   :  { %v7856_v1 = vadd.f32 %v8395_v40, %v15756_v16  ;;  %v7712_v9 = vpop.f32.mrb[45].mxu1 }
 0x9f1   :  { %v7855_v47 = vadd.f32 %v7712_v9, %v15757_v7 }
 0x9f2   :  { %7920 = vst.msk [vmem:[%s14245_s3 + $0x168] sm:$0xff] %vm88_vm0, %v7856_v1 }
 0x9f3   :  { %7919 = vst.msk [vmem:[%s14245_s3 + $0x160] sm:$0xff] %vm88_vm0, %v7855_v47 }
 0x9fb   :  { %v8398_v38 = vpop.f32.mrb[46].mxu1 }
 0x9fc   :  { %v7858_v14 = vadd.f32 %v8398_v38, %v15758_v34  ;;  %v7722_v22 = vpop.f32.mrb[47].mxu1 }
 0x9fd   :  { %v7857_v23 = vadd.f32 %v7722_v22, %v15759_v8 }
 0x9fe   :  { %7922 = vst.msk [vmem:[%s14245_s3 + $0x178] sm:$0xff] %vm88_vm0, %v7858_v14 }
 0x9ff   :  { %7921 = vst.msk [vmem:[%s14245_s3 + $0x170] sm:$0xff] %vm88_vm0, %v7857_v23 }
 0xa07   :  { %v8401_v18 = vpop.f32.mrb[48].mxu1 }
 0xa08   :  { %v7860_v60 = vadd.f32 %v8401_v18, %v15760_v45  ;;  %v7732_v25 = vpop.f32.mrb[49].mxu1 }
 0xa09   :  { %v7859_v0 = vadd.f32 %v7732_v25, %v15761_v30 }
 0xa0a   :  { %7924 = vst.msk [vmem:[%s14245_s3 + $0x188] sm:$0xff] %vm88_vm0, %v7860_v60 }
 0xa0b   :  { %7923 = vst.msk [vmem:[%s14245_s3 + $0x180] sm:$0xff] %vm88_vm0, %v7859_v0 }
 0xa13   :  { %v8404_v46 = vpop.f32.mrb[50].mxu1 }
 0xa14   :  { %v7862_v58 = vadd.f32 %v8404_v46, %v15762_v44  ;;  %v7742_v2 = vpop.f32.mrb[51].mxu1 }
 0xa15   :  { %v7861_v37 = vadd.f32 %v7742_v2, %v15763_v5 }
 0xa16   :  { %7926 = vst.msk [vmem:[%s14245_s3 + $0x198] sm:$0xff] %vm88_vm0, %v7862_v58 }
 0xa17   :  { %7925 = vst.msk [vmem:[%s14245_s3 + $0x190] sm:$0xff] %vm88_vm0, %v7861_v37 }
 0xa1f   :  { %v8407_v35 = vpop.f32.mrb[52].mxu1 }
 0xa20   :  { %v7864_v56 = vadd.f32 %v8407_v35, %v15764_v26  ;;  %v7752_v55 = vpop.f32.mrb[53].mxu1 }
 0xa21   :  { %v7863_v11 = vadd.f32 %v7752_v55, %v15765_v27 }
 0xa22   :  { %7928 = vst.msk [vmem:[%s14245_s3 + $0x1a8] sm:$0xff] %vm88_vm0, %v7864_v56 }
 0xa23   :  { %7927 = vst.msk [vmem:[%s14245_s3 + $0x1a0] sm:$0xff] %vm88_vm0, %v7863_v11 }
 0xa2e   :  { %v8410_v28 = vpop.f32.mrb[54].mxu1 }
 0xa2f   :  { %v7866_v6 = vadd.f32 %v8410_v28, %v15766_v39  ;;  %v7762_v57 = vpop.f32.mrb[55].mxu1 }
 0xa30   :  { %v7865_v59 = vadd.f32 %v7762_v57, %v15767_v54 }
 0xa31   :  { %7930 = vst.msk [vmem:[%s14245_s3 + $0x1b8] sm:$0xff] %vm88_vm0, %v7866_v6 }
 0xa32   :  { %7929 = vst.msk [vmem:[%s14245_s3 + $0x1b0] sm:$0xff] %vm88_vm0, %v7865_v59 }
 0xa3e   :  { %v8413_v3 = vpop.f32.mrb[56].mxu1 }
 0xa3f   :  { %v7868_v63 = vadd.f32 %v8413_v3, %v15768_v42  ;;  %v7772_v21 = vpop.f32.mrb[57].mxu1 }
 0xa40   :  { %v7867_v24 = vadd.f32 %v7772_v21, %v15769_v48 }
 0xa41   :  { %7932 = vst.msk [vmem:[%s14245_s3 + $0x1c8] sm:$0xff] %vm88_vm0, %v7868_v63 }
 0xa42   :  { %7931 = vst.msk [vmem:[%s14245_s3 + $0x1c0] sm:$0xff] %vm88_vm0, %v7867_v24 }
 0xa4e   :  { %v8416_v13 = vpop.f32.mrb[58].mxu1 }
 0xa4f   :  { %v7870_v29 = vadd.f32 %v8416_v13, %v15770_v49  ;;  %v7782_v41 = vpop.f32.mrb[59].mxu1 }
 0xa50   :  { %v7869_v20 = vadd.f32 %v7782_v41, %v15771_v51 }
 0xa51   :  { %7934 = vst.msk [vmem:[%s14245_s3 + $0x1d8] sm:$0xff] %vm88_vm0, %v7870_v29 }
 0xa52   :  { %7933 = vst.msk [vmem:[%s14245_s3 + $0x1d0] sm:$0xff] %vm88_vm0, %v7869_v20 }
 0xa5e   :  { %v8419_v15 = vpop.f32.mrb[60].mxu1 }
 0xa5f   :  { %v7872_v19 = vadd.f32 %v8419_v15, %v15772_v61  ;;  %v7792_v52 = vpop.f32.mrb[61].mxu1 }
 0xa60   :  { %v7871_v62 = vadd.f32 %v7792_v52, %v15773_v4 }
 0xa61   :  { %7936 = vst.msk [vmem:[%s14245_s3 + $0x1e8] sm:$0xff] %vm88_vm0, %v7872_v19 }
 0xa62   :  { %7935 = vst.msk [vmem:[%s14245_s3 + $0x1e0] sm:$0xff] %vm88_vm0, %v7871_v62 }
 0xa6b   :  { %v8422_v12 = vpop.f32.mrb[62].mxu1 }
 0xa6c   :  { %v7874_v36 = vadd.f32 %v8422_v12, %v15774_v33  ;;  %v7802_v17 = vpop.f32.mrb[63].mxu1 }
 0xa6d   :  { %v7873_v43 = vadd.f32 %v7802_v17, %v15775_v32 }
 0xa6e   :  { %7938 = vst.msk [vmem:[%s14245_s3 + $0x1f8] sm:$0xff] %vm88_vm0, %v7874_v36 }
 0xa6f   :  { %7937 = vst.msk [vmem:[%s14245_s3 + $0x1f0] sm:$0xff] %vm88_vm0, %v7873_v43 }

</bundles_post_ra>
